<compile_context>
chip_gen: v6e
topology: v6e:2x2x1
jax: 0.10.0
libtpu: 0.0.40
codegen_flags: <defaults>
</compile_context>

<pallas_src>
import math

import jax
import jax.numpy as jnp
from jax.experimental import pallas as pl
from jax.experimental.pallas import tpu as pltpu


def _round_up(x: int, m: int) -> int:
    return ((x + m - 1) // m) * m


def update_v_kernel(hits_ref, i_ref, e2_ref, w_up_t_ref, b_up_ref,
                    w_layers_t_ref, b_layers_ref, w_out_t_ref,
                    o_ref, acc_ref):
    n_tile = acc_ref.shape[0]
    e_tile = i_ref.shape[1]
    num_output_layers = w_layers_t_ref.shape[0]
    mxu_dtype = w_up_t_ref.dtype          # MXU operand dtype (bf16 or f32)
    # Full precision only matters for the f32 path; bf16 MXU is single-pass anyway.
    prec = (jax.lax.Precision.HIGHEST
            if jnp.dtype(mxu_dtype) == jnp.dtype(jnp.float32) else None)

    n_step = pl.program_id(0)
    e_step = pl.program_id(1)
    num_e_tiles = pl.num_programs(1)

    # First edge tile for this node tile: zero the segment-sum accumulator.
    @pl.when(e_step == 0)
    def _():
        acc_ref[...] = jnp.zeros_like(acc_ref)

    # ---- segment sum of this edge tile (scatter e2 rows onto node rows) ----
    # Skip the whole tile if no edge in it maps to this node tile (SMEM scalar).
    @pl.when(hits_ref[n_step * num_e_tiles + e_step] > 0)
    def _():
        # One-hot built directly in (N_tile, E_tile) layout: no XLU transpose.
        idx = i_ref[...]                                           # (1, E_tile) int32
        node_base = n_step * n_tile
        node_ids = node_base + jax.lax.broadcasted_iota(
            jnp.int32, (n_tile, e_tile), 0)                        # (N_tile, E_tile)
        onehot = (idx == node_ids).astype(mxu_dtype)               # 0/1, exact in bf16
        acc_ref[...] += jnp.dot(onehot, e2_ref[...].astype(mxu_dtype),
                                precision=prec,
                                preferred_element_type=jnp.float32)  # f32 accumulation

    # ---- last edge tile: run the output MLP on the accumulated node features ----
    @pl.when(e_step == num_e_tiles - 1)
    def _():
        v = acc_ref[...]                                           # (N_tile, hidden) f32
        # lin_up: Linear(hidden -> out_emb), bias=True
        v = jnp.dot(v.astype(mxu_dtype), w_up_t_ref[...], precision=prec,
                    preferred_element_type=jnp.float32) + b_up_ref[...]
        # num_output_layers x (Linear(out_emb -> out_emb) + swish); elementwise f32
        for l in range(num_output_layers):
            h = jnp.dot(v.astype(mxu_dtype), w_layers_t_ref[l], precision=prec,
                        preferred_element_type=jnp.float32) + b_layers_ref[l]
            v = h * jax.nn.sigmoid(h)
        # final projection: Linear(out_emb -> out_channels_padded), bias=False
        o_ref[...] = jnp.dot(v.astype(mxu_dtype), w_out_t_ref[...], precision=prec,
                             preferred_element_type=jnp.float32).astype(o_ref.dtype)


def update_v_forward(i, e2, w_up, b_up, w_layers, b_layers, w_out, *,
                     num_nodes, n_tile=128, e_tile=256,
                     matmul_dtype=jnp.bfloat16,
                     vmem_limit_bytes=32 * 1024 * 1024):
    """i: [E] int32 edge->node index, e2: [E, hidden]. Weights in PyTorch
    (out_features, in_features) convention; transposed/cast here."""
    E, hidden = e2.shape
    L = w_layers.shape[0]
    out_emb = w_up.shape[0]
    out_ch = w_out.shape[0]

    # --- pad: edges to e_tile, nodes to n_tile, output lanes to 128 ---
    E_pad = _round_up(max(E, e_tile), e_tile)
    N_pad = _round_up(max(num_nodes, n_tile), n_tile)
    out_ch_pad = _round_up(out_ch, 128)

    # Padded edge rows of e2 are zero, so their (dummy 0) index contributes nothing.
    e2_p = jnp.zeros((E_pad, hidden), matmul_dtype).at[:E].set(e2.astype(matmul_dtype))
    i_p = jnp.zeros((1, E_pad), jnp.int32).at[0, :E].set(i.astype(jnp.int32))

    # Weights pre-transposed (x @ W_t) and cast to the MXU operand dtype.
    w_up_t = jnp.transpose(w_up).astype(matmul_dtype)                      # (hidden, out_emb)
    w_layers_t = jnp.transpose(w_layers, (0, 2, 1)).astype(matmul_dtype)   # (L, out_emb, out_emb)
    w_out_t = jnp.zeros((out_emb, out_ch_pad), matmul_dtype).at[:, :out_ch].set(
        jnp.transpose(w_out).astype(matmul_dtype))                         # lane-dense output
    b_up2d = b_up.reshape(1, out_emb).astype(jnp.float32)
    b_layers3d = b_layers.reshape(L, 1, out_emb).astype(jnp.float32)

    n_tiles = N_pad // n_tile
    e_tiles = E_pad // e_tile

    # Per-(node_tile, edge_tile) hit table (scalar-prefetched to SMEM): lets the
    # kernel skip edge tiles that contribute nothing to the current node tile.
    edge_tile_of = jnp.arange(E_pad, dtype=jnp.int32) // e_tile            # (E_pad,)
    node_tile_of = i_p[0] // n_tile                                        # (E_pad,)
    valid = (jnp.arange(E_pad) < E).astype(jnp.int32)
    hits = jnp.zeros((n_tiles, e_tiles), jnp.int32).at[
        node_tile_of, edge_tile_of].max(valid)
    hits_flat = hits.reshape(-1)                                           # 1-D SMEM friendly

    itemsize = jnp.dtype(matmul_dtype).itemsize
    flops = (2 * E_pad * N_pad * hidden
             + 2 * N_pad * (hidden * out_emb + L * out_emb * out_emb
                            + out_emb * out_ch_pad))
    bytes_accessed = (n_tiles * E_pad * hidden * itemsize + n_tiles * E_pad * 4
                      + N_pad * out_ch_pad * 4
                      + (w_up_t.size + w_layers_t.size + w_out_t.size) * itemsize
                      + (b_up2d.size + b_layers3d.size) * 4)
    cost = pl.CostEstimate(flops=int(flops),
                           transcendentals=int(N_pad * out_emb * L),
                           bytes_accessed=int(bytes_accessed))

    # TODO(synk): for very large graphs, pre-sort edges by destination node and
    # pass CSR-style offsets via the scalar-prefetch index_map so each node tile
    # streams only its own edges (removes the factor-n_tiles HBM re-read of e2
    # and the dense one-hot FLOP blowup).
    out_p = pl.pallas_call(
        update_v_kernel,
        out_shape=jax.ShapeDtypeStruct((N_pad, out_ch_pad), jnp.float32),
        grid_spec=pltpu.PrefetchScalarGridSpec(
            num_scalar_prefetch=1,                # hits table -> SMEM
            grid=(n_tiles, e_tiles),              # node axis parallel, edge axis = reduction (last)
            in_specs=[
                pl.BlockSpec((1, e_tile), lambda n, e, h: (0, e)),        # edge->node indices
                pl.BlockSpec((e_tile, hidden), lambda n, e, h: (e, 0)),   # e2 stream
                pl.BlockSpec((hidden, out_emb), lambda n, e, h: (0, 0)),  # weights stay resident
                pl.BlockSpec((1, out_emb), lambda n, e, h: (0, 0)),
                pl.BlockSpec((L, out_emb, out_emb), lambda n, e, h: (0, 0, 0)),
                pl.BlockSpec((L, 1, out_emb), lambda n, e, h: (0, 0, 0)),
                pl.BlockSpec((out_emb, out_ch_pad), lambda n, e, h: (0, 0)),
            ],
            out_specs=pl.BlockSpec((n_tile, out_ch_pad), lambda n, e, h: (n, 0)),
            scratch_shapes=[pltpu.VMEM((n_tile, hidden), jnp.float32)],
        ),
        compiler_params=pltpu.CompilerParams(
            dimension_semantics=("parallel", "arbitrary"),
            vmem_limit_bytes=vmem_limit_bytes),
        cost_estimate=cost,
    )(hits_flat, i_p, e2_p, w_up_t, b_up2d, w_layers_t, b_layers3d, w_out_t)

    return out_p[:num_nodes, :out_ch]


def _glorot_orthogonal_like(key, shape, scale=2.0):
    # Deterministic stand-in for glorot_orthogonal: normal scaled so that
    # variance = scale * 2 / (fan_in + fan_out).
    fan_out, fan_in = shape
    std = math.sqrt(scale * 2.0 / (fan_in + fan_out))
    return std * jax.random.normal(key, shape, dtype=jnp.float32)


def _reference(i, e2, w_up, b_up, w_layers, b_layers, w_out, num_nodes,
               matmul_dtype=jnp.float32):
    """Pure-JAX reference matching the PyTorch module. matmul_dtype=bf16
    emulates the kernel's MXU-operand rounding points (accumulation in f32)."""
    md = matmul_dtype
    hi = jax.lax.Precision.HIGHEST
    v = jax.ops.segment_sum(e2.astype(md).astype(jnp.float32), i,
                            num_segments=num_nodes)
    v = jnp.dot(v.astype(md), w_up.T.astype(md), precision=hi,
                preferred_element_type=jnp.float32) + b_up
    for l in range(w_layers.shape[0]):
        h = jnp.dot(v.astype(md), w_layers[l].T.astype(md), precision=hi,
                    preferred_element_type=jnp.float32) + b_layers[l]
        v = h * jax.nn.sigmoid(h)
    return jnp.dot(v.astype(md), w_out.T.astype(md), precision=hi,
                   preferred_element_type=jnp.float32)


if __name__ == "__main__":
    # Small shapes consistent with the module (DimeNet-style output block).
    E = 384                     # edges (not a multiple of e_tile -> exercises edge padding)
    N = 200                     # nodes (not a multiple of n_tile -> exercises node padding)
    hidden_channels = 128
    out_emb_channels = 128
    out_channels = 8            # small -> exercises lane-padding of the output projection
    num_output_layers = 2

    key = jax.random.PRNGKey(0)
    k_e1, k_e2, k_i, k_up, k_lin, k_out = jax.random.split(key, 6)

    e1 = jax.random.normal(k_e1, (E, hidden_channels), jnp.float32)  # unused by the module
    e2 = jax.random.normal(k_e2, (E, hidden_channels), jnp.float32)
    i = jax.random.randint(k_i, (E,), 0, N, jnp.int32)

    # Parameters (PyTorch convention: weight is (out_features, in_features)).
    w_up = _glorot_orthogonal_like(k_up, (out_emb_channels, hidden_channels))
    b_up = jnp.zeros((out_emb_channels,), jnp.float32)
    layer_keys = jax.random.split(k_lin, num_output_layers)
    w_layers = jnp.stack([
        _glorot_orthogonal_like(layer_keys[l], (out_emb_channels, out_emb_channels))
        for l in range(num_output_layers)])
    b_layers = jnp.zeros((num_output_layers, out_emb_channels), jnp.float32)
    # output_init == 'GlorotOrthogonal'
    w_out = _glorot_orthogonal_like(k_out, (out_channels, out_emb_channels))

    e = (e1, e2)

    # --- f32 path: faithful to the PyTorch module's numerics ---
    out_f32 = update_v_forward(i, e[1], w_up, b_up, w_layers, b_layers, w_out,
                               num_nodes=N, matmul_dtype=jnp.float32)
    out_f32 = jax.block_until_ready(out_f32)
    ref_f32 = _reference(i, e2, w_up, b_up, w_layers, b_layers, w_out, N,
                         matmul_dtype=jnp.float32)
    assert out_f32.shape == (N, out_channels)
    assert jnp.allclose(out_f32, ref_f32, atol=5e-3, rtol=5e-3), "f32 mismatch vs reference"

    # --- default bf16-MXU path (v6e/v7x fast path), f32 accumulation ---
    out_bf16 = update_v_forward(i, e[1], w_up, b_up, w_layers, b_layers, w_out,
                                num_nodes=N)   # matmul_dtype = bf16 (default)
    out_bf16 = jax.block_until_ready(out_bf16)
    ref_bf16 = _reference(i, e2, w_up, b_up, w_layers, b_layers, w_out, N,
                          matmul_dtype=jnp.bfloat16)
    assert out_bf16.shape == (N, out_channels)
    assert jnp.allclose(out_bf16, ref_bf16, atol=2e-2, rtol=2e-2), "bf16 mismatch vs reference"

    print("KERNEL_OK")
</pallas_src>

<mosaic_0001>
module attributes {stable_mosaic.version = 11 : i64} {
  func.func @update_v_kernel(%arg0: i32, %arg1: i32, %arg2: memref<4xi32, #tpu.memory_space<smem>>, %arg3: memref<1x256xi32, #tpu.memory_space<vmem>>, %arg4: memref<256x128xf32, #tpu.memory_space<vmem>>, %arg5: memref<128x128xf32, #tpu.memory_space<vmem>>, %arg6: memref<1x128xf32, #tpu.memory_space<vmem>>, %arg7: memref<2x128x128xf32, #tpu.memory_space<vmem>>, %arg8: memref<2x1x128xf32, #tpu.memory_space<vmem>>, %arg9: memref<128x128xf32, #tpu.memory_space<vmem>>, %arg10: memref<128x128xf32, #tpu.memory_space<vmem>>, %arg11: memref<128x128xf32, #tpu.memory_space<vmem>>) attributes {dimension_semantics = [#tpu.dimension_semantics<parallel>, #tpu.dimension_semantics<arbitrary>], iteration_bounds = array<i64: 2, 2>, scalar_prefetch = 1 : i64, scratch_operands = 1 : i64, tpu.core_type = #tpu.core_type<tc>, window_params = [{transform_indices = @transform_0, window_bounds = array<i64: 1, 256>}, {transform_indices = @transform_1, window_bounds = array<i64: 256, 128>}, {pipeline_mode = #tpu.pipeline_mode<synchronous>, transform_indices = @transform_2, window_bounds = array<i64: 128, 128>}, {pipeline_mode = #tpu.pipeline_mode<synchronous>, transform_indices = @transform_3, window_bounds = array<i64: 1, 128>}, {pipeline_mode = #tpu.pipeline_mode<synchronous>, transform_indices = @transform_4, window_bounds = array<i64: 2, 128, 128>}, {pipeline_mode = #tpu.pipeline_mode<synchronous>, transform_indices = @transform_5, window_bounds = array<i64: 2, 1, 128>}, {pipeline_mode = #tpu.pipeline_mode<synchronous>, transform_indices = @transform_6, window_bounds = array<i64: 128, 128>}, {transform_indices = @transform_7, window_bounds = array<i64: 128, 128>}]} {
    %c0_i32 = arith.constant 0 : i32
    %0 = arith.cmpi eq, %arg1, %c0_i32 : i32
    %1 = arith.extui %0 : i1 to i32
    %c0_i32_0 = arith.constant 0 : i32
    %2 = arith.cmpi ne, %1, %c0_i32_0 : i32
    scf.if %2 {
      %cst = arith.constant 0.000000e+00 : f32
      %13 = vector.broadcast %cst : f32 to vector<128x128xf32>
      %c0 = arith.constant 0 : index
      %c0_4 = arith.constant 0 : index
      %14 = vector.load %arg11[%c0, %c0_4] : memref<128x128xf32, #tpu.memory_space<vmem>>, vector<128x128xf32>
      tpu.vector_store %arg11[%c0, %c0_4], %13 {strides = array<i32>} : memref<128x128xf32, #tpu.memory_space<vmem>>, vector<128x128xf32>,
    } else {
    }
    %c2_i32 = arith.constant 2 : i32
    %3 = arith.muli %arg0, %c2_i32 : i32
    %4 = arith.addi %3, %arg1 : i32
    %5 = arith.index_cast %4 : i32 to index
    %6 = memref.load %arg2[%5] : memref<4xi32, #tpu.memory_space<smem>>
    %c0_i32_1 = arith.constant 0 : i32
    %7 = arith.cmpi sgt, %6, %c0_i32_1 : i32
    %8 = arith.extui %7 : i1 to i32
    %c0_i32_2 = arith.constant 0 : i32
    %9 = arith.cmpi ne, %8, %c0_i32_2 : i32
    scf.if %9 {
      %c0 = arith.constant 0 : index
      %c0_4 = arith.constant 0 : index
      %13 = vector.load %arg3[%c0, %c0_4] : memref<1x256xi32, #tpu.memory_space<vmem>>, vector<1x256xi32>
      %c128_i32 = arith.constant 128 : i32
      %14 = arith.muli %arg0, %c128_i32 : i32
      %15 = tpu.iota {dimensions = array<i32: 0>} : vector<128x256xi32>
      %16 = vector.broadcast %14 : i32 to vector<128x256xi32>
      %17 = arith.addi %16, %15 : vector<128x256xi32>
      %18 = vector.broadcast %13 : vector<1x256xi32> to vector<128x256xi32>
      %19 = arith.cmpi eq, %18, %17 : vector<128x256xi32>
      %20 = arith.extui %19 : vector<128x256xi1> to vector<128x256xi32>
      %21 = arith.sitofp %20 : vector<128x256xi32> to vector<128x256xf32>
      %c0_5 = arith.constant 0 : index
      %c0_6 = arith.constant 0 : index
      %22 = vector.load %arg11[%c0_5, %c0_6] : memref<128x128xf32, #tpu.memory_space<vmem>>, vector<128x128xf32>
      %c0_7 = arith.constant 0 : index
      %c0_8 = arith.constant 0 : index
      %23 = vector.load %arg4[%c0_7, %c0_8] : memref<256x128xf32, #tpu.memory_space<vmem>>, vector<256x128xf32>
      %cst = arith.constant dense<0.000000e+00> : vector<128x128xf32>
      %24 = tpu.matmul %21, %23, %cst {dimension_numbers = #tpu.dot_dimension_numbers<[1], [0], [0], [1], [0, 0, 1, 1], [], []>, precision = #tpu.contract_precision<fp32>} : vector<128x256xf32>, vector<256x128xf32>, vector<128x128xf32> -> vector<128x128xf32>
      %25 = arith.addf %22, %24 : vector<128x128xf32>
      %c0_9 = arith.constant 0 : index
      %c0_10 = arith.constant 0 : index
      %26 = vector.load %arg11[%c0_9, %c0_10] : memref<128x128xf32, #tpu.memory_space<vmem>>, vector<128x128xf32>
      tpu.vector_store %arg11[%c0_9, %c0_10], %25 {strides = array<i32>} : memref<128x128xf32, #tpu.memory_space<vmem>>, vector<128x128xf32>,
    } else {
    }
    %c1_i32 = arith.constant 1 : i32
    %10 = arith.cmpi eq, %arg1, %c1_i32 : i32
    %11 = arith.extui %10 : i1 to i32
    %c0_i32_3 = arith.constant 0 : i32
    %12 = arith.cmpi ne, %11, %c0_i32_3 : i32
    scf.if %12 {
      %c0 = arith.constant 0 : index
      %c0_4 = arith.constant 0 : index
      %13 = vector.load %arg11[%c0, %c0_4] : memref<128x128xf32, #tpu.memory_space<vmem>>, vector<128x128xf32>
      %c0_5 = arith.constant 0 : index
      %c0_6 = arith.constant 0 : index
      %14 = vector.load %arg5[%c0_5, %c0_6] : memref<128x128xf32, #tpu.memory_space<vmem>>, vector<128x128xf32>
      %cst = arith.constant dense<0.000000e+00> : vector<128x128xf32>
      %15 = tpu.matmul %13, %14, %cst {dimension_numbers = #tpu.dot_dimension_numbers<[1], [0], [0], [1], [0, 0, 1, 1], [], []>, precision = #tpu.contract_precision<fp32>} : vector<128x128xf32>, vector<128x128xf32>, vector<128x128xf32> -> vector<128x128xf32>
      %c0_7 = arith.constant 0 : index
      %c0_8 = arith.constant 0 : index
      %16 = vector.load %arg6[%c0_7, %c0_8] : memref<1x128xf32, #tpu.memory_space<vmem>>, vector<1x128xf32>
      %17 = vector.broadcast %16 : vector<1x128xf32> to vector<128x128xf32>
      %18 = arith.addf %15, %17 : vector<128x128xf32>
      %c0_9 = arith.constant 0 : index
      %c0_10 = arith.constant 0 : index
      %c0_11 = arith.constant 0 : index
      %19 = vector.load %arg7[%c0_9, %c0_10, %c0_11] : memref<2x128x128xf32, #tpu.memory_space<vmem>>, vector<1x128x128xf32>
      %20 = vector.shape_cast %19 : vector<1x128x128xf32> to vector<128x128xf32>
      %cst_12 = arith.constant dense<0.000000e+00> : vector<128x128xf32>
      %21 = tpu.matmul %18, %20, %cst_12 {dimension_numbers = #tpu.dot_dimension_numbers<[1], [0], [0], [1], [0, 0, 1, 1], [], []>, precision = #tpu.contract_precision<fp32>} : vector<128x128xf32>, vector<128x128xf32>, vector<128x128xf32> -> vector<128x128xf32>
      %c0_13 = arith.constant 0 : index
      %c0_14 = arith.constant 0 : index
      %c0_15 = arith.constant 0 : index
      %22 = vector.load %arg8[%c0_13, %c0_14, %c0_15] : memref<2x1x128xf32, #tpu.memory_space<vmem>>, vector<1x1x128xf32>
      %23 = vector.shape_cast %22 : vector<1x1x128xf32> to vector<1x128xf32>
      %24 = vector.broadcast %23 : vector<1x128xf32> to vector<128x128xf32>
      %25 = arith.addf %21, %24 : vector<128x128xf32>
      %26 = arith.negf %25 : vector<128x128xf32>
      %27 = math.exp %26 : vector<128x128xf32>
      %cst_16 = arith.constant 1.000000e+00 : f32
      %28 = vector.broadcast %cst_16 : f32 to vector<128x128xf32>
      %29 = arith.addf %28, %27 : vector<128x128xf32>
      %30 = arith.divf %28, %29 : vector<128x128xf32>
      %31 = arith.mulf %25, %30 : vector<128x128xf32>
      %c1 = arith.constant 1 : index
      %c0_17 = arith.constant 0 : index
      %c0_18 = arith.constant 0 : index
      %32 = vector.load %arg7[%c1, %c0_17, %c0_18] : memref<2x128x128xf32, #tpu.memory_space<vmem>>, vector<1x128x128xf32>
      %33 = vector.shape_cast %32 : vector<1x128x128xf32> to vector<128x128xf32>
      %cst_19 = arith.constant dense<0.000000e+00> : vector<128x128xf32>
      %34 = tpu.matmul %31, %33, %cst_19 {dimension_numbers = #tpu.dot_dimension_numbers<[1], [0], [0], [1], [0, 0, 1, 1], [], []>, precision = #tpu.contract_precision<fp32>} : vector<128x128xf32>, vector<128x128xf32>, vector<128x128xf32> -> vector<128x128xf32>
      %c1_20 = arith.constant 1 : index
      %c0_21 = arith.constant 0 : index
      %c0_22 = arith.constant 0 : index
      %35 = vector.load %arg8[%c1_20, %c0_21, %c0_22] : memref<2x1x128xf32, #tpu.memory_space<vmem>>, vector<1x1x128xf32>
      %36 = vector.shape_cast %35 : vector<1x1x128xf32> to vector<1x128xf32>
      %37 = vector.broadcast %36 : vector<1x128xf32> to vector<128x128xf32>
      %38 = arith.addf %34, %37 : vector<128x128xf32>
      %39 = arith.negf %38 : vector<128x128xf32>
      %40 = math.exp %39 : vector<128x128xf32>
      %cst_23 = arith.constant 1.000000e+00 : f32
      %41 = vector.broadcast %cst_23 : f32 to vector<128x128xf32>
      %42 = arith.addf %41, %40 : vector<128x128xf32>
      %43 = arith.divf %41, %42 : vector<128x128xf32>
      %44 = arith.mulf %38, %43 : vector<128x128xf32>
      %c0_24 = arith.constant 0 : index
      %c0_25 = arith.constant 0 : index
      %45 = vector.load %arg9[%c0_24, %c0_25] : memref<128x128xf32, #tpu.memory_space<vmem>>, vector<128x128xf32>
      %cst_26 = arith.constant dense<0.000000e+00> : vector<128x128xf32>
      %46 = tpu.matmul %44, %45, %cst_26 {dimension_numbers = #tpu.dot_dimension_numbers<[1], [0], [0], [1], [0, 0, 1, 1], [], []>, precision = #tpu.contract_precision<fp32>} : vector<128x128xf32>, vector<128x128xf32>, vector<128x128xf32> -> vector<128x128xf32>
      %c0_27 = arith.constant 0 : index
      %c0_28 = arith.constant 0 : index
      %47 = vector.load %arg10[%c0_27, %c0_28] : memref<128x128xf32, #tpu.memory_space<vmem>>, vector<128x128xf32>
      tpu.vector_store %arg10[%c0_27, %c0_28], %46 {strides = array<i32>} : memref<128x128xf32, #tpu.memory_space<vmem>>, vector<128x128xf32>,
    } else {
    }
    return
  }
  func.func @transform_0(%arg0: i32, %arg1: i32, %arg2: memref<4xi32, #tpu.memory_space<smem>>) -> (i32, i32) {
    %c0_i32 = arith.constant 0 : i32
    %c0_i32_0 = arith.constant 0 : i32
    return %c0_i32, %arg1 : i32, i32
  }
  func.func @transform_1(%arg0: i32, %arg1: i32, %arg2: memref<4xi32, #tpu.memory_space<smem>>) -> (i32, i32) {
    %c0_i32 = arith.constant 0 : i32
    %c0_i32_0 = arith.constant 0 : i32
    return %arg1, %c0_i32 : i32, i32
  }
  func.func @transform_2(%arg0: i32, %arg1: i32, %arg2: memref<4xi32, #tpu.memory_space<smem>>) -> (i32, i32) {
    %c0_i32 = arith.constant 0 : i32
    %c0_i32_0 = arith.constant 0 : i32
    %c0_i32_1 = arith.constant 0 : i32
    return %c0_i32, %c0_i32_0 : i32, i32
  }
  func.func @transform_3(%arg0: i32, %arg1: i32, %arg2: memref<4xi32, #tpu.memory_space<smem>>) -> (i32, i32) {
    %c0_i32 = arith.constant 0 : i32
    %c0_i32_0 = arith.constant 0 : i32
    %c0_i32_1 = arith.constant 0 : i32
    return %c0_i32, %c0_i32_0 : i32, i32
  }
  func.func @transform_4(%arg0: i32, %arg1: i32, %arg2: memref<4xi32, #tpu.memory_space<smem>>) -> (i32, i32, i32) {
    %c0_i32 = arith.constant 0 : i32
    %c0_i32_0 = arith.constant 0 : i32
    %c0_i32_1 = arith.constant 0 : i32
    %c0_i32_2 = arith.constant 0 : i32
    return %c0_i32, %c0_i32_0, %c0_i32_1 : i32, i32, i32
  }
  func.func @transform_5(%arg0: i32, %arg1: i32, %arg2: memref<4xi32, #tpu.memory_space<smem>>) -> (i32, i32, i32) {
    %c0_i32 = arith.constant 0 : i32
    %c0_i32_0 = arith.constant 0 : i32
    %c0_i32_1 = arith.constant 0 : i32
    %c0_i32_2 = arith.constant 0 : i32
    return %c0_i32, %c0_i32_0, %c0_i32_1 : i32, i32, i32
  }
  func.func @transform_6(%arg0: i32, %arg1: i32, %arg2: memref<4xi32, #tpu.memory_space<smem>>) -> (i32, i32) {
    %c0_i32 = arith.constant 0 : i32
    %c0_i32_0 = arith.constant 0 : i32
    %c0_i32_1 = arith.constant 0 : i32
    return %c0_i32, %c0_i32_0 : i32, i32
  }
  func.func @transform_7(%arg0: i32, %arg1: i32, %arg2: memref<4xi32, #tpu.memory_space<smem>>) -> (i32, i32) {
    %c0_i32 = arith.constant 0 : i32
    %c0_i32_0 = arith.constant 0 : i32
    return %arg0, %c0_i32 : i32, i32
  }
}

</mosaic_0001>

<bundles_post_ra>
// kernel: tpu_custom_call.1
= control target key start
LH: loop header
LB: loop body
LE: loop exit
PB: predicated region body
PF: predicated region fallthrough
CT: control target
= control target key end

     0   :  { %s11328_s27 = smov [#allocation4]   ;;  %s16538_s0 = inlined_call_operand.hbm [shape: s32[4], index: 0, kind: input, shape index: {}]   ;;  %s16539_s1 = inlined_call_operand.hbm [shape: s32[1,512], index: 1, kind: input, shape index: {}]   ;;  %s16540_s2 = inlined_call_operand.hbm [shape: f32[512,128], index: 2, kind: input, shape index: {}]   ;;  %s16541_s3 = inlined_call_operand.hbm [shape: f32[128,128], index: 3, kind: input, shape index: {}]   ;;  %s16542_s4 = inlined_call_operand.vmem [shape: f32[1,128], index: 4, kind: input, shape index: {}]   ;;  %s16543_s5 = inlined_call_operand.hbm [shape: f32[2,128,128], index: 5, kind: input, shape index: {}]   ;;  %s16544_s6 = inlined_call_operand.vmem [shape: f32[2,1,128], index: 6, kind: input, shape index: {}]   ;;  %s16545_s7 = inlined_call_operand.hbm [shape: f32[128,128], index: 7, kind: input, shape index: {}]   ;;  %s16546_s8 = inlined_call_operand.hbm [shape: f32[256,128], index: 8, kind: output, shape index: {}]  }
   0x1   :  { %17092 = sst [smem:[#allocation155_spill]] %s16539_s1 }
   0x2   :  { %17093 = sst [smem:[#allocation156_spill]] %s16541_s3 }
   0x3   :  { %17094 = sst [smem:[#allocation157_spill]] %s16543_s5 }
   0x4   :  { %17095 = sst [smem:[#allocation158_spill]] %s16544_s6 }
   0x5   :  { %17096 = sst [smem:[#allocation159_spill]] %s16545_s7 }
   0x6   :  { %17097 = sst [smem:[#allocation160_spill]] %s16546_s8 }
   0x7   :  { %14 = dma.hbm_to_smem %s16538_s0, 16, %s11328_s27, [#allocation3] }
   0x8   :  { %11262 = dma.done.wait [#allocation3], 16 }
   0x9   :  { %11263 = vsyncadd [#allocation3], 4294967280 }
   0xa   :  { %16 = sfence }
   0xb   :  { %17 = vsyncpa [#allocation6], 0 }
   0xc   :  { %19 = vsyncpa [#allocation6 + $0x1], 0 }
   0xd   :  { %20 = vsyncpa [#allocation9], 0 }
   0xe   :  { %22 = vsyncpa [#allocation9 + $0x1], 0 }
   0xf   :  { %23 = vsyncpa [#allocation12], 0 }
  0x10   :  { %24 = vsyncpa [#allocation7], 0 }
  0x11   :  { %26 = vsyncpa [#allocation7 + $0x1], 0  ;;  %s11390_s30 = smov 0   ;;  %s11392_s9 = smov 0  }
  0x12   :  { %s11394_s10 = smov 0   ;;  %s11396_s11 = smov 0  }
  0x13   :  { %s11398_s12 = smov 0   ;;  %s11400_s0 = smov 0  }
  0x14   :  { %s11402_s13 = smov 0   ;;  %s11404_s14 = smov 0  }
  0x15   :  { %s11406_s15 = smov 0   ;;  %s11408_s16 = smov 0  }
  0x16   :  { %s11410_s17 = smov 0  }
  0x17 LB: > { %17098 = sst [smem:[#allocation21_spill]] %s11286_s30  ;;  %s11444_s18 = sadd.s32 4294967295, %s11326_s17   ;;  %s11326_s17 = sphi %s11410_s17, %s32_s17   ;;  %s11322_s16 = sphi %s11408_s16, %s17910_s16   ;;  %s11318_s15 = sphi %s11406_s15, %s17918_s15   ;;  %s11314_s14 = sphi %s11404_s14, %s17908_s14   ;;  %s11310_s13 = sphi %s11402_s13, %s17917_s13   ;;  %s11306_s0 = sphi %s11400_s0, %s17916_s0   ;;  %s11302_s12 = sphi %s11398_s12, %s17915_s12   ;;  %s11298_s11 = sphi %s11396_s11, %s17914_s11   ;;  %s11294_s10 = sphi %s11394_s10, %s17913_s10   ;;  %s11290_s9 = sphi %s11392_s9, %s17912_s9   ;;  %s11286_s30 = sphi %s11390_s30, %s17911_s30  }
  0x18   : > { %17099 = sst [smem:[#allocation22_spill]] %s11322_s16  ;;  %s7988_s19 = sadd.s32 4294967294, %s11326_s17  }
  0x19   : > { %p64_p0 = scmp.ne.s32.totalorder %s11302_s12, %s11298_s11  ;;  %p16550_p1 = scmp.eq.s32.totalorder %s11444_s18, 0 }
  0x1a   : > { %p218_p2 = scmp.ne.s32.totalorder %s11294_s10, %s11290_s9  ;;  %p219_p4 = scmp.eq.s32.totalorder %s11444_s18, 3 }
  0x1b   : > { %p11454_p3 = por %p16550_p1, %p64_p0  ;;  %p224_p5 = scmp.ne.s32.totalorder %s11290_s9, %s11286_s30 }
  0x1c   : > { %p225_p6 = scmp.eq.s32.totalorder %s7988_s19, 3  ;;  %p11461_p7 = por %p219_p4, %p218_p2 }
  0x1d   : > { %p7989_p8 = scmp.ge.s32.totalorder %s11326_s17, 1  ;;  %p232_p10 = scmp.lt.s32.totalorder %s11326_s17, 5 }
  0x1e   : > { %s17101_s22 = scalar_select %p11461_p7, 1, 0 }
  0x1f   : > { %p11466_p9 = por %p225_p6, %p224_p5  ;;  %p11471_p11 = pnand %p7989_p8, %p232_p10 }
  0x20   : > { %17102 = sst [smem:[#allocation23_spill]] %s17101_s22  ;;  %s11329_s25 = smov [#allocation10]  }
  0x21   : > { %s17103_s23 = scalar_select %p11466_p9, 1, 0 }
  0x22   : > { %s244_s26 = sshll.u32 %s11329_s25, 4  ;;  %p10794_p12 = pneg %p11471_p11  ;;  %s245_s26 = int_to_ptr.vmem [resolvable:$true] %s244_s26 }
  0x23   : > { %17104 = sst [smem:[#allocation24_spill]] %s17103_s23  ;;  %s11330_s28 = smov [#allocation11]  }
  0x24   : > { %p11479_p13 = pnand %p10794_p12, %p16550_p1  ;;  %s260_s29 = sshll.u32 %s11330_s28, 4  ;;  %s261_s29 = int_to_ptr.vmem [resolvable:$true] %s260_s29 }
  0x25   : > { %s11331_s11 = smov [#allocation13]   ;;  %s11069_s20 = scalar_lea.vmem %s245_s26, 2048 }
  0x26   : > { %s276_s19 = sshll.u32 %s11331_s11, 4  ;;  %p11060_p0 = pneg %p11479_p13  ;;  %s277_s19 = int_to_ptr.vmem [resolvable:$true] %s276_s19 }
  0x27   : > { %p11070_p2 = scmp.ne.s32.totalorder %s245_s26, %s11069_s20  ;;  %p11077_p6 = scmp.lt.s32.totalorder %s245_s26, %s245_s26 }
  0x28   : > { %p11078_p8 = scmp.lt.s32.totalorder %s11069_s20, %s11069_s20 }
  0x29   : > { %p11072_p4 = pnand %p11070_p2, %p11060_p0 }
  0x2a   : > { %p11079_p10 = por %p11078_p8, %p11077_p6 }
  0x2b   : > { %p11073_p5 = pneg %p11072_p4 }
  0x2d   : > { %p11080_p12 = pnand %p11079_p10, %p11073_p5 }
  0x2f   : > { %11083 = shalt.err (!%p11080_p12)
}
  0x30   : > { %s16551_s25 = smov 128   ;;  %s16552_s28 = smov 8  }
  0x31   : > { %s17107_s3 = sld [smem:[#allocation156_spill]]  ;;  %s11095_s30 = scalar_lea.vmem %s261_s29, 4096 }
  0x32   : > { %p11096_p2 = scmp.ne.s32.totalorder %s261_s29, %s11095_s30  ;;  %p11103_p5 = scmp.lt.s32.totalorder %s261_s29, %s261_s29 }
  0x33   : > { %p11104_p8 = scmp.lt.s32.totalorder %s11095_s30, %s11095_s30 }
  0x34   : > { %p11098_p4 = pnand %p11096_p2, %p11060_p0 }
  0x35   : > { %p11105_p10 = por %p11104_p8, %p11103_p5 }
  0x36   : > { %p11099_p6 = pneg %p11098_p4 }
  0x37   : > { %10797 = dma.hbm_to_vmem [thread:$0]  (!%p11479_p13), %s17107_s3, 2048, %s245_s26, [#allocation9], %s16551_s25, %s16551_s25, %s16552_s28  }
  0x38   : > { %p11106_p12 = pnand %p11105_p10, %p11099_p6 }
  0x3a   : > { %11109 = shalt.err (!%p11106_p12)
}
  0x3b   : > { %s17108_s5 = sld [smem:[#allocation157_spill]]  ;;  %s11121_s23 = scalar_lea.vmem %s277_s19, 2048 }
  0x3c   : > { %p11122_p1 = scmp.ne.s32.totalorder %s277_s19, %s11121_s23  ;;  %p11129_p5 = scmp.lt.s32.totalorder %s277_s19, %s277_s19 }
  0x3d   : > { %p11130_p6 = scmp.lt.s32.totalorder %s11121_s23, %s11121_s23 }
  0x3e   : > { %p11124_p2 = pnand %p11122_p1, %p11060_p0 }
  0x3f   : > { %p11131_p8 = por %p11130_p6, %p11129_p5 }
  0x40   : > { %p11125_p4 = pneg %p11124_p2 }
  0x41   : > { %10800 = dma.hbm_to_vmem [thread:$0]  (!%p11479_p13), %s17108_s5, 4096, %s261_s29, [#allocation12], %s16551_s25, %s16551_s25, %s16552_s28  }
  0x42   : > { %p11132_p10 = pnand %p11131_p8, %p11125_p4 }
  0x44   : > { %11135 = shalt.err (!%p11132_p10)
}
  0x45   : > { %s17109_s7 = sld [smem:[#allocation159_spill]]  ;;  %s41_s26 = sadd.s32 1, %s11318_s15 }
  0x46   : > { %p42_p1 = scmp.ge.s32.totalorder %s41_s26, 2  ;;  %s44_s27 = sadd.s32 1, %s11322_s16 }
  0x47   : > { %s51_s29 = sadd.s32 1, %s11306_s0  ;;  %p58_p0 = scmp.ne.s32.totalorder %s11306_s0, %s11302_s12 }
  0x48   : > { %s17920_s26 = smov (%p42_p1, %s41_s26), 0  ;;  %s17922_s27 = smov (!%p42_p1, %s44_s27), %s11322_s16 }
  0x49   : > { %17110 = sst [smem:[#allocation25_spill]] %s17920_s26  ;;  %s48_s11 = ssub.s32 %s11318_s15, %s17920_s26 }
  0x4a   : > { %p59_p12 = scmp.eq.s32.totalorder %s11326_s17, 0  ;;  %p46_p2 = scmp.ge.s32.totalorder %s17922_s27, 2 }
  0x4b   : > { %10803 = dma.hbm_to_vmem [thread:$0]  (!%p11479_p13), %s17109_s7, 2048, %s277_s19, [#allocation12], %s16551_s25, %s16551_s25, %s16552_s28  }
  0x4c   : > { %p49_p4 = scmp.eq.s32.totalorder %s48_s11, 0  ;;  %p11529_p5 = por %p59_p12, %p58_p0 }
  0x4d   : > { %p10818_p13 = scmp.lt.s32.totalorder %s11326_s17, 4  ;;  %s17924_s27 = smov (%p46_p2, %s17922_s27), 0 }
  0x4e   : > { %17112 = sst [smem:[#allocation26_spill]] %s17924_s27  ;;  %s205_s23 = ssub.s32 %s11322_s16, %s17924_s27 }
  0x4f   : > { %s11537_s20 = scalar_select %p49_p4, %s11306_s0, %s51_s29  }
  0x50   : > { %s290_s8 = sand.u32 1, %s11306_s0   ;;  %p206_p6 = scmp.eq.s32.totalorder %s205_s23, 0 }
  0x51   : > { %s7994_s30 = sshll.u32 %s290_s8, 1  ;;  %s8181_s25 = sshll.u32 %s11318_s15, 5 }
  0x52   : > { %s17113_s28 = sadd.s32 1, %s11294_s10  ;;  %s17114_s1 = sld [smem:[#allocation155_spill]] }
  0x53   : > { %s11546_s3 = scalar_select %p206_p6, %s11294_s10, %s17113_s28  }
  0x54   : > { %s294_s26 = scalar_lea.vmem [#allocation5], %s7994_s30  ;;  %p11553_p8 = pnand %p10818_p13, %p11529_p5 }
  0x55   : > { %s302_s22 = sshll.u32 %s294_s26, 4  ;;  %s7997_s29 = sshll.u32 %s290_s8, 8  ;;  %s303_s22 = int_to_ptr.vmem [resolvable:$true] %s302_s22 }
  0x56   : > { %s291_s23 = scalar_lea.sflag [#allocation6], %s290_s8  ;;  %p11138_p10 = pneg %p11553_p8 }
  0x57   : > { %s11149_s28 = scalar_lea.vmem %s303_s22, 32  ;;  %s11334_s5 = smov [#allocation5]  }
  0x58   : > { %s300_s7 = scalar_lea.hbm %s17114_s1, %s8181_s25  ;;  %p11150_p1 = scmp.ne.s32.totalorder %s303_s22, %s11149_s28 }
  0x59   : > { %s11154_s25 = sshll.u32 %s11334_s5, 4  ;;  %s11155_s25 = int_to_ptr.vmem [resolvable:$false] %s11154_s25 }
  0x5a   : > { %p11152_p0 = pnand %p11150_p1, %p11138_p10  ;;  %s11156_s26 = scalar_lea.vmem %s11155_s25, 64 }
  0x5b   : > { %p11157_p2 = scmp.lt.s32.totalorder %s303_s22, %s11155_s25  ;;  %p11158_p4 = scmp.lt.s32.totalorder %s11156_s26, %s11149_s28 }
  0x5c   : > { %p11153_p12 = pneg %p11152_p0 }
  0x5d   : > { %p11159_p5 = por %p11158_p4, %p11157_p2 }
  0x5f   : > { %p11160_p13 = pnand %p11159_p5, %p11153_p12 }
  0x61   : > { %11163 = shalt.err (!%p11160_p13)
}
  0x62   : > { %10807 = dma.hbm_to_vmem [thread:$0]  (!%p11553_p8), %s300_s7, 32, %s303_s22, %s291_s23  }
  0x63   : > { %s8182_s19 = sshll.u32 %s11318_s15, 12  ;;  %s313_s8 = scalar_lea.vmem [#allocation8], %s7997_s29 }
  0x64   : > { %s320_s30 = sshll.u32 %s313_s8, 4  ;;  %s309_s11 = sand.u32 1, %s11326_s17   ;;  %s321_s30 = int_to_ptr.vmem [resolvable:$true] %s320_s30 }
  0x65   : > { %s319_s27 = scalar_lea.hbm %s16540_s2, %s8182_s19  ;;  %s310_s25 = scalar_lea.sflag [#allocation9], %s309_s11 }
  0x66   : > { %s11177_s28 = scalar_lea.vmem %s321_s30, 4096  ;;  %s11335_s26 = smov [#allocation8]  }
  0x67   : > { %p11178_p6 = scmp.ne.s32.totalorder %s321_s30, %s11177_s28  ;;  %s11182_s16 = sshll.u32 %s11335_s26, 4  ;;  %s11183_s16 = int_to_ptr.vmem [resolvable:$false] %s11182_s16 }
  0x68   : > { %s11184_s7 = scalar_lea.vmem %s11183_s16, 8192  ;;  %p11185_p12 = scmp.lt.s32.totalorder %s321_s30, %s11183_s16 }
  0x69   : > { %p11180_p1 = pnand %p11178_p6, %p11138_p10  ;;  %p11186_p2 = scmp.lt.s32.totalorder %s11184_s7, %s11177_s28 }
  0x6b   : > { %p11181_p0 = pneg %p11180_p1  ;;  %p11187_p4 = por %p11186_p2, %p11185_p12 }
  0x6d   : > { %p11188_p5 = pnand %p11187_p4, %p11181_p0 }
  0x6f   : > { %11191 = shalt.err (!%p11188_p5)
}
  0x70   : > { %s17116_s1 = smov 8   ;;  %s17117_s22 = smov 128  }
  0x71   : > { %10810 = dma.hbm_to_vmem [thread:$0]  (!%p11553_p8), %s319_s27, 4096, %s321_s30, %s310_s25, %s17117_s22, %s17117_s22, %s17116_s1  }
  0x72   : > { %332 = sbr.rel (%p11471_p11) target bundleno = 1987 (0x7c3), region = 48  ;;  %s334_s29 = sand.u32 (!%p11471_p11), 1, %s11302_s12  }
  0x73   : > { %s8001_s23 = sshll.u32 (!%p11471_p11), %s334_s29, 1  ;;  %s335_s19 = scalar_lea.sflag (!%p11471_p11), [#allocation6], %s334_s29 }
  0x74   : > { %s11580_s8 = scalar_lea.vmem (!%p11471_p11), [#allocation5], %s8001_s23 }
  0x77   : > { %11265 = dma.done.wait (%p11454_p3), %s335_s19, 32  }
  0x78   : > { %11267 = vsyncadd (%p11454_p3), %s335_s19, 4294967264  ;;  %s343_s6 = sand.u32 1, %s11444_s18   ;;  %s8002_s16 = sshll.u32 %s334_s29, 8 }
  0x79   : > { %s344_s27 = scalar_lea.sflag [#allocation9], %s343_s6  ;;  %s11587_s30 = scalar_lea.vmem [#allocation8], %s8002_s16 }
  0x7a   : > { %11269 = dma.done.wait (%p11454_p3), %s344_s27, 4096  }
  0x7b   : > { %11271 = vsyncadd (%p11454_p3), %s344_s27, 4294963200  ;;  %p17118_p11 = scmp.eq.s32.totalorder %s11444_s18, 0 }
  0x7d   : > { %11273 = dma.done.wait (%p17118_p11), [#allocation9], 2048   ;;  %p17119_p8 = pmov %p17118_p11 }
  0x7f   : > { %11275 = vsyncadd (%p17119_p8), [#allocation9], 4294965248  ;;  %p17120_p10 = pmov %p17119_p8 }
  0x80   : > { %p17121_p13 = pmov %p17119_p8 }
  0x81   : > { %11277 = dma.done.wait (%p17120_p10), [#allocation12], 6144  }
  0x82   : > { %11279 = vsyncadd (%p17121_p13), [#allocation12], 4294961152  ;;  %s392_s24 = sand.u32 1, %s11290_s9   ;;  %p8007_p3 = scmp.ne.s32.totalorder %s11310_s13, 0 }
  0x83   : > { %s8006_s11 = sshll.u32 %s392_s24, 7 }
  0x84   : > { %s11604_s5 = scalar_lea.vmem [#allocation14], %s8006_s11  ;;  %401 = sbr.rel (%p8007_p3) target bundleno = 146 (0x92), region = 72 }
  0x89   : > { %v11336_v0 = vmov 0.0  }
  0x8a   : > { %402 = vst [vmem:[#allocation2 + $0x30] sm:$0xff] %v11336_v0  ;;  %403 = vst [vmem:[#allocation2] sm:$0xff] %v11336_v0 }
  0x8b   : > { %404 = vst [vmem:[#allocation2 + $0x58] sm:$0xff] %v11336_v0  ;;  %405 = vst [vmem:[#allocation2 + $0x18] sm:$0xff] %v11336_v0 }
  0x8c   : > { %406 = vst [vmem:[#allocation2 + $0x50] sm:$0xff] %v11336_v0  ;;  %407 = vst [vmem:[#allocation2 + $0x68] sm:$0xff] %v11336_v0 }
  0x8d   : > { %408 = vst [vmem:[#allocation2 + $0x8] sm:$0xff] %v11336_v0  ;;  %409 = vst [vmem:[#allocation2 + $0x48] sm:$0xff] %v11336_v0 }
  0x8e   : > { %410 = vst [vmem:[#allocation2 + $0x40] sm:$0xff] %v11336_v0  ;;  %411 = vst [vmem:[#allocation2 + $0x20] sm:$0xff] %v11336_v0 }
  0x8f   : > { %412 = vst [vmem:[#allocation2 + $0x10] sm:$0xff] %v11336_v0  ;;  %413 = vst [vmem:[#allocation2 + $0x38] sm:$0xff] %v11336_v0 }
  0x90   : > { %414 = vst [vmem:[#allocation2 + $0x60] sm:$0xff] %v11336_v0  ;;  %415 = vst [vmem:[#allocation2 + $0x70] sm:$0xff] %v11336_v0 }
  0x91   : > { %416 = vst [vmem:[#allocation2 + $0x78] sm:$0xff] %v11336_v0  ;;  %417 = vst [vmem:[#allocation2 + $0x28] sm:$0xff] %v11336_v0 }
  0x92 PF: > { %s8008_s18 = sshll.u32 %s11314_s14, 1 }
  0x93   : > { %s419_s21 = sadd.s32 %s11310_s13, %s8008_s18 }
  0x94   : > { %s420_s25 = sld [smem:[#allocation4 + %s419_s21]] }
  0x9a   : > { %p8009_p6 = scmp.le.s32.totalorder %s420_s25, 0 }
  0x9c   : > { %424 = sbr.rel (%p8009_p6) target bundleno = 611 (0x263), region = 76 }
  0xa1   : > { %v612_v1 = vld [vmem:[%s11587_s30 + $0xf8] sm:$0xff]  ;;  %v611_v3 = vld [vmem:[%s11587_s30 + $0xf0] sm:$0xff]  ;;  %s8010_s28 = sshll.u32 %s11314_s14, 7  ;;  %v610_v8 = vld [vmem:[%s11587_s30 + $0xe8] sm:$0xff] }
  0xa2   : > { %v596_v2 = vld [vmem:[%s11587_s30 + $0x78] sm:$0xff]  ;;  %v11613_v4 = vand.u32 4294901760, %v612_v1  ;;  %v11617_v6 = vand.u32 4294901760, %v611_v3  ;;  %v595_v7 = vld [vmem:[%s11587_s30 + $0x70] sm:$0xff]  ;;  %v594_v9 = vld [vmem:[%s11587_s30 + $0x68] sm:$0xff]  ;;  %v11624_v12 = vand.u32 4294901760, %v610_v8  ;;  %v11633_v17 = vstv %s8010_s28 }
  0xa3   : > { %v11615_v5 = vand.u32 4294901760, %v596_v2  ;;  %v11622_v11 = vand.u32 4294901760, %v595_v7  ;;  %v11626_v13 = vand.u32 4294901760, %v594_v9  ;;  %v609_v14 = vld [vmem:[%s11587_s30 + $0xe0] sm:$0xff]  ;;  %v11631_v16 = vld [vmem:[%s11587_s30 + $0xd8] sm:$0xff]  ;;  %v11650_v23 = vld [vmem:[%s11587_s30 + $0xd0] sm:$0xff] }
  0xa4   : > { %v593_v15 = vld [vmem:[%s11587_s30 + $0x60] sm:$0xff]  ;;  %8184 = vmatprep.subr.mxu0 %v11613_v4  ;;  %v11636_v18 = vand.u32 4294901760, %v609_v14  ;;  %v11641_v20 = vand.u32 4294901760, %v11631_v16  ;;  %v11644_v21 = vsub.f32 %v612_v1, %v11613_v4  ;;  %v11647_v22 = vld [vmem:[%s11587_s30 + $0x58] sm:$0xff]  ;;  %v11653_v24 = vld [vmem:[%s11587_s30 + $0x50] sm:$0xff]  ;;  %v11663_v27 = vand.u32 4294901760, %v11650_v23 }
  0xa5   : > { %v11638_v19 = vand.u32 4294901760, %v593_v15  ;;  %8185 = vmatpush3.msra.mxu0 %v11615_v5  ;;  %v11657_v25 = vand.u32 4294901760, %v11647_v22  ;;  %v11660_v26 = vsub.f32 %v596_v2, %v11615_v5  ;;  %v11666_v28 = vsub.f32 %v611_v3, %v11617_v6  ;;  %v11669_v29 = vld [vmem:[%s11587_s30 + $0xc8] sm:$0xff]  ;;  %v11675_v31 = vld [vmem:[%s11587_s30 + $0xc0] sm:$0xff]  ;;  %v11723_v49 = vld [vmem:[%s11587_s30 + $0xb8] sm:$0xff] }
  0xa6   : > { %17123 = vst [vmem:[#allocation28_spill] sm:$0xff] %v11644_v21  ;;  %v11672_v30 = vld [vmem:[%s11587_s30 + $0x48] sm:$0xff]  ;;  %8186 = vmatprep.subr.mxu0 %v11617_v6  ;;  %v16571_v32 = vand.u32 4294901760, %v11644_v21  ;;  %v11680_v33 = vand.u32 4294901760, %v11653_v24  ;;  %v11683_v34 = vsub.f32 %v595_v7, %v11622_v11  ;;  %v11686_v35 = vand.u32 4294901760, %v11669_v29  ;;  %v11698_v40 = vld [vmem:[%s11587_s30 + $0x40] sm:$0xff] }
  0xa7   : > { %17122 = vst [vmem:[#allocation27_spill] sm:$0xff] %v11638_v19  ;;  %8187 = vmatpush3.msra.mxu0 %v11622_v11  ;;  %v16570_v36 = vand.u32 4294901760, %v11660_v26  ;;  %v16567_v37 = vand.u32 4294901760, %v11666_v28  ;;  %v11692_v38 = vsub.f32 %v610_v8, %v11624_v12  ;;  %v11695_v39 = vand.u32 4294901760, %v11672_v30  ;;  %v11734_v54 = vld [vmem:[%s11587_s30 + $0x38] sm:$0xff]  ;;  %v11742_v59 = vld [vmem:[%s11587_s30 + $0xb0] sm:$0xff] }
  0xa8   : > { %17124 = vst [vmem:[#allocation29_spill] sm:$0xff] %v11680_v33  ;;  %17125 = vst [vmem:[#allocation30_spill] sm:$0xff] %v11686_v35  ;;  %8188 = vmatprep.subr.mxu0 %v11624_v12  ;;  %v1066_v41 = vsub.f32 %v11644_v21, %v16571_v32  ;;  %v16566_v42 = vand.u32 4294901760, %v11683_v34  ;;  %v11706_v43 = vsub.f32 %v594_v9, %v11626_v13  ;;  %v11709_v44 = vand.u32 4294901760, %v11675_v31  ;;  %v11755_v0 = vld [vmem:[%s11587_s30 + $0x30] sm:$0xff]  ;;  %v11769_v8 = vld [vmem:[%s11587_s30 + $0xa8] sm:$0xff] }
  0xa9   : > { %17126 = vst [vmem:[#allocation31_spill] sm:$0xff] %v11692_v38  ;;  %17127 = vst [vmem:[#allocation32_spill] sm:$0xff] %v11695_v39  ;;  %8189 = vmatpush3.msra.mxu0 %v11626_v13  ;;  %v954_v45 = vsub.f32 %v11660_v26, %v16570_v36  ;;  %v1073_v46 = vsub.f32 %v11666_v28, %v16567_v37  ;;  %v16564_v47 = vand.u32 4294901760, %v11692_v38  ;;  %v11731_v53 = vand.u32 4294901760, %v11698_v40  ;;  %v11877_v32 = vld [vmem:[%s11587_s30 + $0x10] sm:$0xff]  ;;  %v11889_v10 = vld [vmem:[%s11587_s30 + $0x88] sm:$0xff] }
  0xaa   : > { %17128 = vst [vmem:[#allocation33_spill] sm:$0xff] %v11706_v43  ;;  %17129 = vst [vmem:[#allocation34_spill] sm:$0xff] %v11709_v44  ;;  %v11720_v48 = vsub.f32 %v609_v14, %v11636_v18  ;;  %8190 = vmatprep.subr.mxu0 %v11636_v18  ;;  %v1067_v50 = vand.u32 4294901760, %v1066_v41  ;;  %v961_v51 = vsub.f32 %v11683_v34, %v16566_v42  ;;  %v16563_v52 = vand.u32 4294901760, %v11706_v43  ;;  %v11852_v42 = vld [vmem:[%s11587_s30 + $0x18] sm:$0xff] }
  0xab   : > { %17131 = vst [vmem:[#allocation36_spill] sm:$0xff] %v11731_v53  ;;  %8191 = vmatpush3.msra.mxu0 %v11638_v19  ;;  %v955_v55 = vand.u32 4294901760, %v954_v45  ;;  %v1074_v56 = vand.u32 4294901760, %v1073_v46  ;;  %v1080_v57 = vsub.f32 %v11692_v38, %v16564_v47  ;;  %v11749_v62 = vsub.f32 %v593_v15, %v11638_v19 }
  0xac   : > { %17130 = vst [vmem:[#allocation35_spill] sm:$0xff] %v11720_v48  ;;  %v16561_v58 = vand.u32 4294901760, %v11720_v48  ;;  %8192 = vmatprep.subr.mxu0 %v11641_v20  ;;  %8264 = vmatprep.subr.mxu1 %v1067_v50  ;;  %v962_v60 = vand.u32 4294901760, %v961_v51  ;;  %v968_v61 = vsub.f32 %v11706_v43, %v16563_v52  ;;  %v11752_v63 = vand.u32 4294901760, %v11723_v49  ;;  %v11840_v52 = vld [vmem:[%s11587_s30 + $0x98] sm:$0xff] }
  0xad   : > { %17132 = vst [vmem:[#allocation37_spill] sm:$0xff] %v11749_v62  ;;  %8193 = vmatpush3.msra.mxu0 %v11657_v25  ;;  %8265 = vmatpush3.msra.mxu1 %v955_v55  ;;  %v1081_v1 = vand.u32 4294901760, %v1080_v57  ;;  %v11763_v3 = vsub.f32 %v11631_v16, %v11641_v20  ;;  %v11766_v7 = vand.u32 4294901760, %v11734_v54  ;;  %v16560_v14 = vand.u32 4294901760, %v11749_v62  ;;  %v11781_v16 = vld [vmem:[%s11587_s30 + $0x28] sm:$0xff]  ;;  %v11805_v57 = vld [vmem:[%s11587_s30 + $0xa0] sm:$0xff] }
  0xae   : > { %17133 = vst [vmem:[#allocation38_spill] sm:$0xff] %v11752_v63  ;;  %v1087_v2 = vsub.f32 %v11720_v48, %v16561_v58  ;;  %8194 = vmatprep.subr.mxu0 %v11663_v27  ;;  %8266 = vmatprep.subr.mxu1 %v1074_v56  ;;  %v969_v9 = vand.u32 4294901760, %v968_v61  ;;  %v11775_v15 = vsub.f32 %v11647_v22, %v11657_v25  ;;  %v11778_v41 = vand.u32 4294901760, %v11742_v59 }
  0xaf   : > { %17134 = vst [vmem:[#allocation39_spill] sm:$0xff] %v11763_v3  ;;  %17135 = vst [vmem:[#allocation40_spill] sm:$0xff] %v11766_v7  ;;  %8195 = vmatpush3.msra.mxu0 %v11680_v33  ;;  %8267 = vmatpush3.msra.mxu1 %v962_v60  ;;  %v16559_v46 = vand.u32 4294901760, %v11763_v3  ;;  %v11787_v50 = vsub.f32 %v11650_v23, %v11663_v27  ;;  %v11790_v51 = vand.u32 4294901760, %v11755_v0  ;;  %v11802_v23 = vand.u32 4294901760, %v11769_v8 }
  0xb0   : > { %17136 = vst [vmem:[#allocation41_spill] sm:$0xff] %v11775_v15  ;;  %17137 = vst [vmem:[#allocation42_spill] sm:$0xff] %v11778_v41  ;;  %v1088_v45 = vand.u32 4294901760, %v1087_v2  ;;  %8196 = vmatprep.subr.mxu0 %v11686_v35  ;;  %8268 = vmatprep.subr.mxu1 %v1081_v1  ;;  %v975_v22 = vsub.f32 %v11749_v62, %v16560_v14  ;;  %v16562_v55 = vand.u32 4294901760, %v11775_v15  ;;  %v11874_v36 = vand.u32 4294901760, %v11840_v52 }
  0xb1   : > { %17138 = vst [vmem:[#allocation43_spill] sm:$0xff] %v11790_v51  ;;  %v11799_v56 = vsub.f32 %v11653_v24, %v11680_v33  ;;  %17139 = vst [vmem:[#allocation44_spill] sm:$0xff] %v11802_v23  ;;  %8197 = vmatpush3.msra.mxu0 %v11695_v39  ;;  %8269 = vmatpush3.msra.mxu1 %v969_v9  ;;  %v1094_v60 = vsub.f32 %v11763_v3, %v16559_v46  ;;  %v16565_v61 = vand.u32 4294901760, %v11787_v50 }
  0xb2   : > { %v11814_v1 = vsub.f32 %v11669_v29, %v11686_v35  ;;  %v11817_v24 = vand.u32 4294901760, %v11781_v16  ;;  %8198 = vmatprep.subr.mxu0 %v11709_v44  ;;  %8270 = vmatprep.subr.mxu1 %v1088_v45  ;;  %v976_v2 = vand.u32 4294901760, %v975_v22  ;;  %v982_v9 = vsub.f32 %v11775_v15, %v16562_v55  ;;  %v11829_v29 = vld [vmem:[%s11587_s30 + $0x20] sm:$0xff]  ;;  %17147 = vst [vmem:[#allocation52_spill] sm:$0xff] %v11874_v36 }
  0xb3   : > { %v16568_v46 = vand.u32 4294901760, %v11799_v56  ;;  %v11826_v14 = vsub.f32 %v11672_v30, %v11695_v39  ;;  %8199 = vmatpush3.msra.mxu0 %v11731_v53  ;;  %v1095_v58 = vand.u32 4294901760, %v1094_v60  ;;  %v1101_v45 = vsub.f32 %v11787_v50, %v16565_v61 }
  0xb4   : > { %17140 = vst [vmem:[#allocation45_spill] sm:$0xff] %v11814_v1  ;;  %17141 = vst [vmem:[#allocation46_spill] sm:$0xff] %v11817_v24  ;;  %v16569_v22 = vand.u32 4294901760, %v11814_v1  ;;  %v11837_v55 = vand.u32 4294901760, %v11805_v57  ;;  %8271 = vmatpush3.msra.mxu1 %v976_v2  ;;  %8200 = vmatprep.subr.mxu0 %v11752_v63  ;;  %v983_v30 = vand.u32 4294901760, %v982_v9  ;;  %v11849_v61 = vsub.f32 %v11675_v31, %v11709_v44  ;;  %v11866_v31 = vld [vmem:[%s11587_s30 + $0x90] sm:$0xff] }
  0xb5   : > { %17142 = vst [vmem:[#allocation47_spill] sm:$0xff] %v11826_v14  ;;  %v989_v60 = vsub.f32 %v11799_v56, %v16568_v46  ;;  %v16572_v47 = vand.u32 4294901760, %v11826_v14  ;;  %8272 = vmatprep.subr.mxu1 %v1095_v58  ;;  %8201 = vmatpush3.msra.mxu0 %v11766_v7  ;;  %v1102_v2 = vand.u32 4294901760, %v1101_v45  ;;  %v11859_v37 = vand.u32 4294901760, %v11829_v29 }
  0xb6   : > { %17143 = vst [vmem:[#allocation48_spill] sm:$0xff] %v11837_v55  ;;  %17144 = vst [vmem:[#allocation49_spill] sm:$0xff] %v11849_v61  ;;  %v1108_v9 = vsub.f32 %v11814_v1, %v16569_v22  ;;  %v11863_v46 = vsub.f32 %v11698_v40, %v11731_v53  ;;  %8273 = vmatpush3.msra.mxu1 %v983_v30  ;;  %8202 = vmatprep.subr.mxu0 %v11778_v41  ;;  %v11912_v53 = vand.u32 4294901760, %v11877_v32 }
  0xb7   : > { %17145 = vst [vmem:[#allocation50_spill] sm:$0xff] %v11859_v37  ;;  %v990_v58 = vand.u32 4294901760, %v989_v60  ;;  %v996_v45 = vsub.f32 %v11826_v14, %v16572_v47  ;;  %8274 = vmatprep.subr.mxu1 %v1102_v2  ;;  %8203 = vmatpush3.msra.mxu0 %v11790_v51  ;;  %v11883_v60 = vsub.f32 %v11723_v49, %v11752_v63  ;;  %v11886_v47 = vand.u32 4294901760, %v11852_v42 }
  0xb8   : > { %17146 = vst [vmem:[#allocation51_spill] sm:$0xff] %v11863_v46  ;;  %v1109_v40 = vand.u32 4294901760, %v1108_v9  ;;  %8204 = vmatprep.subr.mxu0 %v11802_v23  ;;  %v17150_v2 = vand.u32 4294901760, %v11849_v61  ;;  %v11897_v30 = vsub.f32 %v11734_v54, %v11766_v7  ;;  %v11900_v49 = vand.u32 4294901760, %v11866_v31  ;;  %17155 = vst [vmem:[#allocation58_spill] sm:$0xff] %v11912_v53  ;;  %v11915_v54 = vld [vmem:[%s11587_s30 + $0x8] sm:$0xff] }
  0xb9   : > { %17148 = vst [vmem:[#allocation53_spill] sm:$0xff] %v11883_v60  ;;  %17149 = vst [vmem:[#allocation54_spill] sm:$0xff] %v11886_v47  ;;  %8275 = vmatpush3.msra.mxu1 %v990_v58  ;;  %v997_v22 = vand.u32 4294901760, %v996_v45  ;;  %8205 = vmatpush3.msra.mxu0 %v11817_v24  ;;  %v17153_v58 = vand.u32 4294901760, %v11863_v46  ;;  %v11924_v45 = vand.u32 4294901760, %v11889_v10  ;;  %v11936_v7 = vsub.f32 %v11769_v8, %v11802_v23 }
  0xba   : > { %v1115_v9 = vsub.f32 %v11849_v61, %v17150_v2  ;;  %17151 = vst [vmem:[#allocation55_spill] sm:$0xff] %v11897_v30  ;;  %17152 = vst [vmem:[#allocation56_spill] sm:$0xff] %v11900_v49  ;;  %8276 = vmatprep.subr.mxu1 %v1109_v40  ;;  %v11909_v2 = vsub.f32 %v11742_v59, %v11778_v41  ;;  %8206 = vmatprep.subr.mxu0 %v11837_v55  ;;  %v11927_v59 = vld [vmem:[%s11587_s30 + $0x80] sm:$0xff] }
  0xbb   : > { %v1003_v63 = vsub.f32 %v11863_v46, %v17153_v58  ;;  %8277 = vmatpush3.msra.mxu1 %v997_v22  ;;  %v11921_v58 = vsub.f32 %v11755_v0, %v11790_v51  ;;  %17157 = vst [vmem:[#allocation60_spill] sm:$0xff] %v11924_v45  ;;  %8207 = vmatpush3.msra.mxu0 %v11859_v37  ;;  %v17158_v22 = vand.u32 4294901760, %v11883_v60  ;;  %17159 = vst [vmem:[#allocation61_spill] sm:$0xff] %v11936_v7 }
  0xbc   : > { %17154 = vst [vmem:[#allocation57_spill] sm:$0xff] %v11909_v2  ;;  %v1116_v40 = vand.u32 4294901760, %v1115_v9  ;;  %8208 = vmatprep.subr.mxu0 %v11874_v36  ;;  %v17160_v0 = vand.u32 4294901760, %v11897_v30  ;;  %v11951_v9 = vld [vmem:[%s11587_s30] sm:$0xff]  ;;  %v11959_v46 = vand.u32 4294901760, %v11927_v59 }
  0xbd   : > { %17156 = vst [vmem:[#allocation59_spill] sm:$0xff] %v11921_v58  ;;  %v1004_v41 = vand.u32 4294901760, %v1003_v63  ;;  %v1122_v44 = vsub.f32 %v11883_v60, %v17158_v22  ;;  %v11944_v63 = vand.u32 4294901760, %v11915_v54  ;;  %v11948_v22 = vsub.f32 %v11781_v16, %v11817_v24  ;;  %8209 = vmatpush3.msra.mxu0 %v11886_v47 }
  0xbe   : > { %8278 = vmatprep.subr.mxu1 %v1116_v40  ;;  %v1010_v51 = vsub.f32 %v11897_v30, %v17160_v0  ;;  %v17162_v40 = vand.u32 4294901760, %v11909_v2  ;;  %v16599_v0 = vand.u32 4294901760, %v11936_v7  ;;  %8210 = vmatprep.subr.mxu0 %v11900_v49  ;;  %v17163_v16 = vand.u32 4294901760, %v11921_v58 }
  0xbf   : > { %17161 = vst [vmem:[#allocation62_spill] sm:$0xff] %v11948_v22  ;;  %8279 = vmatpush3.msra.mxu1 %v1004_v41  ;;  %v1123_v8 = vand.u32 4294901760, %v1122_v44  ;;  %v16602_v44 = vand.u32 4294901760, %v11948_v22  ;;  %v11968_v24 = vsub.f32 %v11805_v57, %v11837_v55  ;;  %8211 = vmatpush3.msra.mxu0 %v11912_v53  ;;  %v17165_v60 = vlaneseq }
  0xc0   : > { %v1129_v23 = vsub.f32 %v11909_v2, %v17162_v40  ;;  %v1011_v30 = vand.u32 4294901760, %v1010_v51  ;;  %v1017_v41 = vsub.f32 %v11921_v58, %v17163_v16  ;;  %v1136_v51 = vsub.f32 %v11936_v7, %v16599_v0  ;;  %8212 = vmatprep.subr.mxu0 %v11924_v45 }
  0xc1   : > { %17164 = vst [vmem:[#allocation63_spill] sm:$0xff] %v11968_v24  ;;  %8280 = vmatprep.subr.mxu1 %v1123_v8  ;;  %v11975_v2 = vand.u32 4294901760, %v11951_v9  ;;  %v11978_v61 = vshrl.u32 %v17165_v60, 7  ;;  %v16607_v57 = vand.u32 4294901760, %v11968_v24  ;;  %v425_v8 = vld [vmem:[%s11580_s8] sm:$0x3]  ;;  %v11988_v0 = vsub.f32 %v11829_v29, %v11859_v37  ;;  %8213 = vmatpush3.msra.mxu0 %v11944_v63 }
  0xc2   : > { %v1130_v40 = vand.u32 4294901760, %v1129_v23  ;;  %8281 = vmatpush3.msra.mxu1 %v1011_v30  ;;  %v1018_v16 = vand.u32 4294901760, %v1017_v41  ;;  %v1024_v23 = vsub.f32 %v11948_v22, %v16602_v44  ;;  %v1137_v55 = vand.u32 4294901760, %v1136_v51  ;;  %8214 = vmatprep.subr.mxu0 %v11959_v46 }
  0xc3   : > { %17166 = vst [vmem:[#allocation64_spill] sm:$0xff] %v11988_v0  ;;  %v11993_v30 = vadd.s32 %v11633_v17, %v11978_v61  ;;  %v463_v60 = vsub.s32 0, %v11978_v61  ;;  %v467_v41 = vsub.s32 1, %v11978_v61  ;;  %v1143_v29 = vsub.f32 %v11968_v24, %v16607_v57  ;;  %8215 = vmatpush3.msra.mxu0 %v11975_v2 }
  0xc4   : > { %8282 = vmatprep.subr.mxu1 %v1130_v40  ;;  %v1025_v44 = vand.u32 4294901760, %v1024_v23  ;;  %v16608_v40 = vand.u32 4294901760, %v11988_v0  ;;  %v12004_v51 = vsub.f32 %v11840_v52, %v11874_v36  ;;  %v429_v23 = vadd.s32 8, %v11978_v61  ;;  %8344 = vmatprep.subr.mxu0 %v11644_v21 }
  0xc5   : > { %17167 = vst [vmem:[#allocation65_spill] sm:$0xff] %v11993_v30  ;;  %8283 = vmatpush3.msra.mxu1 %v1018_v16  ;;  %v12007_v37 = vrot.slane %v425_v8, %v463_v60  ;;  %v12009_v22 = vrot.slane %v425_v8, %v467_v41  ;;  %v12013_v16 = vsub.f32 %v11852_v42, %v11886_v47  ;;  %v1144_v57 = vand.u32 4294901760, %v1143_v29 }
  0xc6   : > { %8284 = vmatprep.subr.mxu1 %v1137_v55  ;;  %v1031_v52 = vsub.f32 %v11988_v0, %v16608_v40  ;;  %v16614_v55 = vand.u32 4294901760, %v12004_v51  ;;  %v12022_v60 = vsub.f32 %v11866_v31, %v11900_v49  ;;  %v16610_v8 = vmov 0.0  }
  0xc7   : > { %17168 = vst [vmem:[#allocation66_spill] sm:$0xff] %v12013_v16  ;;  %8285 = vmatpush3.msra.mxu1 %v1025_v44  ;;  %vm470_vm0 = vcmp.eq.s32.totalorder %v12009_v22, %v11993_v30  ;;  %vm469_vm1 = vcmp.eq.s32.totalorder %v12007_v37, %v11993_v30  ;;  %v12031_v44 = vadd.s32 %v11633_v17, %v429_v23  ;;  %v16615_v42 = vmov 1.0  }
  0xc8   : > { %17169 = vst [vmem:[#allocation67_spill] sm:$0xff] %v12022_v60  ;;  %8286 = vmatprep.subr.mxu1 %v1144_v57  ;;  %v8012_v31 = vsel %vm470_vm0, 1.0, %v16610_v8  ;;  %v1032_v41 = vand.u32 4294901760, %v1031_v52  ;;  %v8011_v29 = vsel %vm469_vm1, 1.0, %v16610_v8  ;;  %v1150_v40 = vsub.f32 %v12004_v51, %v16614_v55  ;;  %8043 = vmatprep.mubr.msk.f32.mxu1 %vm470_vm0, %v16615_v42 }
  0xc9   : > { %17170 = vst [vmem:[#allocation68_spill] sm:$0xff] %v12031_v44  ;;  %v12048_v57 = vsub.f32 %v8012_v31, %v8012_v31  ;;  %v12050_v23 = vsub.f32 %v8011_v29, %v8011_v29  ;;  %v17172_v52 = vand.u32 4294901760, %v12013_v16  ;;  %v16617_v8 = vand.u32 4294901760, %v12022_v60 }
  0xca   : > { %8287 = vmatpush3.msra.mxu1 %v1032_v41  ;;  %v1151_v49 = vand.u32 4294901760, %v1150_v40  ;;  %vm472_vm2 = vcmp.eq.s32.totalorder %v12009_v22, %v12031_v44  ;;  %v12060_v55 = vsub.f32 %v11877_v32, %v11912_v53  ;;  %vm471_vm3 = vcmp.eq.s32.totalorder %v12007_v37, %v12031_v44 }
  0xcb   : > { %17171 = vst [vmem:[#allocation69_spill] sm:$0xff] %v12048_v57  ;;  %v1038_v21 = vsub.f32 %v12013_v16, %v17172_v52  ;;  %v1157_v41 = vsub.f32 %v12022_v60, %v16617_v8  ;;  %v17173_v40 = vmov 0.0   ;;  %v17174_v29 = vand.u32 4294901760, %v12048_v57 }
  0xcc   : > { %8288 = vmatprep.subr.mxu1 %v1151_v49  ;;  %v8014_v52 = vsel %vm472_vm2, 1.0, %v17173_v40  ;;  %v8013_v31 = vsel %vm471_vm3, 1.0, %v17173_v40  ;;  %v17175_v8 = vand.u32 4294901760, %v12050_v23  ;;  %v17177_v47 = vand.u32 4294901760, %v12060_v55 }
  0xcd   : > { %v1039_v42 = vand.u32 4294901760, %v1038_v21  ;;  %v12080_v21 = vsub.f32 %v11889_v10, %v11924_v45  ;;  %v712_v49 = vsub.f32 %v12048_v57, %v17174_v29  ;;  %v1158_v60 = vand.u32 4294901760, %v1157_v41 }
  0xce   : > { %v718_v53 = vsub.f32 %v12050_v23, %v17175_v8  ;;  %v12088_v32 = vsub.f32 %v8014_v52, %v8014_v52  ;;  %v1045_v36 = vsub.f32 %v12060_v55, %v17177_v47  ;;  %v12093_v16 = vsub.f32 %v8013_v31, %v8013_v31 }
  0xcf   : > { %8289 = vmatpush3.msra.mxu1 %v1039_v42  ;;  %v16632_v10 = vand.u32 4294901760, %v12080_v21  ;;  %v12098_v45 = vsub.f32 %v11915_v54, %v11944_v63  ;;  %v713_v29 = vand.u32 4294901760, %v712_v49  ;;  %v12103_v8 = vsub.f32 %v11927_v59, %v11959_v46 }
  0xd0   : > { %17176 = vst [vmem:[#allocation70_spill] sm:$0xff] %v12088_v32  ;;  %v719_v57 = vand.u32 4294901760, %v718_v53  ;;  %8290 = vmatprep.subr.mxu1 %v1158_v60  ;;  %v16633_v42 = vand.u32 4294901760, %v12088_v32  ;;  %v1046_v41 = vand.u32 4294901760, %v1045_v36  ;;  %v16637_v47 = vand.u32 4294901760, %v12093_v16 }
  0xd1   : > { %v1164_v31 = vsub.f32 %v12080_v21, %v16632_v10  ;;  %v16636_v52 = vand.u32 4294901760, %v12098_v45  ;;  %714 = vmatprep.mubr.f32.mxu0 %v713_v29  ;;  %v16639_v54 = vand.u32 4294901760, %v12103_v8  ;;  %v430_v60 = vadd.s32 16, %v11978_v61 }
  0xd2   : > { %v727_v53 = vsub.f32 %v12088_v32, %v16633_v42  ;;  %v12117_v36 = vsub.f32 %v11951_v9, %v11975_v2  ;;  %720 = vmatmul.mubr.f32.vlgmr.msra.gmra.mxu0 %v719_v57  ;;  %8291 = vmatpush3.msra.mxu1 %v1046_v41  ;;  %v733_v59 = vsub.f32 %v12093_v16, %v16637_v47  ;;  %v431_v10 = vadd.s32 24, %v11978_v61 }
  0xd3   : > { %v1165_v49 = vand.u32 4294901760, %v1164_v31  ;;  %v1052_v29 = vsub.f32 %v12098_v45, %v16636_v52  ;;  %v1171_v32 = vsub.f32 %v12103_v8, %v16639_v54  ;;  %v12130_v9 = vadd.s32 %v11633_v17, %v430_v60  ;;  %8345 = vmatpush3.msra.mxu0 %v11660_v26 }
  0xd4   : > { %v728_v42 = vand.u32 4294901760, %v727_v53  ;;  %v16638_v57 = vand.u32 4294901760, %v12117_v36  ;;  %v734_v41 = vand.u32 4294901760, %v733_v59  ;;  %8346 = vmatprep.subr.mxu0 %v11666_v28  ;;  %v12136_v52 = vadd.s32 %v11633_v17, %v431_v10 }
  0xd5   : > { %17178 = vst [vmem:[#allocation71_spill] sm:$0xff] %v12130_v9  ;;  %8292 = vmatprep.subr.mxu1 %v1165_v49  ;;  %v1053_v31 = vand.u32 4294901760, %v1052_v29  ;;  %v432_v53 = vadd.s32 32, %v11978_v61  ;;  %v1172_v47 = vand.u32 4294901760, %v1171_v32  ;;  %vm16730_vm4 = vcmp.eq.s32.totalorder %v12009_v22, %v12130_v9  ;;  %8347 = vmatpush3.msra.mxu0 %v11683_v34 }
  0xd6   : > { %17179 = vst [vmem:[#allocation72_spill] sm:$0xff] %v12136_v52  ;;  %729 = vmatprep.mubr.f32.mxu0 %v728_v42  ;;  %v1059_v60 = vsub.f32 %v12117_v36, %v16638_v57  ;;  %vm16685_vm5 = vcmp.eq.s32.totalorder %v12007_v37, %v12130_v9  ;;  %v8016_v10 = vsel %vm16730_vm4, 1.0, %v17173_v40  ;;  %vm16679_vm6 = vcmp.eq.s32.totalorder %v12009_v22, %v12136_v52 }
  0xd7   : > { %735 = vmatmul.mubr.f32.gmra.mxu0 %v734_v41  ;;  %8293 = vmatpush3.msra.mxu1 %v1053_v31  ;;  %v8015_v32 = vsel %vm16685_vm5, 1.0, %v17173_v40  ;;  %vm16669_vm7 = vcmp.eq.s32.totalorder %v12007_v37, %v12136_v52  ;;  %v12159_v42 = vsub.f32 %v8016_v10, %v8016_v10  ;;  %v8018_v29 = vsel %vm16679_vm6, 1.0, %v17173_v40 }
  0xd8   : > { %8294 = vmatprep.subr.mxu1 %v1172_v47  ;;  %v1060_v59 = vand.u32 4294901760, %v1059_v60  ;;  %v12161_v49 = vsub.f32 %v8015_v32, %v8015_v32  ;;  %8348 = vmatprep.subr.mxu0 %v11692_v38  ;;  %v12168_v41 = vsub.f32 %v8018_v29, %v8018_v29  ;;  %v8017_v31 = vsel %vm16669_vm7, 1.0, %v17173_v40 }
  0xd9   : > { %v12175_v47 = vadd.s32 %v11633_v17, %v432_v53  ;;  %8349 = vmatpush3.msra.mxu0 %v11706_v43  ;;  %v433_v60 = vadd.s32 40, %v11978_v61  ;;  %v16642_v10 = vand.u32 4294901760, %v12159_v42  ;;  %v12181_v57 = vsub.f32 %v8017_v31, %v8017_v31 }
  0xda   : > { %17180 = vst [vmem:[#allocation73_spill] sm:$0xff] %v12161_v49  ;;  %17181 = vst [vmem:[#allocation74_spill] sm:$0xff] %v12168_v41  ;;  %8295 = vmatpush3.msra.mxu1 %v1060_v59  ;;  %v16644_v32 = vand.u32 4294901760, %v12161_v49  ;;  %8350 = vmatprep.subr.mxu0 %v11720_v48  ;;  %v434_v29 = vadd.s32 48, %v11978_v61  ;;  %v17183_v54 = vmov 1.0  }
  0xdb   : > { %17182 = vst [vmem:[#allocation75_spill] sm:$0xff] %v12175_v47  ;;  %8044 = vmatmul.mubr.msk.f32.vlgmr.msra.gmra.mxu1 %vm469_vm1, %v17183_v54  ;;  %8424 = vmatprep.subr.mxu1 %v11613_v4  ;;  %vm16672_vm8 = vcmp.eq.s32.totalorder %v12009_v22, %v12175_v47  ;;  %vm16677_vm9 = vcmp.eq.s32.totalorder %v12007_v37, %v12175_v47  ;;  %v17187_v38 = vand.u32 4294901760, %v12181_v57 }
  0xdc   : > { %v12196_v59 = vadd.s32 %v11633_v17, %v433_v60  ;;  %v742_v31 = vsub.f32 %v12159_v42, %v16642_v10  ;;  %v748_v30 = vsub.f32 %v12161_v49, %v16644_v32  ;;  %8425 = vmatpush3.msra.mxu1 %v11615_v5  ;;  %8045 = vmatprep.mubr.msk.f32.mxu1 %vm472_vm2, %v17183_v54  ;;  %v8020_v60 = vsel %vm16672_vm8, 1.0, %v17173_v40 }
  0xdd   : > { %v17185_v10 = vand.u32 4294901760, %v12168_v41  ;;  %8426 = vmatprep.subr.mxu1 %v11617_v6  ;;  %v12218_v32 = vsub.f32 %v8020_v60, %v8020_v60  ;;  %v8019_v43 = vsel %vm16677_vm9, 1.0, %v17173_v40  ;;  %8351 = vmatpush3.msra.mxu0 %v11749_v62  ;;  %v12264_v44 = vadd.s32 %v11633_v17, %v434_v29 }
  0xde   : > { %17184 = vst [vmem:[#allocation76_spill] sm:$0xff] %v12196_v59  ;;  %vm16678_vm10 = vcmp.eq.s32.totalorder %v12009_v22, %v12196_v59  ;;  %v743_v53 = vand.u32 4294901760, %v742_v31  ;;  %v749_v49 = vand.u32 4294901760, %v748_v30  ;;  %8427 = vmatpush3.msra.mxu1 %v11622_v11  ;;  %v12231_v60 = vsub.f32 %v8019_v43, %v8019_v43  ;;  %8352 = vmatprep.subr.mxu0 %v11763_v3 }
  0xdf   : > { %v757_v48 = vsub.f32 %v12168_v41, %v17185_v10  ;;  %17186 = vst [vmem:[#allocation77_spill] sm:$0xff] %v12218_v32  ;;  %v763_v10 = vsub.f32 %v12181_v57, %v17187_v38  ;;  %8046 = vmatmul.mubr.msk.f32.gmra.mxu1 %vm471_vm3, %v17183_v54  ;;  %v16655_v62 = vand.u32 4294901760, %v12218_v32  ;;  %8428 = vmatprep.subr.mxu1 %v11624_v12  ;;  %v8022_v38 = vsel %vm16678_vm10, 1.0, %v17173_v40 }
  0xe0   : > { %17188 = vst [vmem:[#allocation78_spill] sm:$0xff] %v12231_v60  ;;  %vm16720_vm11 = vcmp.eq.s32.totalorder %v12007_v37, %v12196_v59  ;;  %744 = vmatprep.mubr.f32.mxu0 %v743_v53  ;;  %8047 = vmatprep.mubr.msk.f32.mxu1 %vm16730_vm4, %v17183_v54  ;;  %v12251_v30 = vsub.f32 %v8022_v38, %v8022_v38  ;;  %17190 = vst [vmem:[#allocation80_spill] sm:$0xff] %v12264_v44  ;;  %v435_v38 = vadd.s32 56, %v11978_v61 }
  0xe1   : > { %v758_v41 = vand.u32 4294901760, %v757_v48  ;;  %v764_v43 = vand.u32 4294901760, %v763_v10  ;;  %v16658_v48 = vand.u32 4294901760, %v12231_v60  ;;  %v8021_v31 = vsel %vm16720_vm11, 1.0, %v17173_v40  ;;  %750 = vmatmul.mubr.f32.gmra.mxu0 %v749_v49  ;;  %8429 = vmatpush3.msra.mxu1 %v11626_v13 }
  0xe2   : > { %17189 = vst [vmem:[#allocation79_spill] sm:$0xff] %v12251_v30  ;;  %v772_v53 = vsub.f32 %v12218_v32, %v16655_v62  ;;  %v12261_v10 = vsub.f32 %v8021_v31, %v8021_v31  ;;  %v16659_v49 = vand.u32 4294901760, %v12251_v30  ;;  %8430 = vmatprep.subr.mxu1 %v11636_v18  ;;  %v436_v62 = vadd.s32 64, %v11978_v61  ;;  %8353 = vmatpush3.msra.mxu0 %v11775_v15 }
  0xe3   : > { %759 = vmatprep.mubr.f32.mxu0 %v758_v41  ;;  %v778_v3 = vsub.f32 %v12231_v60, %v16658_v48  ;;  %v437_v32 = vadd.s32 72, %v11978_v61  ;;  %8048 = vmatmul.mubr.msk.f32.gmra.mxu1 %vm16685_vm5, %v17183_v54  ;;  %vm16703_vm12 = vcmp.eq.s32.totalorder %v12009_v22, %v12264_v44  ;;  %vm16702_vm13 = vcmp.eq.s32.totalorder %v12007_v37, %v12264_v44 }
  0xe4   : > { %v773_v31 = vand.u32 4294901760, %v772_v53  ;;  %v16668_v41 = vand.u32 4294901760, %v12261_v10  ;;  %v787_v53 = vsub.f32 %v12251_v30, %v16659_v49  ;;  %8049 = vmatprep.mubr.msk.f32.mxu1 %vm16679_vm6, %v17183_v54  ;;  %8431 = vmatpush3.msra.mxu1 %v11638_v19  ;;  %v8024_v48 = vsel %vm16703_vm12, 1.0, %v17173_v40 }
  0xe5   : > { %v779_v29 = vand.u32 4294901760, %v778_v3  ;;  %v8023_v3 = vsel %vm16702_vm13, 1.0, %v17173_v40  ;;  %765 = vmatmul.mubr.f32.gmra.mxu0 %v764_v43  ;;  %v12303_v9 = vsub.f32 %v8024_v48, %v8024_v48  ;;  %8432 = vmatprep.subr.mxu1 %v11641_v20  ;;  %v438_v30 = vadd.s32 80, %v11978_v61 }
  0xe6   : > { %v793_v49 = vsub.f32 %v12261_v10, %v16668_v41  ;;  %v12305_v15 = vsub.f32 %v8023_v3, %v8023_v3  ;;  %774 = vmatprep.mubr.f32.mxu0 %v773_v31  ;;  %v788_v60 = vand.u32 4294901760, %v787_v53  ;;  %8433 = vmatpush3.msra.mxu1 %v11657_v25  ;;  %v12311_v19 = vadd.s32 %v11633_v17, %v435_v38 }
  0xe7   : > { %v12314_v43 = vadd.s32 %v11633_v17, %v436_v62  ;;  %v12317_v41 = vadd.s32 %v11633_v17, %v437_v32  ;;  %8050 = vmatmul.mubr.msk.f32.gmra.mxu1 %vm16669_vm7, %v17183_v54  ;;  %v16670_v31 = vand.u32 4294901760, %v12303_v9  ;;  %8354 = vmatprep.subr.mxu0 %v11787_v50  ;;  %v12327_v38 = vadd.s32 %v11633_v17, %v438_v30 }
  0xe8   : > { %17191 = vst [vmem:[#allocation81_spill] sm:$0xff] %v12305_v15  ;;  %17192 = vst [vmem:[#allocation82_spill] sm:$0xff] %v12311_v19  ;;  %v794_v48 = vand.u32 4294901760, %v793_v49  ;;  %v16671_v53 = vand.u32 4294901760, %v12305_v15  ;;  %8051 = vmatprep.mubr.msk.f32.mxu1 %vm16672_vm8, %v17183_v54  ;;  %vm16717_vm14 = vcmp.eq.s32.totalorder %v12009_v22, %v12311_v19  ;;  %8355 = vmatpush3.msra.mxu0 %v11799_v56  ;;  %v439_v62 = vadd.s32 88, %v11978_v61 }
  0xe9   : > { %17193 = vst [vmem:[#allocation83_spill] sm:$0xff] %v12314_v43  ;;  %17194 = vst [vmem:[#allocation84_spill] sm:$0xff] %v12317_v41  ;;  %vm16716_vm15 = vcmp.eq.s32.totalorder %v12007_v37, %v12311_v19  ;;  %vm16718_vm7 = vcmp.eq.s32.totalorder %v12009_v22, %v12314_v43  ;;  %780 = vmatmul.mubr.f32.gmra.mxu0 %v779_v29  ;;  %v802_v32 = vsub.f32 %v12303_v9, %v16670_v31 }
  0xea   : > { %17195 = vst [vmem:[#allocation85_spill] sm:$0xff] %v12327_v38  ;;  %v808_v30 = vsub.f32 %v12305_v15, %v16671_v53  ;;  %v8026_v49 = vsel %vm16717_vm14, 1.0, %v17173_v40  ;;  %v8025_v3 = vsel %vm16716_vm15, 1.0, %v17173_v40  ;;  %8434 = vmatprep.subr.mxu1 %v11663_v27  ;;  %789 = vmatprep.mubr.f32.mxu0 %v788_v60  ;;  %v8028_v53 = vsel %vm16718_vm7, 1.0, %v17173_v40 }
  0xeb   : > { %v12356_v29 = vsub.f32 %v8026_v49, %v8026_v49  ;;  %v12358_v31 = vsub.f32 %v8025_v3, %v8025_v3  ;;  %8435 = vmatpush3.msra.mxu1 %v11680_v33  ;;  %vm16728_vm8 = vcmp.eq.s32.totalorder %v12007_v37, %v12314_v43  ;;  %v803_v52 = vand.u32 4294901760, %v802_v32  ;;  %8356 = vmatprep.subr.mxu0 %v11814_v1  ;;  %v17207_v33 = vld [vmem:[#allocation34_spill] sm:$0xff] }
  0xec   : > { %v809_v15 = vand.u32 4294901760, %v808_v30  ;;  %8052 = vmatmul.mubr.msk.f32.gmra.mxu1 %vm16677_vm9, %v17183_v54  ;;  %v12372_v60 = vsub.f32 %v8028_v53, %v8028_v53  ;;  %v8027_v49 = vsel %vm16728_vm8, 1.0, %v17173_v40  ;;  %8357 = vmatpush3.msra.mxu0 %v11826_v14  ;;  %vm16727_vm9 = vcmp.eq.s32.totalorder %v12009_v22, %v12317_v41 }
  0xed   : > { %17196 = vst [vmem:[#allocation86_spill] sm:$0xff] %v12356_v29  ;;  %17197 = vst [vmem:[#allocation87_spill] sm:$0xff] %v12358_v31  ;;  %8053 = vmatprep.mubr.msk.f32.mxu1 %vm16678_vm10, %v17183_v54  ;;  %v16684_v32 = vand.u32 4294901760, %v12358_v31  ;;  %v12385_v30 = vsub.f32 %v8027_v49, %v8027_v49  ;;  %795 = vmatmul.mubr.f32.gmra.mxu0 %v794_v48  ;;  %v8030_v3 = vsel %vm16727_vm9, 1.0, %v17173_v40  ;;  %v17200_v49 = vand.u32 4294901760, %v12356_v29 }
  0xee   : > { %17198 = vst [vmem:[#allocation88_spill] sm:$0xff] %v12372_v60  ;;  %8436 = vmatprep.subr.mxu1 %v11686_v35  ;;  %vm16729_vm10 = vcmp.eq.s32.totalorder %v12007_v37, %v12317_v41  ;;  %vm490_vm6 = vcmp.eq.s32.totalorder %v12009_v22, %v12327_v38  ;;  %804 = vmatprep.mubr.f32.mxu0 %v803_v52  ;;  %v17202_v52 = vand.u32 4294901760, %v12372_v60 }
  0xef   : > { %17199 = vst [vmem:[#allocation89_spill] sm:$0xff] %v12385_v30  ;;  %v817_v48 = vsub.f32 %v12356_v29, %v17200_v49  ;;  %v823_v53 = vsub.f32 %v12358_v31, %v16684_v32  ;;  %8437 = vmatpush3.msra.mxu1 %v11695_v39  ;;  %v12407_v14 = vsub.f32 %v8030_v3, %v8030_v3  ;;  %v17203_v49 = vld [vmem:[#allocation49_spill] sm:$0xff]  ;;  %v8029_v32 = vsel %vm16729_vm10, 1.0, %v17173_v40  ;;  %v17205_v39 = vld [vmem:[#allocation51_spill] sm:$0xff] }
  0xf0   : > { %8054 = vmatmul.mubr.msk.f32.gmra.mxu1 %vm16720_vm11, %v17183_v54  ;;  %v832_v35 = vsub.f32 %v12372_v60, %v17202_v52  ;;  %8358 = vmatprep.subr.mxu0 %v17203_v49  ;;  %v8032_v3 = vsel %vm490_vm6, 1.0, %v17173_v40  ;;  %vm489_vm5 = vcmp.eq.s32.totalorder %v12007_v37, %v12327_v38  ;;  %v17204_v52 = vand.u32 4294901760, %v12385_v30 }
  0xf1   : > { %17201 = vst [vmem:[#allocation90_spill] sm:$0xff] %v12407_v14  ;;  %v818_v47 = vand.u32 4294901760, %v817_v48  ;;  %v824_v59 = vand.u32 4294901760, %v823_v53  ;;  %8055 = vmatprep.mubr.msk.f32.mxu1 %vm16703_vm12, %v17183_v54  ;;  %v16699_v31 = vand.u32 4294901760, %v12407_v14  ;;  %8359 = vmatpush3.msra.mxu0 %v17205_v39  ;;  %v12436_v29 = vsub.f32 %v8029_v32, %v8029_v32  ;;  %v17219_v39 = vld [vmem:[#allocation57_spill] sm:$0xff] }
  0xf2   : > { %v838_v60 = vsub.f32 %v12385_v30, %v17204_v52  ;;  %810 = vmatmul.mubr.f32.gmra.mxu0 %v809_v15  ;;  %v833_v49 = vand.u32 4294901760, %v832_v35  ;;  %8438 = vmatprep.subr.mxu1 %v17207_v33  ;;  %v12439_v53 = vsub.f32 %v8032_v3, %v8032_v3  ;;  %v8031_v48 = vsel %vm489_vm5, 1.0, %v17173_v40  ;;  %v17209_v30 = vld [vmem:[#allocation36_spill] sm:$0xff] }
  0xf3   : > { %17206 = vst [vmem:[#allocation91_spill] sm:$0xff] %v12436_v29  ;;  %819 = vmatprep.mubr.f32.mxu0 %v818_v47  ;;  %v847_v52 = vsub.f32 %v12407_v14, %v16699_v31  ;;  %8439 = vmatpush3.msra.mxu1 %v17209_v30  ;;  %v12449_v35 = vsub.f32 %v8031_v48, %v8031_v48  ;;  %v16706_v32 = vand.u32 4294901760, %v12436_v29  ;;  %v17212_v47 = vld [vmem:[#allocation53_spill] sm:$0xff]  ;;  %v440_v3 = vadd.s32 96, %v11978_v61  ;;  %v17214_v30 = vld [vmem:[#allocation38_spill] sm:$0xff] }
  0xf4   : > { %17208 = vst [vmem:[#allocation34_spill] sm:$0xff] %v12439_v53  ;;  %v839_v1 = vand.u32 4294901760, %v838_v60  ;;  %v12452_v15 = vadd.s32 %v11633_v17, %v439_v62  ;;  %8056 = vmatmul.mubr.msk.f32.gmra.mxu1 %vm16702_vm13, %v17183_v54  ;;  %8360 = vmatprep.subr.mxu0 %v17212_v47  ;;  %v16709_v60 = vand.u32 4294901760, %v12439_v53  ;;  %v441_v31 = vadd.s32 104, %v11978_v61  ;;  %v17213_v62 = vld [vmem:[#allocation55_spill] sm:$0xff] }
  0xf5   : > { %17210 = vst [vmem:[#allocation92_spill] sm:$0xff] %v12449_v35  ;;  %v848_v48 = vand.u32 4294901760, %v847_v52  ;;  %8057 = vmatprep.mubr.msk.f32.mxu1 %vm16717_vm14, %v17183_v54  ;;  %8361 = vmatpush3.msra.mxu0 %v17213_v62  ;;  %v853_v52 = vsub.f32 %v12436_v29, %v16706_v32  ;;  %v17215_v62 = vand.u32 4294901760, %v12449_v35  ;;  %v17216_v29 = vld [vmem:[#allocation40_spill] sm:$0xff] }
  0xf6   : > { %17211 = vst [vmem:[#allocation93_spill] sm:$0xff] %v12452_v15  ;;  %vm492_vm13 = vcmp.eq.s32.totalorder %v12009_v22, %v12452_v15  ;;  %vm491_vm12 = vcmp.eq.s32.totalorder %v12007_v37, %v12452_v15  ;;  %825 = vmatmul.mubr.f32.gmra.mxu0 %v824_v59  ;;  %v862_v14 = vsub.f32 %v12439_v53, %v16709_v60  ;;  %v17238_v15 = vld [vmem:[#allocation56_spill] sm:$0xff] }
  0xf7   : > { %8440 = vmatprep.subr.mxu1 %v17214_v30  ;;  %v8034_v44 = vsel %vm492_vm13, 1.0, %v17173_v40  ;;  %v8033_v59 = vsel %vm491_vm12, 1.0, %v17173_v40  ;;  %834 = vmatprep.mubr.f32.mxu0 %v833_v49  ;;  %v868_v32 = vsub.f32 %v12449_v35, %v17215_v62  ;;  %v442_v30 = vadd.s32 112, %v11978_v61  ;;  %v17220_v35 = vld [vmem:[#allocation42_spill] sm:$0xff] }
  0xf8   : > { %8441 = vmatpush3.msra.mxu1 %v17216_v29  ;;  %v12492_v60 = vsub.f32 %v8034_v44, %v8034_v44  ;;  %v12494_v53 = vsub.f32 %v8033_v59, %v8033_v59  ;;  %v854_v47 = vand.u32 4294901760, %v853_v52  ;;  %8362 = vmatprep.subr.mxu0 %v17219_v39  ;;  %v12503_v49 = vadd.s32 %v11633_v17, %v440_v3 }
  0xf9   : > { %8058 = vmatmul.mubr.msk.f32.gmra.mxu1 %vm16716_vm15, %v17183_v54  ;;  %v12506_v62 = vadd.s32 %v11633_v17, %v441_v31  ;;  %v863_v44 = vand.u32 4294901760, %v862_v14  ;;  %8363 = vmatpush3.msra.mxu0 %v11921_v58  ;;  %v12516_v19 = vadd.s32 %v11633_v17, %v442_v30  ;;  %v869_v3 = vand.u32 4294901760, %v868_v32  ;;  %v17221_v31 = vld [vmem:[#allocation43_spill] sm:$0xff]  ;;  %v17227_v58 = vld [vmem:[#allocation44_spill] sm:$0xff] }
  0xfa   : > { %17217 = vst [vmem:[#allocation40_spill] sm:$0xff] %v12492_v60  ;;  %17218 = vst [vmem:[#allocation94_spill] sm:$0xff] %v12494_v53  ;;  %8059 = vmatprep.mubr.msk.f32.mxu1 %vm16718_vm7, %v17183_v54  ;;  %v16719_v52 = vand.u32 4294901760, %v12492_v60  ;;  %840 = vmatmul.mubr.f32.gmra.mxu0 %v839_v1  ;;  %vm494_vm15 = vcmp.eq.s32.totalorder %v12009_v22, %v12503_v49  ;;  %vm493_vm14 = vcmp.eq.s32.totalorder %v12007_v37, %v12503_v49 }
  0xfb   : > { %8442 = vmatprep.subr.mxu1 %v17220_v35  ;;  %vm496_vm7 = vcmp.eq.s32.totalorder %v12009_v22, %v12506_v62  ;;  %849 = vmatprep.mubr.f32.mxu0 %v848_v48  ;;  %v8036_v1 = vsel %vm494_vm15, 1.0, %v17173_v40  ;;  %v8035_v30 = vsel %vm493_vm14, 1.0, %v17173_v40  ;;  %v443_v32 = vadd.s32 120, %v11978_v61 }
  0xfc   : > { %v877_v14 = vsub.f32 %v12492_v60, %v16719_v52  ;;  %8443 = vmatpush3.msra.mxu1 %v17221_v31  ;;  %8364 = vmatprep.subr.mxu0 %v11936_v7  ;;  %v12543_v48 = vsub.f32 %v8036_v1, %v8036_v1  ;;  %v12545_v52 = vsub.f32 %v8035_v30, %v8035_v30  ;;  %v8038_v59 = vsel %vm496_vm7, 1.0, %v17173_v40  ;;  %v17225_v30 = vld [vmem:[#allocation62_spill] sm:$0xff] }
  0xfd   : > { %8060 = vmatmul.mubr.msk.f32.gmra.mxu1 %vm16728_vm8, %v17183_v54  ;;  %vm495_vm11 = vcmp.eq.s32.totalorder %v12007_v37, %v12506_v62  ;;  %v17224_v43 = vand.u32 4294901760, %v12494_v53  ;;  %8365 = vmatpush3.msra.mxu0 %v17225_v30  ;;  %v12561_v60 = vsub.f32 %v8038_v59, %v8038_v59  ;;  %vm497_vm8 = vcmp.eq.s32.totalorder %v12007_v37, %v12516_v19 }
  0xfe   : > { %17222 = vst [vmem:[#allocation57_spill] sm:$0xff] %v12543_v48  ;;  %17223 = vst [vmem:[#allocation95_spill] sm:$0xff] %v12545_v52  ;;  %v878_v61 = vand.u32 4294901760, %v877_v14  ;;  %8061 = vmatprep.mubr.msk.f32.mxu1 %vm16727_vm9, %v17183_v54  ;;  %v8037_v31 = vsel %vm495_vm11, 1.0, %v17173_v40  ;;  %855 = vmatmul.mubr.f32.gmra.mxu0 %v854_v47  ;;  %v16731_v14 = vand.u32 4294901760, %v12543_v48  ;;  %vm498_vm9 = vcmp.eq.s32.totalorder %v12009_v22, %v12516_v19 }
  0xff   : > { %v883_v1 = vsub.f32 %v12494_v53, %v17224_v43  ;;  %17226 = vst [vmem:[#allocation62_spill] sm:$0xff] %v12561_v60  ;;  %8444 = vmatprep.subr.mxu1 %v17227_v58  ;;  %v12570_v35 = vsub.f32 %v8037_v31, %v8037_v31  ;;  %864 = vmatprep.mubr.f32.mxu0 %v863_v44  ;;  %v17228_v43 = vld [vmem:[#allocation46_spill] sm:$0xff]  ;;  %v8040_v47 = vsel %vm498_vm9, 1.0, %v17173_v40 }
 0x100   : > { %8445 = vmatpush3.msra.mxu1 %v17228_v43  ;;  %v12583_v7 = vadd.s32 %v11633_v17, %v443_v32  ;;  %v892_v44 = vsub.f32 %v12543_v48, %v16731_v14  ;;  %8366 = vmatprep.subr.mxu0 %v11968_v24  ;;  %v12593_v31 = vsub.f32 %v8040_v47, %v8040_v47  ;;  %v8039_v17 = vsel %vm497_vm8, 1.0, %v17173_v40  ;;  %v17231_v48 = vld [vmem:[#allocation48_spill] sm:$0xff]  ;;  %v17232_v53 = vld [vmem:[#allocation50_spill] sm:$0xff] }
 0x101   : > { %8062 = vmatmul.mubr.msk.f32.gmra.mxu1 %vm16729_vm10, %v17183_v54  ;;  %v884_v59 = vand.u32 4294901760, %v883_v1  ;;  %8367 = vmatpush3.msra.mxu0 %v11988_v0  ;;  %v17229_v1 = vand.u32 4294901760, %v12545_v52  ;;  %v17230_v14 = vand.u32 4294901760, %v12561_v60  ;;  %v16746_v0 = vand.u32 4294901760, %v12570_v35  ;;  %v17234_v43 = vld [vmem:[#allocation52_spill] sm:$0xff] }
 0x102   : > { %8063 = vmatprep.mubr.msk.f32.mxu1 %vm490_vm6, %v17183_v54  ;;  %vm500_vm10 = vcmp.eq.s32.totalorder %v12009_v22, %v12583_v7  ;;  %vm16750_vm4 = vcmp.eq.s32.totalorder %v12007_v37, %v12583_v7  ;;  %870 = vmatmul.mubr.f32.gmra.mxu0 %v869_v3  ;;  %v893_v32 = vand.u32 4294901760, %v892_v44  ;;  %v12618_v24 = vsub.f32 %v8039_v17, %v8039_v17  ;;  %v17233_v44 = vld [vmem:[#allocation66_spill] sm:$0xff] }
 0x103   : > { %v898_v47 = vsub.f32 %v12545_v52, %v17229_v1  ;;  %v907_v41 = vsub.f32 %v12561_v60, %v17230_v14  ;;  %8446 = vmatprep.subr.mxu1 %v17231_v48  ;;  %879 = vmatprep.mubr.f32.mxu0 %v878_v61  ;;  %v8042_v3 = vsel %vm500_vm10, 1.0, %v17173_v40  ;;  %v8041_v14 = vsel %vm16750_vm4, 1.0, %v17173_v40 }
 0x104   : > { %8447 = vmatpush3.msra.mxu1 %v17232_v53  ;;  %8368 = vmatprep.subr.mxu0 %v12004_v51  ;;  %v12633_v61 = vsub.f32 %v8042_v3, %v8042_v3  ;;  %v913_v40 = vsub.f32 %v12570_v35, %v16746_v0  ;;  %v927_v1 = vand.u32 4294901760, %v12618_v24  ;;  %v12645_v38 = vsub.f32 %v8041_v14, %v8041_v14  ;;  %v17236_v53 = vld [vmem:[#allocation54_spill] sm:$0xff] }
 0x105   : > { %8064 = vmatmul.mubr.msk.f32.gmra.mxu1 %vm489_vm5, %v17183_v54  ;;  %8369 = vmatpush3.msra.mxu0 %v17233_v44  ;;  %v899_v17 = vand.u32 4294901760, %v898_v47  ;;  %v908_v3 = vand.u32 4294901760, %v907_v41  ;;  %v17235_v60 = vand.u32 4294901760, %v12593_v31  ;;  %v17237_v47 = vld [vmem:[#allocation67_spill] sm:$0xff] }
 0x106   : > { %8065 = vmatprep.mubr.msk.f32.mxu1 %vm492_vm13, %v17183_v54  ;;  %885 = vmatmul.mubr.f32.gmra.mxu0 %v884_v59  ;;  %v16749_v59 = vand.u32 4294901760, %v12633_v61  ;;  %v914_v41 = vand.u32 4294901760, %v913_v40 }
 0x107   : > { %8448 = vmatprep.subr.mxu1 %v17234_v43  ;;  %894 = vmatprep.mubr.f32.mxu0 %v893_v32  ;;  %v922_v52 = vsub.f32 %v12593_v31, %v17235_v60  ;;  %v928_v60 = vsub.f32 %v12618_v24, %v927_v1  ;;  %v942_v32 = vand.u32 4294901760, %v12645_v38 }
 0x108   : > { %8449 = vmatpush3.msra.mxu1 %v17236_v53  ;;  %8370 = vmatprep.subr.mxu0 %v17237_v47  ;;  %v937_v0 = vsub.f32 %v12633_v61, %v16749_v59  ;;  %v17240_v59 = vld [vmem:[#allocation60_spill] sm:$0xff] }
 0x109   : > { %8066 = vmatmul.mubr.msk.f32.gmra.mxu1 %vm491_vm12, %v17183_v54  ;;  %8371 = vmatpush3.msra.mxu0 %v12060_v55  ;;  %v923_v14 = vand.u32 4294901760, %v922_v52  ;;  %v929_v52 = vand.u32 4294901760, %v928_v60  ;;  %v943_v40 = vsub.f32 %v12645_v38, %v942_v32 }
 0x10a   : > { %8067 = vmatprep.mubr.msk.f32.mxu1 %vm494_vm15, %v17183_v54  ;;  %900 = vmatmul.mubr.f32.gmra.mxu0 %v899_v17  ;;  %v17239_v17 = vld [vmem:[#allocation58_spill] sm:$0xff] }
 0x10b   : > { %8372 = vmatprep.subr.mxu0 %v12080_v21  ;;  %909 = vmatprep.mubr.f32.mxu0 %v908_v3  ;;  %v938_v3 = vand.u32 4294901760, %v937_v0  ;;  %v17241_v0 = vld [vmem:[#allocation28_spill] sm:$0xff] }
 0x10c   : > { %8450 = vmatprep.subr.mxu1 %v17238_v15  ;;  %8373 = vmatpush3.msra.mxu0 %v12098_v45  ;;  %v17242_v60 = vand.u32 4294901760, %v17241_v0 }
 0x10d   : > { %8068 = vmatmul.mubr.msk.f32.gmra.mxu1 %vm493_vm14, %v17183_v54  ;;  %8374 = vmatprep.subr.mxu0 %v12103_v8 }
 0x10e   : > { %8069 = vmatprep.mubr.msk.f32.mxu1 %vm496_vm7, %v17183_v54  ;;  %8451 = vmatpush3.msra.mxu1 %v17239_v17 }
 0x10f   : > { %915 = vmatmul.mubr.f32.gmra.mxu0 %v914_v41  ;;  %8452 = vmatprep.subr.mxu1 %v17240_v59  ;;  %v944_v41 = vand.u32 4294901760, %v943_v40  ;;  %v17245_v40 = vld [vmem:[#allocation70_spill] sm:$0xff] }
 0x110   : > { %924 = vmatprep.mubr.f32.mxu0 %v923_v14  ;;  %8375 = vmatpush3.msra.mxu0 %v12117_v36  ;;  %v17243_v14 = vld [vmem:[#allocation69_spill] sm:$0xff]  ;;  %v17249_v0 = vand.u32 4294901760, %v17245_v40 }
 0x111   : > { %8070 = vmatmul.mubr.msk.f32.gmra.mxu1 %vm495_vm11, %v17183_v54  ;;  %8504 = vmatprep.subr.mxu0 %v17242_v60  ;;  %v17252_v60 = vld [vmem:[#allocation31_spill] sm:$0xff] }
 0x112   : > { %8071 = vmatprep.mubr.msk.f32.mxu1 %vm498_vm9, %v17183_v54  ;;  %8453 = vmatpush3.msra.mxu1 %v11944_v63 }
 0x113   : > { %930 = vmatmul.mubr.f32.gmra.mxu0 %v929_v52  ;;  %8454 = vmatprep.subr.mxu1 %v11959_v46  ;;  %v17244_v52 = vand.u32 4294901760, %v17243_v14 }
 0x114   : > { %939 = vmatprep.mubr.f32.mxu0 %v938_v3  ;;  %8455 = vmatpush3.msra.mxu1 %v11975_v2  ;;  %v17246_v3 = vand.u32 4294901760, %v11660_v26  ;;  %v17250_v26 = vand.u32 4294901760, %v11683_v34 }
 0x115   : > { %8072 = vmatmul.mubr.msk.f32.gmra.mxu1 %vm497_vm8, %v17183_v54  ;;  %8584 = vmatprep.subr.mxu1 %v11613_v4  ;;  %v17247_v4 = vand.u32 4294901760, %v12050_v23 }
 0x116   : > { %8073 = vmatprep.mubr.msk.f32.mxu1 %vm500_vm10, %v17183_v54 }
 0x117   : > { %945 = vmatmul.mubr.f32.gmra.mxu0 %v944_v41  ;;  %v17248_v41 = vand.u32 4294901760, %v11666_v28  ;;  %v17253_v28 = vand.u32 4294901760, %v17252_v60  ;;  %v17271_v60 = vld [vmem:[#allocation78_spill] sm:$0xff] }
 0x118   : > { %1417 = vmatprep.mubr.f32.mxu0 %v17243_v14  ;;  %v17255_v14 = vld [vmem:[#allocation73_spill] sm:$0xff] }
 0x119   : > { %8074 = vmatmul.mubr.msk.f32.gmra.mxu1 %vm16750_vm4, %v17183_v54 }
 0x11a   : > { %1659 = vmatprep.mubr.f32.mxu1 %v17244_v52  ;;  %v17257_v52 = vld [vmem:[#allocation33_spill] sm:$0xff] }
 0x11b   : > { %1420 = vmatmul.mubr.f32.vlgmr.msra.gmra.mxu0 %v12050_v23  ;;  %v17251_v23 = vand.u32 4294901760, %v12093_v16  ;;  %v17258_v34 = vand.u32 4294901760, %v17257_v52  ;;  %v17279_v52 = vand.u32 4294901760, %v12261_v10 }
 0x11c   : > { %1426 = vmatprep.mubr.f32.mxu0 %v17245_v40  ;;  %8505 = vmatpush3.msra.mxu0 %v17246_v3  ;;  %v17260_v40 = vld [vmem:[#allocation35_spill] sm:$0xff] }
 0x11d   : > { %1663 = vmatmul.mubr.f32.vlgmr.msra.gmra.mxu1 %v17247_v4  ;;  %8506 = vmatprep.subr.mxu0 %v17248_v41  ;;  %v17261_v3 = vand.u32 4294901760, %v17260_v40  ;;  %v17266_v41 = vand.u32 4294901760, %v12181_v57  ;;  %v17284_v40 = vld [vmem:[#allocation81_spill] sm:$0xff] }
 0x11e   : > { %8585 = vmatpush3.msra.mxu1 %v11615_v5  ;;  %1670 = vmatprep.mubr.f32.mxu1 %v17249_v0  ;;  %v17254_v5 = vand.u32 4294901760, %v12159_v42  ;;  %v17267_v0 = vld [vmem:[#allocation39_spill] sm:$0xff] }
 0x11f   : > { %1429 = vmatmul.mubr.f32.gmra.mxu0 %v12093_v16  ;;  %8586 = vmatprep.subr.mxu1 %v11617_v6  ;;  %v17256_v6 = vld [vmem:[#allocation74_spill] sm:$0xff]  ;;  %v17259_v16 = vand.u32 4294901760, %v17255_v14 }
 0x120   : > { %1435 = vmatprep.mubr.f32.mxu0 %v12159_v42  ;;  %8507 = vmatpush3.msra.mxu0 %v17250_v26  ;;  %v17264_v42 = vld [vmem:[#allocation37_spill] sm:$0xff]  ;;  %v17268_v26 = vand.u32 4294901760, %v17267_v0  ;;  %v17295_v0 = vld [vmem:[#allocation88_spill] sm:$0xff] }
 0x121   : > { %1674 = vmatmul.mubr.f32.gmra.mxu1 %v17251_v23  ;;  %8508 = vmatprep.subr.mxu0 %v17253_v28  ;;  %v17265_v4 = vand.u32 4294901760, %v17264_v42  ;;  %v17269_v23 = vld [vmem:[#allocation27_spill] sm:$0xff]  ;;  %v17273_v28 = vld [vmem:[#allocation41_spill] sm:$0xff] }
 0x122   : > { %8587 = vmatpush3.msra.mxu1 %v11622_v11  ;;  %1681 = vmatprep.mubr.f32.mxu1 %v17254_v5  ;;  %v17262_v11 = vand.u32 4294901760, %v17256_v6  ;;  %v17274_v5 = vand.u32 4294901760, %v17273_v28  ;;  %v17301_v28 = vld [vmem:[#allocation36_spill] sm:$0xff] }
 0x123   : > { %1438 = vmatmul.mubr.f32.gmra.mxu0 %v17255_v14  ;;  %8588 = vmatprep.subr.mxu1 %v11624_v12  ;;  %v17263_v12 = vld [vmem:[#allocation77_spill] sm:$0xff]  ;;  %v17276_v14 = vand.u32 4294901760, %v11787_v50 }
 0x124   : > { %1444 = vmatprep.mubr.f32.mxu0 %v17256_v6  ;;  %8509 = vmatpush3.msra.mxu0 %v17258_v34  ;;  %v17280_v34 = vld [vmem:[#allocation45_spill] sm:$0xff] }
 0x125   : > { %1685 = vmatmul.mubr.f32.gmra.mxu1 %v17259_v16  ;;  %8510 = vmatprep.subr.mxu0 %v17261_v3  ;;  %v17281_v50 = vand.u32 4294901760, %v17280_v34  ;;  %v17282_v16 = vld [vmem:[#allocation29_spill] sm:$0xff]  ;;  %v17285_v3 = vld [vmem:[#allocation30_spill] sm:$0xff]  ;;  %v17309_v34 = vand.u32 4294901760, %v17219_v39 }
 0x126   : > { %8589 = vmatpush3.msra.mxu1 %v11626_v13  ;;  %1692 = vmatprep.mubr.f32.mxu1 %v17262_v11  ;;  %v17270_v13 = vand.u32 4294901760, %v17263_v12  ;;  %v17287_v11 = vld [vmem:[#allocation47_spill] sm:$0xff] }
 0x127   : > { %1447 = vmatmul.mubr.f32.gmra.mxu0 %v12181_v57  ;;  %8590 = vmatprep.subr.mxu1 %v11636_v18  ;;  %v17272_v18 = vld [vmem:[#allocation79_spill] sm:$0xff]  ;;  %v17275_v57 = vand.u32 4294901760, %v17271_v60 }
 0x128   : > { %1453 = vmatprep.mubr.f32.mxu0 %v17263_v12  ;;  %8511 = vmatpush3.msra.mxu0 %v17265_v4  ;;  %v17277_v6 = vand.u32 4294901760, %v17272_v18  ;;  %v17290_v12 = vld [vmem:[#allocation49_spill] sm:$0xff]  ;;  %v17292_v4 = vld [vmem:[#allocation32_spill] sm:$0xff] }
 0x129   : > { %1696 = vmatmul.mubr.f32.gmra.mxu1 %v17266_v41  ;;  %8512 = vmatprep.subr.mxu0 %v17268_v26  ;;  %v17291_v42 = vand.u32 4294901760, %v17290_v12  ;;  %v17294_v41 = vld [vmem:[#allocation87_spill] sm:$0xff]  ;;  %v17321_v12 = vld [vmem:[#allocation92_spill] sm:$0xff] }
 0x12a   : > { %8591 = vmatpush3.msra.mxu1 %v17269_v23  ;;  %1703 = vmatprep.mubr.f32.mxu1 %v17270_v13  ;;  %v17296_v26 = vld [vmem:[#allocation51_spill] sm:$0xff]  ;;  %v17298_v13 = vand.u32 4294901760, %v17294_v41 }
 0x12b   : > { %1456 = vmatmul.mubr.f32.gmra.mxu0 %v17271_v60  ;;  %8592 = vmatprep.subr.mxu1 %v11641_v20  ;;  %v17278_v20 = vand.u32 4294901760, %v11799_v56  ;;  %v17288_v56 = vand.u32 4294901760, %v17287_v11  ;;  %v17297_v23 = vand.u32 4294901760, %v17296_v26  ;;  %v17299_v60 = vld [vmem:[#allocation53_spill] sm:$0xff]  ;;  %v17327_v26 = vld [vmem:[#allocation46_spill] sm:$0xff] }
 0x12c   : > { %1462 = vmatprep.mubr.f32.mxu0 %v17272_v18  ;;  %8513 = vmatpush3.msra.mxu0 %v17274_v5  ;;  %v17300_v18 = vand.u32 4294901760, %v17299_v60  ;;  %v17302_v5 = vand.u32 4294901760, %v17295_v0  ;;  %v17331_v60 = vld [vmem:[#allocation64_spill] sm:$0xff] }
 0x12d   : > { %1707 = vmatmul.mubr.f32.gmra.mxu1 %v17275_v57  ;;  %8514 = vmatprep.subr.mxu0 %v17276_v14  ;;  %v17303_v57 = vld [vmem:[#allocation89_spill] sm:$0xff]  ;;  %v17304_v14 = vld [vmem:[#allocation38_spill] sm:$0xff] }
 0x12e   : > { %8593 = vmatpush3.msra.mxu1 %v11657_v25  ;;  %1714 = vmatprep.mubr.f32.mxu1 %v17277_v6  ;;  %v17283_v25 = vand.u32 4294901760, %v12303_v9  ;;  %v17306_v6 = vld [vmem:[#allocation55_spill] sm:$0xff] }
 0x12f   : > { %1465 = vmatmul.mubr.f32.gmra.mxu0 %v12261_v10  ;;  %8594 = vmatprep.subr.mxu1 %v11663_v27  ;;  %v17286_v27 = vld [vmem:[#allocation86_spill] sm:$0xff]  ;;  %v17289_v10 = vand.u32 4294901760, %v17284_v40 }
 0x130   : > { %1471 = vmatprep.mubr.f32.mxu0 %v12303_v9  ;;  %8515 = vmatpush3.msra.mxu0 %v17278_v20  ;;  %v17293_v9 = vand.u32 4294901760, %v17286_v27  ;;  %v17307_v20 = vand.u32 4294901760, %v17306_v6 }
 0x131   : > { %1718 = vmatmul.mubr.f32.gmra.mxu1 %v17279_v52  ;;  %8516 = vmatprep.subr.mxu0 %v17281_v50  ;;  %v17308_v52 = vand.u32 4294901760, %v17303_v57 }
 0x132   : > { %8595 = vmatpush3.msra.mxu1 %v17282_v16  ;;  %1725 = vmatprep.mubr.f32.mxu1 %v17283_v25  ;;  %v17311_v16 = vld [vmem:[#allocation91_spill] sm:$0xff]  ;;  %v17312_v25 = vld [vmem:[#allocation42_spill] sm:$0xff] }
 0x133   : > { %1474 = vmatmul.mubr.f32.gmra.mxu0 %v17284_v40  ;;  %8596 = vmatprep.subr.mxu1 %v17285_v3  ;;  %v17313_v40 = vld [vmem:[#allocation34_spill] sm:$0xff]  ;;  %v17314_v3 = vld [vmem:[#allocation59_spill] sm:$0xff]  ;;  %v17316_v11 = vand.u32 4294901760, %v17311_v16 }
 0x134   : > { %1480 = vmatprep.mubr.f32.mxu0 %v17286_v27  ;;  %8517 = vmatpush3.msra.mxu0 %v17288_v56  ;;  %v17315_v27 = vand.u32 4294901760, %v17314_v3  ;;  %v17317_v56 = vld [vmem:[#allocation61_spill] sm:$0xff] }
 0x135   : > { %1729 = vmatmul.mubr.f32.gmra.mxu1 %v17289_v10  ;;  %8518 = vmatprep.subr.mxu0 %v17291_v42  ;;  %v17318_v39 = vand.u32 4294901760, %v17317_v56  ;;  %v17319_v10 = vld [vmem:[#allocation43_spill] sm:$0xff]  ;;  %v17322_v42 = vld [vmem:[#allocation40_spill] sm:$0xff] }
 0x136   : > { %8597 = vmatpush3.msra.mxu1 %v17292_v4  ;;  %1736 = vmatprep.mubr.f32.mxu1 %v17293_v9  ;;  %v17323_v4 = vand.u32 4294901760, %v17225_v30  ;;  %v17324_v9 = vand.u32 4294901760, %v17321_v12  ;;  %v17332_v30 = vand.u32 4294901760, %v17331_v60 }
 0x137   : > { %1483 = vmatmul.mubr.f32.gmra.mxu0 %v17294_v41  ;;  %8598 = vmatprep.subr.mxu1 %v17207_v33  ;;  %v17305_v33 = vld [vmem:[#allocation90_spill] sm:$0xff]  ;;  %v17325_v41 = vld [vmem:[#allocation63_spill] sm:$0xff] }
 0x138   : > { %1489 = vmatprep.mubr.f32.mxu0 %v17295_v0  ;;  %8519 = vmatpush3.msra.mxu0 %v17297_v23  ;;  %v17310_v50 = vand.u32 4294901760, %v17305_v33  ;;  %v17326_v0 = vand.u32 4294901760, %v17325_v41  ;;  %v17328_v23 = vand.u32 4294901760, %v17322_v42 }
 0x139   : > { %1740 = vmatmul.mubr.f32.gmra.mxu1 %v17298_v13  ;;  %8520 = vmatprep.subr.mxu0 %v17300_v18  ;;  %v17329_v13 = vld [vmem:[#allocation94_spill] sm:$0xff] }
 0x13a   : > { %8599 = vmatpush3.msra.mxu1 %v17301_v28  ;;  %1747 = vmatprep.mubr.f32.mxu1 %v17302_v5  ;;  %v17333_v18 = vand.u32 4294901760, %v17329_v13  ;;  %v17334_v28 = vand.u32 4294901760, %v12004_v51  ;;  %v17335_v5 = vld [vmem:[#allocation50_spill] sm:$0xff]  ;;  %v17341_v51 = vand.u32 4294901760, %v17237_v47  ;;  %v17345_v47 = vand.u32 4294901760, %v12080_v21 }
 0x13b   : > { %1492 = vmatmul.mubr.f32.gmra.mxu0 %v17303_v57  ;;  %8600 = vmatprep.subr.mxu1 %v17304_v14  ;;  %v17337_v14 = vld [vmem:[#allocation95_spill] sm:$0xff] }
 0x13c   : > { %1498 = vmatprep.mubr.f32.mxu0 %v17305_v33  ;;  %8521 = vmatpush3.msra.mxu0 %v17307_v20  ;;  %v17339_v33 = vand.u32 4294901760, %v17233_v44  ;;  %v17340_v6 = vand.u32 4294901760, %v17337_v14  ;;  %v17344_v44 = vand.u32 4294901760, %v12570_v35 }
 0x13d   : > { %1751 = vmatmul.mubr.f32.gmra.mxu1 %v17308_v52  ;;  %8522 = vmatprep.subr.mxu0 %v17309_v34 }
 0x13e   : > { %8601 = vmatpush3.msra.mxu1 %v17216_v29  ;;  %1758 = vmatprep.mubr.f32.mxu1 %v17310_v50  ;;  %v17320_v29 = vand.u32 4294901760, %v17313_v40 }
 0x13f   : > { %1501 = vmatmul.mubr.f32.gmra.mxu0 %v17311_v16  ;;  %8602 = vmatprep.subr.mxu1 %v17312_v25 }
 0x140   : > { %1507 = vmatprep.mubr.f32.mxu0 %v17313_v40  ;;  %8523 = vmatpush3.msra.mxu0 %v17315_v27 }
 0x141   : > { %1762 = vmatmul.mubr.f32.gmra.mxu1 %v17316_v11  ;;  %8524 = vmatprep.subr.mxu0 %v17318_v39 }
 0x142   : > { %8603 = vmatpush3.msra.mxu1 %v17319_v10  ;;  %1769 = vmatprep.mubr.f32.mxu1 %v17320_v29 }
 0x143   : > { %1510 = vmatmul.mubr.f32.gmra.mxu0 %v17321_v12  ;;  %8604 = vmatprep.subr.mxu1 %v17227_v58  ;;  %v17330_v58 = vld [vmem:[#allocation57_spill] sm:$0xff] }
 0x144   : > { %1516 = vmatprep.mubr.f32.mxu0 %v17322_v42  ;;  %8525 = vmatpush3.msra.mxu0 %v17323_v4  ;;  %v17336_v57 = vand.u32 4294901760, %v17330_v58 }
 0x145   : > { %1773 = vmatmul.mubr.f32.gmra.mxu1 %v17324_v9  ;;  %8526 = vmatprep.subr.mxu0 %v17326_v0 }
 0x146   : > { %8605 = vmatpush3.msra.mxu1 %v17327_v26  ;;  %1780 = vmatprep.mubr.f32.mxu1 %v17328_v23 }
 0x147   : > { %1519 = vmatmul.mubr.f32.gmra.mxu0 %v17329_v13  ;;  %8606 = vmatprep.subr.mxu1 %v17231_v48  ;;  %v17338_v48 = vld [vmem:[#allocation62_spill] sm:$0xff] }
 0x148   : > { %1525 = vmatprep.mubr.f32.mxu0 %v17330_v58  ;;  %8527 = vmatpush3.msra.mxu0 %v17332_v30  ;;  %v17342_v20 = vand.u32 4294901760, %v17338_v48 }
 0x149   : > { %1784 = vmatmul.mubr.f32.gmra.mxu1 %v17333_v18  ;;  %8528 = vmatprep.subr.mxu0 %v17334_v28 }
 0x14a   : > { %8607 = vmatpush3.msra.mxu1 %v17335_v5  ;;  %1791 = vmatprep.mubr.f32.mxu1 %v17336_v57 }
 0x14b   : > { %1528 = vmatmul.mubr.f32.gmra.mxu0 %v17337_v14  ;;  %8608 = vmatprep.subr.mxu1 %v17234_v43  ;;  %v17343_v43 = vand.u32 4294901760, %v12060_v55  ;;  %v17348_v55 = vand.u32 4294901760, %v12593_v31 }
 0x14c   : > { %1534 = vmatprep.mubr.f32.mxu0 %v17338_v48  ;;  %8529 = vmatpush3.msra.mxu0 %v17339_v33 }
 0x14d   : > { %1795 = vmatmul.mubr.f32.gmra.mxu1 %v17340_v6  ;;  %8530 = vmatprep.subr.mxu0 %v17341_v51 }
 0x14e   : > { %8609 = vmatpush3.msra.mxu1 %v17236_v53  ;;  %1802 = vmatprep.mubr.f32.mxu1 %v17342_v20  ;;  %v17346_v53 = vand.u32 4294901760, %v12098_v45  ;;  %v17350_v45 = vand.u32 4294901760, %v12633_v61 }
 0x14f   : > { %1537 = vmatmul.mubr.f32.gmra.mxu0 %v12570_v35  ;;  %8610 = vmatprep.subr.mxu1 %v17238_v15  ;;  %v17347_v15 = vand.u32 4294901760, %v12103_v8  ;;  %v17349_v35 = vand.u32 4294901760, %v12117_v36  ;;  %v17367_v8 = vld [vmem:[#allocation76_spill] sm:$0xff] }
 0x150   : > { %1543 = vmatprep.mubr.f32.mxu0 %v12593_v31  ;;  %8531 = vmatpush3.msra.mxu0 %v17343_v43  ;;  %v17372_v36 = vld [vmem:[#allocation80_spill] sm:$0xff]  ;;  %v17382_v31 = vld [vmem:[#allocation83_spill] sm:$0xff] }
 0x151   : > { %1806 = vmatmul.mubr.f32.gmra.mxu1 %v17344_v44  ;;  %8532 = vmatprep.subr.mxu0 %v17345_v47 }
 0x152   : > { %8533 = vmatpush3.msra.mxu0 %v17346_v53  ;;  %8611 = vmatpush3.msra.mxu1 %v17239_v17 }
 0x153   : > { %1546 = vmatmul.mubr.f32.gmra.mxu0 %v12618_v24  ;;  %8534 = vmatprep.subr.mxu0 %v17347_v15 }
 0x154   : > { %1552 = vmatprep.mubr.f32.mxu0 %v12633_v61  ;;  %1813 = vmatprep.mubr.f32.mxu1 %v17348_v55  ;;  %v17387_v61 = vld [vmem:[#allocation84_spill] sm:$0xff] }
 0x155   : > { %8535 = vmatpush3.msra.mxu0 %v17349_v35  ;;  %1817 = vmatmul.mubr.f32.gmra.mxu1 %v927_v1 }
 0x156   : > { %8612 = vmatprep.subr.mxu1 %v17240_v59  ;;  %1824 = vmatprep.mubr.f32.mxu1 %v17350_v45 }
 0x157   : > { %1555 = vmatmul.mubr.f32.gmra.mxu0 %v12645_v38  ;;  %8613 = vmatpush3.msra.mxu1 %v11944_v63  ;;  %v17362_v63 = vld [vmem:[#allocation75_spill] sm:$0xff]  ;;  %v17377_v38 = vld [vmem:[#allocation82_spill] sm:$0xff] }
 0x158   : > { %8075 = vmatprep.mubr.msk.f32.mxu0 %vm470_vm0, %v17183_v54  ;;  %8614 = vmatprep.subr.mxu1 %v11959_v46  ;;  %v17353_v46 = vld [vmem:[#allocation71_spill] sm:$0xff] }
 0x159   : > { %1828 = vmatmul.mubr.f32.gmra.mxu1 %v942_v32 }
 0x15a   : > { %8615 = vmatpush3.msra.mxu1 %v11975_v2  ;;  %8107 = vmatprep.mubr.msk.f32.mxu1 %vm470_vm0, %v17183_v54  ;;  %vm17354_vm0 = vcmp.eq.s32.totalorder %v12009_v22, %v17353_v46  ;;  %v17357_v2 = vld [vmem:[#allocation72_spill] sm:$0xff] }
 0x15b   : > { %8076 = vmatmul.mubr.msk.f32.vlgmr.msra.gmra.mxu0 %vm469_vm1, %v17183_v54  ;;  %vm17358_vm4 = vcmp.eq.s32.totalorder %v12009_v22, %v17357_v2 }
 0x15c   : > { %8077 = vmatprep.mubr.msk.f32.mxu0 %vm472_vm2, %v17183_v54 }
 0x15d   : > { %8108 = vmatmul.mubr.msk.f32.vlgmr.msra.gmra.mxu1 %vm469_vm1, %v17183_v54  ;;  %vm17355_vm1 = vmmov %vm17354_vm0 }
 0x15e   : > { %8109 = vmatprep.mubr.msk.f32.mxu1 %vm472_vm2, %v17183_v54  ;;  %vm17356_vm2 = vcmp.eq.s32.totalorder %v12007_v37, %v17353_v46 }
 0x15f   : > { %8078 = vmatmul.mubr.msk.f32.gmra.mxu0 %vm471_vm3, %v17183_v54 }
 0x160   : > { %8079 = vmatprep.mubr.msk.f32.mxu0 %vm17354_vm0, %v17183_v54  ;;  %vm17359_vm0 = vmmov %vm17356_vm2 }
 0x161   : > { %8110 = vmatmul.mubr.msk.f32.gmra.mxu1 %vm471_vm3, %v17183_v54  ;;  %vm17360_vm3 = vmmov %vm17358_vm4 }
 0x162   : > { %8111 = vmatprep.mubr.msk.f32.mxu1 %vm17355_vm1, %v17183_v54  ;;  %vm17361_vm1 = vcmp.eq.s32.totalorder %v12007_v37, %v17357_v2 }
 0x163   : > { %8080 = vmatmul.mubr.msk.f32.gmra.mxu0 %vm17356_vm2, %v17183_v54  ;;  %vm17363_vm2 = vcmp.eq.s32.totalorder %v12009_v22, %v17362_v63 }
 0x164   : > { %8081 = vmatprep.mubr.msk.f32.mxu0 %vm17358_vm4, %v17183_v54  ;;  %vm17364_vm4 = vmmov %vm17361_vm1 }
 0x165   : > { %8112 = vmatmul.mubr.msk.f32.gmra.mxu1 %vm17359_vm0, %v17183_v54  ;;  %vm17365_vm0 = vmmov %vm17363_vm2 }
 0x166   : > { %8113 = vmatprep.mubr.msk.f32.mxu1 %vm17360_vm3, %v17183_v54  ;;  %vm17366_vm3 = vcmp.eq.s32.totalorder %v12007_v37, %v17362_v63 }
 0x167   : > { %8082 = vmatmul.mubr.msk.f32.gmra.mxu0 %vm17361_vm1, %v17183_v54  ;;  %vm17368_vm1 = vcmp.eq.s32.totalorder %v12009_v22, %v17367_v8 }
 0x168   : > { %8083 = vmatprep.mubr.msk.f32.mxu0 %vm17363_vm2, %v17183_v54  ;;  %vm17369_vm2 = vmmov %vm17366_vm3 }
 0x169   : > { %8114 = vmatmul.mubr.msk.f32.gmra.mxu1 %vm17364_vm4, %v17183_v54  ;;  %vm17370_vm4 = vmmov %vm17368_vm1 }
 0x16a   : > { %8115 = vmatprep.mubr.msk.f32.mxu1 %vm17365_vm0, %v17183_v54  ;;  %vm17371_vm0 = vcmp.eq.s32.totalorder %v12007_v37, %v17367_v8 }
 0x16b   : > { %8084 = vmatmul.mubr.msk.f32.gmra.mxu0 %vm17366_vm3, %v17183_v54  ;;  %vm17373_vm3 = vcmp.eq.s32.totalorder %v12009_v22, %v17372_v36 }
 0x16c   : > { %8085 = vmatprep.mubr.msk.f32.mxu0 %vm17368_vm1, %v17183_v54  ;;  %vm17374_vm1 = vmmov %vm17371_vm0 }
 0x16d   : > { %8116 = vmatmul.mubr.msk.f32.gmra.mxu1 %vm17369_vm2, %v17183_v54  ;;  %vm17375_vm2 = vmmov %vm17373_vm3 }
 0x16e   : > { %8117 = vmatprep.mubr.msk.f32.mxu1 %vm17370_vm4, %v17183_v54  ;;  %vm17376_vm4 = vcmp.eq.s32.totalorder %v12007_v37, %v17372_v36 }
 0x16f   : > { %8086 = vmatmul.mubr.msk.f32.gmra.mxu0 %vm17371_vm0, %v17183_v54  ;;  %vm17378_vm0 = vcmp.eq.s32.totalorder %v12009_v22, %v17377_v38 }
 0x170   : > { %8087 = vmatprep.mubr.msk.f32.mxu0 %vm17373_vm3, %v17183_v54  ;;  %vm17379_vm3 = vmmov %vm17376_vm4 }
 0x171   : > { %8118 = vmatmul.mubr.msk.f32.gmra.mxu1 %vm17374_vm1, %v17183_v54  ;;  %vm17380_vm1 = vmmov %vm17378_vm0 }
 0x172   : > { %8119 = vmatprep.mubr.msk.f32.mxu1 %vm17375_vm2, %v17183_v54  ;;  %vm17381_vm2 = vcmp.eq.s32.totalorder %v12007_v37, %v17377_v38 }
 0x173   : > { %8088 = vmatmul.mubr.msk.f32.gmra.mxu0 %vm17376_vm4, %v17183_v54  ;;  %vm17383_vm4 = vcmp.eq.s32.totalorder %v12009_v22, %v17382_v31 }
 0x174   : > { %8089 = vmatprep.mubr.msk.f32.mxu0 %vm17378_vm0, %v17183_v54  ;;  %vm17384_vm0 = vmmov %vm17381_vm2 }
 0x175   : > { %8120 = vmatmul.mubr.msk.f32.gmra.mxu1 %vm17379_vm3, %v17183_v54  ;;  %vm17385_vm3 = vmmov %vm17383_vm4 }
 0x176   : > { %8121 = vmatprep.mubr.msk.f32.mxu1 %vm17380_vm1, %v17183_v54  ;;  %vm17386_vm1 = vcmp.eq.s32.totalorder %v12007_v37, %v17382_v31 }
 0x177   : > { %8090 = vmatmul.mubr.msk.f32.gmra.mxu0 %vm17381_vm2, %v17183_v54  ;;  %vm17388_vm2 = vcmp.eq.s32.totalorder %v12009_v22, %v17387_v61 }
 0x178   : > { %8091 = vmatprep.mubr.msk.f32.mxu0 %vm17383_vm4, %v17183_v54  ;;  %vm17389_vm4 = vmmov %vm17386_vm1 }
 0x179   : > { %8122 = vmatmul.mubr.msk.f32.gmra.mxu1 %vm17384_vm0, %v17183_v54  ;;  %vm17390_vm0 = vmmov %vm17388_vm2 }
 0x17a   : > { %8123 = vmatprep.mubr.msk.f32.mxu1 %vm17385_vm3, %v17183_v54  ;;  %vm17391_vm3 = vcmp.eq.s32.totalorder %v12007_v37, %v17387_v61 }
 0x17b   : > { %8092 = vmatmul.mubr.msk.f32.gmra.mxu0 %vm17386_vm1, %v17183_v54  ;;  %vm17393_vm1 = vmmov %vm17391_vm3 }
 0x17c   : > { %8093 = vmatprep.mubr.msk.f32.mxu0 %vm17388_vm2, %v17183_v54 }
 0x17d   : > { %8124 = vmatmul.mubr.msk.f32.gmra.mxu1 %vm17389_vm4, %v17183_v54 }
 0x17e   : > { %8125 = vmatprep.mubr.msk.f32.mxu1 %vm17390_vm0, %v17183_v54 }
 0x17f   : > { %8094 = vmatmul.mubr.msk.f32.gmra.mxu0 %vm17391_vm3, %v17183_v54 }
 0x180   : > { %8095 = vmatprep.mubr.msk.f32.mxu0 %vm490_vm6, %v17183_v54 }
 0x181   : > { %8126 = vmatmul.mubr.msk.f32.gmra.mxu1 %vm17393_vm1, %v17183_v54 }
 0x182   : > { %8127 = vmatprep.mubr.msk.f32.mxu1 %vm490_vm6, %v17183_v54 }
 0x183   : > { %8096 = vmatmul.mubr.msk.f32.gmra.mxu0 %vm489_vm5, %v17183_v54 }
 0x184   : > { %8097 = vmatprep.mubr.msk.f32.mxu0 %vm492_vm13, %v17183_v54 }
 0x185   : > { %8128 = vmatmul.mubr.msk.f32.gmra.mxu1 %vm489_vm5, %v17183_v54  ;;  %vm17395_vm5 = vcmp.eq.s32.totalorder %v12007_v37, %v12583_v7 }
 0x186   : > { %8129 = vmatprep.mubr.msk.f32.mxu1 %vm492_vm13, %v17183_v54  ;;  %vm17396_vm6 = vmmov %vm17395_vm5 }
 0x187   : > { %8098 = vmatmul.mubr.msk.f32.gmra.mxu0 %vm491_vm12, %v17183_v54 }
 0x188   : > { %8099 = vmatprep.mubr.msk.f32.mxu0 %vm494_vm15, %v17183_v54 }
 0x189   : > { %8130 = vmatmul.mubr.msk.f32.gmra.mxu1 %vm491_vm12, %v17183_v54 }
 0x18a   : > { %8131 = vmatprep.mubr.msk.f32.mxu1 %vm494_vm15, %v17183_v54 }
 0x18b   : > { %8100 = vmatmul.mubr.msk.f32.gmra.mxu0 %vm493_vm14, %v17183_v54 }
 0x18c   : > { %8101 = vmatprep.mubr.msk.f32.mxu0 %vm496_vm7, %v17183_v54 }
 0x18d   : > { %8132 = vmatmul.mubr.msk.f32.gmra.mxu1 %vm493_vm14, %v17183_v54 }
 0x18e   : > { %8133 = vmatprep.mubr.msk.f32.mxu1 %vm496_vm7, %v17183_v54 }
 0x18f   : > { %8102 = vmatmul.mubr.msk.f32.gmra.mxu0 %vm495_vm11, %v17183_v54 }
 0x190   : > { %8103 = vmatprep.mubr.msk.f32.mxu0 %vm498_vm9, %v17183_v54 }
 0x191   : > { %8134 = vmatmul.mubr.msk.f32.gmra.mxu1 %vm495_vm11, %v17183_v54 }
 0x192   : > { %8135 = vmatprep.mubr.msk.f32.mxu1 %vm498_vm9, %v17183_v54  ;;  %v8216_v49 = vpop.f32.mrf.mxu0 }
 0x193   : > { %8104 = vmatmul.mubr.msk.f32.gmra.mxu0 %vm497_vm8, %v17183_v54 }
 0x194   : > { %8105 = vmatprep.mubr.msk.f32.mxu0 %vm500_vm10, %v17183_v54  ;;  %v8217_v62 = vpop.f32.mrf.mxu0 }
 0x195   : > { %8136 = vmatmul.mubr.msk.f32.gmra.mxu1 %vm497_vm8, %v17183_v54  ;;  %v8218_v32 = vadd.f32 %v8217_v62, %v8216_v49 }
 0x196   : > { %8137 = vmatprep.mubr.msk.f32.mxu1 %vm500_vm10, %v17183_v54 }
 0x197   : > { %8106 = vmatmul.mubr.msk.f32.gmra.mxu0 %vm17395_vm5, %v17183_v54  ;;  %v8219_v17 = vpop.f32.mrf.mxu0 }
 0x199   : > { %8138 = vmatmul.mubr.msk.f32.gmra.mxu1 %vm17396_vm6, %v17183_v54  ;;  %v8220_v19 = vpop.f32.mrf.mxu0 }
 0x19a   : > { %v8221_v52 = vadd.f32 %v8220_v19, %v8219_v17 }
 0x19b   : > { %v8296_v34 = vpop.f32.mrf.mxu1 }
 0x19d   : > { %v8297_v50 = vpop.f32.mrf.mxu1 }
 0x19e   : > { %v8298_v16 = vadd.f32 %v8297_v50, %v8296_v34 }
 0x19f   : > { %v8299_v22 = vpop.f32.mrf.mxu1 }
 0x1a0   : > { %v13158_v25 = vadd.f32 %v8298_v16, %v8218_v32 }
 0x1a1   : > { %v8222_v40 = vpop.f32.mrf.mxu0  ;;  %v8300_v3 = vpop.f32.mrf.mxu1 }
 0x1a2   : > { %v8301_v27 = vadd.f32 %v8300_v3, %v8299_v22 }
 0x1a3   : > { %v8223_v11 = vpop.f32.mrf.mxu0  ;;  %v8302_v56 = vpop.f32.mrf.mxu1 }
 0x1a4   : > { %v8224_v39 = vadd.f32 %v8223_v11, %v8222_v40  ;;  %v13160_v10 = vadd.f32 %v8301_v27, %v8221_v52 }
 0x1a5   : > { %v8225_v29 = vpop.f32.mrf.mxu0  ;;  %v8303_v12 = vpop.f32.mrf.mxu1 }
 0x1a6   : > { %v8304_v37 = vadd.f32 %v8303_v12, %v8302_v56 }
 0x1a7   : > { %v8226_v7 = vpop.f32.mrf.mxu0  ;;  %v8305_v54 = vpop.f32.mrf.mxu1 }
 0x1a8   : > { %v8227_v42 = vadd.f32 %v8226_v7, %v8225_v29  ;;  %v13162_v4 = vadd.f32 %v8304_v37, %v8224_v39 }
 0x1a9   : > { %v8228_v9 = vpop.f32.mrf.mxu0  ;;  %v8306_v41 = vpop.f32.mrf.mxu1 }
 0x1aa   : > { %v8307_v0 = vadd.f32 %v8306_v41, %v8305_v54 }
 0x1ab   : > { %v8229_v26 = vpop.f32.mrf.mxu0 }
 0x1ac   : > { %v8308_v23 = vpop.f32.mrf.mxu1  ;;  %v8230_v13 = vadd.f32 %v8229_v26, %v8228_v9  ;;  %v13164_v58 = vadd.f32 %v8307_v0, %v8227_v42 }
 0x1ad   : > { %v8231_v60 = vpop.f32.mrf.mxu0 }
 0x1ae   : > { %v8309_v30 = vpop.f32.mrf.mxu1 }
 0x1af   : > { %v8310_v18 = vadd.f32 %v8309_v30, %v8308_v23  ;;  %v8232_v28 = vpop.f32.mrf.mxu0 }
 0x1b0   : > { %v8311_v5 = vpop.f32.mrf.mxu1  ;;  %v8233_v57 = vadd.f32 %v8232_v28, %v8231_v60 }
 0x1b1   : > { %v13166_v14 = vadd.f32 %v8310_v18, %v8230_v13 }
 0x1b2   : > { %v8234_v48 = vpop.f32.mrf.mxu0  ;;  %v8312_v33 = vpop.f32.mrf.mxu1 }
 0x1b3   : > { %v8313_v6 = vadd.f32 %v8312_v33, %v8311_v5 }
 0x1b4   : > { %v8235_v51 = vpop.f32.mrf.mxu0  ;;  %v8314_v20 = vpop.f32.mrf.mxu1 }
 0x1b5   : > { %v8236_v43 = vadd.f32 %v8235_v51, %v8234_v48  ;;  %v13168_v44 = vadd.f32 %v8313_v6, %v8233_v57 }
 0x1b6   : > { %v8237_v47 = vpop.f32.mrf.mxu0  ;;  %v8315_v53 = vpop.f32.mrf.mxu1 }
 0x1b7   : > { %v8316_v15 = vadd.f32 %v8315_v53, %v8314_v20 }
 0x1b8   : > { %v8238_v55 = vpop.f32.mrf.mxu0 }
 0x1b9   : > { %v8317_v35 = vpop.f32.mrf.mxu1  ;;  %v8239_v45 = vadd.f32 %v8238_v55, %v8237_v47  ;;  %v13170_v21 = vadd.f32 %v8316_v15, %v8236_v43 }
 0x1ba   : > { %v8240_v24 = vpop.f32.mrf.mxu0 }
 0x1bb   : > { %v8318_v46 = vpop.f32.mrf.mxu1 }
 0x1bc   : > { %v8319_v2 = vadd.f32 %v8318_v46, %v8317_v35  ;;  %v8241_v63 = vpop.f32.mrf.mxu0 }
 0x1bd   : > { %v8320_v8 = vpop.f32.mrf.mxu1  ;;  %v8242_v36 = vadd.f32 %v8241_v63, %v8240_v24 }
 0x1be   : > { %v13172_v38 = vadd.f32 %v8319_v2, %v8239_v45  ;;  %v8243_v31 = vpop.f32.mrf.mxu0 }
 0x1bf   : > { %v8321_v61 = vpop.f32.mrf.mxu1 }
 0x1c0   : > { %v8322_v1 = vadd.f32 %v8321_v61, %v8320_v8  ;;  %v8244_v59 = vpop.f32.mrf.mxu0 }
 0x1c1   : > { %v8323_v49 = vpop.f32.mrf.mxu1  ;;  %v8245_v62 = vadd.f32 %v8244_v59, %v8243_v31 }
 0x1c2   : > { %v13174_v32 = vadd.f32 %v8322_v1, %v8242_v36  ;;  %v8246_v17 = vpop.f32.mrf.mxu0 }
 0x1c3   : > { %v8324_v19 = vpop.f32.mrf.mxu1 }
 0x1c4   : > { %v8325_v52 = vadd.f32 %v8324_v19, %v8323_v49  ;;  %v8247_v34 = vpop.f32.mrf.mxu0 }
 0x1c5   : > { %v8326_v50 = vpop.f32.mrf.mxu1  ;;  %v8248_v16 = vadd.f32 %v8247_v34, %v8246_v17 }
 0x1c6   : > { %v13176_v22 = vadd.f32 %v8325_v52, %v8245_v62  ;;  %v8249_v40 = vpop.f32.mrf.mxu0 }
 0x1c7   : > { %v8327_v3 = vpop.f32.mrf.mxu1 }
 0x1c8   : > { %17397 = vst [vmem:[#allocation44_spill] sm:$0xff] %v13176_v22  ;;  %v8328_v27 = vadd.f32 %v8327_v3, %v8326_v50  ;;  %v8250_v11 = vpop.f32.mrf.mxu0 }
 0x1c9   : > { %v8329_v56 = vpop.f32.mrf.mxu1  ;;  %v8251_v39 = vadd.f32 %v8250_v11, %v8249_v40 }
 0x1ca   : > { %v13178_v29 = vadd.f32 %v8328_v27, %v8248_v16  ;;  %v8252_v12 = vpop.f32.mrf.mxu0 }
 0x1cb   : > { %v8330_v37 = vpop.f32.mrf.mxu1 }
 0x1cc   : > { %17398 = vst [vmem:[#allocation48_spill] sm:$0xff] %v13178_v29  ;;  %v8331_v7 = vadd.f32 %v8330_v37, %v8329_v56  ;;  %v8253_v54 = vpop.f32.mrf.mxu0 }
 0x1cd   : > { %v8332_v42 = vpop.f32.mrf.mxu1  ;;  %v8254_v9 = vadd.f32 %v8253_v54, %v8252_v12 }
 0x1ce   : > { %v13180_v41 = vadd.f32 %v8331_v7, %v8251_v39 }
 0x1cf   : > { %v8255_v0 = vpop.f32.mrf.mxu0  ;;  %v8333_v26 = vpop.f32.mrf.mxu1 }
 0x1d0   : > { %17399 = vst [vmem:[#allocation66_spill] sm:$0xff] %v13180_v41  ;;  %v8334_v23 = vadd.f32 %v8333_v26, %v8332_v42 }
 0x1d1   : > { %v8256_v13 = vpop.f32.mrf.mxu0  ;;  %v8335_v60 = vpop.f32.mrf.mxu1 }
 0x1d2   : > { %v8257_v30 = vadd.f32 %v8256_v13, %v8255_v0  ;;  %v13182_v18 = vadd.f32 %v8334_v23, %v8254_v9 }
 0x1d3   : > { %v8258_v28 = vpop.f32.mrf.mxu0  ;;  %v8336_v5 = vpop.f32.mrf.mxu1 }
 0x1d4   : > { %17400 = vst [vmem:[#allocation52_spill] sm:$0xff] %v13182_v18  ;;  %v8337_v57 = vadd.f32 %v8336_v5, %v8335_v60 }
 0x1d5   : > { %v8259_v48 = vpop.f32.mrf.mxu0  ;;  %v8338_v33 = vpop.f32.mrf.mxu1 }
 0x1d6   : > { %v8260_v6 = vadd.f32 %v8259_v48, %v8258_v28  ;;  %v13184_v51 = vadd.f32 %v8337_v57, %v8257_v30 }
 0x1d7   : > { %v8261_v20 = vpop.f32.mrf.mxu0  ;;  %v8339_v43 = vpop.f32.mrf.mxu1 }
 0x1d8   : > { %17401 = vst [vmem:[#allocation54_spill] sm:$0xff] %v13184_v51  ;;  %v8340_v47 = vadd.f32 %v8339_v43, %v8338_v33 }
 0x1d9   : > { %v8262_v53 = vpop.f32.mrf.mxu0  ;;  %v8341_v15 = vpop.f32.mrf.mxu1 }
 0x1da   : > { %v8263_v55 = vadd.f32 %v8262_v53, %v8261_v20  ;;  %v13186_v35 = vadd.f32 %v8340_v47, %v8260_v6 }
 0x1db   : > { %v13188_v45 = vpop.f32.mrf.mxu0  ;;  %v8342_v24 = vpop.f32.mrf.mxu1 }
 0x1dc   : > { %17402 = vst [vmem:[#allocation67_spill] sm:$0xff] %v13186_v35  ;;  %v8343_v46 = vadd.f32 %v8342_v24, %v8341_v15 }
 0x1dd   : > { %v8377_v2 = vpop.f32.mrf.mxu0  ;;  %v13190_v63 = vpop.f32.mrf.mxu1 }
 0x1de   : > { %v13192_v8 = vadd.f32 %v8343_v46, %v8263_v55 }
 0x1df   : > { %v13194_v36 = vpop.f32.mrf.mxu0  ;;  %v8457_v31 = vpop.f32.mrf.mxu1 }
 0x1e0   : > { %17403 = vst [vmem:[#allocation56_spill] sm:$0xff] %v13192_v8 }
 0x1e1   : > { %v13196_v61 = vpop.f32.mrf.mxu0  ;;  %v13198_v1 = vpop.f32.mrf.mxu1 }
 0x1e3   : > { %v13200_v59 = vpop.f32.mrf.mxu0  ;;  %v13202_v49 = vpop.f32.mrf.mxu1 }
 0x1e5   : > { %v13204_v62 = vpop.f32.mrf.mxu0  ;;  %v13206_v17 = vpop.f32.mrf.mxu1 }
 0x1e7   : > { %v13208_v19 = vpop.f32.mrf.mxu0  ;;  %v13210_v52 = vpop.f32.mrf.mxu1 }
 0x1e9   : > { %v13212_v34 = vpop.f32.mrf.mxu0  ;;  %v13214_v50 = vpop.f32.mrf.mxu1 }
 0x1eb   : > { %v13216_v16 = vpop.f32.mrf.mxu0  ;;  %v13218_v40 = vpop.f32.mrf.mxu1 }
 0x1ed   : > { %v13220_v3 = vpop.f32.mrf.mxu0  ;;  %v13222_v27 = vpop.f32.mrf.mxu1 }
 0x1ef   : > { %v13224_v11 = vpop.f32.mrf.mxu0  ;;  %v13226_v56 = vpop.f32.mrf.mxu1 }
 0x1f1   : > { %v13228_v39 = vpop.f32.mrf.mxu0  ;;  %v13230_v12 = vpop.f32.mrf.mxu1 }
 0x1f3   : > { %v13232_v37 = vpop.f32.mrf.mxu0  ;;  %v13234_v7 = vpop.f32.mrf.mxu1 }
 0x1f5   : > { %v13236_v54 = vpop.f32.mrf.mxu0  ;;  %v13238_v42 = vpop.f32.mrf.mxu1 }
 0x1f7   : > { %v13240_v9 = vpop.f32.mrf.mxu0  ;;  %v13242_v0 = vpop.f32.mrf.mxu1 }
 0x1f9   : > { %v13244_v26 = vpop.f32.mrf.mxu0  ;;  %v13246_v23 = vpop.f32.mrf.mxu1 }
 0x1fb   : > { %v13248_v13 = vpop.f32.mrf.mxu0  ;;  %v13250_v60 = vpop.f32.mrf.mxu1 }
 0x1fd   : > { %v13252_v30 = vpop.f32.mrf.mxu0  ;;  %v13254_v28 = vpop.f32.mrf.mxu1 }
 0x1ff   : > { %v13256_v5 = vpop.f32.mrf.mxu0  ;;  %v13258_v57 = vpop.f32.mrf.mxu1 }
 0x201   : > { %v13260_v48 = vpop.f32.mrf.mxu0  ;;  %v13262_v33 = vpop.f32.mrf.mxu1 }
 0x203   : > { %v13264_v6 = vpop.f32.mrf.mxu0  ;;  %v13266_v20 = vpop.f32.mrf.mxu1 }
 0x205   : > { %v13268_v43 = vpop.f32.mrf.mxu0  ;;  %v13270_v47 = vpop.f32.mrf.mxu1 }
 0x206   : > { %17404 = vst [vmem:[#allocation58_spill] sm:$0xff] %v13270_v47 }
 0x207   : > { %v13272_v53 = vpop.f32.mrf.mxu0  ;;  %v13274_v15 = vpop.f32.mrf.mxu1 }
 0x208   : > { %17405 = vst [vmem:[#allocation60_spill] sm:$0xff] %v13272_v53  ;;  %17406 = vst [vmem:[#allocation28_spill] sm:$0xff] %v13274_v15 }
 0x209   : > { %v13276_v55 = vpop.f32.mrf.mxu0  ;;  %v13278_v24 = vpop.f32.mrf.mxu1 }
 0x20a   : > { %17407 = vst [vmem:[#allocation69_spill] sm:$0xff] %v13276_v55  ;;  %17408 = vst [vmem:[#allocation70_spill] sm:$0xff] %v13278_v24 }
 0x20b   : > { %v13280_v46 = vpop.f32.mrf.mxu0  ;;  %v13282_v8 = vpop.f32.mrf.mxu1 }
 0x20c   : > { %17409 = vst [vmem:[#allocation31_spill] sm:$0xff] %v13280_v46  ;;  %17410 = vst [vmem:[#allocation73_spill] sm:$0xff] %v13282_v8 }
 0x20d   : > { %v13284_v35 = vpop.f32.mrf.mxu0  ;;  %v13286_v51 = vpop.f32.mrf.mxu1 }
 0x20e   : > { %17411 = vst [vmem:[#allocation74_spill] sm:$0xff] %v13284_v35  ;;  %17412 = vst [vmem:[#allocation33_spill] sm:$0xff] %v13286_v51 }
 0x20f   : > { %v13288_v18 = vpop.f32.mrf.mxu0  ;;  %v13290_v41 = vpop.f32.mrf.mxu1 }
 0x210   : > { %17413 = vst [vmem:[#allocation35_spill] sm:$0xff] %v13288_v18  ;;  %17414 = vst [vmem:[#allocation77_spill] sm:$0xff] %v13290_v41  ;;  %v8378_v18 = vadd.f32 %v8377_v2, %v13188_v45  ;;  %v8461_v45 = vadd.f32 %v13202_v49, %v13198_v1 }
 0x211   : > { %v13292_v29 = vpop.f32.mrf.mxu0  ;;  %v13294_v53 = vpop.f32.mrf.mxu1 }
 0x212   : > { %17415 = vst [vmem:[#allocation37_spill] sm:$0xff] %v13292_v29  ;;  %17416 = vst [vmem:[#allocation39_spill] sm:$0xff] %v13294_v53  ;;  %v8458_v53 = vadd.f32 %v8457_v31, %v13190_v63 }
 0x213   : > { %v13296_v15 = vpop.f32.mrf.mxu0  ;;  %v13298_v55 = vpop.f32.mrf.mxu1 }
 0x214   : > { %17417 = vst [vmem:[#allocation27_spill] sm:$0xff] %v13296_v15  ;;  %17418 = vst [vmem:[#allocation78_spill] sm:$0xff] %v13298_v55  ;;  %v1422_v55 = vadd.f32 %v8378_v18, %v13158_v25  ;;  %v565_v18 = vld [vmem:[#allocation2 + $0x30] sm:$0xff] }
 0x215   : > { %v13300_v24 = vpop.f32.mrf.mxu0  ;;  %v13302_v46 = vpop.f32.mrf.mxu1 }
 0x216   : > { %17419 = vst [vmem:[#allocation79_spill] sm:$0xff] %v13300_v24  ;;  %17420 = vst [vmem:[#allocation41_spill] sm:$0xff] %v13302_v46  ;;  %v8381_v46 = vadd.f32 %v13196_v61, %v13194_v36  ;;  %v1665_v47 = vadd.f32 %v8458_v53, %v1422_v55  ;;  %v8464_v61 = vadd.f32 %v13210_v52, %v13206_v17 }
 0x217   : > { %v13304_v8 = vpop.f32.mrf.mxu0  ;;  %v13306_v35 = vpop.f32.mrf.mxu1 }
 0x218   : > { %17421 = vst [vmem:[#allocation45_spill] sm:$0xff] %v13304_v8  ;;  %17422 = vst [vmem:[#allocation29_spill] sm:$0xff] %v13306_v35  ;;  %v1431_v31 = vadd.f32 %v8381_v46, %v13160_v10 }
 0x219   : > { %v13309_v51 = vpop.f32.mrf.mxu0  ;;  %v13311_v41 = vpop.f32.mrf.mxu1 }
 0x21a   : > { %17423 = vst [vmem:[#allocation81_spill] sm:$0xff] %v13309_v51  ;;  %17424 = vst [vmem:[#allocation30_spill] sm:$0xff] %v13311_v41  ;;  %v8384_v41 = vadd.f32 %v13204_v62, %v13200_v59  ;;  %v1676_v36 = vadd.f32 %v8461_v45, %v1431_v31  ;;  %v8387_v59 = vadd.f32 %v13212_v34, %v13208_v19 }
 0x21b   : > { %v8536_v29 = vpop.f32.mrf.mxu0  ;;  %v13314_v15 = vpop.f32.mrf.mxu1  ;;  %v8467_v45 = vadd.f32 %v13218_v40, %v13214_v50  ;;  %v8470_v50 = vadd.f32 %v13226_v56, %v13222_v27  ;;  %v8473_v27 = vadd.f32 %v13234_v7, %v13230_v12  ;;  %v8476_v12 = vadd.f32 %v13242_v0, %v13238_v42 }
 0x21c   : > { %17425 = vst [vmem:[#allocation86_spill] sm:$0xff] %v13314_v15  ;;  %v1449_v19 = vadd.f32 %v8387_v59, %v13164_v58  ;;  %v8393_v58 = vadd.f32 %v13228_v39, %v13224_v11  ;;  %v8479_v42 = vadd.f32 %v13250_v60, %v13246_v23  ;;  %v8482_v23 = vadd.f32 %v13258_v57, %v13254_v28 }
 0x21d   : > { %v8537_v24 = vpop.f32.mrf.mxu0  ;;  %v8616_v8 = vpop.f32.mrf.mxu1  ;;  %v8485_v28 = vadd.f32 %v13266_v20, %v13262_v33 }
 0x21e   : > { %v8538_v2 = vadd.f32 %v8537_v24, %v8536_v29  ;;  %v1440_v29 = vadd.f32 %v8384_v41, %v13162_v4  ;;  %v566_v24 = vld [vmem:[#allocation2] sm:$0xff]  ;;  %v8390_v4 = vadd.f32 %v13220_v3, %v13216_v16  ;;  %v1467_v11 = vadd.f32 %v8393_v58, %v13168_v44 }
 0x21f   : > { %v8539_v51 = vpop.f32.mrf.mxu0  ;;  %v8617_v63 = vpop.f32.mrf.mxu1  ;;  %v8399_v44 = vadd.f32 %v13244_v26, %v13240_v9 }
 0x220   : > { %v1998_v15 = vadd.f32 %v8538_v2, %v1665_v47  ;;  %v8618_v35 = vadd.f32 %v8617_v63, %v8616_v8  ;;  %v1687_v2 = vadd.f32 %v8464_v61, %v1440_v29  ;;  %v567_v63 = vld [vmem:[#allocation2 + $0x58] sm:$0xff] }
 0x221   : > { %v8540_v25 = vpop.f32.mrf.mxu0  ;;  %v8619_v22 = vpop.f32.mrf.mxu1  ;;  %v1485_v9 = vadd.f32 %v8399_v44, %v13172_v38  ;;  %v8405_v38 = vadd.f32 %v13260_v48, %v13256_v5 }
 0x222   : > { %v8541_v53 = vadd.f32 %v8540_v25, %v8539_v51  ;;  %v2207_v55 = vadd.f32 %v8618_v35, %v1998_v15  ;;  %v1698_v25 = vadd.f32 %v8467_v45, %v1449_v19 }
 0x223   : > { %v8542_v1 = vpop.f32.mrf.mxu0  ;;  %v8620_v49 = vpop.f32.mrf.mxu1 }
 0x224   : > { %v2005_v62 = vadd.f32 %v8541_v53, %v1676_v36  ;;  %v2315_v10 = vadd.f32 %v2207_v55, %v565_v18  ;;  %v8621_v47 = vadd.f32 %v8620_v49, %v8619_v22  ;;  %v1458_v36 = vadd.f32 %v8390_v4, %v13166_v14 }
 0x225   : > { %v8543_v8 = vpop.f32.mrf.mxu0  ;;  %v8622_v46 = vpop.f32.mrf.mxu1  ;;  %v8396_v14 = vadd.f32 %v13236_v54, %v13232_v37 }
 0x226   : > { %v8544_v17 = vadd.f32 %v8543_v8, %v8542_v1  ;;  %2331 = vst [vmem:[#allocation2 + $0x30] sm:$0xff] %v2315_v10  ;;  %v2214_v51 = vadd.f32 %v8621_v47, %v2005_v62  ;;  %v568_v1 = vld [vmem:[#allocation2 + $0x18] sm:$0xff]  ;;  %v1709_v59 = vadd.f32 %v8470_v50, %v1458_v36  ;;  %v571_v36 = vld [vmem:[#allocation2 + $0x8] sm:$0xff] }
 0x227   : > { %v8545_v41 = vpop.f32.mrf.mxu0  ;;  %v8623_v35 = vpop.f32.mrf.mxu1  ;;  %v1476_v4 = vadd.f32 %v8396_v14, %v13170_v21  ;;  %v8402_v21 = vadd.f32 %v13252_v30, %v13248_v13 }
 0x228   : > { %v2012_v52 = vadd.f32 %v8544_v17, %v1687_v2  ;;  %v2316_v34 = vadd.f32 %v2214_v51, %v566_v24  ;;  %v8624_v22 = vadd.f32 %v8623_v35, %v8622_v46  ;;  %v569_v2 = vld [vmem:[#allocation2 + $0x50] sm:$0xff]  ;;  %v1720_v17 = vadd.f32 %v8473_v27, %v1467_v11 }
 0x229   : > { %v8546_v15 = vpop.f32.mrf.mxu0  ;;  %v8625_v31 = vpop.f32.mrf.mxu1 }
 0x22a   : > { %v8547_v40 = vadd.f32 %v8546_v15, %v8545_v41  ;;  %2332 = vst [vmem:[#allocation2] sm:$0xff] %v2316_v34  ;;  %v2221_v18 = vadd.f32 %v8624_v22, %v2012_v52  ;;  %v570_v34 = vld [vmem:[#allocation2 + $0x68] sm:$0xff]  ;;  %v1731_v15 = vadd.f32 %v8476_v12, %v1476_v4  ;;  %v17431_v4 = vld [vmem:[#allocation69_spill] sm:$0xff] }
 0x22b   : > { %v8548_v16 = vpop.f32.mrf.mxu0  ;;  %v8626_v3 = vpop.f32.mrf.mxu1  ;;  %v17429_v12 = vld [vmem:[#allocation48_spill] sm:$0xff] }
 0x22c   : > { %v2019_v61 = vadd.f32 %v8547_v40, %v1698_v25  ;;  %v2317_v53 = vadd.f32 %v2221_v18, %v567_v63  ;;  %v8627_v55 = vadd.f32 %v8626_v3, %v8625_v31  ;;  %v1742_v3 = vadd.f32 %v8479_v42, %v1485_v9 }
 0x22d   : > { %v8549_v29 = vpop.f32.mrf.mxu0  ;;  %v8628_v49 = vpop.f32.mrf.mxu1 }
 0x22e   : > { %v8550_v56 = vadd.f32 %v8549_v29, %v8548_v16  ;;  %2333 = vst [vmem:[#allocation2 + $0x58] sm:$0xff] %v2317_v53  ;;  %v2228_v62 = vadd.f32 %v8627_v55, %v2019_v61  ;;  %v1494_v61 = vadd.f32 %v8402_v21, %v13174_v32  ;;  %v8408_v32 = vadd.f32 %v13268_v43, %v13264_v6  ;;  %v17434_v21 = vld [vmem:[#allocation31_spill] sm:$0xff] }
 0x22f   : > { %v8551_v10 = vpop.f32.mrf.mxu0  ;;  %v8629_v47 = vpop.f32.mrf.mxu1 }
 0x230   : > { %v2026_v39 = vadd.f32 %v8550_v56, %v1709_v59  ;;  %v2318_v8 = vadd.f32 %v2228_v62, %v568_v1  ;;  %v8630_v24 = vadd.f32 %v8629_v47, %v8628_v49  ;;  %v572_v49 = vld [vmem:[#allocation2 + $0x48] sm:$0xff]  ;;  %v1753_v27 = vadd.f32 %v8482_v23, %v1494_v61  ;;  %v575_v23 = vld [vmem:[#allocation2 + $0x10] sm:$0xff] }
 0x231   : > { %v8552_v46 = vpop.f32.mrf.mxu0  ;;  %v8631_v45 = vpop.f32.mrf.mxu1  ;;  %v17437_v61 = vld [vmem:[#allocation33_spill] sm:$0xff] }
 0x232   : > { %v8553_v7 = vadd.f32 %v8552_v46, %v8551_v10  ;;  %2334 = vst [vmem:[#allocation2 + $0x18] sm:$0xff] %v2318_v8  ;;  %v2235_v51 = vadd.f32 %v8630_v24, %v2026_v39  ;;  %v17426_v10 = vld [vmem:[#allocation44_spill] sm:$0xff]  ;;  %v573_v8 = vld [vmem:[#allocation2 + $0x40] sm:$0xff] }
 0x233   : > { %v8554_v37 = vpop.f32.mrf.mxu0  ;;  %v8632_v54 = vpop.f32.mrf.mxu1  ;;  %v1503_v5 = vadd.f32 %v8405_v38, %v17426_v10 }
 0x234   : > { %v2033_v41 = vadd.f32 %v8553_v7, %v1720_v17  ;;  %v2319_v35 = vadd.f32 %v2235_v51, %v569_v2  ;;  %v8633_v19 = vadd.f32 %v8632_v54, %v8631_v45  ;;  %v17427_v2 = vld [vmem:[#allocation58_spill] sm:$0xff]  ;;  %v17428_v45 = vld [vmem:[#allocation28_spill] sm:$0xff]  ;;  %v1512_v7 = vadd.f32 %v8408_v32, %v17429_v12 }
 0x235   : > { %v8555_v52 = vpop.f32.mrf.mxu0  ;;  %v8634_v22 = vpop.f32.mrf.mxu1  ;;  %v1764_v46 = vadd.f32 %v8485_v28, %v1503_v5  ;;  %v8488_v33 = vadd.f32 %v17428_v45, %v17427_v2  ;;  %v17430_v51 = vld [vmem:[#allocation60_spill] sm:$0xff] }
 0x236   : > { %v8556_v0 = vadd.f32 %v8555_v52, %v8554_v37  ;;  %2335 = vst [vmem:[#allocation2 + $0x50] sm:$0xff] %v2319_v35  ;;  %v2242_v63 = vadd.f32 %v8633_v19, %v2033_v41  ;;  %v8411_v37 = vadd.f32 %v17431_v4, %v17430_v51  ;;  %v574_v19 = vld [vmem:[#allocation2 + $0x20] sm:$0xff] }
 0x237   : > { %v8557_v31 = vpop.f32.mrf.mxu0  ;;  %v8635_v25 = vpop.f32.mrf.mxu1  ;;  %v577_v51 = vld [vmem:[#allocation2 + $0x60] sm:$0xff] }
 0x238   : > { %v2040_v26 = vadd.f32 %v8556_v0, %v1731_v15  ;;  %v2320_v50 = vadd.f32 %v2242_v63, %v570_v34  ;;  %v8636_v40 = vadd.f32 %v8635_v25, %v8634_v22  ;;  %v1775_v34 = vadd.f32 %v8488_v33, %v1512_v7  ;;  %v17432_v22 = vld [vmem:[#allocation70_spill] sm:$0xff]  ;;  %v17433_v15 = vld [vmem:[#allocation73_spill] sm:$0xff] }
 0x239   : > { %v8558_v18 = vpop.f32.mrf.mxu0  ;;  %v8637_v16 = vpop.f32.mrf.mxu1  ;;  %v8491_v42 = vadd.f32 %v17433_v15, %v17432_v22 }
 0x23a   : > { %v8559_v60 = vadd.f32 %v8558_v18, %v8557_v31  ;;  %2336 = vst [vmem:[#allocation2 + $0x68] sm:$0xff] %v2320_v50  ;;  %v2249_v58 = vadd.f32 %v8636_v40, %v2040_v26  ;;  %v17435_v31 = vld [vmem:[#allocation74_spill] sm:$0xff] }
 0x23b   : > { %v8560_v13 = vpop.f32.mrf.mxu0  ;;  %v8638_v30 = vpop.f32.mrf.mxu1  ;;  %v8414_v25 = vadd.f32 %v17435_v31, %v17434_v21  ;;  %v17436_v50 = vld [vmem:[#allocation66_spill] sm:$0xff] }
 0x23c   : > { %v2047_v53 = vadd.f32 %v8559_v60, %v1742_v3  ;;  %v2321_v55 = vadd.f32 %v2249_v58, %v571_v36  ;;  %v8639_v29 = vadd.f32 %v8638_v30, %v8637_v16  ;;  %v1521_v40 = vadd.f32 %v8411_v37, %v17436_v50 }
 0x23d   : > { %v8561_v1 = vpop.f32.mrf.mxu0  ;;  %v8640_v59 = vpop.f32.mrf.mxu1 }
 0x23e   : > { %v8562_v57 = vadd.f32 %v8561_v1, %v8560_v13  ;;  %2337 = vst [vmem:[#allocation2 + $0x8] sm:$0xff] %v2321_v55  ;;  %v2256_v56 = vadd.f32 %v8639_v29, %v2047_v53  ;;  %v1786_v58 = vadd.f32 %v8491_v42, %v1521_v40  ;;  %v17438_v13 = vld [vmem:[#allocation77_spill] sm:$0xff]  ;;  %v17439_v55 = vld [vmem:[#allocation52_spill] sm:$0xff] }
 0x23f   : > { %v8563_v62 = vpop.f32.mrf.mxu0  ;;  %v8641_v14 = vpop.f32.mrf.mxu1  ;;  %v8494_v30 = vadd.f32 %v17438_v13, %v17437_v61  ;;  %v1530_v29 = vadd.f32 %v8414_v25, %v17439_v55  ;;  %v17450_v42 = vld [vmem:[#allocation45_spill] sm:$0xff]  ;;  %v17454_v61 = vld [vmem:[#allocation56_spill] sm:$0xff] }
 0x240   : > { %v2054_v48 = vadd.f32 %v8562_v57, %v1753_v27  ;;  %v2322_v47 = vadd.f32 %v2256_v56, %v572_v49  ;;  %v8642_v11 = vadd.f32 %v8641_v14, %v8640_v59  ;;  %v17440_v59 = vld [vmem:[#allocation35_spill] sm:$0xff]  ;;  %v17441_v27 = vld [vmem:[#allocation37_spill] sm:$0xff] }
 0x241   : > { %v8564_v39 = vpop.f32.mrf.mxu0  ;;  %v8643_v24 = vpop.f32.mrf.mxu1  ;;  %v8417_v28 = vadd.f32 %v17441_v27, %v17440_v59  ;;  %v576_v14 = vld [vmem:[#allocation2 + $0x38] sm:$0xff]  ;;  %v1797_v5 = vadd.f32 %v8494_v30, %v1530_v29 }
 0x242   : > { %v8565_v20 = vadd.f32 %v8564_v39, %v8563_v62  ;;  %2338 = vst [vmem:[#allocation2 + $0x48] sm:$0xff] %v2322_v47  ;;  %v2263_v17 = vadd.f32 %v8642_v11, %v2054_v48  ;;  %v17442_v48 = vld [vmem:[#allocation39_spill] sm:$0xff]  ;;  %v17443_v47 = vld [vmem:[#allocation78_spill] sm:$0xff] }
 0x243   : > { %v8566_v6 = vpop.f32.mrf.mxu0  ;;  %v8644_v43 = vpop.f32.mrf.mxu1  ;;  %v8497_v11 = vadd.f32 %v17443_v47, %v17442_v48  ;;  %v579_v29 = vld [vmem:[#allocation2 + $0x78] sm:$0xff] }
 0x244   : > { %v2061_v54 = vadd.f32 %v8565_v20, %v1764_v46  ;;  %v2323_v44 = vadd.f32 %v2263_v17, %v573_v8  ;;  %v8645_v41 = vadd.f32 %v8644_v43, %v8643_v24  ;;  %v17444_v24 = vld [vmem:[#allocation27_spill] sm:$0xff]  ;;  %v17446_v20 = vld [vmem:[#allocation54_spill] sm:$0xff] }
 0x245   : > { %v8567_v35 = vpop.f32.mrf.mxu0  ;;  %v8646_v52 = vpop.f32.mrf.mxu1  ;;  %v17445_v46 = vld [vmem:[#allocation79_spill] sm:$0xff]  ;;  %v1539_v17 = vadd.f32 %v8417_v28, %v17446_v20 }
 0x246   : > { %v8568_v0 = vadd.f32 %v8567_v35, %v8566_v6  ;;  %2339 = vst [vmem:[#allocation2 + $0x40] sm:$0xff] %v2323_v44  ;;  %v2270_v63 = vadd.f32 %v8645_v41, %v2061_v54  ;;  %v8420_v2 = vadd.f32 %v17445_v46, %v17444_v24  ;;  %v17447_v54 = vld [vmem:[#allocation41_spill] sm:$0xff] }
 0x247   : > { %v8569_v9 = vpop.f32.mrf.mxu0  ;;  %v8647_v26 = vpop.f32.mrf.mxu1  ;;  %v1808_v37 = vadd.f32 %v8497_v11, %v1539_v17  ;;  %v17448_v44 = vld [vmem:[#allocation29_spill] sm:$0xff] }
 0x248   : > { %v2068_v18 = vadd.f32 %v8568_v0, %v1775_v34  ;;  %v2324_v36 = vadd.f32 %v2270_v63, %v574_v19  ;;  %v8648_v16 = vadd.f32 %v8647_v26, %v8646_v52  ;;  %v8500_v41 = vadd.f32 %v17448_v44, %v17447_v54  ;;  %v17449_v52 = vld [vmem:[#allocation67_spill] sm:$0xff]  ;;  %v17451_v0 = vld [vmem:[#allocation81_spill] sm:$0xff] }
 0x249   : > { %v8570_v3 = vpop.f32.mrf.mxu0  ;;  %v8649_v60 = vpop.f32.mrf.mxu1  ;;  %v1548_v34 = vadd.f32 %v8420_v2, %v17449_v52  ;;  %v8423_v63 = vadd.f32 %v17451_v0, %v17450_v42  ;;  %v578_v26 = vld [vmem:[#allocation2 + $0x70] sm:$0xff] }
 0x24a   : > { %v8571_v38 = vadd.f32 %v8570_v3, %v8569_v9  ;;  %2340 = vst [vmem:[#allocation2 + $0x20] sm:$0xff] %v2324_v36  ;;  %v2277_v53 = vadd.f32 %v8648_v16, %v2068_v18  ;;  %v17452_v18 = vld [vmem:[#allocation30_spill] sm:$0xff] }
 0x24b   : > { %v8572_v1 = vpop.f32.mrf.mxu0  ;;  %v8650_v49 = vpop.f32.mrf.mxu1  ;;  %v1819_v40 = vadd.f32 %v8500_v41, %v1548_v34  ;;  %v17453_v36 = vld [vmem:[#allocation86_spill] sm:$0xff]  ;;  %v1557_v13 = vadd.f32 %v8423_v63, %v17454_v61 }
 0x24c   : > { %v2075_v57 = vadd.f32 %v8571_v38, %v1786_v58  ;;  %v2325_v56 = vadd.f32 %v2277_v53, %v575_v23  ;;  %v8651_v32 = vadd.f32 %v8650_v49, %v8649_v60  ;;  %v8503_v16 = vadd.f32 %v17453_v36, %v17452_v18 }
 0x24d   : > { %v8573_v62 = vpop.f32.mrf.mxu0  ;;  %v8652_v10 = vpop.f32.mrf.mxu1 }
 0x24e   : > { %v8574_v39 = vadd.f32 %v8573_v62, %v8572_v1  ;;  %2341 = vst [vmem:[#allocation2 + $0x10] sm:$0xff] %v2325_v56  ;;  %v2284_v8 = vadd.f32 %v8651_v32, %v2075_v57  ;;  %v1830_v49 = vadd.f32 %v8503_v16, %v1557_v13  ;;  %v580_v62 = vld [vmem:[#allocation2 + $0x28] sm:$0xff] }
 0x24f   : > { %v8575_v45 = vpop.f32.mrf.mxu0  ;;  %v8653_v33 = vpop.f32.mrf.mxu1 }
 0x250   : > { %v2082_v12 = vadd.f32 %v8574_v39, %v1797_v5  ;;  %v2326_v7 = vadd.f32 %v2284_v8, %v576_v14  ;;  %v8654_v6 = vadd.f32 %v8653_v33, %v8652_v10 }
 0x251   : > { %v8576_v43 = vpop.f32.mrf.mxu0  ;;  %v8655_v4 = vpop.f32.mrf.mxu1 }
 0x252   : > { %v8577_v35 = vadd.f32 %v8576_v43, %v8575_v45  ;;  %2342 = vst [vmem:[#allocation2 + $0x38] sm:$0xff] %v2326_v7  ;;  %v2291_v19 = vadd.f32 %v8654_v6, %v2082_v12 }
 0x253   : > { %v8578_v22 = vpop.f32.mrf.mxu0  ;;  %v8656_v15 = vpop.f32.mrf.mxu1 }
 0x254   : > { %v2089_v21 = vadd.f32 %v8577_v35, %v1808_v37  ;;  %v2327_v31 = vadd.f32 %v2291_v19, %v577_v51  ;;  %v8657_v25 = vadd.f32 %v8656_v15, %v8655_v4 }
 0x255   : > { %v8579_v9 = vpop.f32.mrf.mxu0  ;;  %v8658_v50 = vpop.f32.mrf.mxu1 }
 0x256   : > { %v8580_v3 = vadd.f32 %v8579_v9, %v8578_v22  ;;  %2343 = vst [vmem:[#allocation2 + $0x60] sm:$0xff] %v2327_v31  ;;  %v2298_v23 = vadd.f32 %v8657_v25, %v2089_v21 }
 0x257   : > { %v8581_v60 = vpop.f32.mrf.mxu0  ;;  %v8659_v58 = vpop.f32.mrf.mxu1 }
 0x258   : > { %v2096_v30 = vadd.f32 %v8580_v3, %v1819_v40  ;;  %v2328_v38 = vadd.f32 %v2298_v23, %v578_v26  ;;  %v8660_v53 = vadd.f32 %v8659_v58, %v8658_v50 }
 0x259   : > { %v8582_v55 = vpop.f32.mrf.mxu0  ;;  %v8661_v1 = vpop.f32.mrf.mxu1 }
 0x25a   : > { %v8583_v59 = vadd.f32 %v8582_v55, %v8581_v60  ;;  %2344 = vst [vmem:[#allocation2 + $0x70] sm:$0xff] %v2328_v38  ;;  %v2305_v27 = vadd.f32 %v8660_v53, %v2096_v30 }
 0x25b   : > { %v8662_v28 = vpop.f32.mrf.mxu1 }
 0x25c   : > { %v2103_v57 = vadd.f32 %v8583_v59, %v1830_v49  ;;  %v2329_v56 = vadd.f32 %v2305_v27, %v579_v29  ;;  %v8663_v32 = vadd.f32 %v8662_v28, %v8661_v1 }
 0x25e   : > { %2345 = vst [vmem:[#allocation2 + $0x78] sm:$0xff] %v2329_v56  ;;  %v2312_v14 = vadd.f32 %v8663_v32, %v2103_v57 }
 0x260   : > { %v2330_v10 = vadd.f32 %v2312_v14, %v580_v62 }
 0x262   : > { %2346 = vst [vmem:[#allocation2 + $0x28] sm:$0xff] %v2330_v10 }
 0x263 PF: > { %p8139_p1 = scmp.ne.s32.totalorder %s11310_s13, 1 }
 0x265   : > { %2350 = sbr.rel (%p8139_p1) target bundleno = 1963 (0x7ab), region = 80 }
 0x26a   : > { %v2382_v5 = vld [vmem:[#allocation10 + $0x78] sm:$0xff]  ;;  %v2381_v48 = vld [vmem:[#allocation10 + $0x70] sm:$0xff]  ;;  %v2380_v47 = vld [vmem:[#allocation10 + $0x68] sm:$0xff]  ;;  %s17679_s22 = sld [smem:[#allocation158_spill]] }
 0x26b   : > { %v13393_v11 = vand.u32 4294901760, %v2382_v5  ;;  %v13395_v39 = vand.u32 4294901760, %v2381_v48  ;;  %v13397_v8 = vand.u32 4294901760, %v2380_v47  ;;  %v2379_v24 = vld [vmem:[#allocation10 + $0x60] sm:$0xff]  ;;  %v2378_v46 = vld [vmem:[#allocation10 + $0x58] sm:$0xff]  ;;  %v2377_v2 = vld [vmem:[#allocation10 + $0x50] sm:$0xff] }
 0x26c   : > { %v13399_v45 = vand.u32 4294901760, %v2379_v24  ;;  %v13401_v33 = vand.u32 4294901760, %v2378_v46  ;;  %v13403_v20 = vand.u32 4294901760, %v2377_v2  ;;  %v2376_v17 = vld [vmem:[#allocation10 + $0x48] sm:$0xff]  ;;  %v2375_v12 = vld [vmem:[#allocation10 + $0x40] sm:$0xff]  ;;  %v2374_v4 = vld [vmem:[#allocation10 + $0x38] sm:$0xff] }
 0x26d   : > { %9432 = vmatprep.subr.mxu0 %v13393_v11  ;;  %v13407_v7 = vsub.f32 %v2382_v5, %v13393_v11  ;;  %v13410_v6 = vsub.f32 %v2381_v48, %v13395_v39  ;;  %v13412_v43 = vand.u32 4294901760, %v2376_v17  ;;  %v13415_v51 = vsub.f32 %v2380_v47, %v13397_v8  ;;  %v2373_v52 = vld [vmem:[#allocation10 + $0x30] sm:$0xff]  ;;  %v2372_v9 = vld [vmem:[#allocation10 + $0x28] sm:$0xff]  ;;  %v2371_v36 = vld [vmem:[#allocation10 + $0x20] sm:$0xff] }
 0x26e   : > { %9433 = vmatpush3.msra.mxu0 %v13393_v11  ;;  %v13419_v37 = vsub.f32 %v2379_v24, %v13399_v45  ;;  %v13422_v54 = vsub.f32 %v2378_v46, %v13401_v33  ;;  %v13434_v19 = vand.u32 4294901760, %v2375_v12  ;;  %v13440_v22 = vand.u32 4294901760, %v2374_v4  ;;  %v2351_v13 = vld [vmem:[#allocation2 + $0x30] sm:$0xff]  ;;  %v2352_v38 = vld [vmem:[#allocation2] sm:$0xff]  ;;  %v2353_v10 = vld [vmem:[#allocation2 + $0x58] sm:$0xff] }
 0x26f   : > { %9434 = vmatprep.subr.mxu0 %v13395_v39  ;;  %v13426_v44 = vand.u32 4294901760, %v13407_v7  ;;  %v13429_v41 = vand.u32 4294901760, %v13410_v6  ;;  %v13432_v35 = vand.u32 4294901760, %v13415_v51  ;;  %v13446_v42 = vsub.f32 %v2377_v2, %v13403_v20  ;;  %v2370_v1 = vld [vmem:[#allocation10 + $0x18] sm:$0xff]  ;;  %v2369_v56 = vld [vmem:[#allocation10 + $0x10] sm:$0xff]  ;;  %v2368_v24 = vld [vmem:[#allocation10 + $0x8] sm:$0xff] }
 0x270   : > { %9435 = vmatpush3.msra.mxu0 %v13395_v39  ;;  %v13438_v34 = vand.u32 4294901760, %v13419_v37  ;;  %v13443_v15 = vand.u32 4294901760, %v13422_v54  ;;  %v13456_v31 = vsub.f32 %v2376_v17, %v13412_v43  ;;  %v13459_v25 = vand.u32 4294901760, %v2373_v52 }
 0x271   : > { %17455 = vst [vmem:[#allocation96_spill] sm:$0xff] %v13429_v41  ;;  %17456 = vst [vmem:[#allocation97_spill] sm:$0xff] %v13432_v35  ;;  %9436 = vmatprep.subr.mxu0 %v13397_v8  ;;  %v2635_v0 = vsub.f32 %v13407_v7, %v13426_v44  ;;  %v2642_v63 = vsub.f32 %v13410_v6, %v13429_v41  ;;  %v2649_v21 = vsub.f32 %v13415_v51, %v13432_v35  ;;  %v2360_v41 = vld [vmem:[#allocation2 + $0x20] sm:$0xff] }
 0x272   : > { %17457 = vst [vmem:[#allocation98_spill] sm:$0xff] %v13438_v34  ;;  %17458 = vst [vmem:[#allocation99_spill] sm:$0xff] %v13443_v15  ;;  %9437 = vmatpush3.msra.mxu0 %v13397_v8  ;;  %v2656_v40 = vsub.f32 %v13419_v37, %v13438_v34  ;;  %v13465_v18 = vand.u32 4294901760, %v13446_v42  ;;  %v13469_v16 = vand.u32 4294901760, %v13456_v31  ;;  %v13472_v3 = vsub.f32 %v2375_v12, %v13434_v19 }
 0x273   : > { %9438 = vmatprep.subr.mxu0 %v13399_v45  ;;  %v2636_v26 = vand.u32 4294901760, %v2635_v0  ;;  %v2643_v50 = vand.u32 4294901760, %v2642_v63  ;;  %v2650_v23 = vand.u32 4294901760, %v2649_v21  ;;  %v2663_v60 = vsub.f32 %v13422_v54, %v13443_v15  ;;  %v2367_v63 = vld [vmem:[#allocation10] sm:$0xff] }
 0x274   : > { %17459 = vst [vmem:[#allocation100_spill] sm:$0xff] %v13465_v18  ;;  %9439 = vmatpush3.msra.mxu0 %v13399_v45  ;;  %17460 = vst [vmem:[#allocation101_spill] sm:$0xff] %v13469_v16  ;;  %v13477_v58 = vand.u32 4294901760, %v2372_v9  ;;  %v13480_v61 = vsub.f32 %v2374_v4, %v13440_v22  ;;  %v13483_v30 = vand.u32 4294901760, %v2371_v36  ;;  %v2657_v53 = vand.u32 4294901760, %v2656_v40  ;;  %v2354_v4 = vld [vmem:[#allocation2 + $0x18] sm:$0xff] }
 0x275   : > { %9440 = vmatprep.subr.mxu0 %v13401_v33  ;;  %9488 = vmatprep.subr.mxu1 %v2636_v26  ;;  %v2670_v55 = vsub.f32 %v13446_v42, %v13465_v18  ;;  %v13489_v29 = vand.u32 4294901760, %v13472_v3  ;;  %v13492_v49 = vsub.f32 %v2373_v52, %v13459_v25  ;;  %v2677_v59 = vsub.f32 %v13456_v31, %v13469_v16  ;;  %v2357_v16 = vld [vmem:[#allocation2 + $0x8] sm:$0xff] }
 0x276   : > { %9441 = vmatpush3.msra.mxu0 %v13401_v33  ;;  %9489 = vmatpush3.msra.mxu1 %v2636_v26  ;;  %v13497_v27 = vand.u32 4294901760, %v2351_v13  ;;  %v2664_v28 = vand.u32 4294901760, %v2663_v60  ;;  %v13501_v57 = vand.u32 4294901760, %v13480_v61  ;;  %v13504_v32 = vsub.f32 %v2372_v9, %v13477_v58 }
 0x277   : > { %9442 = vmatprep.subr.mxu0 %v13403_v20  ;;  %9490 = vmatprep.subr.mxu1 %v2643_v50  ;;  %17461 = vst [vmem:[#allocation102_spill] sm:$0xff] %v13489_v29  ;;  %v13506_v62 = vand.u32 4294901760, %v2352_v38  ;;  %v13509_v14 = vand.u32 4294901760, %v2370_v1  ;;  %v2671_v5 = vand.u32 4294901760, %v2670_v55  ;;  %v2684_v48 = vsub.f32 %v13472_v3, %v13489_v29  ;;  %v2358_v29 = vld [vmem:[#allocation2 + $0x48] sm:$0xff] }
 0x278   : > { %9443 = vmatpush3.msra.mxu0 %v13403_v20  ;;  %9491 = vmatpush3.msra.mxu1 %v2643_v50  ;;  %17462 = vst [vmem:[#allocation103_spill] sm:$0xff] %v13501_v57  ;;  %v13515_v47 = vand.u32 4294901760, %v13492_v49  ;;  %v13518_v46 = vsub.f32 %v2371_v36, %v13483_v30  ;;  %v2678_v2 = vand.u32 4294901760, %v2677_v59  ;;  %v13521_v17 = vand.u32 4294901760, %v2369_v56 }
 0x279   : > { %9444 = vmatprep.subr.mxu0 %v13412_v43  ;;  %9492 = vmatprep.subr.mxu1 %v2650_v23  ;;  %v13524_v12 = vsub.f32 %v2351_v13, %v13497_v27  ;;  %v2691_v52 = vsub.f32 %v13480_v61, %v13501_v57  ;;  %v13530_v0 = vand.u32 4294901760, %v13504_v32  ;;  %v13533_v21 = vsub.f32 %v2352_v38, %v13506_v62  ;;  %v2355_v13 = vld [vmem:[#allocation2 + $0x50] sm:$0xff] }
 0x27a   : > { %9445 = vmatpush3.msra.mxu0 %v13412_v43  ;;  %9493 = vmatpush3.msra.mxu1 %v2650_v23  ;;  %17463 = vst [vmem:[#allocation104_spill] sm:$0xff] %v13515_v47  ;;  %v13535_v9 = vand.u32 4294901760, %v2353_v10  ;;  %v13538_v26 = vand.u32 4294901760, %v2368_v24  ;;  %v13541_v50 = vsub.f32 %v2370_v1, %v13509_v14  ;;  %v2685_v40 = vand.u32 4294901760, %v2684_v48 }
 0x27b   : > { %9446 = vmatprep.subr.mxu0 %v13434_v19  ;;  %9494 = vmatprep.subr.mxu1 %v2657_v53  ;;  %17464 = vst [vmem:[#allocation105_spill] sm:$0xff] %v13530_v0  ;;  %v2698_v36 = vsub.f32 %v13492_v49, %v13515_v47  ;;  %v13547_v23 = vand.u32 4294901760, %v13518_v46  ;;  %v13549_v60 = vand.u32 4294901760, %v2354_v4  ;;  %v13552_v38 = vand.u32 4294901760, %v2367_v63 }
 0x27c   : > { %9447 = vmatpush3.msra.mxu0 %v13434_v19  ;;  %9495 = vmatpush3.msra.mxu1 %v2657_v53  ;;  %17465 = vst [vmem:[#allocation106_spill] sm:$0xff] %v13538_v26  ;;  %v13556_v55 = vsub.f32 %v2369_v56, %v13521_v17  ;;  %v2692_v1 = vand.u32 4294901760, %v2691_v52  ;;  %v2705_v59 = vsub.f32 %v13504_v32, %v13530_v0  ;;  %v13567_v53 = vand.u32 4294901760, %v13541_v50 }
 0x27d   : > { %9448 = vmatprep.subr.mxu0 %v13440_v22  ;;  %9496 = vmatprep.subr.mxu1 %v2664_v28  ;;  %17466 = vst [vmem:[#allocation107_spill] sm:$0xff] %v13547_v23  ;;  %17467 = vst [vmem:[#allocation108_spill] sm:$0xff] %v13552_v38  ;;  %v13563_v48 = vsub.f32 %v2353_v10, %v13535_v9  ;;  %v13570_v56 = vsub.f32 %v2368_v24, %v13538_v26  ;;  %v13572_v47 = vand.u32 4294901760, %v2355_v13 }
 0x27e   : > { %9449 = vmatpush3.msra.mxu0 %v13440_v22  ;;  %9497 = vmatpush3.msra.mxu1 %v2664_v28  ;;  %17469 = vst [vmem:[#allocation110_spill] sm:$0xff] %v13567_v53  ;;  %v2699_v52 = vand.u32 4294901760, %v2698_v36  ;;  %v2712_v10 = vsub.f32 %v13518_v46, %v13547_v23  ;;  %v13578_v28 = vsub.f32 %v2354_v4, %v13549_v60  ;;  %v13585_v0 = vand.u32 4294901760, %v13556_v55 }
 0x27f   : > { %9450 = vmatprep.subr.mxu0 %v13459_v25  ;;  %9498 = vmatprep.subr.mxu1 %v2671_v5  ;;  %17468 = vst [vmem:[#allocation109_spill] sm:$0xff] %v13563_v48  ;;  %v2706_v36 = vand.u32 4294901760, %v2705_v59  ;;  %v17472_v23 = vand.u32 4294901760, %v13533_v21  ;;  %v13601_v18 = vand.u32 4294901760, %v13570_v56  ;;  %v13604_v59 = vsub.f32 %v2355_v13, %v13572_v47 }
 0x280   : > { %9451 = vmatpush3.msra.mxu0 %v13459_v25  ;;  %9499 = vmatpush3.msra.mxu1 %v2671_v5  ;;  %v2356_v5 = vld [vmem:[#allocation2 + $0x68] sm:$0xff]  ;;  %17471 = vst [vmem:[#allocation111_spill] sm:$0xff] %v13585_v0  ;;  %v13614_v34 = vand.u32 4294901760, %v2357_v16 }
 0x281   : > { %9452 = vmatprep.subr.mxu0 %v13477_v58  ;;  %9500 = vmatprep.subr.mxu1 %v2678_v2  ;;  %v13587_v57 = vand.u32 4294901760, %v2356_v5  ;;  %v2484_v4 = vsub.f32 %v13533_v21, %v17472_v23  ;;  %17473 = vst [vmem:[#allocation112_spill] sm:$0xff] %v13601_v18  ;;  %v2713_v23 = vand.u32 4294901760, %v2712_v10  ;;  %v17474_v10 = vand.u32 4294901760, %v13563_v48 }
 0x282   : > { %9453 = vmatpush3.msra.mxu0 %v13477_v58  ;;  %9501 = vmatpush3.msra.mxu1 %v2678_v2  ;;  %v17470_v2 = vand.u32 4294901760, %v13524_v12 }
 0x283   : > { %9454 = vmatprep.subr.mxu0 %v13483_v30  ;;  %9502 = vmatprep.subr.mxu1 %v2685_v40  ;;  %v13612_v15 = vsub.f32 %v2356_v5, %v13587_v57  ;;  %v2485_v13 = vand.u32 4294901760, %v2484_v4  ;;  %v2733_v5 = vsub.f32 %v13570_v56, %v13601_v18  ;;  %v17475_v4 = vand.u32 4294901760, %v13578_v28 }
 0x284   : > { %9455 = vmatpush3.msra.mxu0 %v13483_v30  ;;  %9503 = vmatpush3.msra.mxu1 %v2685_v40  ;;  %v2474_v24 = vsub.f32 %v13524_v12, %v17470_v2  ;;  %v13595_v40 = vsub.f32 %v2367_v63, %v13552_v38  ;;  %v2719_v2 = vsub.f32 %v13541_v50, %v13567_v53 }
 0x285   : > { %9456 = vmatprep.subr.mxu0 %v13509_v14  ;;  %9504 = vmatprep.subr.mxu1 %v2692_v1  ;;  %v2726_v53 = vsub.f32 %v13556_v55, %v13585_v0  ;;  %v2494_v63 = vsub.f32 %v13563_v48, %v17474_v10  ;;  %v13627_v0 = vand.u32 4294901760, %v2358_v29  ;;  %v2504_v10 = vsub.f32 %v13578_v28, %v17475_v4  ;;  %v2359_v48 = vld [vmem:[#allocation2 + $0x40] sm:$0xff] }
 0x286   : > { %9457 = vmatpush3.msra.mxu0 %v13509_v14  ;;  %9505 = vmatpush3.msra.mxu1 %v2692_v1  ;;  %v2475_v1 = vand.u32 4294901760, %v2474_v24  ;;  %v13621_v35 = vand.u32 4294901760, %v13595_v40  ;;  %v13636_v18 = vsub.f32 %v2357_v16, %v13614_v34  ;;  %v2734_v4 = vand.u32 4294901760, %v2733_v5 }
 0x287   : > { %9458 = vmatprep.subr.mxu0 %v13521_v17  ;;  %9506 = vmatprep.subr.mxu1 %v2699_v52  ;;  %v2495_v24 = vand.u32 4294901760, %v2494_v63  ;;  %v13647_v16 = vand.u32 4294901760, %v2359_v48  ;;  %v13655_v5 = vand.u32 4294901760, %v2360_v41 }
 0x288   : > { %9459 = vmatpush3.msra.mxu0 %v13521_v17  ;;  %9507 = vmatpush3.msra.mxu1 %v2699_v52  ;;  %v2720_v52 = vand.u32 4294901760, %v2719_v2  ;;  %v16785_v2 = vand.u32 4294901760, %v13612_v15 }
 0x289   : > { %9460 = vmatprep.subr.mxu0 %v13538_v26  ;;  %9508 = vmatprep.subr.mxu1 %v2706_v36 }
 0x28a   : > { %9461 = vmatpush3.msra.mxu0 %v13538_v26  ;;  %9509 = vmatpush3.msra.mxu1 %v2706_v36  ;;  %v2727_v36 = vand.u32 4294901760, %v2726_v53  ;;  %v2740_v26 = vsub.f32 %v13595_v40, %v13621_v35  ;;  %v2524_v63 = vsub.f32 %v13612_v15, %v16785_v2  ;;  %v2362_v2 = vld [vmem:[#allocation2 + $0x38] sm:$0xff] }
 0x28b   : > { %9462 = vmatprep.subr.mxu0 %v13552_v38  ;;  %9510 = vmatprep.subr.mxu1 %v2713_v23 }
 0x28c   : > { %9463 = vmatpush3.msra.mxu0 %v13552_v38  ;;  %9464 = vmatprep.mubr.f32.mxu0 %v2475_v1  ;;  %v17476_v38 = vand.u32 4294901760, %v13604_v59  ;;  %v13645_v1 = vsub.f32 %v2358_v29, %v13627_v0  ;;  %v2741_v29 = vand.u32 4294901760, %v2740_v26 }
 0x28d   : > { %9511 = vmatpush3.msra.mxu1 %v2713_v23  ;;  %9465 = vmatmul.mubr.f32.vlgmr.msra.gmra.mxu0 %v2485_v13  ;;  %v2505_v23 = vand.u32 4294901760, %v2504_v10  ;;  %v16789_v13 = vand.u32 4294901760, %v13636_v18  ;;  %v13660_v10 = vsub.f32 %v2359_v48, %v13647_v16 }
 0x28e   : > { %9512 = vmatprep.subr.mxu1 %v2720_v52  ;;  %9544 = vmatprep.subr.mxu0 %v13407_v7  ;;  %v2514_v53 = vsub.f32 %v13604_v59, %v17476_v38  ;;  %v2361_v38 = vld [vmem:[#allocation2 + $0x10] sm:$0xff] }
 0x28f   : > { %9513 = vmatpush3.msra.mxu1 %v2720_v52  ;;  %9545 = vmatpush3.msra.mxu0 %v13407_v7  ;;  %v16787_v52 = vand.u32 4294901760, %v13645_v1  ;;  %v2534_v26 = vsub.f32 %v13636_v18, %v16789_v13 }
 0x290   : > { %9514 = vmatprep.subr.mxu1 %v2727_v36  ;;  %9546 = vmatprep.subr.mxu0 %v13410_v6  ;;  %v2515_v7 = vand.u32 4294901760, %v2514_v53 }
 0x291   : > { %9467 = vmatprep.mubr.f32.mxu0 %v2495_v24  ;;  %9515 = vmatpush3.msra.mxu1 %v2727_v36  ;;  %v2525_v24 = vand.u32 4294901760, %v2524_v63  ;;  %v13670_v36 = vand.u32 4294901760, %v2361_v38  ;;  %v2544_v48 = vsub.f32 %v13645_v1, %v16787_v52  ;;  %v2535_v53 = vand.u32 4294901760, %v2534_v26 }
 0x292   : > { %9547 = vmatpush3.msra.mxu0 %v13410_v6  ;;  %9516 = vmatprep.subr.mxu1 %v2734_v4  ;;  %v13668_v6 = vsub.f32 %v2360_v41, %v13655_v5  ;;  %v2363_v41 = vld [vmem:[#allocation2 + $0x60] sm:$0xff] }
 0x293   : > { %9468 = vmatmul.mubr.f32.gmra.mxu0 %v2505_v23  ;;  %9548 = vmatprep.subr.mxu0 %v13415_v51  ;;  %v13684_v63 = vsub.f32 %v2361_v38, %v13670_v36  ;;  %v13696_v26 = vand.u32 4294901760, %v2363_v41 }
 0x294   : > { %9517 = vmatpush3.msra.mxu1 %v2734_v4  ;;  %9549 = vmatpush3.msra.mxu0 %v13415_v51  ;;  %v16786_v51 = vand.u32 4294901760, %v13660_v10  ;;  %v13677_v4 = vand.u32 4294901760, %v2362_v2  ;;  %v16788_v23 = vand.u32 4294901760, %v13668_v6 }
 0x295   : > { %9518 = vmatprep.subr.mxu1 %v2741_v29  ;;  %9550 = vmatprep.subr.mxu0 %v13419_v37  ;;  %v16790_v38 = vand.u32 4294901760, %v13684_v63  ;;  %v13712_v52 = vsub.f32 %v2363_v41, %v13696_v26 }
 0x296   : > { %9470 = vmatprep.mubr.f32.mxu0 %v2515_v7  ;;  %9519 = vmatpush3.msra.mxu1 %v2741_v29  ;;  %v2364_v29 = vld [vmem:[#allocation2 + $0x70] sm:$0xff]  ;;  %v2554_v7 = vsub.f32 %v13660_v10, %v16786_v51 }
 0x297   : > { %9520 = vmatprep.mubr.f32.mxu1 %v13497_v27  ;;  %9551 = vmatpush3.msra.mxu0 %v13419_v37  ;;  %v2545_v37 = vand.u32 4294901760, %v2544_v48  ;;  %v13705_v48 = vand.u32 4294901760, %v2364_v29  ;;  %v2593_v41 = vand.u32 4294901760, %v13712_v52 }
 0x298   : > { %9471 = vmatmul.mubr.f32.gmra.mxu0 %v2525_v24  ;;  %9521 = vmatmul.mubr.f32.vlgmr.msra.gmra.mxu1 %v13506_v62  ;;  %v13694_v24 = vsub.f32 %v2362_v2, %v13677_v4  ;;  %v2365_v2 = vld [vmem:[#allocation2 + $0x78] sm:$0xff]  ;;  %v2555_v51 = vand.u32 4294901760, %v2554_v7 }
 0x299   : > { %9552 = vmatprep.subr.mxu0 %v13422_v54  ;;  %9600 = vmatprep.subr.mxu1 %v13393_v11  ;;  %v13722_v7 = vsub.f32 %v2364_v29, %v13705_v48  ;;  %v13724_v13 = vand.u32 4294901760, %v2365_v2 }
 0x29a   : > { %9553 = vmatpush3.msra.mxu0 %v13422_v54  ;;  %9601 = vmatpush3.msra.mxu1 %v13393_v11  ;;  %v2564_v54 = vsub.f32 %v13668_v6, %v16788_v23  ;;  %v2366_v23 = vld [vmem:[#allocation2 + $0x28] sm:$0xff] }
 0x29b   : > { %9554 = vmatprep.subr.mxu0 %v13446_v42  ;;  %9602 = vmatprep.subr.mxu1 %v13395_v39 }
 0x29c   : > { %9473 = vmatprep.mubr.f32.mxu0 %v2535_v53  ;;  %9523 = vmatprep.mubr.f32.mxu1 %v13535_v9  ;;  %v2583_v53 = vand.u32 4294901760, %v13694_v24 }
 0x29d   : > { %9555 = vmatpush3.msra.mxu0 %v13446_v42  ;;  %9603 = vmatpush3.msra.mxu1 %v13395_v39  ;;  %v2565_v42 = vand.u32 4294901760, %v2564_v54  ;;  %v13733_v54 = vand.u32 4294901760, %v2366_v23 }
 0x29e   : > { %9474 = vmatmul.mubr.f32.gmra.mxu0 %v2545_v37  ;;  %9524 = vmatmul.mubr.f32.gmra.mxu1 %v13549_v60  ;;  %v2574_v37 = vsub.f32 %v13684_v63, %v16790_v38  ;;  %v13740_v38 = vsub.f32 %v2365_v2, %v13724_v13 }
 0x29f   : > { %9556 = vmatprep.subr.mxu0 %v13456_v31  ;;  %9604 = vmatprep.subr.mxu1 %v13397_v8 }
 0x2a0   : > { %9557 = vmatpush3.msra.mxu0 %v13456_v31  ;;  %9605 = vmatpush3.msra.mxu1 %v13397_v8  ;;  %v2584_v31 = vsub.f32 %v13694_v24, %v2583_v53  ;;  %v2575_v29 = vand.u32 4294901760, %v2574_v37  ;;  %v13750_v37 = vsub.f32 %v2366_v23, %v13733_v54  ;;  %v2613_v2 = vand.u32 4294901760, %v13740_v38 }
 0x2a1   : > { %9558 = vmatprep.subr.mxu0 %v13472_v3  ;;  %9606 = vmatprep.subr.mxu1 %v13399_v45 }
 0x2a2   : > { %9476 = vmatprep.mubr.f32.mxu0 %v2555_v51  ;;  %9526 = vmatprep.mubr.f32.mxu1 %v13572_v47  ;;  %v2603_v51 = vand.u32 4294901760, %v13722_v7 }
 0x2a3   : > { %9559 = vmatpush3.msra.mxu0 %v13472_v3  ;;  %9607 = vmatpush3.msra.mxu1 %v13399_v45  ;;  %v2585_v3 = vand.u32 4294901760, %v2584_v31  ;;  %v2623_v31 = vand.u32 4294901760, %v13750_v37 }
 0x2a4   : > { %9477 = vmatmul.mubr.f32.gmra.mxu0 %v2565_v42  ;;  %9527 = vmatmul.mubr.f32.gmra.mxu1 %v13587_v57  ;;  %v2594_v42 = vsub.f32 %v13712_v52, %v2593_v41 }
 0x2a5   : > { %9560 = vmatprep.subr.mxu0 %v13480_v61  ;;  %9608 = vmatprep.subr.mxu1 %v13401_v33 }
 0x2a6   : > { %9561 = vmatpush3.msra.mxu0 %v13480_v61  ;;  %9609 = vmatpush3.msra.mxu1 %v13401_v33  ;;  %v2604_v61 = vsub.f32 %v13722_v7, %v2603_v51  ;;  %v2595_v23 = vand.u32 4294901760, %v2594_v42 }
 0x2a7   : > { %9562 = vmatprep.subr.mxu0 %v13492_v49  ;;  %9610 = vmatprep.subr.mxu1 %v13403_v20 }
 0x2a8   : > { %9479 = vmatprep.mubr.f32.mxu0 %v2575_v29  ;;  %9529 = vmatprep.mubr.f32.mxu1 %v13614_v34  ;;  %v2605_v29 = vand.u32 4294901760, %v2604_v61  ;;  %v17483_v61 = vand.u32 4294901760, %v13524_v12 }
 0x2a9   : > { %9563 = vmatpush3.msra.mxu0 %v13492_v49  ;;  %9611 = vmatpush3.msra.mxu1 %v13403_v20  ;;  %v2614_v49 = vsub.f32 %v13740_v38, %v2613_v2 }
 0x2aa   : > { %9480 = vmatmul.mubr.f32.gmra.mxu0 %v2585_v3  ;;  %9530 = vmatmul.mubr.f32.gmra.mxu1 %v13627_v0  ;;  %v2624_v3 = vsub.f32 %v13750_v37, %v2623_v31 }
 0x2ab   : > { %9564 = vmatprep.subr.mxu0 %v13504_v32  ;;  %9612 = vmatprep.subr.mxu1 %v13412_v43 }
 0x2ac   : > { %9565 = vmatpush3.msra.mxu0 %v13504_v32  ;;  %9613 = vmatpush3.msra.mxu1 %v13412_v43  ;;  %v2615_v32 = vand.u32 4294901760, %v2614_v49  ;;  %v2625_v42 = vand.u32 4294901760, %v2624_v3  ;;  %v17486_v49 = vld [vmem:[#allocation100_spill] sm:$0xff]  ;;  %v17489_v3 = vld [vmem:[#allocation101_spill] sm:$0xff] }
 0x2ad   : > { %9566 = vmatprep.subr.mxu0 %v13518_v46  ;;  %9614 = vmatprep.subr.mxu1 %v13434_v19 }
 0x2ae   : > { %9482 = vmatprep.mubr.f32.mxu0 %v2595_v23  ;;  %9532 = vmatprep.mubr.f32.mxu1 %v13647_v16  ;;  %v17484_v23 = vand.u32 4294901760, %v13533_v21 }
 0x2af   : > { %9567 = vmatpush3.msra.mxu0 %v13518_v46  ;;  %9615 = vmatpush3.msra.mxu1 %v13434_v19  ;;  %v17477_v46 = vld [vmem:[#allocation96_spill] sm:$0xff] }
 0x2b0   : > { %9483 = vmatmul.mubr.f32.gmra.mxu0 %v2605_v29  ;;  %9533 = vmatmul.mubr.f32.gmra.mxu1 %v13655_v5  ;;  %v17485_v29 = vld [vmem:[#allocation99_spill] sm:$0xff] }
 0x2b1   : > { %9568 = vmatprep.subr.mxu0 %v13541_v50  ;;  %9616 = vmatprep.subr.mxu1 %v13440_v22 }
 0x2b2   : > { %9569 = vmatpush3.msra.mxu0 %v13541_v50  ;;  %9617 = vmatpush3.msra.mxu1 %v13440_v22  ;;  %v17478_v50 = vld [vmem:[#allocation109_spill] sm:$0xff] }
 0x2b3   : > { %9570 = vmatprep.subr.mxu0 %v13556_v55  ;;  %9618 = vmatprep.subr.mxu1 %v13459_v25 }
 0x2b4   : > { %9485 = vmatprep.mubr.f32.mxu0 %v2615_v32  ;;  %9535 = vmatprep.mubr.f32.mxu1 %v13670_v36  ;;  %v17493_v32 = vld [vmem:[#allocation103_spill] sm:$0xff] }
 0x2b5   : > { %9571 = vmatpush3.msra.mxu0 %v13556_v55  ;;  %9619 = vmatpush3.msra.mxu1 %v13459_v25  ;;  %v17479_v55 = vld [vmem:[#allocation106_spill] sm:$0xff] }
 0x2b6   : > { %9486 = vmatmul.mubr.f32.gmra.mxu0 %v2625_v42  ;;  %9536 = vmatmul.mubr.f32.gmra.mxu1 %v13677_v4 }
 0x2b7   : > { %9572 = vmatprep.subr.mxu0 %v13570_v56  ;;  %9620 = vmatprep.subr.mxu1 %v13477_v58 }
 0x2b8   : > { %9573 = vmatpush3.msra.mxu0 %v13570_v56  ;;  %9621 = vmatpush3.msra.mxu1 %v13477_v58  ;;  %v17480_v56 = vld [vmem:[#allocation97_spill] sm:$0xff] }
 0x2b9   : > { %9574 = vmatprep.subr.mxu0 %v13595_v40  ;;  %9622 = vmatprep.subr.mxu1 %v13483_v30 }
 0x2ba   : > { %9538 = vmatprep.mubr.f32.mxu1 %v13696_v26  ;;  %9575 = vmatpush3.msra.mxu0 %v13595_v40  ;;  %v17482_v40 = vld [vmem:[#allocation98_spill] sm:$0xff] }
 0x2bb   : > { %9576 = vmatprep.mubr.f32.mxu0 %v13524_v12  ;;  %9623 = vmatpush3.msra.mxu1 %v13483_v30  ;;  %v17487_v12 = vand.u32 4294901760, %v17478_v50 }
 0x2bc   : > { %9539 = vmatmul.mubr.f32.gmra.mxu1 %v13705_v48  ;;  %9577 = vmatmul.mubr.f32.vlgmr.msra.gmra.mxu0 %v13533_v21  ;;  %v17488_v21 = vand.u32 4294901760, %v13578_v28 }
 0x2bd   : > { %9624 = vmatprep.subr.mxu1 %v13509_v14  ;;  %9656 = vmatprep.subr.mxu0 %v13426_v44 }
 0x2be   : > { %9625 = vmatpush3.msra.mxu1 %v13509_v14  ;;  %9657 = vmatpush3.msra.mxu0 %v13426_v44  ;;  %v17481_v44 = vld [vmem:[#allocation108_spill] sm:$0xff] }
 0x2bf   : > { %9626 = vmatprep.subr.mxu1 %v13521_v17  ;;  %9658 = vmatprep.subr.mxu0 %v17477_v46 }
 0x2c0   : > { %9541 = vmatprep.mubr.f32.mxu1 %v13724_v13  ;;  %9579 = vmatprep.mubr.f32.mxu0 %v17478_v50 }
 0x2c1   : > { %9627 = vmatpush3.msra.mxu1 %v13521_v17  ;;  %9659 = vmatpush3.msra.mxu0 %v17477_v46 }
 0x2c2   : > { %9542 = vmatmul.mubr.f32.gmra.mxu1 %v13733_v54  ;;  %9580 = vmatmul.mubr.f32.gmra.mxu0 %v13578_v28  ;;  %v17492_v28 = vand.u32 4294901760, %v13612_v15 }
 0x2c3   : > { %9628 = vmatprep.subr.mxu1 %v17479_v55  ;;  %9660 = vmatprep.subr.mxu0 %v17480_v56 }
 0x2c4   : > { %9629 = vmatpush3.msra.mxu1 %v17479_v55  ;;  %9661 = vmatpush3.msra.mxu0 %v17480_v56 }
 0x2c5   : > { %9630 = vmatprep.subr.mxu1 %v17481_v44  ;;  %9662 = vmatprep.subr.mxu0 %v17482_v40 }
 0x2c6   : > { %9582 = vmatprep.mubr.f32.mxu0 %v13604_v59  ;;  %9631 = vmatpush3.msra.mxu1 %v17481_v44 }
 0x2c7   : > { %9632 = vmatprep.mubr.f32.mxu1 %v17483_v61  ;;  %9663 = vmatpush3.msra.mxu0 %v17482_v40 }
 0x2c8   : > { %9583 = vmatmul.mubr.f32.gmra.mxu0 %v13612_v15  ;;  %9633 = vmatmul.mubr.f32.vlgmr.msra.gmra.mxu1 %v17484_v23  ;;  %v17496_v15 = vand.u32 4294901760, %v13645_v1 }
 0x2c9   : > { %9664 = vmatprep.subr.mxu0 %v17485_v29  ;;  %9712 = vmatprep.subr.mxu1 %v13393_v11 }
 0x2ca   : > { %9665 = vmatpush3.msra.mxu0 %v17485_v29  ;;  %9713 = vmatpush3.msra.mxu1 %v13393_v11  ;;  %v17490_v11 = vld [vmem:[#allocation102_spill] sm:$0xff] }
 0x2cb   : > { %9666 = vmatprep.subr.mxu0 %v17486_v49  ;;  %9714 = vmatprep.subr.mxu1 %v13395_v39  ;;  %v3682_v29 = vld [vmem:[#allocation11 + $0x30] sm:$0xff] }
 0x2cc   : > { %9585 = vmatprep.mubr.f32.mxu0 %v13636_v18  ;;  %9635 = vmatprep.mubr.f32.mxu1 %v17487_v12 }
 0x2cd   : > { %9667 = vmatpush3.msra.mxu0 %v17486_v49  ;;  %9715 = vmatpush3.msra.mxu1 %v13395_v39  ;;  %v17491_v39 = vand.u32 4294901760, %v13604_v59  ;;  %v17497_v59 = vld [vmem:[#allocation105_spill] sm:$0xff] }
 0x2ce   : > { %9586 = vmatmul.mubr.f32.gmra.mxu0 %v13645_v1  ;;  %9636 = vmatmul.mubr.f32.gmra.mxu1 %v17488_v21  ;;  %v17501_v1 = vld [vmem:[#allocation110_spill] sm:$0xff] }
 0x2cf   : > { %9668 = vmatprep.subr.mxu0 %v17489_v3  ;;  %9716 = vmatprep.subr.mxu1 %v13397_v8 }
 0x2d0   : > { %9669 = vmatpush3.msra.mxu0 %v17489_v3  ;;  %9717 = vmatpush3.msra.mxu1 %v13397_v8  ;;  %v17494_v8 = vld [vmem:[#allocation104_spill] sm:$0xff] }
 0x2d1   : > { %9670 = vmatprep.subr.mxu0 %v17490_v11  ;;  %9718 = vmatprep.subr.mxu1 %v13399_v45 }
 0x2d2   : > { %9588 = vmatprep.mubr.f32.mxu0 %v13660_v10  ;;  %9638 = vmatprep.mubr.f32.mxu1 %v17491_v39  ;;  %v3681_v39 = vld [vmem:[#allocation11 + $0x28] sm:$0xff] }
 0x2d3   : > { %9671 = vmatpush3.msra.mxu0 %v17490_v11  ;;  %9719 = vmatpush3.msra.mxu1 %v13399_v45  ;;  %v17495_v45 = vand.u32 4294901760, %v13636_v18  ;;  %v17500_v18 = vand.u32 4294901760, %v13668_v6  ;;  %v14052_v11 = vand.u32 4294901760, %v3682_v29 }
 0x2d4   : > { %9589 = vmatmul.mubr.f32.gmra.mxu0 %v13668_v6  ;;  %9639 = vmatmul.mubr.f32.gmra.mxu1 %v17492_v28 }
 0x2d5   : > { %9672 = vmatprep.subr.mxu0 %v17493_v32  ;;  %9720 = vmatprep.subr.mxu1 %v13401_v33  ;;  %17527 = vst [vmem:[#allocation118_spill] sm:$0xff] %v14052_v11 }
 0x2d6   : > { %9673 = vmatpush3.msra.mxu0 %v17493_v32  ;;  %9721 = vmatpush3.msra.mxu1 %v13401_v33  ;;  %v17498_v33 = vld [vmem:[#allocation107_spill] sm:$0xff] }
 0x2d7   : > { %9674 = vmatprep.subr.mxu0 %v17494_v8  ;;  %9722 = vmatprep.subr.mxu1 %v13403_v20 }
 0x2d8   : > { %9591 = vmatprep.mubr.f32.mxu0 %v13684_v63  ;;  %9641 = vmatprep.mubr.f32.mxu1 %v17495_v45  ;;  %v14060_v45 = vand.u32 4294901760, %v3681_v39 }
 0x2d9   : > { %9675 = vmatpush3.msra.mxu0 %v17494_v8  ;;  %9723 = vmatpush3.msra.mxu1 %v13403_v20  ;;  %v17499_v20 = vand.u32 4294901760, %v13660_v10  ;;  %v17504_v10 = vld [vmem:[#allocation112_spill] sm:$0xff] }
 0x2da   : > { %9592 = vmatmul.mubr.f32.gmra.mxu0 %v13694_v24  ;;  %9642 = vmatmul.mubr.f32.gmra.mxu1 %v17496_v15  ;;  %17529 = vst [vmem:[#allocation120_spill] sm:$0xff] %v14060_v45  ;;  %v14064_v15 = vsub.f32 %v3682_v29, %v14052_v11 }
 0x2db   : > { %9676 = vmatprep.subr.mxu0 %v17497_v59  ;;  %9724 = vmatprep.subr.mxu1 %v13412_v43 }
 0x2dc   : > { %9677 = vmatpush3.msra.mxu0 %v17497_v59  ;;  %9725 = vmatpush3.msra.mxu1 %v13412_v43  ;;  %v17502_v43 = vld [vmem:[#allocation111_spill] sm:$0xff]  ;;  %17530 = vst [vmem:[#allocation121_spill] sm:$0xff] %v14064_v15  ;;  %v3680_v59 = vld [vmem:[#allocation11 + $0x20] sm:$0xff] }
 0x2dd   : > { %9678 = vmatprep.subr.mxu0 %v17498_v33  ;;  %9726 = vmatprep.subr.mxu1 %v13434_v19 }
 0x2de   : > { %9594 = vmatprep.mubr.f32.mxu0 %v13712_v52  ;;  %9644 = vmatprep.mubr.f32.mxu1 %v17499_v20 }
 0x2df   : > { %9679 = vmatpush3.msra.mxu0 %v17498_v33  ;;  %9727 = vmatpush3.msra.mxu1 %v13434_v19  ;;  %v17503_v19 = vand.u32 4294901760, %v13684_v63 }
 0x2e0   : > { %9595 = vmatmul.mubr.f32.gmra.mxu0 %v13722_v7  ;;  %9645 = vmatmul.mubr.f32.gmra.mxu1 %v17500_v18  ;;  %v14070_v18 = vsub.f32 %v3681_v39, %v14060_v45 }
 0x2e1   : > { %9680 = vmatprep.subr.mxu0 %v17501_v1  ;;  %9728 = vmatprep.subr.mxu1 %v13440_v22 }
 0x2e2   : > { %9681 = vmatpush3.msra.mxu0 %v17501_v1  ;;  %9729 = vmatpush3.msra.mxu1 %v13440_v22  ;;  %v3690_v22 = vld [vmem:[#allocation11 + $0x70] sm:$0xff]  ;;  %17531 = vst [vmem:[#allocation122_spill] sm:$0xff] %v14070_v18  ;;  %v14072_v1 = vand.u32 4294901760, %v3680_v59 }
 0x2e3   : > { %9682 = vmatprep.subr.mxu0 %v17502_v43  ;;  %9730 = vmatprep.subr.mxu1 %v13459_v25 }
 0x2e4   : > { %9597 = vmatprep.mubr.f32.mxu0 %v13740_v38  ;;  %9647 = vmatprep.mubr.f32.mxu1 %v17503_v19  ;;  %17532 = vst [vmem:[#allocation123_spill] sm:$0xff] %v14072_v1  ;;  %v3679_v19 = vld [vmem:[#allocation11 + $0x18] sm:$0xff] }
 0x2e5   : > { %9683 = vmatpush3.msra.mxu0 %v17502_v43  ;;  %9731 = vmatpush3.msra.mxu1 %v13459_v25  ;;  %v14076_v43 = vand.u32 4294901760, %v14064_v15 }
 0x2e6   : > { %9598 = vmatmul.mubr.f32.gmra.mxu0 %v13750_v37  ;;  %9648 = vmatmul.mubr.f32.gmra.mxu1 %v2583_v53  ;;  %v3684_v37 = vld [vmem:[#allocation11 + $0x40] sm:$0xff] }
 0x2e7   : > { %9684 = vmatprep.subr.mxu0 %v17504_v10  ;;  %9732 = vmatprep.subr.mxu1 %v13477_v58  ;;  %v14025_v46 = vand.u32 4294901760, %v3684_v37  ;;  %17533 = vst [vmem:[#allocation124_spill] sm:$0xff] %v14076_v43 }
 0x2e8   : > { %9685 = vmatpush3.msra.mxu0 %v17504_v10  ;;  %9733 = vmatpush3.msra.mxu1 %v13477_v58  ;;  %v13958_v58 = vand.u32 4294901760, %v3690_v22 }
 0x2e9   : > { %9686 = vmatprep.subr.mxu0 %v13621_v35  ;;  %9734 = vmatprep.subr.mxu1 %v13483_v30  ;;  %17521 = vst [vmem:[#allocation112_spill] sm:$0xff] %v14025_v46  ;;  %v14037_v40 = vsub.f32 %v3684_v37, %v14025_v46 }
 0x2ea   : > { %9650 = vmatprep.mubr.f32.mxu1 %v2593_v41  ;;  %9687 = vmatpush3.msra.mxu0 %v13621_v35  ;;  %v3691_v35 = vld [vmem:[#allocation11 + $0x78] sm:$0xff] }
 0x2eb   : > { %9688 = vmatprep.mubr.f32.mxu0 %v13497_v27  ;;  %9735 = vmatpush3.msra.mxu1 %v13483_v30  ;;  %v3689_v30 = vld [vmem:[#allocation11 + $0x68] sm:$0xff]  ;;  %17523 = vst [vmem:[#allocation114_spill] sm:$0xff] %v14037_v40  ;;  %v14046_v21 = vand.u32 4294901760, %v14037_v40 }
 0x2ec   : > { %9651 = vmatmul.mubr.f32.gmra.mxu1 %v2603_v51  ;;  %9689 = vmatmul.mubr.f32.vlgmr.msra.gmra.mxu0 %v13506_v62 }
 0x2ed   : > { %9736 = vmatprep.subr.mxu1 %v13509_v14  ;;  %9653 = vmatprep.mubr.f32.mxu1 %v2613_v2  ;;  %17525 = vst [vmem:[#allocation116_spill] sm:$0xff] %v14046_v21  ;;  %v3993_v32 = vsub.f32 %v14037_v40, %v14046_v21 }
 0x2ee   : > { %9737 = vmatpush3.msra.mxu1 %v13509_v14  ;;  %9691 = vmatprep.mubr.f32.mxu0 %v13535_v9  ;;  %v3688_v14 = vld [vmem:[#allocation11 + $0x60] sm:$0xff] }
 0x2ef   : > { %9738 = vmatprep.subr.mxu1 %v13521_v17  ;;  %v3994_v33 = vand.u32 4294901760, %v3993_v32 }
 0x2f0   : > { %9739 = vmatpush3.msra.mxu1 %v13521_v17  ;;  %9692 = vmatmul.mubr.f32.gmra.mxu0 %v13549_v60 }
 0x2f1   : > { %9654 = vmatmul.mubr.f32.gmra.mxu1 %v2623_v31  ;;  %9740 = vmatprep.subr.mxu1 %v17479_v55 }
 0x2f2   : > { %9741 = vmatpush3.msra.mxu1 %v17479_v55  ;;  %9694 = vmatprep.mubr.f32.mxu0 %v13572_v47  ;;  %v3683_v55 = vld [vmem:[#allocation11 + $0x38] sm:$0xff] }
 0x2f3   : > { %9742 = vmatprep.subr.mxu1 %v17481_v44  ;;  %9744 = vmatprep.mubr.f32.mxu1 %v13497_v27  ;;  %v14039_v61 = vand.u32 4294901760, %v3683_v55 }
 0x2f4   : > { %9743 = vmatpush3.msra.mxu1 %v17481_v44  ;;  %9695 = vmatmul.mubr.f32.gmra.mxu0 %v13587_v57 }
 0x2f5   : > { %9745 = vmatmul.mubr.f32.vlgmr.msra.gmra.mxu1 %v13506_v62  ;;  %9697 = vmatprep.mubr.f32.mxu0 %v13614_v34  ;;  %v13968_v62 = vand.u32 4294901760, %v3689_v30  ;;  %17524 = vst [vmem:[#allocation115_spill] sm:$0xff] %v14039_v61  ;;  %v14049_v3 = vsub.f32 %v3683_v55, %v14039_v61 }
 0x2f6   : > { %9747 = vmatprep.mubr.f32.mxu1 %v13535_v9  ;;  %v13980_v9 = vand.u32 4294901760, %v3688_v14 }
 0x2f7   : > { %17526 = vst [vmem:[#allocation117_spill] sm:$0xff] %v14049_v3  ;;  %v14058_v8 = vand.u32 4294901760, %v14049_v3 }
 0x2f8   : > { %9698 = vmatmul.mubr.f32.gmra.mxu0 %v13627_v0  ;;  %v13990_v52 = vsub.f32 %v3688_v14, %v13980_v9  ;;  %v4007_v14 = vsub.f32 %v14064_v15, %v14076_v43  ;;  %v14190_v43 = vld [vmem:[%s16542_s4] ss:$0 sm:$0xff] }
 0x2f9   : > { %9748 = vmatmul.mubr.f32.gmra.mxu1 %v13549_v60  ;;  %9700 = vmatprep.mubr.f32.mxu0 %v13647_v16  ;;  %v3687_v60 = vld [vmem:[#allocation11 + $0x58] sm:$0xff]  ;;  %17528 = vst [vmem:[#allocation119_spill] sm:$0xff] %v14058_v8  ;;  %v4000_v20 = vsub.f32 %v14049_v3, %v14058_v8 }
 0x2fa   : > { %9750 = vmatprep.mubr.f32.mxu1 %v13572_v47  ;;  %17511 = vst [vmem:[#allocation99_spill] sm:$0xff] %v13990_v52  ;;  %v13993_v6 = vand.u32 4294901760, %v3687_v60  ;;  %v13999_v24 = vand.u32 4294901760, %v13990_v52 }
 0x2fb   : > { %v4001_v10 = vand.u32 4294901760, %v4000_v20 }
 0x2fc   : > { %9701 = vmatmul.mubr.f32.gmra.mxu0 %v13655_v5  ;;  %17512 = vst [vmem:[#allocation100_spill] sm:$0xff] %v13993_v6  ;;  %17513 = vst [vmem:[#allocation101_spill] sm:$0xff] %v13999_v24  ;;  %v14004_v38 = vsub.f32 %v3687_v60, %v13993_v6  ;;  %v3965_v7 = vsub.f32 %v13990_v52, %v13999_v24 }
 0x2fd   : > { %9751 = vmatmul.mubr.f32.gmra.mxu1 %v13587_v57  ;;  %9703 = vmatprep.mubr.f32.mxu0 %v13670_v36  ;;  %v13966_v57 = vsub.f32 %v3690_v22, %v13958_v58  ;;  %v14083_v22 = vsub.f32 %v3680_v59, %v14072_v1 }
 0x2fe   : > { %9753 = vmatprep.mubr.f32.mxu1 %v13614_v34  ;;  %v13953_v34 = vand.u32 4294901760, %v3691_v35  ;;  %17515 = vst [vmem:[#allocation103_spill] sm:$0xff] %v14004_v38  ;;  %v14016_v51 = vand.u32 4294901760, %v14004_v38  ;;  %v3966_v2 = vand.u32 4294901760, %v3965_v7 }
 0x2ff   : > { %17507 = vst [vmem:[#allocation106_spill] sm:$0xff] %v13966_v57  ;;  %v13975_v17 = vand.u32 4294901760, %v13966_v57  ;;  %17535 = vst [vmem:[#allocation126_spill] sm:$0xff] %v14083_v22 }
 0x300   : > { %9704 = vmatmul.mubr.f32.gmra.mxu0 %v13677_v4  ;;  %v13956_v25 = vsub.f32 %v3691_v35, %v13953_v34  ;;  %9768 = vmatprep.subr.mxu0 %v13953_v34  ;;  %17518 = vst [vmem:[#allocation107_spill] sm:$0xff] %v14016_v51  ;;  %v3972_v50 = vsub.f32 %v14004_v38, %v14016_v51  ;;  %v14080_v35 = vand.u32 4294901760, %v14070_v18 }
 0x301   : > { %9754 = vmatmul.mubr.f32.gmra.mxu1 %v13627_v0  ;;  %9706 = vmatprep.mubr.f32.mxu0 %v13696_v26  ;;  %17508 = vst [vmem:[#allocation97_spill] sm:$0xff] %v13975_v17  ;;  %v13978_v0 = vsub.f32 %v3689_v30, %v13968_v62  ;;  %v14085_v30 = vand.u32 4294901760, %v3679_v19 }
 0x302   : > { %9756 = vmatprep.mubr.f32.mxu1 %v13647_v16  ;;  %17505 = vst [vmem:[#allocation96_spill] sm:$0xff] %v13956_v25  ;;  %9769 = vmatpush3.msra.mxu0 %v13953_v34  ;;  %v13963_v27 = vand.u32 4294901760, %v13956_v25  ;;  %v3973_v23 = vand.u32 4294901760, %v3972_v50  ;;  %17534 = vst [vmem:[#allocation125_spill] sm:$0xff] %v14080_v35  ;;  %v4014_v60 = vsub.f32 %v14070_v18, %v14080_v35  ;;  %v3676_v50 = vld [vmem:[#allocation11] sm:$0xff] }
 0x303   : > { %9770 = vmatprep.subr.mxu0 %v13958_v58  ;;  %17509 = vst [vmem:[#allocation108_spill] sm:$0xff] %v13978_v0  ;;  %17536 = vst [vmem:[#allocation127_spill] sm:$0xff] %v14085_v30  ;;  %v14120_v29 = vand.u32 4294901760, %v3676_v50 }
 0x304   : > { %9707 = vmatmul.mubr.f32.gmra.mxu0 %v13705_v48  ;;  %17506 = vst [vmem:[#allocation109_spill] sm:$0xff] %v13963_v27  ;;  %v3944_v47 = vsub.f32 %v13956_v25, %v13963_v27 }
 0x305   : > { %9757 = vmatmul.mubr.f32.gmra.mxu1 %v13655_v5  ;;  %9709 = vmatprep.mubr.f32.mxu0 %v13724_v13  ;;  %v13987_v5 = vand.u32 4294901760, %v13978_v0  ;;  %17544 = vst [vmem:[#allocation135_spill] sm:$0xff] %v14120_v29 }
 0x306   : > { %9759 = vmatprep.mubr.f32.mxu1 %v13670_v36  ;;  %9771 = vmatpush3.msra.mxu0 %v13958_v58  ;;  %v3945_v16 = vand.u32 4294901760, %v3944_v47  ;;  %v3686_v36 = vld [vmem:[#allocation11 + $0x50] sm:$0xff] }
 0x307   : > { %9772 = vmatprep.subr.mxu0 %v13968_v62  ;;  %17510 = vst [vmem:[#allocation98_spill] sm:$0xff] %v13987_v5  ;;  %v3958_v63 = vsub.f32 %v13978_v0, %v13987_v5  ;;  %v3678_v47 = vld [vmem:[#allocation11 + $0x10] sm:$0xff] }
 0x308   : > { %9710 = vmatmul.mubr.f32.gmra.mxu0 %v13733_v54  ;;  %9824 = vmatprep.subr.mxu1 %v3945_v16 }
 0x309   : > { %9760 = vmatmul.mubr.f32.gmra.mxu1 %v13677_v4  ;;  %9773 = vmatpush3.msra.mxu0 %v13968_v62  ;;  %v3959_v53 = vand.u32 4294901760, %v3958_v63  ;;  %v3677_v63 = vld [vmem:[#allocation11 + $0x8] sm:$0xff] }
 0x30a   : > { %9762 = vmatprep.mubr.f32.mxu1 %v13696_v26  ;;  %9774 = vmatprep.subr.mxu0 %v13980_v9  ;;  %v14001_v26 = vand.u32 4294901760, %v3686_v36 }
 0x30b   : > { %9775 = vmatpush3.msra.mxu0 %v13980_v9  ;;  %9825 = vmatpush3.msra.mxu1 %v3945_v16  ;;  %v14094_v16 = vand.u32 4294901760, %v14083_v22 }
 0x30c   : > { %17514 = vst [vmem:[#allocation102_spill] sm:$0xff] %v14001_v26  ;;  %9776 = vmatprep.subr.mxu0 %v13993_v6  ;;  %v14010_v41 = vsub.f32 %v3686_v36, %v14001_v26  ;;  %v14099_v36 = vand.u32 4294901760, %v3678_v47 }
 0x30d   : > { %9763 = vmatmul.mubr.f32.gmra.mxu1 %v13705_v48  ;;  %v3685_v48 = vld [vmem:[#allocation11 + $0x48] sm:$0xff]  ;;  %9777 = vmatpush3.msra.mxu0 %v13993_v6  ;;  %17537 = vst [vmem:[#allocation128_spill] sm:$0xff] %v14094_v16 }
 0x30e   : > { %9765 = vmatprep.mubr.f32.mxu1 %v13724_v13  ;;  %v3951_v13 = vsub.f32 %v13966_v57, %v13975_v17  ;;  %17516 = vst [vmem:[#allocation104_spill] sm:$0xff] %v14010_v41  ;;  %9778 = vmatprep.subr.mxu0 %v14001_v26  ;;  %v14020_v31 = vand.u32 4294901760, %v14010_v41  ;;  %17539 = vst [vmem:[#allocation130_spill] sm:$0xff] %v14099_v36  ;;  %v14109_v37 = vsub.f32 %v3678_v47, %v14099_v36 }
 0x30f   : > { %9779 = vmatpush3.msra.mxu0 %v14001_v26 }
 0x310   : > { %v3952_v4 = vand.u32 4294901760, %v3951_v13  ;;  %17519 = vst [vmem:[#allocation110_spill] sm:$0xff] %v14020_v31  ;;  %v3979_v56 = vsub.f32 %v14010_v41, %v14020_v31  ;;  %v14097_v13 = vsub.f32 %v3679_v19, %v14085_v30  ;;  %17541 = vst [vmem:[#allocation132_spill] sm:$0xff] %v14109_v37 }
 0x311   : > { %9766 = vmatmul.mubr.f32.gmra.mxu1 %v13733_v54  ;;  %v14012_v54 = vand.u32 4294901760, %v3685_v48 }
 0x312   : > { %9826 = vmatprep.subr.mxu1 %v3952_v4  ;;  %v3980_v49 = vand.u32 4294901760, %v3979_v56  ;;  %17538 = vst [vmem:[#allocation129_spill] sm:$0xff] %v14097_v13  ;;  %v14106_v7 = vand.u32 4294901760, %v14097_v13 }
 0x313   : > { %17517 = vst [vmem:[#allocation105_spill] sm:$0xff] %v14012_v54  ;;  %9827 = vmatpush3.msra.mxu1 %v3952_v4  ;;  %v14023_v42 = vsub.f32 %v3685_v48, %v14012_v54  ;;  %9780 = vmatprep.subr.mxu0 %v14012_v54  ;;  %v4008_v4 = vand.u32 4294901760, %v4007_v14  ;;  %v4015_v48 = vand.u32 4294901760, %v4014_v60 }
 0x314   : > { %9828 = vmatprep.subr.mxu1 %v3959_v53  ;;  %9781 = vmatpush3.msra.mxu0 %v14012_v54  ;;  %17540 = vst [vmem:[#allocation131_spill] sm:$0xff] %v14106_v7  ;;  %v4028_v56 = vsub.f32 %v14097_v13, %v14106_v7 }
 0x315   : > { %17520 = vst [vmem:[#allocation111_spill] sm:$0xff] %v14023_v42  ;;  %9829 = vmatpush3.msra.mxu1 %v3959_v53  ;;  %v14034_v44 = vand.u32 4294901760, %v14023_v42  ;;  %9782 = vmatprep.subr.mxu0 %v14025_v46  ;;  %v4021_v53 = vsub.f32 %v14083_v22, %v14094_v16 }
 0x316   : > { %9830 = vmatprep.subr.mxu1 %v3966_v2  ;;  %9783 = vmatpush3.msra.mxu0 %v14025_v46 }
 0x317   : > { %17522 = vst [vmem:[#allocation113_spill] sm:$0xff] %v14034_v44  ;;  %9831 = vmatpush3.msra.mxu1 %v3966_v2  ;;  %v3986_v12 = vsub.f32 %v14023_v42, %v14034_v44  ;;  %9784 = vmatprep.subr.mxu0 %v14039_v61  ;;  %v14112_v2 = vand.u32 4294901760, %v3677_v63  ;;  %v4022_v55 = vand.u32 4294901760, %v4021_v53 }
 0x318   : > { %9832 = vmatprep.subr.mxu1 %v3973_v23  ;;  %9785 = vmatpush3.msra.mxu0 %v14039_v61 }
 0x319   : > { %9833 = vmatpush3.msra.mxu1 %v3973_v23  ;;  %v3987_v28 = vand.u32 4294901760, %v3986_v12  ;;  %9786 = vmatprep.subr.mxu0 %v14052_v11  ;;  %17542 = vst [vmem:[#allocation133_spill] sm:$0xff] %v14112_v2  ;;  %v14118_v23 = vand.u32 4294901760, %v14109_v37  ;;  %v4029_v12 = vand.u32 4294901760, %v4028_v56 }
 0x31a   : > { %9834 = vmatprep.subr.mxu1 %v3980_v49  ;;  %9787 = vmatpush3.msra.mxu0 %v14052_v11 }
 0x31b   : > { %9835 = vmatpush3.msra.mxu1 %v3980_v49  ;;  %9788 = vmatprep.subr.mxu0 %v14060_v45  ;;  %17543 = vst [vmem:[#allocation134_spill] sm:$0xff] %v14118_v23  ;;  %v14124_v49 = vsub.f32 %v3677_v63, %v14112_v2  ;;  %v4035_v39 = vsub.f32 %v14109_v37, %v14118_v23 }
 0x31c   : > { %9836 = vmatprep.subr.mxu1 %v3987_v28  ;;  %9789 = vmatpush3.msra.mxu0 %v14060_v45 }
 0x31d   : > { %9837 = vmatpush3.msra.mxu1 %v3987_v28  ;;  %9790 = vmatprep.subr.mxu0 %v14072_v1  ;;  %17545 = vst [vmem:[#allocation136_spill] sm:$0xff] %v14124_v49  ;;  %v14130_v28 = vsub.f32 %v3676_v50, %v14120_v29  ;;  %v14134_v32 = vand.u32 4294901760, %v14124_v49  ;;  %v4036_v59 = vand.u32 4294901760, %v4035_v39 }
 0x31e   : > { %9838 = vmatprep.subr.mxu1 %v3994_v33  ;;  %9791 = vmatpush3.msra.mxu0 %v14072_v1 }
 0x31f   : > { %9839 = vmatpush3.msra.mxu1 %v3994_v33  ;;  %9792 = vmatprep.subr.mxu0 %v14085_v30  ;;  %17546 = vst [vmem:[#allocation137_spill] sm:$0xff] %v14130_v28  ;;  %17547 = vst [vmem:[#allocation138_spill] sm:$0xff] %v14134_v32  ;;  %v14138_v33 = vand.u32 4294901760, %v14130_v28  ;;  %v4042_v20 = vsub.f32 %v14124_v49, %v14134_v32 }
 0x320   : > { %9840 = vmatprep.subr.mxu1 %v4001_v10  ;;  %9793 = vmatpush3.msra.mxu0 %v14085_v30 }
 0x321   : > { %9841 = vmatpush3.msra.mxu1 %v4001_v10  ;;  %9794 = vmatprep.subr.mxu0 %v14099_v36  ;;  %17548 = vst [vmem:[#allocation139_spill] sm:$0xff] %v14138_v33  ;;  %v4049_v19 = vsub.f32 %v14130_v28, %v14138_v33  ;;  %v4043_v10 = vand.u32 4294901760, %v4042_v20 }
 0x322   : > { %9842 = vmatprep.subr.mxu1 %v4008_v4  ;;  %9795 = vmatpush3.msra.mxu0 %v14099_v36 }
 0x323   : > { %9843 = vmatpush3.msra.mxu1 %v4008_v4  ;;  %9796 = vmatprep.subr.mxu0 %v14112_v2  ;;  %v4050_v14 = vand.u32 4294901760, %v4049_v19 }
 0x324   : > { %9844 = vmatprep.subr.mxu1 %v4015_v48  ;;  %9797 = vmatpush3.msra.mxu0 %v14112_v2 }
 0x325   : > { %9845 = vmatpush3.msra.mxu1 %v4015_v48  ;;  %9798 = vmatprep.subr.mxu0 %v14120_v29 }
 0x326   : > { %9846 = vmatprep.subr.mxu1 %v4022_v55  ;;  %9799 = vmatpush3.msra.mxu0 %v14120_v29 }
 0x327   : > { %9847 = vmatpush3.msra.mxu1 %v4022_v55  ;;  %9880 = vmatprep.subr.mxu0 %v13956_v25 }
 0x328   : > { %9848 = vmatprep.subr.mxu1 %v4029_v12 }
 0x329   : > { %9849 = vmatpush3.msra.mxu1 %v4029_v12 }
 0x32a   : > { %9850 = vmatprep.subr.mxu1 %v4036_v59 }
 0x32b   : > { %9851 = vmatpush3.msra.mxu1 %v4036_v59 }
 0x32c   : > { %9852 = vmatprep.subr.mxu1 %v4043_v10 }
 0x32d   : > { %9853 = vmatpush3.msra.mxu1 %v4043_v10 }
 0x32e   : > { %9854 = vmatprep.subr.mxu1 %v4050_v14 }
 0x32f   : > { %9855 = vmatpush3.msra.mxu1 %v4050_v14 }
 0x330   : > { %9936 = vmatprep.subr.mxu1 %v13953_v34 }
 0x34d   : > { %v14147_v47 = vpop.f32.mrf.mxu0 }
 0x34e   : > { %v2488_v57 = vadd.f32 %v14147_v47, %v14190_v43 }
 0x34f   : > { %v14149_v60 = vpop.f32.mrf.mxu0 }
 0x353   : > { %v14151_v4 = vpop.f32.mrf.mxu0 }
 0x355   : > { %v14153_v63 = vpop.f32.mrf.mxu0 }
 0x358   : > { %v14155_v48 = vpop.f32.mrf.mxu0  ;;  %v14157_v53 = vpop.f32.mrf.mxu1 }
 0x359   : > { %v2528_v47 = vadd.f32 %v14155_v48, %v14190_v43 }
 0x35a   : > { %v14159_v50 = vpop.f32.mrf.mxu0  ;;  %v14161_v55 = vpop.f32.mrf.mxu1 }
 0x35e   : > { %v14163_v56 = vpop.f32.mrf.mxu0  ;;  %v14165_v12 = vpop.f32.mrf.mxu1 }
 0x360   : > { %v14167_v39 = vpop.f32.mrf.mxu0  ;;  %v14169_v59 = vpop.f32.mrf.mxu1 }
 0x364   : > { %v14171_v20 = vpop.f32.mrf.mxu0  ;;  %v14173_v19 = vpop.f32.mrf.mxu1 }
 0x366   : > { %v14175_v10 = vpop.f32.mrf.mxu0  ;;  %v14177_v14 = vpop.f32.mrf.mxu1 }
 0x36a   : > { %v9481_v33 = vpop.f32.mrf.mxu0  ;;  %v14179_v32 = vpop.f32.mrf.mxu1 }
 0x36b   : > { %v2588_v44 = vadd.f32 %v9481_v33, %v14190_v43 }
 0x36c   : > { %v14181_v23 = vpop.f32.mrf.mxu0  ;;  %v14183_v7 = vpop.f32.mrf.mxu1 }
 0x370   : > { %v9484_v16 = vpop.f32.mrf.mxu0  ;;  %v14185_v35 = vpop.f32.mrf.mxu1 }
 0x371   : > { %v2608_v27 = vadd.f32 %v9484_v16, %v14190_v43 }
 0x372   : > { %v14192_v8 = vpop.f32.mrf.mxu0  ;;  %v14194_v21 = vpop.f32.mrf.mxu1 }
 0x376   : > { %v9487_v31 = vpop.f32.mrf.mxu0  ;;  %v9537_v51 = vpop.f32.mrf.mxu1 }
 0x377   : > { %v14197_v24 = vadd.f32 %v9537_v51, %v2588_v44  ;;  %v2628_v22 = vadd.f32 %v9487_v31, %v14190_v43 }
 0x378   : > { %v14199_v5 = vpop.f32.mrf.mxu0  ;;  %v14201_v17 = vpop.f32.mrf.mxu1 }
 0x379   : > { %17549 = vst [vmem:[#allocation140_spill] sm:$0xff] %v14197_v24 }
 0x37c   : > { %v9540_v28 = vpop.f32.mrf.mxu1  ;;  %v9578_v49 = vpop.f32.mrf.mxu0 }
 0x37d   : > { %v14204_v37 = vadd.f32 %v9540_v28, %v2608_v27 }
 0x37e   : > { %v14206_v13 = vpop.f32.mrf.mxu1  ;;  %v2972_v29 = vpop.f32.mrf.mxu0 }
 0x37f   : > { %17550 = vst [vmem:[#allocation141_spill] sm:$0xff] %v14204_v37  ;;  %v2478_v37 = vadd.f32 %v14190_v43, %v14149_v60  ;;  %v2498_v60 = vadd.f32 %v14190_v43, %v14153_v63 }
 0x382   : > { %v9543_v33 = vpop.f32.mrf.mxu1  ;;  %v9581_v2 = vpop.f32.mrf.mxu0 }
 0x383   : > { %v14209_v18 = vadd.f32 %v9543_v33, %v2628_v22 }
 0x384   : > { %v14211_v51 = vpop.f32.mrf.mxu1  ;;  %v2986_v44 = vpop.f32.mrf.mxu0 }
 0x385   : > { %17551 = vst [vmem:[#allocation142_spill] sm:$0xff] %v14209_v18 }
 0x388   : > { %v14213_v36 = vpop.f32.mrf.mxu0  ;;  %v9634_v15 = vpop.f32.mrf.mxu1 }
 0x38a   : > { %v14215_v16 = vpop.f32.mrf.mxu0  ;;  %v3166_v30 = vpop.f32.mrf.mxu1 }
 0x38e   : > { %v14217_v27 = vpop.f32.mrf.mxu0  ;;  %v9637_v28 = vpop.f32.mrf.mxu1 }
 0x390   : > { %v14219_v3 = vpop.f32.mrf.mxu0  ;;  %v3182_v1 = vpop.f32.mrf.mxu1 }
 0x394   : > { %v14221_v31 = vpop.f32.mrf.mxu0  ;;  %v14223_v40 = vpop.f32.mrf.mxu1 }
 0x396   : > { %v14225_v22 = vpop.f32.mrf.mxu0  ;;  %v14227_v33 = vpop.f32.mrf.mxu1 }
 0x39a   : > { %v14229_v45 = vpop.f32.mrf.mxu0  ;;  %v14231_v42 = vpop.f32.mrf.mxu1 }
 0x39b   : > { %17552 = vst [vmem:[#allocation143_spill] sm:$0xff] %v14229_v45 }
 0x39c   : > { %v14233_v11 = vpop.f32.mrf.mxu0  ;;  %v14235_v41 = vpop.f32.mrf.mxu1 }
 0x39d   : > { %17553 = vst [vmem:[#allocation144_spill] sm:$0xff] %v14233_v11 }
 0x3a0   : > { %v14237_v61 = vpop.f32.mrf.mxu0  ;;  %v14239_v38 = vpop.f32.mrf.mxu1 }
 0x3a1   : > { %17554 = vst [vmem:[#allocation145_spill] sm:$0xff] %v14237_v61 }
 0x3a2   : > { %v14241_v18 = vpop.f32.mrf.mxu0  ;;  %v14243_v46 = vpop.f32.mrf.mxu1 }
 0x3a3   : > { %17555 = vst [vmem:[#allocation146_spill] sm:$0xff] %v14241_v18  ;;  %v2508_v18 = vadd.f32 %v14151_v4, %v14190_v43 }
 0x3a6   : > { %v14245_v52 = vpop.f32.mrf.mxu0  ;;  %v14247_v54 = vpop.f32.mrf.mxu1 }
 0x3a7   : > { %17556 = vst [vmem:[#allocation147_spill] sm:$0xff] %v14245_v52  ;;  %17557 = vst [vmem:[#allocation148_spill] sm:$0xff] %v14247_v54  ;;  %v2785_v52 = vadd.f32 %v14157_v53, %v2488_v57  ;;  %v2797_v57 = vadd.f32 %v14165_v12, %v2508_v18 }
 0x3a8   : > { %v14249_v0 = vpop.f32.mrf.mxu0  ;;  %v14251_v26 = vpop.f32.mrf.mxu1 }
 0x3a9   : > { %17558 = vst [vmem:[#allocation149_spill] sm:$0xff] %v14249_v0  ;;  %17559 = vst [vmem:[#allocation150_spill] sm:$0xff] %v14251_v26  ;;  %v2779_v0 = vadd.f32 %v14161_v55, %v2478_v37  ;;  %v2980_v26 = vadd.f32 %v9578_v49, %v2785_v52  ;;  %v2518_v52 = vadd.f32 %v14190_v43, %v14159_v50 }
 0x3aa   : > { %v2538_v37 = vadd.f32 %v14190_v43, %v14167_v39  ;;  %v2568_v49 = vadd.f32 %v14171_v20, %v14190_v43  ;;  %v2791_v55 = vadd.f32 %v14169_v59, %v2498_v60  ;;  %v2618_v60 = vadd.f32 %v14190_v43, %v14199_v5 }
 0x3ab   : > { %v2973_v4 = vadd.f32 %v2972_v29, %v2779_v0  ;;  %v3175_v53 = vadd.f32 %v9634_v15, %v2980_v26  ;;  %v2809_v0 = vadd.f32 %v14173_v19, %v2528_v47  ;;  %v2558_v26 = vadd.f32 %v14190_v43, %v14175_v10 }
 0x3ac   : > { %v14255_v25 = vpop.f32.mrf.mxu1  ;;  %v9690_v61 = vpop.f32.mrf.mxu0  ;;  %v2803_v15 = vadd.f32 %v14177_v14, %v2518_v52  ;;  %v2987_v12 = vadd.f32 %v2986_v44, %v2791_v55 }
 0x3ad   : > { %17560 = vst [vmem:[#allocation151_spill] sm:$0xff] %v14255_v25  ;;  %v2548_v25 = vadd.f32 %v14163_v56, %v14190_v43  ;;  %v2994_v56 = vadd.f32 %v9581_v2, %v2797_v57  ;;  %v3167_v63 = vadd.f32 %v3166_v30, %v2973_v4  ;;  %v2578_v30 = vadd.f32 %v14190_v43, %v14181_v23 }
 0x3ae   : > { %v14262_v6 = vpop.f32.mrf.mxu1  ;;  %v3405_v54 = vpop.f32.mrf.mxu0  ;;  %v2833_v2 = vadd.f32 %v14185_v35, %v2568_v49  ;;  %v3008_v59 = vadd.f32 %v14213_v36, %v2809_v0  ;;  %v3183_v10 = vadd.f32 %v3182_v1, %v2987_v12  ;;  %v3001_v23 = vadd.f32 %v14215_v16, %v2803_v15 }
 0x3af   : > { %17561 = vst [vmem:[#allocation152_spill] sm:$0xff] %v14262_v6  ;;  %v2821_v29 = vadd.f32 %v14179_v32, %v2548_v25  ;;  %v3191_v39 = vadd.f32 %v9637_v28, %v2994_v56  ;;  %v3406_v20 = vadd.f32 %v3405_v54, %v3167_v63  ;;  %v2598_v54 = vadd.f32 %v14190_v43, %v14192_v8 }
 0x3b0   : > { %v9693_v11 = vpop.f32.mrf.mxu0 }
 0x3b1   : > { %v14269_v45 = vpop.f32.mrf.mxu1  ;;  %v3424_v14 = vadd.f32 %v9693_v11, %v3191_v39  ;;  %v3022_v8 = vadd.f32 %v14217_v27, %v2821_v29  ;;  %v14318_v5 = vadd.f32 %v14206_v13, %v2598_v54  ;;  %v14330_v13 = vadd.f32 %v14211_v51, %v2618_v60  ;;  %v17566_v60 = vld [vmem:[#allocation144_spill] sm:$0xff] }
 0x3b2   : > { %17562 = vst [vmem:[#allocation153_spill] sm:$0xff] %v14269_v45  ;;  %v3417_v6 = vpop.f32.mrf.mxu0  ;;  %v3412_v45 = vadd.f32 %v9690_v61, %v3175_v53  ;;  %v2815_v61 = vadd.f32 %v14183_v7, %v2538_v37  ;;  %v3207_v7 = vadd.f32 %v14223_v40, %v3008_v59  ;;  %v2839_v37 = vadd.f32 %v14201_v17, %v2578_v30 }
 0x3b3   : > { %v14280_v48 = vpop.f32.mrf.mxu1  ;;  %v3418_v35 = vadd.f32 %v3417_v6, %v3183_v10  ;;  %v3223_v27 = vadd.f32 %v14231_v42, %v3022_v8  ;;  %v3036_v51 = vadd.f32 %v14221_v31, %v2833_v2 }
 0x3b4   : > { %17563 = vst [vmem:[#allocation154_spill] sm:$0xff] %v14280_v48  ;;  %v9696_v18 = vpop.f32.mrf.mxu0  ;;  %v3015_v43 = vadd.f32 %v14219_v3, %v2815_v61  ;;  %v3043_v8 = vadd.f32 %v17566_v60, %v2839_v37 }
 0x3b5   : > { %v9746_v50 = vpop.f32.mrf.mxu1  ;;  %v3436_v57 = vadd.f32 %v9696_v18, %v3207_v7  ;;  %v3239_v2 = vadd.f32 %v14239_v38, %v3036_v51  ;;  %v17572_v51 = vld [vmem:[#allocation106_spill] sm:$0xff] }
 0x3b6   : > { %v3589_v48 = vadd.f32 %v9746_v50, %v3412_v45  ;;  %v3429_v24 = vpop.f32.mrf.mxu0  ;;  %v2827_v45 = vadd.f32 %v14194_v21, %v2558_v26  ;;  %v3199_v21 = vadd.f32 %v14227_v33, %v3001_v23  ;;  %v3215_v3 = vadd.f32 %v14235_v41, %v3015_v43  ;;  %v17565_v23 = vld [vmem:[#allocation143_spill] sm:$0xff]  ;;  %v17569_v43 = vld [vmem:[#allocation145_spill] sm:$0xff] }
 0x3b7   : > { %v3582_v19 = vpop.f32.mrf.mxu1 }
 0x3b8   : > { %v14293_v47 = vand.u32 4294901760, %v3589_v48  ;;  %v3583_v25 = vadd.f32 %v3582_v19, %v3406_v20  ;;  %v9699_v32 = vpop.f32.mrf.mxu0  ;;  %v3430_v49 = vadd.f32 %v3429_v24, %v3199_v21  ;;  %v3029_v29 = vadd.f32 %v14225_v22, %v2827_v45 }
 0x3b9   : > { %v9749_v44 = vpop.f32.mrf.mxu1  ;;  %v3448_v63 = vadd.f32 %v9699_v32, %v3223_v27 }
 0x3ba   : > { %v14301_v36 = vsub.f32 %v3589_v48, %v14293_v47  ;;  %v14303_v1 = vand.u32 4294901760, %v3583_v25  ;;  %v3601_v11 = vadd.f32 %v9749_v44, %v3424_v14  ;;  %v3441_v28 = vpop.f32.mrf.mxu0  ;;  %v3231_v59 = vadd.f32 %v14243_v46, %v3029_v29  ;;  %v17564_v46 = vld [vmem:[#allocation140_spill] sm:$0xff]  ;;  %v17573_v29 = vld [vmem:[#allocation102_spill] sm:$0xff] }
 0x3bb   : > { %v3594_v16 = vpop.f32.mrf.mxu1  ;;  %v3442_v20 = vadd.f32 %v3441_v28, %v3215_v3  ;;  %v3050_v7 = vadd.f32 %v17565_v23, %v17564_v46 }
 0x3bc   : > { %v3792_v40 = vand.u32 4294901760, %v14301_v36  ;;  %v14311_v6 = vsub.f32 %v3583_v25, %v14303_v1  ;;  %v14313_v4 = vand.u32 4294901760, %v3601_v11  ;;  %v3595_v53 = vadd.f32 %v3594_v16, %v3418_v35  ;;  %9856 = vmatprep.mubr.f32.mxu1 %v14303_v1  ;;  %v9702_v52 = vpop.f32.mrf.mxu0  ;;  %v17567_v16 = vld [vmem:[#allocation100_spill] sm:$0xff] }
 0x3bd   : > { %v9752_v33 = vpop.f32.mrf.mxu1  ;;  %9857 = vmatmul.mubr.f32.vlgmr.msra.gmra.mxu1 %v14293_v47  ;;  %v3460_v44 = vadd.f32 %v9702_v52, %v3239_v2  ;;  %v17568_v52 = vld [vmem:[#allocation141_spill] sm:$0xff] }
 0x3be   : > { %v14324_v48 = vsub.f32 %v3601_v11, %v14313_v4  ;;  %v14326_v55 = vand.u32 4294901760, %v3595_v53  ;;  %v3613_v56 = vadd.f32 %v9752_v33, %v3436_v57  ;;  %9937 = vmatpush3.msra.mxu1 %v13953_v34  ;;  %v3453_v17 = vpop.f32.mrf.mxu0  ;;  %v3782_v24 = vand.u32 4294901760, %v14311_v6 }
 0x3bf   : > { %v3606_v42 = vpop.f32.mrf.mxu1  ;;  %9938 = vmatprep.subr.mxu1 %v13958_v58  ;;  %v3793_v18 = vsub.f32 %v14301_v36, %v3792_v40  ;;  %v3454_v21 = vadd.f32 %v3453_v17, %v3231_v59  ;;  %v3064_v27 = vadd.f32 %v17569_v43, %v17568_v52  ;;  %v17571_v17 = vld [vmem:[#allocation150_spill] sm:$0xff] }
 0x3c0   : > { %v14339_v0 = vsub.f32 %v3595_v53, %v14326_v55  ;;  %v14341_v26 = vand.u32 4294901760, %v3613_v56  ;;  %v3607_v15 = vadd.f32 %v3606_v42, %v3430_v49  ;;  %9859 = vmatprep.mubr.f32.mxu1 %v14326_v55  ;;  %9939 = vmatpush3.msra.mxu1 %v13958_v58  ;;  %v14345_v41 = vpop.f32.mrf.mxu0  ;;  %v3783_v12 = vsub.f32 %v14311_v6, %v3782_v24  ;;  %v17570_v49 = vld [vmem:[#allocation96_spill] sm:$0xff] }
 0x3c1   : > { %v9755_v50 = vpop.f32.mrf.mxu1  ;;  %9860 = vmatmul.mubr.f32.gmra.mxu1 %v14313_v4  ;;  %9940 = vmatprep.subr.mxu1 %v13968_v62  ;;  %v3812_v39 = vand.u32 4294901760, %v14324_v48  ;;  %v3794_v25 = vand.u32 4294901760, %v3793_v18  ;;  %v3247_v42 = vadd.f32 %v17571_v17, %v3043_v8  ;;  %v17577_v8 = vld [vmem:[#allocation108_spill] sm:$0xff] }
 0x3c2   : > { %v14355_v30 = vand.u32 4294901760, %v3607_v15  ;;  %v3625_v61 = vadd.f32 %v9755_v50, %v3448_v63  ;;  %9941 = vmatpush3.msra.mxu1 %v13968_v62  ;;  %v3465_v31 = vpop.f32.mrf.mxu0  ;;  %v3802_v22 = vand.u32 4294901760, %v14339_v0  ;;  %v14362_v19 = vsub.f32 %v3613_v56, %v14341_v26  ;;  %v17574_v50 = vld [vmem:[#allocation148_spill] sm:$0xff] }
 0x3c3   : > { %v3618_v10 = vpop.f32.mrf.mxu1  ;;  %9942 = vmatprep.subr.mxu1 %v13980_v9  ;;  %v3784_v14 = vand.u32 4294901760, %v3783_v12  ;;  %v3813_v28 = vsub.f32 %v14324_v48, %v3812_v39  ;;  %v3255_v12 = vadd.f32 %v17574_v50, %v3050_v7 }
 0x3c4   : > { %v14366_v32 = vsub.f32 %v3607_v15, %v14355_v30  ;;  %v3619_v54 = vadd.f32 %v3618_v10, %v3442_v20  ;;  %9862 = vmatprep.mubr.f32.mxu1 %v14355_v30  ;;  %9943 = vmatpush3.msra.mxu1 %v13980_v9  ;;  %v14370_v45 = vpop.f32.mrf.mxu0  ;;  %v3803_v38 = vsub.f32 %v14339_v0, %v3802_v22  ;;  %v14377_v35 = vand.u32 4294901760, %v3625_v61 }
 0x3c5   : > { %9800 = vmatprep.mubr.f32.mxu0 %v3784_v14  ;;  %v9758_v11 = vpop.f32.mrf.mxu1  ;;  %9863 = vmatmul.mubr.f32.gmra.mxu1 %v14341_v26  ;;  %v3832_v37 = vand.u32 4294901760, %v14362_v19  ;;  %v3814_v59 = vand.u32 4294901760, %v3813_v28  ;;  %v17575_v14 = vld [vmem:[#allocation146_spill] sm:$0xff]  ;;  %v3472_v46 = vadd.f32 %v14345_v41, %v3255_v12  ;;  %v17578_v41 = vld [vmem:[#allocation105_spill] sm:$0xff]  ;;  %v17581_v12 = vld [vmem:[#allocation99_spill] sm:$0xff] }
 0x3c6   : > { %v14384_v57 = vand.u32 4294901760, %v3619_v54  ;;  %9801 = vmatmul.mubr.f32.vlgmr.msra.gmra.mxu0 %v3794_v25  ;;  %9944 = vmatprep.subr.mxu1 %v17567_v16  ;;  %v3804_v53 = vand.u32 4294901760, %v3803_v38  ;;  %v3637_v33 = vadd.f32 %v9758_v11, %v3460_v44  ;;  %v3477_v56 = vpop.f32.mrf.mxu0  ;;  %v3822_v63 = vand.u32 4294901760, %v14366_v32 }
 0x3c7   : > { %9881 = vmatpush3.msra.mxu0 %v17570_v49  ;;  %9945 = vmatpush3.msra.mxu1 %v17567_v16  ;;  %v3630_v3 = vpop.f32.mrf.mxu1  ;;  %v14401_v20 = vsub.f32 %v3625_v61, %v14377_v35  ;;  %v3057_v25 = vadd.f32 %v17575_v14, %v14318_v5  ;;  %v3833_v5 = vsub.f32 %v14362_v19, %v3832_v37 }
 0x3c8   : > { %v14395_v18 = vsub.f32 %v3619_v54, %v14384_v57  ;;  %v3631_v15 = vadd.f32 %v3630_v3, %v3454_v21  ;;  %9882 = vmatprep.subr.mxu0 %v17572_v51  ;;  %9946 = vmatprep.subr.mxu1 %v17573_v29  ;;  %v3823_v10 = vsub.f32 %v14366_v32, %v3822_v63  ;;  %v14415_v23 = vand.u32 4294901760, %v3637_v33  ;;  %v9711_v7 = vpop.f32.mrf.mxu0  ;;  %v17579_v3 = vld [vmem:[#allocation149_spill] sm:$0xff] }
 0x3c9   : > { %9803 = vmatprep.mubr.f32.mxu0 %v3804_v53  ;;  %9865 = vmatprep.mubr.f32.mxu1 %v14384_v57  ;;  %v9761_v2 = vpop.f32.mrf.mxu1  ;;  %v3466_v54 = vadd.f32 %v3465_v31, %v3247_v42  ;;  %v17576_v31 = vld [vmem:[#allocation152_spill] sm:$0xff]  ;;  %v16884_v49 = vand.u32 4294901760, %v14401_v20  ;;  %v3071_v17 = vadd.f32 %v17579_v3, %v14330_v13  ;;  %v17580_v42 = vld [vmem:[#allocation151_spill] sm:$0xff]  ;;  %v3834_v14 = vand.u32 4294901760, %v3833_v5 }
 0x3ca   : > { %v14409_v38 = vand.u32 4294901760, %v3631_v15  ;;  %9883 = vmatpush3.msra.mxu0 %v17572_v51  ;;  %9947 = vmatpush3.msra.mxu1 %v17573_v29  ;;  %v3842_v61 = vand.u32 4294901760, %v14395_v18  ;;  %v3824_v11 = vand.u32 4294901760, %v3823_v10  ;;  %v3263_v28 = vadd.f32 %v17576_v31, %v3057_v25  ;;  %v3489_v10 = vpop.f32.mrf.mxu0 }
 0x3cb   : > { %9804 = vmatmul.mubr.f32.gmra.mxu0 %v3814_v59  ;;  %9866 = vmatmul.mubr.f32.gmra.mxu1 %v14377_v35  ;;  %v3642_v44 = vpop.f32.mrf.mxu1  ;;  %v3649_v53 = vadd.f32 %v9761_v2, %v3472_v46  ;;  %v17582_v2 = vld [vmem:[#allocation112_spill] sm:$0xff]  ;;  %v14441_v59 = vsub.f32 %v3637_v33, %v14415_v23  ;;  %v3853_v31 = vsub.f32 %v14401_v20, %v16884_v49 }
 0x3cc   : > { %v14423_v60 = vsub.f32 %v3631_v15, %v14409_v38  ;;  %9884 = vmatprep.subr.mxu0 %v17577_v8  ;;  %9948 = vmatprep.subr.mxu1 %v17578_v41  ;;  %v3643_v21 = vadd.f32 %v3642_v44, %v3466_v54  ;;  %v3843_v43 = vsub.f32 %v14395_v18, %v3842_v61  ;;  %v17583_v54 = vld [vmem:[#allocation154_spill] sm:$0xff] }
 0x3cd   : > { %9885 = vmatpush3.msra.mxu0 %v17577_v8  ;;  %9949 = vmatpush3.msra.mxu1 %v17578_v41  ;;  %v9764_v52 = vpop.f32.mrf.mxu1  ;;  %v3271_v15 = vadd.f32 %v17580_v42, %v3064_v27  ;;  %v3478_v51 = vadd.f32 %v3477_v56, %v3263_v28  ;;  %v3279_v27 = vadd.f32 %v17583_v54, %v3071_v17  ;;  %v14449_v44 = vand.u32 4294901760, %v3649_v53  ;;  %v17585_v28 = vld [vmem:[#allocation147_spill] sm:$0xff]  ;;  %v17590_v54 = vld [vmem:[#allocation118_spill] sm:$0xff] }
 0x3ce   : > { %v14436_v50 = vand.u32 4294901760, %v3643_v21  ;;  %9886 = vmatprep.subr.mxu0 %v17581_v12  ;;  %9950 = vmatprep.subr.mxu1 %v17582_v2  ;;  %v16882_v13 = vand.u32 4294901760, %v14423_v60  ;;  %v17586_v17 = vld [vmem:[#allocation103_spill] sm:$0xff] }
 0x3cf   : > { %9806 = vmatprep.mubr.f32.mxu0 %v3824_v11  ;;  %9868 = vmatprep.mubr.f32.mxu1 %v14409_v38  ;;  %v3654_v25 = vpop.f32.mrf.mxu1  ;;  %v3484_v56 = vadd.f32 %v14370_v45, %v3271_v15  ;;  %v3844_v11 = vand.u32 4294901760, %v3843_v43  ;;  %v17584_v45 = vld [vmem:[#allocation142_spill] sm:$0xff]  ;;  %v3490_v3 = vadd.f32 %v3489_v10, %v3279_v27  ;;  %v17587_v42 = vld [vmem:[#allocation115_spill] sm:$0xff]  ;;  %v3854_v27 = vand.u32 4294901760, %v3853_v31 }
 0x3d0   : > { %9887 = vmatpush3.msra.mxu0 %v17581_v12  ;;  %9951 = vmatpush3.msra.mxu1 %v17582_v2  ;;  %v3655_v46 = vadd.f32 %v3654_v25, %v3478_v51  ;;  %v14452_v33 = vsub.f32 %v3643_v21, %v14436_v50  ;;  %v3078_v8 = vadd.f32 %v17585_v28, %v17584_v45  ;;  %v16880_v12 = vand.u32 4294901760, %v14441_v59  ;;  %v17589_v25 = vld [vmem:[#allocation104_spill] sm:$0xff]  ;;  %v17591_v31 = vld [vmem:[#allocation111_spill] sm:$0xff] }
 0x3d1   : > { %9807 = vmatmul.mubr.f32.gmra.mxu0 %v3834_v14  ;;  %9869 = vmatmul.mubr.f32.gmra.mxu1 %v14415_v23  ;;  %v9767_v5 = vpop.f32.mrf.mxu1  ;;  %v3661_v15 = vadd.f32 %v9764_v52, %v3484_v56  ;;  %v3863_v51 = vsub.f32 %v14423_v60, %v16882_v13  ;;  %v17588_v14 = vld [vmem:[#allocation153_spill] sm:$0xff]  ;;  %v14474_v52 = vsub.f32 %v3649_v53, %v14449_v44 }
 0x3d2   : > { %9888 = vmatprep.subr.mxu0 %v17586_v17  ;;  %9952 = vmatprep.subr.mxu1 %v17587_v42  ;;  %v14464_v21 = vand.u32 4294901760, %v3655_v46  ;;  %v3287_v10 = vadd.f32 %v17588_v14, %v3078_v8  ;;  %v16878_v45 = vand.u32 4294901760, %v14452_v33  ;;  %v17593_v14 = vld [vmem:[#allocation114_spill] sm:$0xff] }
 0x3d3   : > { %9889 = vmatpush3.msra.mxu0 %v17586_v17  ;;  %9953 = vmatpush3.msra.mxu1 %v17587_v42  ;;  %v3666_v43 = vpop.f32.mrf.mxu1  ;;  %v14480_v8 = vand.u32 4294901760, %v3661_v15  ;;  %v3864_v53 = vand.u32 4294901760, %v3863_v51  ;;  %v16879_v51 = vand.u32 4294901760, %v14474_v52 }
 0x3d4   : > { %9890 = vmatprep.subr.mxu0 %v17589_v25  ;;  %9954 = vmatprep.subr.mxu1 %v17590_v54  ;;  %v3667_v56 = vadd.f32 %v3666_v43, %v3490_v3  ;;  %v3496_v28 = vadd.f32 %v9711_v7, %v3287_v10  ;;  %v14483_v17 = vsub.f32 %v3655_v46, %v14464_v21  ;;  %v17592_v7 = vld [vmem:[#allocation120_spill] sm:$0xff]  ;;  %v17594_v10 = vld [vmem:[#allocation123_spill] sm:$0xff] }
 0x3d5   : > { %9809 = vmatprep.mubr.f32.mxu0 %v3844_v11  ;;  %9871 = vmatprep.mubr.f32.mxu1 %v14436_v50  ;;  %v3873_v11 = vsub.f32 %v14441_v59, %v16880_v12  ;;  %v3883_v46 = vsub.f32 %v14452_v33, %v16878_v45  ;;  %v17596_v45 = vld [vmem:[#allocation127_spill] sm:$0xff] }
 0x3d6   : > { %9891 = vmatpush3.msra.mxu0 %v17589_v25  ;;  %9955 = vmatpush3.msra.mxu1 %v17590_v54  ;;  %v3673_v3 = vadd.f32 %v9767_v5, %v3496_v28  ;;  %v14493_v43 = vand.u32 4294901760, %v3667_v56  ;;  %v14502_v25 = vsub.f32 %v3661_v15, %v14480_v8 }
 0x3d7   : > { %9810 = vmatmul.mubr.f32.gmra.mxu0 %v3854_v27  ;;  %9872 = vmatmul.mubr.f32.gmra.mxu1 %v14449_v44  ;;  %v3874_v5 = vand.u32 4294901760, %v3873_v11  ;;  %v16881_v27 = vand.u32 4294901760, %v14483_v17  ;;  %v3884_v15 = vand.u32 4294901760, %v3883_v46  ;;  %v17595_v11 = vld [vmem:[#allocation117_spill] sm:$0xff]  ;;  %v17598_v46 = vld [vmem:[#allocation130_spill] sm:$0xff] }
 0x3d8   : > { %9892 = vmatprep.subr.mxu0 %v17591_v31  ;;  %9956 = vmatprep.subr.mxu1 %v17592_v7  ;;  %v14508_v28 = vand.u32 4294901760, %v3673_v3 }
 0x3d9   : > { %9893 = vmatpush3.msra.mxu0 %v17591_v31  ;;  %9957 = vmatpush3.msra.mxu1 %v17592_v7  ;;  %v14511_v31 = vsub.f32 %v3667_v56, %v14493_v43  ;;  %v3903_v56 = vsub.f32 %v14483_v17, %v16881_v27 }
 0x3da   : > { %9894 = vmatprep.subr.mxu0 %v17593_v14  ;;  %9958 = vmatprep.subr.mxu1 %v17594_v10 }
 0x3db   : > { %9812 = vmatprep.mubr.f32.mxu0 %v3864_v53  ;;  %9874 = vmatprep.mubr.f32.mxu1 %v14464_v21  ;;  %v3893_v53 = vsub.f32 %v14474_v52, %v16879_v51  ;;  %v14528_v51 = vsub.f32 %v3673_v3, %v14508_v28  ;;  %v3904_v27 = vand.u32 4294901760, %v3903_v56  ;;  %v17599_v3 = vld [vmem:[#allocation122_spill] sm:$0xff] }
 0x3dc   : > { %9895 = vmatpush3.msra.mxu0 %v17593_v14  ;;  %9959 = vmatpush3.msra.mxu1 %v17594_v10  ;;  %v16883_v14 = vand.u32 4294901760, %v14502_v25  ;;  %v17601_v56 = vld [vmem:[#allocation126_spill] sm:$0xff] }
 0x3dd   : > { %9813 = vmatmul.mubr.f32.gmra.mxu0 %v3874_v5  ;;  %9875 = vmatmul.mubr.f32.gmra.mxu1 %v14480_v8  ;;  %v17597_v5 = vld [vmem:[#allocation121_spill] sm:$0xff]  ;;  %v3894_v12 = vand.u32 4294901760, %v3893_v53 }
 0x3de   : > { %9896 = vmatprep.subr.mxu0 %v17595_v11  ;;  %9960 = vmatprep.subr.mxu1 %v17596_v45  ;;  %v3913_v13 = vsub.f32 %v14502_v25, %v16883_v14 }
 0x3df   : > { %9897 = vmatpush3.msra.mxu0 %v17595_v11  ;;  %9961 = vmatpush3.msra.mxu1 %v17596_v45  ;;  %v16885_v11 = vand.u32 4294901760, %v14511_v31 }
 0x3e0   : > { %9898 = vmatprep.subr.mxu0 %v17597_v5  ;;  %9962 = vmatprep.subr.mxu1 %v17598_v46  ;;  %v3914_v14 = vand.u32 4294901760, %v3913_v13 }
 0x3e1   : > { %9815 = vmatprep.mubr.f32.mxu0 %v3884_v15  ;;  %9877 = vmatprep.mubr.f32.mxu1 %v14493_v43  ;;  %v17600_v15 = vld [vmem:[#allocation133_spill] sm:$0xff]  ;;  %v3923_v53 = vsub.f32 %v14511_v31, %v16885_v11 }
 0x3e2   : > { %9899 = vmatpush3.msra.mxu0 %v17597_v5  ;;  %9963 = vmatpush3.msra.mxu1 %v17598_v46  ;;  %v17602_v5 = vld [vmem:[#allocation135_spill] sm:$0xff] }
 0x3e3   : > { %9816 = vmatmul.mubr.f32.gmra.mxu0 %v3894_v12  ;;  %9878 = vmatmul.mubr.f32.gmra.mxu1 %v14508_v28  ;;  %v3932_v12 = vand.u32 4294901760, %v14528_v51  ;;  %v3924_v49 = vand.u32 4294901760, %v3923_v53 }
 0x3e4   : > { %9900 = vmatprep.subr.mxu0 %v17599_v3  ;;  %9964 = vmatprep.subr.mxu1 %v17600_v15 }
 0x3e5   : > { %9901 = vmatpush3.msra.mxu0 %v17599_v3  ;;  %9965 = vmatpush3.msra.mxu1 %v17600_v15  ;;  %v17603_v3 = vld [vmem:[#allocation129_spill] sm:$0xff]  ;;  %v3933_v11 = vsub.f32 %v14528_v51, %v3932_v12 }
 0x3e6   : > { %9968 = vmatprep.mubr.f32.mxu1 %v3782_v24  ;;  %9902 = vmatprep.subr.mxu0 %v17601_v56  ;;  %v17604_v24 = vld [vmem:[#allocation132_spill] sm:$0xff] }
 0x3e7   : > { %9966 = vmatprep.subr.mxu1 %v17602_v5  ;;  %9818 = vmatprep.mubr.f32.mxu0 %v3904_v27  ;;  %v3934_v13 = vand.u32 4294901760, %v3933_v11 }
 0x3e8   : > { %9903 = vmatpush3.msra.mxu0 %v17601_v56  ;;  %9967 = vmatpush3.msra.mxu1 %v17602_v5 }
 0x3e9   : > { %9819 = vmatmul.mubr.f32.gmra.mxu0 %v3914_v14  ;;  %9904 = vmatprep.subr.mxu0 %v17603_v3 }
 0x3ea   : > { %9969 = vmatmul.mubr.f32.vlgmr.msra.gmra.mxu1 %v3792_v40  ;;  %10048 = vmatprep.subr.mxu1 %v13953_v34  ;;  %v17605_v40 = vld [vmem:[#allocation136_spill] sm:$0xff] }
 0x3eb   : > { %9905 = vmatpush3.msra.mxu0 %v17603_v3  ;;  %9971 = vmatprep.mubr.f32.mxu1 %v3802_v22  ;;  %v17615_v22 = vand.u32 4294901760, %v14452_v33 }
 0x3ec   : > { %10049 = vmatpush3.msra.mxu1 %v13953_v34  ;;  %9906 = vmatprep.subr.mxu0 %v17604_v24  ;;  %v17606_v34 = vld [vmem:[#allocation137_spill] sm:$0xff] }
 0x3ed   : > { %10050 = vmatprep.subr.mxu1 %v13958_v58  ;;  %9821 = vmatprep.mubr.f32.mxu0 %v3924_v49  ;;  %v17627_v49 = vld [vmem:[#allocation131_spill] sm:$0xff] }
 0x3ee   : > { %9907 = vmatpush3.msra.mxu0 %v17604_v24  ;;  %10051 = vmatpush3.msra.mxu1 %v13958_v58  ;;  %v17607_v58 = vld [vmem:[#allocation109_spill] sm:$0xff] }
 0x3ef   : > { %9822 = vmatmul.mubr.f32.gmra.mxu0 %v3934_v13  ;;  %9908 = vmatprep.subr.mxu0 %v17605_v40 }
 0x3f0   : > { %9972 = vmatmul.mubr.f32.gmra.mxu1 %v3812_v39  ;;  %10052 = vmatprep.subr.mxu1 %v13968_v62  ;;  %v17614_v39 = vld [vmem:[#allocation107_spill] sm:$0xff] }
 0x3f1   : > { %9909 = vmatpush3.msra.mxu0 %v17605_v40  ;;  %9912 = vmatprep.mubr.f32.mxu0 %v14311_v6  ;;  %v17611_v6 = vand.u32 4294901760, %v14423_v60  ;;  %v5105_v40 = vld [vmem:[#allocation11 + $0xb8] sm:$0xff] }
 0x3f2   : > { %9974 = vmatprep.mubr.f32.mxu1 %v3822_v63  ;;  %10053 = vmatpush3.msra.mxu1 %v13968_v62  ;;  %v17608_v62 = vld [vmem:[#allocation97_spill] sm:$0xff]  ;;  %v17619_v63 = vand.u32 4294901760, %v14483_v17 }
 0x3f3   : > { %9910 = vmatprep.subr.mxu0 %v17606_v34  ;;  %10054 = vmatprep.subr.mxu1 %v13980_v9 }
 0x3f4   : > { %9911 = vmatpush3.msra.mxu0 %v17606_v34  ;;  %10055 = vmatpush3.msra.mxu1 %v13980_v9  ;;  %v17609_v9 = vand.u32 4294901760, %v14401_v20 }
 0x3f5   : > { %9913 = vmatmul.mubr.f32.vlgmr.msra.gmra.mxu0 %v14301_v36  ;;  %9975 = vmatmul.mubr.f32.gmra.mxu1 %v3832_v37  ;;  %v17610_v36 = vld [vmem:[#allocation98_spill] sm:$0xff]  ;;  %v17620_v37 = vld [vmem:[#allocation116_spill] sm:$0xff] }
 0x3f6   : > { %9992 = vmatprep.subr.mxu0 %v17607_v58  ;;  %10056 = vmatprep.subr.mxu1 %v17567_v16 }
 0x3f7   : > { %9915 = vmatprep.mubr.f32.mxu0 %v14339_v0  ;;  %9977 = vmatprep.mubr.f32.mxu1 %v3842_v61  ;;  %v17612_v0 = vld [vmem:[#allocation101_spill] sm:$0xff]  ;;  %v17624_v61 = vld [vmem:[#allocation124_spill] sm:$0xff] }
 0x3f8   : > { %9993 = vmatpush3.msra.mxu0 %v17607_v58  ;;  %10057 = vmatpush3.msra.mxu1 %v17567_v16  ;;  %v17618_v16 = vld [vmem:[#allocation113_spill] sm:$0xff] }
 0x3f9   : > { %9994 = vmatprep.subr.mxu0 %v17608_v62  ;;  %10058 = vmatprep.subr.mxu1 %v17573_v29 }
 0x3fa   : > { %9995 = vmatpush3.msra.mxu0 %v17608_v62  ;;  %10059 = vmatpush3.msra.mxu1 %v17573_v29  ;;  %v17622_v29 = vld [vmem:[#allocation119_spill] sm:$0xff] }
 0x3fb   : > { %9916 = vmatmul.mubr.f32.gmra.mxu0 %v14324_v48  ;;  %9978 = vmatmul.mubr.f32.gmra.mxu1 %v17609_v9  ;;  %v17613_v48 = vand.u32 4294901760, %v14441_v59  ;;  %v14788_v9 = vand.u32 4294901760, %v5105_v40 }
 0x3fc   : > { %9996 = vmatprep.subr.mxu0 %v17610_v36  ;;  %10060 = vmatprep.subr.mxu1 %v17578_v41 }
 0x3fd   : > { %9918 = vmatprep.mubr.f32.mxu0 %v14366_v32  ;;  %9980 = vmatprep.mubr.f32.mxu1 %v17611_v6  ;;  %v17616_v32 = vld [vmem:[#allocation110_spill] sm:$0xff]  ;;  %17653 = vst [vmem:[#allocation103_spill] sm:$0xff] %v14788_v9 }
 0x3fe   : > { %9997 = vmatpush3.msra.mxu0 %v17610_v36  ;;  %10061 = vmatpush3.msra.mxu1 %v17578_v41  ;;  %v17626_v41 = vld [vmem:[#allocation128_spill] sm:$0xff]  ;;  %v5104_v6 = vld [vmem:[#allocation11 + $0xb0] sm:$0xff] }
 0x3ff   : > { %9998 = vmatprep.subr.mxu0 %v17612_v0  ;;  %10062 = vmatprep.subr.mxu1 %v17582_v2 }
 0x400   : > { %9999 = vmatpush3.msra.mxu0 %v17612_v0  ;;  %10063 = vmatpush3.msra.mxu1 %v17582_v2  ;;  %v17628_v2 = vld [vmem:[#allocation134_spill] sm:$0xff] }
 0x401   : > { %9919 = vmatmul.mubr.f32.gmra.mxu0 %v14362_v19  ;;  %9981 = vmatmul.mubr.f32.gmra.mxu1 %v17613_v48  ;;  %v17617_v19 = vand.u32 4294901760, %v14474_v52 }
 0x402   : > { %10000 = vmatprep.subr.mxu0 %v17614_v39  ;;  %10064 = vmatprep.subr.mxu1 %v17587_v42 }
 0x403   : > { %9921 = vmatprep.mubr.f32.mxu0 %v14395_v18  ;;  %9983 = vmatprep.mubr.f32.mxu1 %v17615_v22  ;;  %v17621_v18 = vand.u32 4294901760, %v14502_v25  ;;  %v14801_v22 = vand.u32 4294901760, %v5104_v6 }
 0x404   : > { %10001 = vmatpush3.msra.mxu0 %v17614_v39  ;;  %10065 = vmatpush3.msra.mxu1 %v17587_v42  ;;  %v14799_v39 = vsub.f32 %v5105_v40, %v14788_v9 }
 0x405   : > { %10002 = vmatprep.subr.mxu0 %v17616_v32  ;;  %10066 = vmatprep.subr.mxu1 %v17590_v54  ;;  %17657 = vst [vmem:[#allocation118_spill] sm:$0xff] %v14801_v22 }
 0x406   : > { %10003 = vmatpush3.msra.mxu0 %v17616_v32  ;;  %10067 = vmatpush3.msra.mxu1 %v17590_v54  ;;  %17656 = vst [vmem:[#allocation104_spill] sm:$0xff] %v14799_v39 }
 0x407   : > { %9922 = vmatmul.mubr.f32.gmra.mxu0 %v14401_v20  ;;  %9984 = vmatmul.mubr.f32.gmra.mxu1 %v17617_v19  ;;  %v17623_v20 = vand.u32 4294901760, %v14511_v31  ;;  %v5103_v19 = vld [vmem:[#allocation11 + $0xa8] sm:$0xff] }
 0x408   : > { %10004 = vmatprep.subr.mxu0 %v17618_v16  ;;  %10068 = vmatprep.subr.mxu1 %v17592_v7 }
 0x409   : > { %9924 = vmatprep.mubr.f32.mxu0 %v14423_v60  ;;  %9986 = vmatprep.mubr.f32.mxu1 %v17619_v63  ;;  %v17625_v60 = vld [vmem:[#allocation125_spill] sm:$0xff]  ;;  %v14810_v63 = vand.u32 4294901760, %v14799_v39 }
 0x40a   : > { %10005 = vmatpush3.msra.mxu0 %v17618_v16  ;;  %10069 = vmatpush3.msra.mxu1 %v17592_v7 }
 0x40b   : > { %10006 = vmatprep.subr.mxu0 %v17620_v37  ;;  %10070 = vmatprep.subr.mxu1 %v17594_v10  ;;  %17658 = vst [vmem:[#allocation111_spill] sm:$0xff] %v14810_v63 }
 0x40c   : > { %10007 = vmatpush3.msra.mxu0 %v17620_v37  ;;  %10071 = vmatpush3.msra.mxu1 %v17594_v10  ;;  %v14813_v37 = vsub.f32 %v5104_v6, %v14801_v22  ;;  %v5098_v6 = vld [vmem:[#allocation11 + $0x80] sm:$0xff] }
 0x40d   : > { %9925 = vmatmul.mubr.f32.gmra.mxu0 %v14441_v59  ;;  %9987 = vmatmul.mubr.f32.gmra.mxu1 %v17621_v18  ;;  %v17629_v59 = vld [vmem:[#allocation138_spill] sm:$0xff]  ;;  %v14815_v18 = vand.u32 4294901760, %v5103_v19 }
 0x40e   : > { %10008 = vmatprep.subr.mxu0 %v17622_v29  ;;  %10072 = vmatprep.subr.mxu1 %v17596_v45  ;;  %17659 = vst [vmem:[#allocation120_spill] sm:$0xff] %v14813_v37 }
 0x40f   : > { %9927 = vmatprep.mubr.f32.mxu0 %v14452_v33  ;;  %9989 = vmatprep.mubr.f32.mxu1 %v17623_v20  ;;  %v17630_v33 = vld [vmem:[#allocation139_spill] sm:$0xff]  ;;  %17660 = vst [vmem:[#allocation114_spill] sm:$0xff] %v14815_v18  ;;  %v5102_v20 = vld [vmem:[#allocation11 + $0xa0] sm:$0xff] }
 0x410   : > { %10009 = vmatpush3.msra.mxu0 %v17622_v29  ;;  %10073 = vmatpush3.msra.mxu1 %v17596_v45  ;;  %v5109_v45 = vld [vmem:[#allocation11 + $0xd8] sm:$0xff] }
 0x411   : > { %10010 = vmatprep.subr.mxu0 %v17624_v61  ;;  %10074 = vmatprep.subr.mxu1 %v17598_v46  ;;  %v14744_v7 = vand.u32 4294901760, %v5109_v45 }
 0x412   : > { %10011 = vmatpush3.msra.mxu0 %v17624_v61  ;;  %10075 = vmatpush3.msra.mxu1 %v17598_v46 }
 0x413   : > { %9928 = vmatmul.mubr.f32.gmra.mxu0 %v14474_v52  ;;  %9990 = vmatmul.mubr.f32.gmra.mxu1 %v3932_v12  ;;  %17642 = vst [vmem:[#allocation146_spill] sm:$0xff] %v14744_v7  ;;  %v14754_v27 = vsub.f32 %v5109_v45, %v14744_v7  ;;  %v5106_v12 = vld [vmem:[#allocation11 + $0xc0] sm:$0xff] }
 0x414   : > { %10012 = vmatprep.subr.mxu0 %v17625_v60  ;;  %10076 = vmatprep.subr.mxu1 %v17600_v15  ;;  %v14777_v24 = vand.u32 4294901760, %v5106_v12 }
 0x415   : > { %9930 = vmatprep.mubr.f32.mxu0 %v14483_v17  ;;  %10013 = vmatpush3.msra.mxu0 %v17625_v60  ;;  %17644 = vst [vmem:[#allocation108_spill] sm:$0xff] %v14754_v27  ;;  %v14763_v11 = vand.u32 4294901760, %v14754_v27  ;;  %v5423_v60 = vsub.f32 %v14799_v39, %v14810_v63 }
 0x416   : > { %10077 = vmatpush3.msra.mxu1 %v17600_v15  ;;  %10080 = vmatprep.mubr.f32.mxu1 %v14303_v1  ;;  %17650 = vst [vmem:[#allocation154_spill] sm:$0xff] %v14777_v24  ;;  %v14786_v62 = vsub.f32 %v5106_v12, %v14777_v24 }
 0x417   : > { %10014 = vmatprep.subr.mxu0 %v17626_v41  ;;  %10078 = vmatprep.subr.mxu1 %v17602_v5  ;;  %17646 = vst [vmem:[#allocation149_spill] sm:$0xff] %v14763_v11 }
 0x418   : > { %10015 = vmatpush3.msra.mxu0 %v17626_v41  ;;  %10079 = vmatpush3.msra.mxu1 %v17602_v5  ;;  %v5395_v5 = vsub.f32 %v14754_v27, %v14763_v11  ;;  %17652 = vst [vmem:[#allocation147_spill] sm:$0xff] %v14786_v62  ;;  %v14796_v48 = vand.u32 4294901760, %v14786_v62  ;;  %v14822_v41 = vand.u32 4294901760, %v14813_v37 }
 0x419   : > { %9931 = vmatmul.mubr.f32.gmra.mxu0 %v14502_v25  ;;  %10016 = vmatprep.subr.mxu0 %v17627_v49 }
 0x41a   : > { %10081 = vmatmul.mubr.f32.vlgmr.msra.gmra.mxu1 %v14293_v47  ;;  %9933 = vmatprep.mubr.f32.mxu0 %v14511_v31  ;;  %v5107_v31 = vld [vmem:[#allocation11 + $0xc8] sm:$0xff]  ;;  %v5396_v34 = vand.u32 4294901760, %v5395_v5  ;;  %17655 = vst [vmem:[#allocation153_spill] sm:$0xff] %v14796_v48  ;;  %v5416_v16 = vsub.f32 %v14786_v62, %v14796_v48  ;;  %17661 = vst [vmem:[#allocation123_spill] sm:$0xff] %v14822_v41  ;;  %v14946_v48 = vld [vmem:[%s17679_s22] ss:$0 sm:$0xff] }
 0x41b   : > { %10017 = vmatpush3.msra.mxu0 %v17627_v49  ;;  %10083 = vmatprep.mubr.f32.mxu1 %v14326_v55  ;;  %v14769_v53 = vand.u32 4294901760, %v5107_v31  ;;  %v14825_v49 = vsub.f32 %v5103_v19, %v14815_v18 }
 0x41c   : > { %10018 = vmatprep.subr.mxu0 %v17628_v2  ;;  %v5417_v61 = vand.u32 4294901760, %v5416_v16  ;;  %v14883_v16 = vand.u32 4294901760, %v5098_v6 }
 0x41d   : > { %10019 = vmatpush3.msra.mxu0 %v17628_v2  ;;  %17648 = vst [vmem:[#allocation99_spill] sm:$0xff] %v14769_v53  ;;  %v14780_v13 = vsub.f32 %v5107_v31, %v14769_v53  ;;  %17662 = vst [vmem:[#allocation117_spill] sm:$0xff] %v14825_v49 }
 0x41e   : > { %9934 = vmatmul.mubr.f32.gmra.mxu0 %v14528_v51  ;;  %10020 = vmatprep.subr.mxu0 %v17629_v59  ;;  %v5108_v51 = vld [vmem:[#allocation11 + $0xd0] sm:$0xff]  ;;  %17675 = vst [vmem:[#allocation97_spill] sm:$0xff] %v14883_v16 }
 0x41f   : > { %10084 = vmatmul.mubr.f32.gmra.mxu1 %v14313_v4  ;;  %10021 = vmatpush3.msra.mxu0 %v17629_v59  ;;  %17651 = vst [vmem:[#allocation142_spill] sm:$0xff] %v14780_v13  ;;  %v14792_v36 = vand.u32 4294901760, %v14780_v13  ;;  %v14830_v59 = vand.u32 4294901760, %v5102_v20 }
 0x420   : > { %10024 = vmatprep.mubr.f32.mxu0 %v14303_v1  ;;  %10086 = vmatprep.mubr.f32.mxu1 %v14355_v30 }
 0x421   : > { %10022 = vmatprep.subr.mxu0 %v17630_v33  ;;  %17654 = vst [vmem:[#allocation115_spill] sm:$0xff] %v14792_v36  ;;  %v5409_v32 = vsub.f32 %v14780_v13, %v14792_v36  ;;  %17663 = vst [vmem:[#allocation127_spill] sm:$0xff] %v14830_v59 }
 0x422   : > { %10023 = vmatpush3.msra.mxu0 %v17630_v33  ;;  %v5101_v33 = vld [vmem:[#allocation11 + $0x98] sm:$0xff] }
 0x423   : > { %10025 = vmatmul.mubr.f32.vlgmr.msra.gmra.mxu0 %v14293_v47  ;;  %10087 = vmatmul.mubr.f32.gmra.mxu1 %v14341_v26  ;;  %v5113_v47 = vld [vmem:[#allocation11 + $0xf8] sm:$0xff]  ;;  %v5410_v29 = vand.u32 4294901760, %v5409_v32 }
 0x424   : > { %10027 = vmatprep.mubr.f32.mxu0 %v14326_v55  ;;  %10089 = vmatprep.mubr.f32.mxu1 %v14384_v57  ;;  %v14705_v1 = vand.u32 4294901760, %v5113_v47 }
 0x426   : > { %17631 = vst [vmem:[#allocation140_spill] sm:$0xff] %v14705_v1  ;;  %v14708_v55 = vsub.f32 %v5113_v47, %v14705_v1  ;;  %10104 = vmatprep.subr.mxu0 %v14705_v1  ;;  %v5424_v47 = vand.u32 4294901760, %v5423_v60 }
 0x427   : > { %10028 = vmatmul.mubr.f32.gmra.mxu0 %v14313_v4  ;;  %10090 = vmatmul.mubr.f32.gmra.mxu1 %v14377_v35  ;;  %v5112_v4 = vld [vmem:[#allocation11 + $0xf0] sm:$0xff] }
 0x428   : > { %10030 = vmatprep.mubr.f32.mxu0 %v14355_v30  ;;  %10092 = vmatprep.mubr.f32.mxu1 %v14409_v38  ;;  %17632 = vst [vmem:[#allocation143_spill] sm:$0xff] %v14708_v55  ;;  %v14715_v30 = vand.u32 4294901760, %v14708_v55 }
 0x429   : > { %10105 = vmatpush3.msra.mxu0 %v14705_v1 }
 0x42a   : > { %17634 = vst [vmem:[#allocation100_spill] sm:$0xff] %v14715_v30 }
 0x42b   : > { %10031 = vmatmul.mubr.f32.gmra.mxu0 %v14341_v26  ;;  %10093 = vmatmul.mubr.f32.gmra.mxu1 %v14415_v23  ;;  %v14710_v26 = vand.u32 4294901760, %v5112_v4 }
 0x42c   : > { %10033 = vmatprep.mubr.f32.mxu0 %v14384_v57  ;;  %10095 = vmatprep.mubr.f32.mxu1 %v14436_v50  ;;  %v5111_v57 = vld [vmem:[#allocation11 + $0xe8] sm:$0xff] }
 0x42d   : > { %17633 = vst [vmem:[#allocation144_spill] sm:$0xff] %v14710_v26  ;;  %10106 = vmatprep.subr.mxu0 %v14710_v26 }
 0x42e   : > { %10107 = vmatpush3.msra.mxu0 %v14710_v26 }
 0x42f   : > { %10034 = vmatmul.mubr.f32.gmra.mxu0 %v14377_v35  ;;  %10096 = vmatmul.mubr.f32.gmra.mxu1 %v14449_v44  ;;  %v14718_v35 = vsub.f32 %v5112_v4, %v14710_v26  ;;  %v5430_v4 = vsub.f32 %v14813_v37, %v14822_v41 }
 0x430   : > { %10036 = vmatprep.mubr.f32.mxu0 %v14409_v38  ;;  %10098 = vmatprep.mubr.f32.mxu1 %v14464_v21  ;;  %v14721_v38 = vand.u32 4294901760, %v5111_v57 }
 0x431   : > { %17635 = vst [vmem:[#allocation141_spill] sm:$0xff] %v14718_v35  ;;  %v5431_v45 = vand.u32 4294901760, %v5430_v4  ;;  %v14897_v4 = vsub.f32 %v5098_v6, %v14883_v16 }
 0x432   : > { %17636 = vst [vmem:[#allocation145_spill] sm:$0xff] %v14721_v38  ;;  %v14730_v42 = vsub.f32 %v5111_v57, %v14721_v38  ;;  %10108 = vmatprep.subr.mxu0 %v14721_v38  ;;  %v14836_v57 = vand.u32 4294901760, %v14825_v49 }
 0x433   : > { %10037 = vmatmul.mubr.f32.gmra.mxu0 %v14415_v23  ;;  %10099 = vmatmul.mubr.f32.gmra.mxu1 %v14480_v8  ;;  %v5367_v23 = vsub.f32 %v14708_v55, %v14715_v30  ;;  %17677 = vst [vmem:[#allocation101_spill] sm:$0xff] %v14897_v4 }
 0x434   : > { %10039 = vmatprep.mubr.f32.mxu0 %v14436_v50  ;;  %10101 = vmatprep.mubr.f32.mxu1 %v14493_v43  ;;  %v14727_v50 = vand.u32 4294901760, %v14718_v35  ;;  %17638 = vst [vmem:[#allocation150_spill] sm:$0xff] %v14730_v42  ;;  %17664 = vst [vmem:[#allocation121_spill] sm:$0xff] %v14836_v57 }
 0x435   : > { %v5368_v54 = vand.u32 4294901760, %v5367_v23  ;;  %10109 = vmatpush3.msra.mxu0 %v14721_v38  ;;  %v14838_v23 = vand.u32 4294901760, %v5101_v33 }
 0x436   : > { %17637 = vst [vmem:[#allocation96_spill] sm:$0xff] %v14727_v50  ;;  %v5374_v52 = vsub.f32 %v14718_v35, %v14727_v50 }
 0x437   : > { %10040 = vmatmul.mubr.f32.gmra.mxu0 %v14449_v44  ;;  %10102 = vmatmul.mubr.f32.gmra.mxu1 %v14508_v28  ;;  %v5110_v44 = vld [vmem:[#allocation11 + $0xe0] sm:$0xff]  ;;  %17665 = vst [vmem:[#allocation130_spill] sm:$0xff] %v14838_v23 }
 0x438   : > { %10042 = vmatprep.mubr.f32.mxu0 %v14464_v21  ;;  %v14732_v21 = vand.u32 4294901760, %v5110_v44  ;;  %10160 = vmatprep.subr.mxu1 %v5368_v54 }
 0x439   : > { %10161 = vmatpush3.msra.mxu1 %v5368_v54  ;;  %v14844_v54 = vsub.f32 %v5102_v20, %v14830_v59 }
 0x43a   : > { %17639 = vst [vmem:[#allocation106_spill] sm:$0xff] %v14732_v21  ;;  %v14742_v17 = vsub.f32 %v5110_v44, %v14732_v21  ;;  %10110 = vmatprep.subr.mxu0 %v14732_v21 }
 0x43b   : > { %10043 = vmatmul.mubr.f32.gmra.mxu0 %v14480_v8  ;;  %v14739_v8 = vand.u32 4294901760, %v14730_v42  ;;  %17666 = vst [vmem:[#allocation122_spill] sm:$0xff] %v14844_v54 }
 0x43c   : > { %10045 = vmatprep.mubr.f32.mxu0 %v14493_v43  ;;  %17641 = vst [vmem:[#allocation148_spill] sm:$0xff] %v14742_v17  ;;  %v5375_v43 = vand.u32 4294901760, %v5374_v52  ;;  %10111 = vmatpush3.msra.mxu0 %v14732_v21  ;;  %v14751_v25 = vand.u32 4294901760, %v14742_v17  ;;  %v5100_v52 = vld [vmem:[#allocation11 + $0x90] sm:$0xff] }
 0x43d   : > { %17640 = vst [vmem:[#allocation102_spill] sm:$0xff] %v14739_v8  ;;  %v5381_v10 = vsub.f32 %v14730_v42, %v14739_v8  ;;  %10112 = vmatprep.subr.mxu0 %v14744_v7 }
 0x43e   : > { %17643 = vst [vmem:[#allocation152_spill] sm:$0xff] %v14751_v25  ;;  %10162 = vmatprep.subr.mxu1 %v5375_v43  ;;  %10113 = vmatpush3.msra.mxu0 %v14744_v7  ;;  %v5388_v46 = vsub.f32 %v14742_v17, %v14751_v25 }
 0x43f   : > { %10046 = vmatmul.mubr.f32.gmra.mxu0 %v14508_v28  ;;  %v14756_v28 = vand.u32 4294901760, %v5108_v51  ;;  %10163 = vmatpush3.msra.mxu1 %v5375_v43  ;;  %v5382_v14 = vand.u32 4294901760, %v5381_v10  ;;  %v5437_v43 = vsub.f32 %v14825_v49, %v14836_v57  ;;  %v14852_v10 = vand.u32 4294901760, %v5100_v52 }
 0x440   : > { %v5389_v56 = vand.u32 4294901760, %v5388_v46  ;;  %v5099_v46 = vld [vmem:[#allocation11 + $0x88] sm:$0xff] }
 0x441   : > { %17645 = vst [vmem:[#allocation105_spill] sm:$0xff] %v14756_v28  ;;  %v14766_v15 = vsub.f32 %v5108_v51, %v14756_v28  ;;  %10114 = vmatprep.subr.mxu0 %v14756_v28  ;;  %10164 = vmatprep.subr.mxu1 %v5382_v14  ;;  %v14850_v51 = vsub.f32 %v5101_v33, %v14838_v23  ;;  %17668 = vst [vmem:[#allocation126_spill] sm:$0xff] %v14852_v10  ;;  %v5438_v12 = vand.u32 4294901760, %v5437_v43 }
 0x442   : > { %10115 = vmatpush3.msra.mxu0 %v14756_v28  ;;  %10165 = vmatpush3.msra.mxu1 %v5382_v14  ;;  %v14858_v14 = vand.u32 4294901760, %v14844_v54  ;;  %v14865_v5 = vsub.f32 %v5100_v52, %v14852_v10  ;;  %v14867_v40 = vand.u32 4294901760, %v5099_v46 }
 0x443   : > { %17647 = vst [vmem:[#allocation151_spill] sm:$0xff] %v14766_v15  ;;  %v14775_v3 = vand.u32 4294901760, %v14766_v15  ;;  %10116 = vmatprep.subr.mxu0 %v14769_v53  ;;  %10166 = vmatprep.subr.mxu1 %v5389_v56  ;;  %17667 = vst [vmem:[#allocation133_spill] sm:$0xff] %v14850_v51 }
 0x444   : > { %10117 = vmatpush3.msra.mxu0 %v14769_v53  ;;  %10167 = vmatpush3.msra.mxu1 %v5389_v56  ;;  %17669 = vst [vmem:[#allocation135_spill] sm:$0xff] %v14858_v14  ;;  %v14862_v56 = vand.u32 4294901760, %v14850_v51  ;;  %17671 = vst [vmem:[#allocation132_spill] sm:$0xff] %v14865_v5  ;;  %v14878_v32 = vand.u32 4294901760, %v14865_v5  ;;  %v14881_v19 = vsub.f32 %v5099_v46, %v14867_v40 }
 0x445   : > { %17649 = vst [vmem:[#allocation112_spill] sm:$0xff] %v14775_v3  ;;  %v5402_v58 = vsub.f32 %v14766_v15, %v14775_v3  ;;  %10118 = vmatprep.subr.mxu0 %v14777_v24  ;;  %10168 = vmatprep.subr.mxu1 %v5396_v34  ;;  %17672 = vst [vmem:[#allocation136_spill] sm:$0xff] %v14867_v40 }
 0x446   : > { %10119 = vmatpush3.msra.mxu0 %v14777_v24  ;;  %10169 = vmatpush3.msra.mxu1 %v5396_v34  ;;  %17670 = vst [vmem:[#allocation129_spill] sm:$0xff] %v14862_v56  ;;  %17673 = vst [vmem:[#allocation137_spill] sm:$0xff] %v14878_v32  ;;  %v5458_v33 = vsub.f32 %v14865_v5, %v14878_v32 }
 0x447   : > { %v5403_v0 = vand.u32 4294901760, %v5402_v58  ;;  %10120 = vmatprep.subr.mxu0 %v14788_v9  ;;  %v5444_v58 = vsub.f32 %v14844_v54, %v14858_v14  ;;  %17674 = vst [vmem:[#allocation109_spill] sm:$0xff] %v14881_v19 }
 0x448   : > { %10121 = vmatpush3.msra.mxu0 %v14788_v9  ;;  %v5459_v43 = vand.u32 4294901760, %v5458_v33 }
 0x449   : > { %10170 = vmatprep.subr.mxu1 %v5403_v0  ;;  %10122 = vmatprep.subr.mxu0 %v14801_v22  ;;  %v5445_v20 = vand.u32 4294901760, %v5444_v58 }
 0x44a   : > { %10171 = vmatpush3.msra.mxu1 %v5403_v0  ;;  %10123 = vmatpush3.msra.mxu0 %v14801_v22  ;;  %v5451_v0 = vsub.f32 %v14850_v51, %v14862_v56 }
 0x44b   : > { %10172 = vmatprep.subr.mxu1 %v5410_v29  ;;  %10124 = vmatprep.subr.mxu0 %v14815_v18 }
 0x44c   : > { %10173 = vmatpush3.msra.mxu1 %v5410_v29  ;;  %10125 = vmatpush3.msra.mxu0 %v14815_v18  ;;  %v5452_v60 = vand.u32 4294901760, %v5451_v0 }
 0x44d   : > { %10174 = vmatprep.subr.mxu1 %v5417_v61  ;;  %10126 = vmatprep.subr.mxu0 %v14830_v59 }
 0x44e   : > { %10175 = vmatpush3.msra.mxu1 %v5417_v61  ;;  %10127 = vmatpush3.msra.mxu0 %v14830_v59 }
 0x44f   : > { %10176 = vmatprep.subr.mxu1 %v5424_v47  ;;  %10128 = vmatprep.subr.mxu0 %v14838_v23 }
 0x450   : > { %10177 = vmatpush3.msra.mxu1 %v5424_v47  ;;  %10129 = vmatpush3.msra.mxu0 %v14838_v23  ;;  %v14894_v47 = vand.u32 4294901760, %v14881_v19 }
 0x451   : > { %10178 = vmatprep.subr.mxu1 %v5431_v45  ;;  %10130 = vmatprep.subr.mxu0 %v14852_v10 }
 0x452   : > { %10179 = vmatpush3.msra.mxu1 %v5431_v45  ;;  %10131 = vmatpush3.msra.mxu0 %v14852_v10  ;;  %17676 = vst [vmem:[#allocation98_spill] sm:$0xff] %v14894_v47  ;;  %v5465_v46 = vsub.f32 %v14881_v19, %v14894_v47 }
 0x453   : > { %10180 = vmatprep.subr.mxu1 %v5438_v12  ;;  %10132 = vmatprep.subr.mxu0 %v14867_v40 }
 0x454   : > { %10181 = vmatpush3.msra.mxu1 %v5438_v12  ;;  %10133 = vmatpush3.msra.mxu0 %v14867_v40  ;;  %v14908_v12 = vand.u32 4294901760, %v14897_v4  ;;  %v5466_v58 = vand.u32 4294901760, %v5465_v46 }
 0x455   : > { %10182 = vmatprep.subr.mxu1 %v5445_v20  ;;  %10134 = vmatprep.subr.mxu0 %v14883_v16 }
 0x456   : > { %10183 = vmatpush3.msra.mxu1 %v5445_v20  ;;  %17678 = vst [vmem:[#allocation107_spill] sm:$0xff] %v14908_v12  ;;  %10135 = vmatpush3.msra.mxu0 %v14883_v16  ;;  %v5472_v6 = vsub.f32 %v14897_v4, %v14908_v12 }
 0x457   : > { %10184 = vmatprep.subr.mxu1 %v5452_v60  ;;  %10216 = vmatprep.subr.mxu0 %v14708_v55 }
 0x458   : > { %10185 = vmatpush3.msra.mxu1 %v5452_v60  ;;  %v5473_v33 = vand.u32 4294901760, %v5472_v6 }
 0x459   : > { %10186 = vmatprep.subr.mxu1 %v5459_v43 }
 0x45a   : > { %10187 = vmatpush3.msra.mxu1 %v5459_v43 }
 0x45b   : > { %10188 = vmatprep.subr.mxu1 %v5466_v58 }
 0x45c   : > { %10189 = vmatpush3.msra.mxu1 %v5466_v58 }
 0x45d   : > { %10190 = vmatprep.subr.mxu1 %v5473_v33 }
 0x45e   : > { %10191 = vmatpush3.msra.mxu1 %v5473_v33 }
 0x45f   : > { %10272 = vmatprep.subr.mxu1 %v14705_v1 }
 0x47d   : > { %v14828_v2 = vpop.f32.mrf.mxu1 }
 0x47f   : > { %v14841_v44 = vpop.f32.mrf.mxu1 }
 0x481   : > { %v14855_v31 = vpop.f32.mrf.mxu1 }
 0x483   : > { %v14870_v34 = vpop.f32.mrf.mxu1 }
 0x485   : > { %v14886_v29 = vpop.f32.mrf.mxu1 }
 0x486   : > { %v14889_v61 = vpop.f32.mrf.mxu0 }
 0x487   : > { %v14900_v52 = vpop.f32.mrf.mxu1  ;;  %v3797_v55 = vadd.f32 %v14889_v61, %v14946_v48 }
 0x488   : > { %v14903_v45 = vpop.f32.mrf.mxu0 }
 0x489   : > { %v3787_v21 = vadd.f32 %v14946_v48, %v14903_v45 }
 0x48b   : > { %v14914_v0 = vpop.f32.mrf.mxu0  ;;  %v14916_v20 = vpop.f32.mrf.mxu1  ;;  %v4088_v61 = vadd.f32 %v14841_v44, %v3787_v21 }
 0x48c   : > { %v3817_v1 = vadd.f32 %v14914_v0, %v14946_v48 }
 0x48d   : > { %v14918_v47 = vpop.f32.mrf.mxu0  ;;  %v14920_v32 = vpop.f32.mrf.mxu1 }
 0x491   : > { %v14922_v60 = vpop.f32.mrf.mxu0  ;;  %v14924_v46 = vpop.f32.mrf.mxu1 }
 0x492   : > { %v3837_v45 = vadd.f32 %v14922_v60, %v14946_v48 }
 0x493   : > { %v14927_v12 = vpop.f32.mrf.mxu0  ;;  %v14929_v56 = vpop.f32.mrf.mxu1 }
 0x494   : > { %v4118_v44 = vadd.f32 %v14886_v29, %v3837_v45 }
 0x497   : > { %v14931_v43 = vpop.f32.mrf.mxu0  ;;  %v9873_v6 = vpop.f32.mrf.mxu1 }
 0x498   : > { %v3857_v21 = vadd.f32 %v14931_v43, %v14946_v48 }
 0x499   : > { %v14933_v14 = vpop.f32.mrf.mxu0  ;;  %v14935_v57 = vpop.f32.mrf.mxu1 }
 0x49a   : > { %v4130_v43 = vadd.f32 %v14916_v20, %v3857_v21 }
 0x49d   : > { %v14937_v58 = vpop.f32.mrf.mxu0  ;;  %v9876_v33 = vpop.f32.mrf.mxu1 }
 0x49f   : > { %v14939_v41 = vpop.f32.mrf.mxu0  ;;  %v14941_v63 = vpop.f32.mrf.mxu1 }
 0x4a3   : > { %v9817_v36 = vpop.f32.mrf.mxu0  ;;  %v9879_v3 = vpop.f32.mrf.mxu1 }
 0x4a4   : > { %v3897_v11 = vadd.f32 %v9817_v36, %v14946_v48 }
 0x4a5   : > { %v14949_v25 = vpop.f32.mrf.mxu0  ;;  %v14951_v8 = vpop.f32.mrf.mxu1 }
 0x4a6   : > { %17680 = vst [vmem:[#allocation110_spill] sm:$0xff] %v14951_v8  ;;  %v14953_v50 = vadd.f32 %v9873_v6, %v3897_v11 }
 0x4a9   : > { %v9820_v30 = vpop.f32.mrf.mxu0 }
 0x4aa   : > { %v3917_v4 = vadd.f32 %v9820_v30, %v14946_v48  ;;  %v9970_v19 = vpop.f32.mrf.mxu1 }
 0x4ab   : > { %v14956_v5 = vpop.f32.mrf.mxu0 }
 0x4ac   : > { %v4475_v51 = vpop.f32.mrf.mxu1  ;;  %v14958_v16 = vadd.f32 %v9876_v33, %v3917_v4 }
 0x4af   : > { %v9823_v54 = vpop.f32.mrf.mxu0 }
 0x4b0   : > { %v3937_v40 = vadd.f32 %v9823_v54, %v14946_v48  ;;  %v14961_v49 = vpop.f32.mrf.mxu1 }
 0x4b1   : > { %v14963_v36 = vpop.f32.mrf.mxu0 }
 0x4b2   : > { %v14965_v10 = vpop.f32.mrf.mxu1  ;;  %v14967_v11 = vadd.f32 %v9879_v3, %v3937_v40 }
 0x4b4   : > { %17681 = vst [vmem:[#allocation113_spill] sm:$0xff] %v14967_v11 }
 0x4b5   : > { %v9914_v6 = vpop.f32.mrf.mxu0  ;;  %v14969_v37 = vpop.f32.mrf.mxu1 }
 0x4b7   : > { %v4281_v30 = vpop.f32.mrf.mxu0  ;;  %v14971_v23 = vpop.f32.mrf.mxu1 }
 0x4bb   : > { %v9917_v39 = vpop.f32.mrf.mxu0  ;;  %v14973_v4 = vpop.f32.mrf.mxu1 }
 0x4bd   : > { %v4295_v33 = vpop.f32.mrf.mxu0  ;;  %v14975_v59 = vpop.f32.mrf.mxu1 }
 0x4c1   : > { %v9920_v54 = vpop.f32.mrf.mxu0  ;;  %v14977_v62 = vpop.f32.mrf.mxu1 }
 0x4c3   : > { %v4309_v18 = vpop.f32.mrf.mxu0  ;;  %v14979_v13 = vpop.f32.mrf.mxu1 }
 0x4c7   : > { %v9923_v3 = vpop.f32.mrf.mxu0  ;;  %v14981_v40 = vpop.f32.mrf.mxu1 }
 0x4c8   : > { %17682 = vst [vmem:[#allocation116_spill] sm:$0xff] %v14981_v40  ;;  %v4282_v40 = vadd.f32 %v4281_v30, %v4088_v61  ;;  %v4331_v45 = vadd.f32 %v9923_v3, %v4130_v43 }
 0x4c9   : > { %v14983_v22 = vpop.f32.mrf.mxu0  ;;  %v14985_v15 = vpop.f32.mrf.mxu1 }
 0x4ca   : > { %17683 = vst [vmem:[#allocation119_spill] sm:$0xff] %v14985_v15 }
 0x4cd   : > { %v14987_v9 = vpop.f32.mrf.mxu0  ;;  %v14989_v27 = vpop.f32.mrf.mxu1 }
 0x4ce   : > { %17684 = vst [vmem:[#allocation124_spill] sm:$0xff] %v14989_v27 }
 0x4cf   : > { %v14991_v24 = vpop.f32.mrf.mxu0  ;;  %v14993_v17 = vpop.f32.mrf.mxu1 }
 0x4d0   : > { %17685 = vst [vmem:[#allocation125_spill] sm:$0xff] %v14993_v17 }
 0x4d3   : > { %v14995_v53 = vpop.f32.mrf.mxu0  ;;  %v14997_v42 = vpop.f32.mrf.mxu1 }
 0x4d4   : > { %17686 = vst [vmem:[#allocation128_spill] sm:$0xff] %v14997_v42  ;;  %v4094_v42 = vadd.f32 %v14828_v2, %v3797_v55  ;;  %v3827_v55 = vadd.f32 %v14946_v48, %v14927_v12 }
 0x4d5   : > { %v14999_v28 = vpop.f32.mrf.mxu0  ;;  %v15001_v35 = vpop.f32.mrf.mxu1 }
 0x4d6   : > { %17687 = vst [vmem:[#allocation131_spill] sm:$0xff] %v15001_v35  ;;  %v3807_v35 = vadd.f32 %v14946_v48, %v14918_v47  ;;  %v4289_v27 = vadd.f32 %v9914_v6, %v4094_v42  ;;  %v4112_v12 = vadd.f32 %v14900_v52, %v3827_v55 }
 0x4d8   : > { %v4100_v42 = vadd.f32 %v14870_v34, %v3807_v35  ;;  %v4484_v47 = vadd.f32 %v9970_v19, %v4289_v27  ;;  %v3877_v19 = vadd.f32 %v14937_v58, %v14946_v48  ;;  %v4310_v29 = vadd.f32 %v4309_v18, %v4112_v12 }
 0x4d9   : > { %v15005_v7 = vpop.f32.mrf.mxu0 }
 0x4da   : > { %v10082_v38 = vpop.f32.mrf.mxu1  ;;  %v4296_v30 = vadd.f32 %v4295_v33, %v4100_v42 }
 0x4db   : > { %v15009_v26 = vpop.f32.mrf.mxu0 }
 0x4dc   : > { %17688 = vst [vmem:[#allocation134_spill] sm:$0xff] %v15009_v26  ;;  %v4891_v17 = vpop.f32.mrf.mxu1  ;;  %v4106_v26 = vadd.f32 %v14855_v31, %v3817_v1  ;;  %v4476_v1 = vadd.f32 %v4475_v51, %v4282_v40  ;;  %v3847_v31 = vadd.f32 %v14946_v48, %v14933_v14  ;;  %v4492_v40 = vadd.f32 %v14965_v10, %v4296_v30 }
 0x4dd   : > { %v4142_v10 = vadd.f32 %v14924_v46, %v3877_v19  ;;  %v4532_v46 = vadd.f32 %v14973_v4, %v4331_v45  ;;  %v3907_v4 = vadd.f32 %v14946_v48, %v14956_v5  ;;  %v3927_v19 = vadd.f32 %v14946_v48, %v14963_v36  ;;  %v17691_v45 = vld [vmem:[#allocation116_spill] sm:$0xff] }
 0x4de   : > { %v15017_v11 = vpop.f32.mrf.mxu0  ;;  %v4303_v0 = vadd.f32 %v9917_v39, %v4106_v26 }
 0x4df   : > { %v10085_v15 = vpop.f32.mrf.mxu1  ;;  %v4160_v36 = vadd.f32 %v14941_v63, %v3907_v4  ;;  %v17697_v4 = vld [vmem:[#allocation125_spill] sm:$0xff] }
 0x4e0   : > { %v15022_v8 = vpop.f32.mrf.mxu0  ;;  %v4500_v34 = vadd.f32 %v14961_v49, %v4303_v0  ;;  %v4124_v49 = vadd.f32 %v14920_v32, %v3847_v31 }
 0x4e1   : > { %17689 = vst [vmem:[#allocation138_spill] sm:$0xff] %v15022_v8  ;;  %v4903_v2 = vpop.f32.mrf.mxu1  ;;  %v4317_v8 = vadd.f32 %v9920_v54, %v4118_v44 }
 0x4e2   : > { %v4324_v42 = vadd.f32 %v14983_v22, %v4124_v49 }
 0x4e3   : > { %v10026_v60 = vpop.f32.mrf.mxu0  ;;  %v10088_v6 = vpop.f32.mrf.mxu1  ;;  %v4516_v18 = vadd.f32 %v14969_v37, %v4317_v8  ;;  %v3887_v37 = vadd.f32 %v14946_v48, %v14949_v25 }
 0x4e4   : > { %v4721_v61 = vadd.f32 %v10026_v60, %v4484_v47  ;;  %v4524_v25 = vadd.f32 %v14975_v59, %v4324_v42  ;;  %v17693_v42 = vld [vmem:[#allocation134_spill] sm:$0xff] }
 0x4e5   : > { %v4714_v26 = vpop.f32.mrf.mxu0  ;;  %v4915_v39 = vpop.f32.mrf.mxu1 }
 0x4e6   : > { %v15033_v35 = vadd.f32 %v10082_v38, %v4721_v61  ;;  %v4715_v27 = vadd.f32 %v4714_v26, %v4476_v1  ;;  %v3867_v38 = vadd.f32 %v14946_v48, %v14939_v41  ;;  %v4508_v41 = vadd.f32 %v14971_v23, %v4310_v29 }
 0x4e7   : > { %v10029_v51 = vpop.f32.mrf.mxu0  ;;  %v10091_v33 = vpop.f32.mrf.mxu1  ;;  %v4148_v26 = vadd.f32 %v14935_v57, %v3887_v37 }
 0x4e8   : > { %v8143_v14 = vmul.f32 -1.442695, %v15033_v35  ;;  %v15040_v54 = vadd.f32 %v4891_v17, %v4715_v27  ;;  %v4733_v52 = vadd.f32 %v10029_v51, %v4500_v34  ;;  %v4136_v44 = vadd.f32 %v14929_v56, %v3867_v38 }
 0x4e9   : > { %v4726_v55 = vpop.f32.mrf.mxu0  ;;  %v4927_v58 = vpop.f32.mrf.mxu1  ;;  %v4352_v29 = vadd.f32 %v14999_v28, %v4148_v26 }
 0x4ea   : > { %10922 = vpow2.f32 %v8143_v14  ;;  %v8142_v20 = vmul.f32 -1.442695, %v15040_v54  ;;  %v15048_v0 = vadd.f32 %v10085_v15, %v4733_v52  ;;  %v4727_v17 = vadd.f32 %v4726_v55, %v4492_v40 }
 0x4eb   : > { %v10032_v47 = vpop.f32.mrf.mxu0  ;;  %v10094_v21 = vpop.f32.mrf.mxu1  ;;  %v4345_v15 = vadd.f32 %v14987_v9, %v4142_v10  ;;  %v4373_v14 = vadd.f32 %v15005_v7, %v14958_v16  ;;  %v4366_v10 = vadd.f32 %v17693_v42, %v4160_v36 }
 0x4ec   : > { %10924 = vpow2.f32 %v8142_v20  ;;  %v8145_v32 = vmul.f32 -1.442695, %v15048_v0  ;;  %v15054_v3 = vadd.f32 %v4903_v2, %v4727_v17  ;;  %v4745_v8 = vadd.f32 %v10032_v47, %v4516_v18  ;;  %v17694_v47 = vld [vmem:[#allocation113_spill] sm:$0xff] }
 0x4ed   : > { %v4738_v22 = vpop.f32.mrf.mxu0  ;;  %v4939_v60 = vpop.f32.mrf.mxu1  ;;  %v4338_v2 = vadd.f32 %v14991_v24, %v4136_v44  ;;  %v4548_v27 = vadd.f32 %v14977_v62, %v4345_v15  ;;  %v4387_v63 = vadd.f32 %v15017_v11, %v17694_v47  ;;  %v4572_v26 = vadd.f32 %v17697_v4, %v4366_v10 }
 0x4ee   : > { %10926 = vpow2.f32 %v8145_v32  ;;  %v8144_v23 = vmul.f32 -1.442695, %v15054_v3  ;;  %v15062_v30 = vadd.f32 %v10088_v6, %v4745_v8  ;;  %v4739_v61 = vadd.f32 %v4738_v22, %v4508_v41  ;;  %v17695_v32 = vld [vmem:[#allocation124_spill] sm:$0xff] }
 0x4ef   : > { %v10035_v1 = vpop.f32.mrf.mxu0  ;;  %v10097_v31 = vpop.f32.mrf.mxu1  ;;  %v4540_v57 = vadd.f32 %v14979_v13, %v4338_v2  ;;  %v17690_v13 = vld [vmem:[#allocation110_spill] sm:$0xff]  ;;  %v4580_v8 = vadd.f32 %v17695_v32, %v4373_v14 }
 0x4f0   : > { %10928 = vpow2.f32 %v8144_v23  ;;  %v8147_v9 = vmul.f32 -1.442695, %v15062_v30  ;;  %v15067_v56 = vadd.f32 %v4915_v39, %v4739_v61  ;;  %v4757_v12 = vadd.f32 %v10035_v1, %v4532_v46  ;;  %v17696_v46 = vld [vmem:[#allocation138_spill] sm:$0xff] }
 0x4f1   : > { %v4750_v6 = vpop.f32.mrf.mxu0  ;;  %v4359_v39 = vadd.f32 %v14995_v53, %v14953_v50  ;;  %v4951_v5 = vpop.f32.mrf.mxu1  ;;  %v4172_v40 = vadd.f32 %v17690_v13, %v3927_v19 }
 0x4f2   : > { %10930 = vpow2.f32 %v8147_v9  ;;  %v8146_v24 = vmul.f32 -1.442695, %v15067_v56  ;;  %v15074_v34 = vadd.f32 %v10091_v33, %v4757_v12  ;;  %v4751_v59 = vadd.f32 %v4750_v6, %v4524_v25 }
 0x4f3   : > { %v10038_v43 = vpop.f32.mrf.mxu0  ;;  %v10100_v38 = vpop.f32.mrf.mxu1  ;;  %v4564_v49 = vadd.f32 %v17691_v45, %v4359_v39  ;;  %v4380_v23 = vadd.f32 %v17696_v46, %v4172_v40 }
 0x4f4   : > { %10932 = vpow2.f32 %v8146_v24  ;;  %v8149_v62 = vmul.f32 -1.442695, %v15074_v34  ;;  %v15083_v51 = vadd.f32 %v4927_v58, %v4751_v59  ;;  %v4769_v33 = vadd.f32 %v10038_v43, %v4548_v27  ;;  %v17692_v58 = vld [vmem:[#allocation119_spill] sm:$0xff]  ;;  %v17698_v27 = vld [vmem:[#allocation128_spill] sm:$0xff] }
 0x4f5   : > { %v4762_v52 = vpop.f32.mrf.mxu0  ;;  %v4556_v18 = vadd.f32 %v17692_v58, %v4352_v29  ;;  %v4596_v24 = vadd.f32 %v17698_v27, %v4387_v63 }
 0x4f6   : > { %10934 = vpow2.f32 %v8149_v62  ;;  %v8148_v48 = vmul.f32 -1.442695, %v15083_v51  ;;  %v15088_v50 = vadd.f32 %v10094_v21, %v4769_v33  ;;  %v4763_v28 = vadd.f32 %v4762_v52, %v4540_v57  ;;  %v17699_v57 = vld [vmem:[#allocation131_spill] sm:$0xff] }
 0x4f7   : > { %v10923_v53 = vpop.eup %10922  ;;  %v10041_v55 = vpop.f32.mrf.mxu0  ;;  %v4588_v62 = vadd.f32 %v17699_v57, %v4380_v23 }
 0x4f8   : > { %v5034_v20 = vadd.f32 1.0, %v10923_v53  ;;  %10936 = vpow2.f32 %v8148_v48  ;;  %v8151_v7 = vmul.f32 -1.442695, %v15088_v50  ;;  %v15095_v16 = vadd.f32 %v4939_v60, %v4763_v28  ;;  %v4963_v60 = vpop.f32.mrf.mxu1 }
 0x4f9   : > { %v10925_v17 = vpop.eup %10924  ;;  %v4781_v21 = vadd.f32 %v10041_v55, %v4564_v49  ;;  %v4774_v41 = vpop.f32.mrf.mxu0 }
 0x4fa   : > { %10938 = vrcp.f32 %v5034_v20  ;;  %v5033_v37 = vadd.f32 1.0, %v10925_v17  ;;  %v8150_v15 = vmul.f32 -1.442695, %v15095_v16  ;;  %v4775_v44 = vadd.f32 %v4774_v41, %v4556_v18  ;;  %v10103_v29 = vpop.f32.mrf.mxu1 }
 0x4fb   : > { %v10927_v22 = vpop.eup %10926  ;;  %10940 = vpow2.f32 %v8151_v7  ;;  %v15103_v61 = vadd.f32 %v10097_v31, %v4781_v21  ;;  %v10044_v2 = vpop.f32.mrf.mxu0 }
 0x4fc   : > { %10942 = vrcp.f32 %v5033_v37  ;;  %v5036_v1 = vadd.f32 1.0, %v10927_v22  ;;  %v15105_v11 = vadd.f32 %v4951_v5, %v4775_v44  ;;  %v4793_v25 = vadd.f32 %v10044_v2, %v4580_v8  ;;  %v4975_v45 = vpop.f32.mrf.mxu1 }
 0x4fd   : > { %v10929_v9 = vpop.eup %10928  ;;  %10944 = vpow2.f32 %v8150_v15  ;;  %v8153_v12 = vmul.f32 -1.442695, %v15103_v61  ;;  %v4786_v6 = vpop.f32.mrf.mxu0 }
 0x4fe   : > { %10946 = vrcp.f32 %v5036_v1  ;;  %v5035_v59 = vadd.f32 1.0, %v10929_v9  ;;  %v8152_v31 = vmul.f32 -1.442695, %v15105_v11  ;;  %v15111_v19 = vadd.f32 %v10100_v38, %v4793_v25 }
 0x4ff   : > { %v10931_v39 = vpop.eup %10930  ;;  %10948 = vpow2.f32 %v8153_v12  ;;  %v4787_v5 = vadd.f32 %v4786_v6, %v4572_v26  ;;  %v10047_v43 = vpop.f32.mrf.mxu0 }
 0x500   : > { %10950 = vrcp.f32 %v5035_v59  ;;  %v5038_v33 = vadd.f32 1.0, %v10931_v39  ;;  %v8155_v14 = vmul.f32 -1.442695, %v15111_v19  ;;  %v4805_v52 = vadd.f32 %v10047_v43, %v4596_v24  ;;  %v17700_v24 = vld [vmem:[#allocation140_spill] sm:$0xff] }
 0x501   : > { %v10933_v48 = vpop.eup %10932  ;;  %10952 = vpow2.f32 %v8152_v31  ;;  %v15115_v28 = vadd.f32 %v4963_v60, %v4787_v5  ;;  %v4798_v53 = vpop.f32.mrf.mxu0  ;;  %v17701_v39 = vld [vmem:[#allocation144_spill] sm:$0xff] }
 0x502   : > { %10954 = vrcp.f32 %v5038_v33  ;;  %v5037_v36 = vadd.f32 1.0, %v10933_v48  ;;  %v15117_v13 = vadd.f32 %v10103_v29, %v4805_v52  ;;  %v4799_v40 = vadd.f32 %v4798_v53, %v4588_v62 }
 0x503   : > { %v10935_v38 = vpop.eup %10934  ;;  %10956 = vpow2.f32 %v8155_v14  ;;  %v8154_v49 = vmul.f32 -1.442695, %v15115_v28  ;;  %v17702_v14 = vld [vmem:[#allocation145_spill] sm:$0xff] }
 0x504   : > { %10958 = vrcp.f32 %v5037_v36  ;;  %v5040_v55 = vadd.f32 1.0, %v10935_v38  ;;  %v8157_v58 = vmul.f32 -1.442695, %v15117_v13  ;;  %v15121_v18 = vadd.f32 %v4975_v45, %v4799_v40 }
 0x505   : > { %v10937_v20 = vpop.eup %10936  ;;  %10960 = vpow2.f32 %v8154_v49 }
 0x506   : > { %10962 = vrcp.f32 %v5040_v55  ;;  %v5039_v7 = vadd.f32 1.0, %v10937_v20  ;;  %v8156_v17 = vmul.f32 -1.442695, %v15121_v18  ;;  %v17703_v55 = vld [vmem:[#allocation106_spill] sm:$0xff] }
 0x507   : > { %v10939_v42 = vpop.eup %10938  ;;  %10964 = vpow2.f32 %v8157_v58 }
 0x508   : > { %v10941_v10 = vpop.eup %10940  ;;  %v5082_v47 = vmul.f32 %v10939_v42, %v15033_v35  ;;  %10966 = vrcp.f32 %v5039_v7 }
 0x509   : > { %v10943_v63 = vpop.eup %10942  ;;  %v5042_v21 = vadd.f32 1.0, %v10941_v10  ;;  %10968 = vpow2.f32 %v8156_v17 }
 0x50a   : > { %v10945_v41 = vpop.eup %10944  ;;  %v15125_v32 = vand.u32 4294901760, %v5082_v47  ;;  %v5081_v8 = vmul.f32 %v10943_v63, %v15040_v54 }
 0x50b   : > { %v10947_v37 = vpop.eup %10946  ;;  %10970 = vrcp.f32 %v5042_v21  ;;  %v5041_v15 = vadd.f32 1.0, %v10945_v41 }
 0x50c   : > { %v10949_v44 = vpop.eup %10948  ;;  %v15129_v22 = vsub.f32 %v5082_v47, %v15125_v32  ;;  %v15131_v46 = vand.u32 4294901760, %v5081_v8  ;;  %v5084_v35 = vmul.f32 %v10947_v37, %v15048_v0 }
 0x50d   : > { %v10951_v23 = vpop.eup %10950  ;;  %10972 = vrcp.f32 %v5041_v15  ;;  %v5044_v60 = vadd.f32 1.0, %v10949_v44  ;;  %v17705_v44 = vld [vmem:[#allocation143_spill] sm:$0xff] }
 0x50e   : > { %v10953_v2 = vpop.eup %10952  ;;  %v5215_v1 = vand.u32 4294901760, %v15129_v22  ;;  %v15136_v25 = vsub.f32 %v5081_v8, %v15131_v46  ;;  %v15138_v54 = vand.u32 4294901760, %v5084_v35  ;;  %v5083_v9 = vmul.f32 %v10951_v23, %v15054_v3  ;;  %10192 = vmatprep.mubr.f32.mxu1 %v15131_v46 }
 0x50f   : > { %v10955_v12 = vpop.eup %10954  ;;  %10974 = vrcp.f32 %v5044_v60  ;;  %v5043_v4 = vadd.f32 1.0, %v10953_v2  ;;  %10193 = vmatmul.mubr.f32.vlgmr.msra.gmra.mxu1 %v15125_v32 }
 0x510   : > { %v10957_v0 = vpop.eup %10956  ;;  %v15144_v26 = vsub.f32 %v5084_v35, %v15138_v54  ;;  %v15146_v6 = vand.u32 4294901760, %v5083_v9  ;;  %v5086_v27 = vmul.f32 %v10955_v12, %v15062_v30  ;;  %10273 = vmatpush3.msra.mxu1 %v17700_v24  ;;  %v5216_v3 = vsub.f32 %v15129_v22, %v5215_v1  ;;  %v17707_v12 = vld [vmem:[#allocation105_spill] sm:$0xff] }
 0x511   : > { %v10959_v59 = vpop.eup %10958  ;;  %10976 = vrcp.f32 %v5043_v4  ;;  %v5046_v31 = vadd.f32 1.0, %v10957_v0  ;;  %10274 = vmatprep.subr.mxu1 %v17701_v39  ;;  %v5205_v29 = vand.u32 4294901760, %v15136_v25 }
 0x512   : > { %v10961_v5 = vpop.eup %10960  ;;  %v15156_v43 = vsub.f32 %v5083_v9, %v15146_v6  ;;  %v15158_v57 = vand.u32 4294901760, %v5086_v27  ;;  %v5085_v30 = vmul.f32 %v10959_v59, %v15067_v56  ;;  %10195 = vmatprep.mubr.f32.mxu1 %v15146_v6  ;;  %10275 = vmatpush3.msra.mxu1 %v17701_v39  ;;  %v5235_v48 = vand.u32 4294901760, %v15144_v26  ;;  %v17706_v9 = vld [vmem:[#allocation141_spill] sm:$0xff] }
 0x513   : > { %v10963_v62 = vpop.eup %10962  ;;  %v5045_v33 = vadd.f32 1.0, %v10961_v5  ;;  %10196 = vmatmul.mubr.f32.gmra.mxu1 %v15138_v54  ;;  %10276 = vmatprep.subr.mxu1 %v17702_v14  ;;  %v5206_v52 = vsub.f32 %v15136_v25, %v5205_v29  ;;  %10978 = vrcp.f32 %v5046_v31  ;;  %v5217_v45 = vand.u32 4294901760, %v5216_v3 }
 0x514   : > { %v10965_v53 = vpop.eup %10964  ;;  %v15169_v36 = vand.u32 4294901760, %v5085_v30  ;;  %v5088_v56 = vmul.f32 %v10963_v62, %v15074_v34  ;;  %10277 = vmatpush3.msra.mxu1 %v17702_v14  ;;  %v5225_v40 = vand.u32 4294901760, %v15156_v43  ;;  %v15175_v49 = vsub.f32 %v5086_v27, %v15158_v57 }
 0x515   : > { %v10967_v38 = vpop.eup %10966  ;;  %10980 = vrcp.f32 %v5045_v33  ;;  %10278 = vmatprep.subr.mxu1 %v17703_v55  ;;  %v5207_v58 = vand.u32 4294901760, %v5206_v52  ;;  %v5048_v10 = vadd.f32 1.0, %v10965_v53  ;;  %v5236_v63 = vsub.f32 %v15144_v26, %v5235_v48  ;;  %v17708_v33 = vld [vmem:[#allocation150_spill] sm:$0xff]  ;;  %v17709_v52 = vld [vmem:[#allocation99_spill] sm:$0xff] }
 0x516   : > { %v10969_v20 = vpop.eup %10968  ;;  %v15179_v7 = vsub.f32 %v5085_v30, %v15169_v36  ;;  %v15181_v17 = vand.u32 4294901760, %v5088_v56  ;;  %v5087_v34 = vmul.f32 %v10967_v38, %v15083_v51  ;;  %10198 = vmatprep.mubr.f32.mxu1 %v15169_v36  ;;  %10279 = vmatpush3.msra.mxu1 %v17703_v55  ;;  %v5226_v42 = vsub.f32 %v15156_v43, %v5225_v40  ;;  %v17704_v51 = vld [vmem:[#allocation146_spill] sm:$0xff] }
 0x517   : > { %v5047_v47 = vadd.f32 1.0, %v10969_v20  ;;  %10136 = vmatprep.mubr.f32.mxu0 %v5207_v58  ;;  %10199 = vmatmul.mubr.f32.gmra.mxu1 %v15158_v57  ;;  %v5255_v35 = vand.u32 4294901760, %v15175_v49  ;;  %v5237_v0 = vand.u32 4294901760, %v5236_v63  ;;  %v17711_v58 = vld [vmem:[#allocation154_spill] sm:$0xff] }
 0x518   : > { %v10971_v21 = vpop.eup %10970  ;;  %v15193_v41 = vand.u32 4294901760, %v5087_v34  ;;  %10137 = vmatmul.mubr.f32.vlgmr.msra.gmra.mxu0 %v5217_v45  ;;  %10280 = vmatprep.subr.mxu1 %v17704_v51  ;;  %v5227_v8 = vand.u32 4294901760, %v5226_v42  ;;  %v5245_v37 = vand.u32 4294901760, %v15179_v7  ;;  %v15202_v60 = vsub.f32 %v5088_v56, %v15181_v17 }
 0x519   : > { %v5090_v15 = vmul.f32 %v10971_v21, %v15088_v50  ;;  %10982 = vrcp.f32 %v5047_v47  ;;  %10217 = vmatpush3.msra.mxu0 %v17705_v44  ;;  %10281 = vmatpush3.msra.mxu1 %v17704_v51  ;;  %v5256_v5 = vsub.f32 %v15175_v49, %v5255_v35 }
 0x51a   : > { %v10973_v23 = vpop.eup %10972  ;;  %v15205_v2 = vsub.f32 %v5087_v34, %v15193_v41  ;;  %10218 = vmatprep.subr.mxu0 %v17706_v9  ;;  %10282 = vmatprep.subr.mxu1 %v17707_v12  ;;  %v5246_v50 = vsub.f32 %v15179_v7, %v5245_v37  ;;  %10984 = vrcp.f32 %v5048_v10  ;;  %v16987_v53 = vand.u32 4294901760, %v15202_v60 }
 0x51b   : > { %v5089_v4 = vmul.f32 %v10973_v23, %v15095_v16  ;;  %10139 = vmatprep.mubr.f32.mxu0 %v5227_v8  ;;  %10201 = vmatprep.mubr.f32.mxu1 %v15193_v41  ;;  %v15217_v3 = vand.u32 4294901760, %v5090_v15  ;;  %v17712_v23 = vld [vmem:[#allocation108_spill] sm:$0xff] }
 0x51c   : > { %v10975_v27 = vpop.eup %10974  ;;  %10219 = vmatpush3.msra.mxu0 %v17706_v9  ;;  %10283 = vmatpush3.msra.mxu1 %v17707_v12  ;;  %v5265_v59 = vand.u32 4294901760, %v15205_v2  ;;  %v5247_v16 = vand.u32 4294901760, %v5246_v50  ;;  %v5276_v63 = vsub.f32 %v15202_v60, %v16987_v53  ;;  %v17713_v9 = vld [vmem:[#allocation103_spill] sm:$0xff] }
 0x51d   : > { %v15219_v31 = vand.u32 4294901760, %v5089_v4  ;;  %10140 = vmatmul.mubr.f32.gmra.mxu0 %v5237_v0  ;;  %10202 = vmatmul.mubr.f32.gmra.mxu1 %v15181_v17  ;;  %v5092_v62 = vmul.f32 %v10975_v27, %v15103_v61  ;;  %v17710_v61 = vld [vmem:[#allocation148_spill] sm:$0xff]  ;;  %v15241_v34 = vsub.f32 %v5090_v15, %v15217_v3 }
 0x51e   : > { %v10977_v30 = vpop.eup %10976  ;;  %10220 = vmatprep.subr.mxu0 %v17708_v33  ;;  %10284 = vmatprep.subr.mxu1 %v17709_v52  ;;  %v5266_v45 = vsub.f32 %v15205_v2, %v5265_v59 }
 0x51f   : > { %v15230_v56 = vsub.f32 %v5089_v4, %v15219_v31  ;;  %v5091_v38 = vmul.f32 %v10977_v30, %v15105_v11  ;;  %10221 = vmatpush3.msra.mxu0 %v17708_v33  ;;  %10285 = vmatpush3.msra.mxu1 %v17709_v52  ;;  %v5257_v11 = vand.u32 4294901760, %v5256_v5  ;;  %v15252_v21 = vand.u32 4294901760, %v5092_v62  ;;  %v17715_v5 = vld [vmem:[#allocation118_spill] sm:$0xff] }
 0x520   : > { %10222 = vmatprep.subr.mxu0 %v17710_v61  ;;  %10286 = vmatprep.subr.mxu1 %v17711_v58  ;;  %v10979_v20 = vpop.eup %10978  ;;  %v5267_v44 = vand.u32 4294901760, %v5266_v45  ;;  %v16983_v0 = vand.u32 4294901760, %v15241_v34  ;;  %v5277_v33 = vand.u32 4294901760, %v5276_v63 }
 0x521   : > { %v15243_v42 = vand.u32 4294901760, %v5091_v38  ;;  %10142 = vmatprep.mubr.f32.mxu0 %v5247_v16  ;;  %10204 = vmatprep.mubr.f32.mxu1 %v15219_v31  ;;  %v16985_v10 = vand.u32 4294901760, %v15230_v56  ;;  %v5094_v50 = vmul.f32 %v10979_v20, %v15111_v19  ;;  %v17714_v16 = vld [vmem:[#allocation151_spill] sm:$0xff]  ;;  %v15273_v30 = vsub.f32 %v5092_v62, %v15252_v21 }
 0x522   : > { %v10981_v47 = vpop.eup %10980  ;;  %10223 = vmatpush3.msra.mxu0 %v17710_v61  ;;  %10287 = vmatpush3.msra.mxu1 %v17711_v58  ;;  %v5296_v62 = vsub.f32 %v15241_v34, %v16983_v0 }
 0x523   : > { %v15255_v8 = vsub.f32 %v5091_v38, %v15243_v42  ;;  %v5093_v15 = vmul.f32 %v10981_v47, %v15115_v28  ;;  %10143 = vmatmul.mubr.f32.gmra.mxu0 %v5257_v11  ;;  %10205 = vmatmul.mubr.f32.gmra.mxu1 %v15217_v3  ;;  %v5286_v28 = vsub.f32 %v15230_v56, %v16985_v10  ;;  %v15280_v61 = vand.u32 4294901760, %v5094_v50  ;;  %v17716_v11 = vld [vmem:[#allocation142_spill] sm:$0xff] }
 0x524   : > { %10224 = vmatprep.subr.mxu0 %v17712_v23  ;;  %10288 = vmatprep.subr.mxu1 %v17713_v9  ;;  %v17717_v47 = vld [vmem:[#allocation114_spill] sm:$0xff] }
 0x525   : > { %v15262_v4 = vand.u32 4294901760, %v5093_v15  ;;  %10225 = vmatpush3.msra.mxu0 %v17712_v23  ;;  %10289 = vmatpush3.msra.mxu1 %v17713_v9  ;;  %v16981_v38 = vand.u32 4294901760, %v15255_v8  ;;  %v16982_v23 = vand.u32 4294901760, %v15273_v30 }
 0x526   : > { %v10983_v27 = vpop.eup %10982  ;;  %10226 = vmatprep.subr.mxu0 %v17714_v16  ;;  %10290 = vmatprep.subr.mxu1 %v17715_v5 }
 0x527   : > { %v5095_v19 = vmul.f32 %v10983_v27, %v15121_v18  ;;  %10145 = vmatprep.mubr.f32.mxu0 %v5267_v44  ;;  %10207 = vmatprep.mubr.f32.mxu1 %v15243_v42  ;;  %v10985_v45 = vpop.eup %10984  ;;  %v15283_v20 = vsub.f32 %v5093_v15, %v15262_v4  ;;  %v5287_v18 = vand.u32 4294901760, %v5286_v28  ;;  %v5306_v15 = vsub.f32 %v15255_v8, %v16981_v38  ;;  %v17718_v28 = vld [vmem:[#allocation147_spill] sm:$0xff]  ;;  %v17721_v38 = vld [vmem:[#allocation130_spill] sm:$0xff] }
 0x528   : > { %10227 = vmatpush3.msra.mxu0 %v17714_v16  ;;  %10291 = vmatpush3.msra.mxu1 %v17715_v5  ;;  %v5096_v63 = vmul.f32 %v10985_v45, %v15117_v13  ;;  %v17719_v27 = vld [vmem:[#allocation127_spill] sm:$0xff]  ;;  %v15303_v16 = vsub.f32 %v5094_v50, %v15280_v61  ;;  %v5297_v13 = vand.u32 4294901760, %v5296_v62  ;;  %v17720_v62 = vld [vmem:[#allocation104_spill] sm:$0xff] }
 0x529   : > { %10146 = vmatmul.mubr.f32.gmra.mxu0 %v5277_v33  ;;  %10208 = vmatmul.mubr.f32.gmra.mxu1 %v15252_v21  ;;  %v15292_v44 = vand.u32 4294901760, %v5095_v19  ;;  %v16984_v33 = vand.u32 4294901760, %v15283_v20  ;;  %v5307_v50 = vand.u32 4294901760, %v5306_v15  ;;  %v17723_v15 = vld [vmem:[#allocation126_spill] sm:$0xff] }
 0x52a   : > { %10228 = vmatprep.subr.mxu0 %v17716_v11  ;;  %10292 = vmatprep.subr.mxu1 %v17717_v47  ;;  %v15309_v45 = vand.u32 4294901760, %v5096_v63 }
 0x52b   : > { %10229 = vmatpush3.msra.mxu0 %v17716_v11  ;;  %10293 = vmatpush3.msra.mxu1 %v17717_v47  ;;  %v15312_v11 = vsub.f32 %v5095_v19, %v15292_v44  ;;  %v5326_v19 = vsub.f32 %v15283_v20, %v16984_v33 }
 0x52c   : > { %10230 = vmatprep.subr.mxu0 %v17718_v28  ;;  %10294 = vmatprep.subr.mxu1 %v17719_v27 }
 0x52d   : > { %10148 = vmatprep.mubr.f32.mxu0 %v5287_v18  ;;  %10210 = vmatprep.mubr.f32.mxu1 %v15262_v4  ;;  %v5316_v18 = vsub.f32 %v15273_v30, %v16982_v23  ;;  %v15329_v23 = vsub.f32 %v5096_v63, %v15309_v45  ;;  %v5327_v33 = vand.u32 4294901760, %v5326_v19  ;;  %v17724_v63 = vld [vmem:[#allocation117_spill] sm:$0xff]  ;;  %v17726_v19 = vld [vmem:[#allocation122_spill] sm:$0xff] }
 0x52e   : > { %10231 = vmatpush3.msra.mxu0 %v17718_v28  ;;  %10295 = vmatpush3.msra.mxu1 %v17719_v27  ;;  %v16986_v28 = vand.u32 4294901760, %v15303_v16 }
 0x52f   : > { %10149 = vmatmul.mubr.f32.gmra.mxu0 %v5297_v13  ;;  %10211 = vmatmul.mubr.f32.gmra.mxu1 %v15280_v61  ;;  %v17722_v13 = vld [vmem:[#allocation120_spill] sm:$0xff]  ;;  %v5317_v0 = vand.u32 4294901760, %v5316_v18 }
 0x530   : > { %10232 = vmatprep.subr.mxu0 %v17720_v62  ;;  %10296 = vmatprep.subr.mxu1 %v17721_v38  ;;  %v5336_v10 = vsub.f32 %v15303_v16, %v16986_v28 }
 0x531   : > { %10233 = vmatpush3.msra.mxu0 %v17720_v62  ;;  %10297 = vmatpush3.msra.mxu1 %v17721_v38  ;;  %v16988_v62 = vand.u32 4294901760, %v15312_v11 }
 0x532   : > { %10234 = vmatprep.subr.mxu0 %v17722_v13  ;;  %10298 = vmatprep.subr.mxu1 %v17723_v15  ;;  %v5337_v28 = vand.u32 4294901760, %v5336_v10 }
 0x533   : > { %10151 = vmatprep.mubr.f32.mxu0 %v5307_v50  ;;  %10213 = vmatprep.mubr.f32.mxu1 %v15292_v44  ;;  %v17725_v50 = vld [vmem:[#allocation136_spill] sm:$0xff]  ;;  %v5346_v18 = vsub.f32 %v15312_v11, %v16988_v62 }
 0x534   : > { %10235 = vmatpush3.msra.mxu0 %v17722_v13  ;;  %10299 = vmatpush3.msra.mxu1 %v17723_v15  ;;  %v17727_v13 = vld [vmem:[#allocation97_spill] sm:$0xff] }
 0x535   : > { %10152 = vmatmul.mubr.f32.gmra.mxu0 %v5317_v0  ;;  %10214 = vmatmul.mubr.f32.gmra.mxu1 %v15309_v45  ;;  %v5355_v0 = vand.u32 4294901760, %v15329_v23  ;;  %v5347_v53 = vand.u32 4294901760, %v5346_v18 }
 0x536   : > { %10236 = vmatprep.subr.mxu0 %v17724_v63  ;;  %10300 = vmatprep.subr.mxu1 %v17725_v50 }
 0x537   : > { %10237 = vmatpush3.msra.mxu0 %v17724_v63  ;;  %10301 = vmatpush3.msra.mxu1 %v17725_v50  ;;  %v17728_v63 = vld [vmem:[#allocation133_spill] sm:$0xff]  ;;  %v5356_v62 = vsub.f32 %v15329_v23, %v5355_v0 }
 0x538   : > { %10304 = vmatprep.mubr.f32.mxu1 %v5205_v29  ;;  %10238 = vmatprep.subr.mxu0 %v17726_v19  ;;  %v17729_v29 = vld [vmem:[#allocation132_spill] sm:$0xff] }
 0x539   : > { %10302 = vmatprep.subr.mxu1 %v17727_v13  ;;  %10154 = vmatprep.mubr.f32.mxu0 %v5327_v33  ;;  %v5357_v10 = vand.u32 4294901760, %v5356_v62 }
 0x53a   : > { %10239 = vmatpush3.msra.mxu0 %v17726_v19  ;;  %10303 = vmatpush3.msra.mxu1 %v17727_v13 }
 0x53b   : > { %10155 = vmatmul.mubr.f32.gmra.mxu0 %v5337_v28  ;;  %10240 = vmatprep.subr.mxu0 %v17728_v63 }
 0x53c   : > { %10305 = vmatmul.mubr.f32.vlgmr.msra.gmra.mxu1 %v5215_v1  ;;  %10384 = vmatprep.subr.mxu1 %v17700_v24  ;;  %v17730_v1 = vld [vmem:[#allocation109_spill] sm:$0xff] }
 0x53d   : > { %10241 = vmatpush3.msra.mxu0 %v17728_v63  ;;  %10307 = vmatprep.mubr.f32.mxu1 %v5225_v40  ;;  %v17739_v40 = vld [vmem:[#allocation149_spill] sm:$0xff] }
 0x53e   : > { %10385 = vmatpush3.msra.mxu1 %v17700_v24  ;;  %10242 = vmatprep.subr.mxu0 %v17729_v29  ;;  %v17731_v24 = vld [vmem:[#allocation101_spill] sm:$0xff] }
 0x53f   : > { %10386 = vmatprep.subr.mxu1 %v17701_v39  ;;  %10157 = vmatprep.mubr.f32.mxu0 %v5347_v53  ;;  %v17751_v53 = vld [vmem:[#allocation135_spill] sm:$0xff] }
 0x540   : > { %10243 = vmatpush3.msra.mxu0 %v17729_v29  ;;  %10387 = vmatpush3.msra.mxu1 %v17701_v39  ;;  %v17732_v39 = vld [vmem:[#allocation100_spill] sm:$0xff] }
 0x541   : > { %10158 = vmatmul.mubr.f32.gmra.mxu0 %v5357_v10  ;;  %10244 = vmatprep.subr.mxu0 %v17730_v1 }
 0x542   : > { %10308 = vmatmul.mubr.f32.gmra.mxu1 %v5235_v48  ;;  %10388 = vmatprep.subr.mxu1 %v17702_v14  ;;  %v17737_v48 = vld [vmem:[#allocation152_spill] sm:$0xff] }
 0x543   : > { %10245 = vmatpush3.msra.mxu0 %v17730_v1  ;;  %10248 = vmatprep.mubr.f32.mxu0 %v15136_v25  ;;  %v17733_v25 = vld [vmem:[#allocation96_spill] sm:$0xff]  ;;  %v6527_v1 = vld [vmem:[#allocation13 + $0x38] sm:$0xff] }
 0x544   : > { %10310 = vmatprep.mubr.f32.mxu1 %v5245_v37  ;;  %10389 = vmatpush3.msra.mxu1 %v17702_v14  ;;  %v17736_v14 = vand.u32 4294901760, %v15230_v56  ;;  %v17744_v37 = vand.u32 4294901760, %v15283_v20 }
 0x545   : > { %10246 = vmatprep.subr.mxu0 %v17731_v24  ;;  %10390 = vmatprep.subr.mxu1 %v17703_v55 }
 0x546   : > { %10247 = vmatpush3.msra.mxu0 %v17731_v24  ;;  %10391 = vmatpush3.msra.mxu1 %v17703_v55  ;;  %v17740_v55 = vand.u32 4294901760, %v15255_v8 }
 0x547   : > { %10249 = vmatmul.mubr.f32.vlgmr.msra.gmra.mxu0 %v15129_v22  ;;  %10311 = vmatmul.mubr.f32.gmra.mxu1 %v5255_v35  ;;  %v17734_v22 = vand.u32 4294901760, %v15202_v60  ;;  %v17745_v35 = vld [vmem:[#allocation153_spill] sm:$0xff] }
 0x548   : > { %10328 = vmatprep.subr.mxu0 %v17732_v39  ;;  %10392 = vmatprep.subr.mxu1 %v17704_v51 }
 0x549   : > { %10251 = vmatprep.mubr.f32.mxu0 %v15156_v43  ;;  %10313 = vmatprep.mubr.f32.mxu1 %v5265_v59  ;;  %v17735_v43 = vld [vmem:[#allocation102_spill] sm:$0xff]  ;;  %v17749_v59 = vld [vmem:[#allocation123_spill] sm:$0xff] }
 0x54a   : > { %10329 = vmatpush3.msra.mxu0 %v17732_v39  ;;  %10393 = vmatpush3.msra.mxu1 %v17704_v51  ;;  %v17743_v51 = vld [vmem:[#allocation115_spill] sm:$0xff] }
 0x54b   : > { %10330 = vmatprep.subr.mxu0 %v17733_v25  ;;  %10394 = vmatprep.subr.mxu1 %v17707_v12 }
 0x54c   : > { %10331 = vmatpush3.msra.mxu0 %v17733_v25  ;;  %10395 = vmatpush3.msra.mxu1 %v17707_v12  ;;  %v17748_v12 = vand.u32 4294901760, %v15312_v11 }
 0x54d   : > { %10252 = vmatmul.mubr.f32.gmra.mxu0 %v15144_v26  ;;  %10314 = vmatmul.mubr.f32.gmra.mxu1 %v17734_v22  ;;  %v17738_v26 = vand.u32 4294901760, %v15241_v34  ;;  %v15589_v22 = vand.u32 4294901760, %v6527_v1 }
 0x54e   : > { %10332 = vmatprep.subr.mxu0 %v17735_v43  ;;  %10396 = vmatprep.subr.mxu1 %v17709_v52 }
 0x54f   : > { %10254 = vmatprep.mubr.f32.mxu0 %v15179_v7  ;;  %10316 = vmatprep.mubr.f32.mxu1 %v17736_v14  ;;  %v17741_v7 = vld [vmem:[#allocation112_spill] sm:$0xff]  ;;  %17778 = vst [vmem:[#allocation154_spill] sm:$0xff] %v15589_v22  ;;  %v6526_v14 = vld [vmem:[#allocation13 + $0x30] sm:$0xff] }
 0x550   : > { %10333 = vmatpush3.msra.mxu0 %v17735_v43  ;;  %10397 = vmatpush3.msra.mxu1 %v17709_v52  ;;  %v17750_v52 = vld [vmem:[#allocation121_spill] sm:$0xff] }
 0x551   : > { %10334 = vmatprep.subr.mxu0 %v17737_v48  ;;  %10398 = vmatprep.subr.mxu1 %v17711_v58 }
 0x552   : > { %10335 = vmatpush3.msra.mxu0 %v17737_v48  ;;  %10399 = vmatpush3.msra.mxu1 %v17711_v58  ;;  %v17753_v58 = vld [vmem:[#allocation137_spill] sm:$0xff] }
 0x553   : > { %10255 = vmatmul.mubr.f32.gmra.mxu0 %v15175_v49  ;;  %10317 = vmatmul.mubr.f32.gmra.mxu1 %v17738_v26  ;;  %v17742_v49 = vand.u32 4294901760, %v15273_v30 }
 0x554   : > { %10336 = vmatprep.subr.mxu0 %v17739_v40  ;;  %10400 = vmatprep.subr.mxu1 %v17713_v9 }
 0x555   : > { %10257 = vmatprep.mubr.f32.mxu0 %v15205_v2  ;;  %10319 = vmatprep.mubr.f32.mxu1 %v17740_v55  ;;  %v17747_v2 = vld [vmem:[#allocation111_spill] sm:$0xff]  ;;  %v15602_v55 = vand.u32 4294901760, %v6526_v14 }
 0x556   : > { %10337 = vmatpush3.msra.mxu0 %v17739_v40  ;;  %10401 = vmatpush3.msra.mxu1 %v17713_v9  ;;  %v15600_v40 = vsub.f32 %v6527_v1, %v15589_v22 }
 0x557   : > { %10338 = vmatprep.subr.mxu0 %v17741_v7  ;;  %10402 = vmatprep.subr.mxu1 %v17715_v5  ;;  %17782 = vst [vmem:[#allocation118_spill] sm:$0xff] %v15602_v55 }
 0x558   : > { %10339 = vmatpush3.msra.mxu0 %v17741_v7  ;;  %10403 = vmatpush3.msra.mxu1 %v17715_v5  ;;  %17781 = vst [vmem:[#allocation151_spill] sm:$0xff] %v15600_v40 }
 0x559   : > { %10258 = vmatmul.mubr.f32.gmra.mxu0 %v15202_v60  ;;  %10320 = vmatmul.mubr.f32.gmra.mxu1 %v17742_v49  ;;  %v17746_v60 = vand.u32 4294901760, %v15303_v16  ;;  %v6525_v49 = vld [vmem:[#allocation13 + $0x28] sm:$0xff] }
 0x55a   : > { %10340 = vmatprep.subr.mxu0 %v17743_v51  ;;  %10404 = vmatprep.subr.mxu1 %v17717_v47 }
 0x55b   : > { %10260 = vmatprep.mubr.f32.mxu0 %v15230_v56  ;;  %10322 = vmatprep.mubr.f32.mxu1 %v17744_v37  ;;  %v17752_v56 = vld [vmem:[#allocation129_spill] sm:$0xff]  ;;  %v15611_v37 = vand.u32 4294901760, %v15600_v40 }
 0x55c   : > { %10341 = vmatpush3.msra.mxu0 %v17743_v51  ;;  %10405 = vmatpush3.msra.mxu1 %v17717_v47 }
 0x55d   : > { %10342 = vmatprep.subr.mxu0 %v17745_v35  ;;  %10406 = vmatprep.subr.mxu1 %v17719_v27  ;;  %17783 = vst [vmem:[#allocation142_spill] sm:$0xff] %v15611_v37 }
 0x55e   : > { %10343 = vmatpush3.msra.mxu0 %v17745_v35  ;;  %10407 = vmatpush3.msra.mxu1 %v17719_v27  ;;  %v15614_v35 = vsub.f32 %v6526_v14, %v15602_v55  ;;  %v6520_v14 = vld [vmem:[#allocation13] sm:$0xff] }
 0x55f   : > { %10261 = vmatmul.mubr.f32.gmra.mxu0 %v15241_v34  ;;  %10323 = vmatmul.mubr.f32.gmra.mxu1 %v17746_v60  ;;  %v17754_v34 = vld [vmem:[#allocation98_spill] sm:$0xff]  ;;  %v15616_v60 = vand.u32 4294901760, %v6525_v49 }
 0x560   : > { %10344 = vmatprep.subr.mxu0 %v17747_v2  ;;  %10408 = vmatprep.subr.mxu1 %v17721_v38  ;;  %17784 = vst [vmem:[#allocation114_spill] sm:$0xff] %v15614_v35 }
 0x561   : > { %10263 = vmatprep.mubr.f32.mxu0 %v15255_v8  ;;  %10325 = vmatprep.mubr.f32.mxu1 %v17748_v12  ;;  %v17755_v8 = vld [vmem:[#allocation107_spill] sm:$0xff]  ;;  %17785 = vst [vmem:[#allocation147_spill] sm:$0xff] %v15616_v60  ;;  %v6524_v12 = vld [vmem:[#allocation13 + $0x20] sm:$0xff] }
 0x562   : > { %10345 = vmatpush3.msra.mxu0 %v17747_v2  ;;  %10409 = vmatpush3.msra.mxu1 %v17721_v38  ;;  %v6531_v38 = vld [vmem:[#allocation13 + $0x58] sm:$0xff] }
 0x563   : > { %10346 = vmatprep.subr.mxu0 %v17749_v59  ;;  %10410 = vmatprep.subr.mxu1 %v17723_v15  ;;  %v15545_v47 = vand.u32 4294901760, %v6531_v38 }
 0x564   : > { %10347 = vmatpush3.msra.mxu0 %v17749_v59  ;;  %10411 = vmatpush3.msra.mxu1 %v17723_v15 }
 0x565   : > { %10264 = vmatmul.mubr.f32.gmra.mxu0 %v15273_v30  ;;  %10326 = vmatmul.mubr.f32.gmra.mxu1 %v5355_v0  ;;  %17767 = vst [vmem:[#allocation140_spill] sm:$0xff] %v15545_v47  ;;  %v15555_v33 = vsub.f32 %v6531_v38, %v15545_v47  ;;  %v6528_v0 = vld [vmem:[#allocation13 + $0x40] sm:$0xff] }
 0x566   : > { %10348 = vmatprep.subr.mxu0 %v17750_v52  ;;  %10412 = vmatprep.subr.mxu1 %v17725_v50  ;;  %v15578_v29 = vand.u32 4294901760, %v6528_v0 }
 0x567   : > { %10266 = vmatprep.mubr.f32.mxu0 %v15283_v20  ;;  %10349 = vmatpush3.msra.mxu0 %v17750_v52  ;;  %17769 = vst [vmem:[#allocation145_spill] sm:$0xff] %v15555_v33  ;;  %v15564_v62 = vand.u32 4294901760, %v15555_v33  ;;  %v6837_v52 = vsub.f32 %v15600_v40, %v15611_v37 }
 0x568   : > { %10413 = vmatpush3.msra.mxu1 %v17725_v50  ;;  %10416 = vmatprep.mubr.f32.mxu1 %v15131_v46  ;;  %17775 = vst [vmem:[#allocation150_spill] sm:$0xff] %v15578_v29  ;;  %v15587_v25 = vsub.f32 %v6528_v0, %v15578_v29 }
 0x569   : > { %10350 = vmatprep.subr.mxu0 %v17751_v53  ;;  %10414 = vmatprep.subr.mxu1 %v17727_v13  ;;  %17771 = vst [vmem:[#allocation146_spill] sm:$0xff] %v15564_v62 }
 0x56a   : > { %10351 = vmatpush3.msra.mxu0 %v17751_v53  ;;  %10415 = vmatpush3.msra.mxu1 %v17727_v13  ;;  %v6809_v13 = vsub.f32 %v15555_v33, %v15564_v62  ;;  %17777 = vst [vmem:[#allocation148_spill] sm:$0xff] %v15587_v25  ;;  %v15597_v26 = vand.u32 4294901760, %v15587_v25  ;;  %v15623_v53 = vand.u32 4294901760, %v15614_v35 }
 0x56b   : > { %10267 = vmatmul.mubr.f32.gmra.mxu0 %v15303_v16  ;;  %10352 = vmatprep.subr.mxu0 %v17752_v56 }
 0x56c   : > { %10417 = vmatmul.mubr.f32.vlgmr.msra.gmra.mxu1 %v15125_v32  ;;  %10269 = vmatprep.mubr.f32.mxu0 %v15312_v11  ;;  %v6529_v11 = vld [vmem:[#allocation13 + $0x48] sm:$0xff]  ;;  %v6810_v24 = vand.u32 4294901760, %v6809_v13  ;;  %17780 = vst [vmem:[#allocation103_spill] sm:$0xff] %v15597_v26  ;;  %v6830_v51 = vsub.f32 %v15587_v25, %v15597_v26  ;;  %17786 = vst [vmem:[#allocation127_spill] sm:$0xff] %v15623_v53  ;;  %v15747_v26 = vld [vmem:[%s17679_s22 + $0x1] ss:$0 sm:$0xff] }
 0x56d   : > { %10353 = vmatpush3.msra.mxu0 %v17752_v56  ;;  %10419 = vmatprep.mubr.f32.mxu1 %v15146_v6  ;;  %v15570_v18 = vand.u32 4294901760, %v6529_v11  ;;  %v15626_v56 = vsub.f32 %v6525_v49, %v15616_v60 }
 0x56e   : > { %10354 = vmatprep.subr.mxu0 %v17753_v58  ;;  %v6831_v59 = vand.u32 4294901760, %v6830_v51  ;;  %v15684_v51 = vand.u32 4294901760, %v6520_v14 }
 0x56f   : > { %10355 = vmatpush3.msra.mxu0 %v17753_v58  ;;  %17773 = vst [vmem:[#allocation141_spill] sm:$0xff] %v15570_v18  ;;  %v15581_v10 = vsub.f32 %v6529_v11, %v15570_v18  ;;  %17787 = vst [vmem:[#allocation104_spill] sm:$0xff] %v15626_v56 }
 0x570   : > { %10270 = vmatmul.mubr.f32.gmra.mxu0 %v15329_v23  ;;  %10356 = vmatprep.subr.mxu0 %v17754_v34  ;;  %v6530_v23 = vld [vmem:[#allocation13 + $0x50] sm:$0xff]  ;;  %17800 = vst [vmem:[#allocation96_spill] sm:$0xff] %v15684_v51 }
 0x571   : > { %10420 = vmatmul.mubr.f32.gmra.mxu1 %v15138_v54  ;;  %10357 = vmatpush3.msra.mxu0 %v17754_v34  ;;  %17776 = vst [vmem:[#allocation99_spill] sm:$0xff] %v15581_v10  ;;  %v15593_v43 = vand.u32 4294901760, %v15581_v10  ;;  %v15631_v34 = vand.u32 4294901760, %v6524_v12 }
 0x572   : > { %10360 = vmatprep.mubr.f32.mxu0 %v15131_v46  ;;  %10422 = vmatprep.mubr.f32.mxu1 %v15169_v36 }
 0x573   : > { %10358 = vmatprep.subr.mxu0 %v17755_v8  ;;  %17779 = vst [vmem:[#allocation108_spill] sm:$0xff] %v15593_v43  ;;  %v6823_v7 = vsub.f32 %v15581_v10, %v15593_v43  ;;  %17788 = vst [vmem:[#allocation130_spill] sm:$0xff] %v15631_v34 }
 0x574   : > { %10359 = vmatpush3.msra.mxu0 %v17755_v8  ;;  %v6523_v8 = vld [vmem:[#allocation13 + $0x18] sm:$0xff] }
 0x575   : > { %10361 = vmatmul.mubr.f32.vlgmr.msra.gmra.mxu0 %v15125_v32  ;;  %10423 = vmatmul.mubr.f32.gmra.mxu1 %v15158_v57  ;;  %v6535_v32 = vld [vmem:[#allocation13 + $0x78] sm:$0xff]  ;;  %v6824_v2 = vand.u32 4294901760, %v6823_v7 }
 0x576   : > { %10363 = vmatprep.mubr.f32.mxu0 %v15146_v6  ;;  %10425 = vmatprep.mubr.f32.mxu1 %v15193_v41  ;;  %v15506_v46 = vand.u32 4294901760, %v6535_v32 }
 0x578   : > { %17756 = vst [vmem:[#allocation139_spill] sm:$0xff] %v15506_v46  ;;  %v15509_v6 = vsub.f32 %v6535_v32, %v15506_v46  ;;  %10440 = vmatprep.subr.mxu0 %v15506_v46  ;;  %v6838_v32 = vand.u32 4294901760, %v6837_v52 }
 0x579   : > { %10364 = vmatmul.mubr.f32.gmra.mxu0 %v15138_v54  ;;  %10426 = vmatmul.mubr.f32.gmra.mxu1 %v15181_v17  ;;  %v6534_v54 = vld [vmem:[#allocation13 + $0x70] sm:$0xff] }
 0x57a   : > { %10366 = vmatprep.mubr.f32.mxu0 %v15169_v36  ;;  %10428 = vmatprep.mubr.f32.mxu1 %v15219_v31  ;;  %17757 = vst [vmem:[#allocation110_spill] sm:$0xff] %v15509_v6  ;;  %v15516_v36 = vand.u32 4294901760, %v15509_v6 }
 0x57b   : > { %10441 = vmatpush3.msra.mxu0 %v15506_v46 }
 0x57c   : > { %17759 = vst [vmem:[#allocation119_spill] sm:$0xff] %v15516_v36 }
 0x57d   : > { %10367 = vmatmul.mubr.f32.gmra.mxu0 %v15158_v57  ;;  %10429 = vmatmul.mubr.f32.gmra.mxu1 %v15217_v3  ;;  %v15511_v57 = vand.u32 4294901760, %v6534_v54 }
 0x57e   : > { %10369 = vmatprep.mubr.f32.mxu0 %v15193_v41  ;;  %10431 = vmatprep.mubr.f32.mxu1 %v15243_v42  ;;  %v6533_v41 = vld [vmem:[#allocation13 + $0x68] sm:$0xff] }
 0x57f   : > { %17758 = vst [vmem:[#allocation116_spill] sm:$0xff] %v15511_v57  ;;  %10442 = vmatprep.subr.mxu0 %v15511_v57 }
 0x580   : > { %10443 = vmatpush3.msra.mxu0 %v15511_v57 }
 0x581   : > { %10370 = vmatmul.mubr.f32.gmra.mxu0 %v15181_v17  ;;  %10432 = vmatmul.mubr.f32.gmra.mxu1 %v15252_v21  ;;  %v15519_v17 = vsub.f32 %v6534_v54, %v15511_v57  ;;  %v6844_v54 = vsub.f32 %v15614_v35, %v15623_v53 }
 0x582   : > { %10372 = vmatprep.mubr.f32.mxu0 %v15219_v31  ;;  %10434 = vmatprep.mubr.f32.mxu1 %v15262_v4  ;;  %v6781_v31 = vsub.f32 %v15509_v6, %v15516_v36 }
 0x583   : > { %17760 = vst [vmem:[#allocation134_spill] sm:$0xff] %v15519_v17  ;;  %v6845_v38 = vand.u32 4294901760, %v6844_v54  ;;  %v15698_v54 = vsub.f32 %v6520_v14, %v15684_v51 }
 0x584   : > { %v6782_v5 = vand.u32 4294901760, %v6781_v31  ;;  %v15639_v31 = vand.u32 4294901760, %v6523_v8 }
 0x585   : > { %10373 = vmatmul.mubr.f32.gmra.mxu0 %v15217_v3  ;;  %10435 = vmatmul.mubr.f32.gmra.mxu1 %v15280_v61  ;;  %v15522_v3 = vand.u32 4294901760, %v6533_v41  ;;  %17802 = vst [vmem:[#allocation152_spill] sm:$0xff] %v15698_v54 }
 0x586   : > { %10375 = vmatprep.mubr.f32.mxu0 %v15243_v42  ;;  %10437 = vmatprep.mubr.f32.mxu1 %v15292_v44  ;;  %v15528_v42 = vand.u32 4294901760, %v15519_v17  ;;  %17790 = vst [vmem:[#allocation126_spill] sm:$0xff] %v15639_v31 }
 0x587   : > { %17761 = vst [vmem:[#allocation113_spill] sm:$0xff] %v15522_v3  ;;  %v15531_v9 = vsub.f32 %v6533_v41, %v15522_v3  ;;  %10444 = vmatprep.subr.mxu0 %v15522_v3  ;;  %10496 = vmatprep.subr.mxu1 %v6782_v5  ;;  %v15637_v41 = vand.u32 4294901760, %v15626_v56 }
 0x588   : > { %17762 = vst [vmem:[#allocation124_spill] sm:$0xff] %v15528_v42  ;;  %v6788_v30 = vsub.f32 %v15519_v17, %v15528_v42  ;;  %10445 = vmatpush3.msra.mxu0 %v15522_v3  ;;  %10497 = vmatpush3.msra.mxu1 %v6782_v5  ;;  %v15645_v5 = vsub.f32 %v6524_v12, %v15631_v34 }
 0x589   : > { %10376 = vmatmul.mubr.f32.gmra.mxu0 %v15252_v21  ;;  %10438 = vmatmul.mubr.f32.gmra.mxu1 %v15309_v45  ;;  %v6532_v21 = vld [vmem:[#allocation13 + $0x60] sm:$0xff]  ;;  %17763 = vst [vmem:[#allocation138_spill] sm:$0xff] %v15531_v9  ;;  %17789 = vst [vmem:[#allocation120_spill] sm:$0xff] %v15637_v41 }
 0x58a   : > { %10378 = vmatprep.mubr.f32.mxu0 %v15262_v4  ;;  %v15533_v4 = vand.u32 4294901760, %v6532_v21  ;;  %17791 = vst [vmem:[#allocation117_spill] sm:$0xff] %v15645_v5 }
 0x58c   : > { %17764 = vst [vmem:[#allocation125_spill] sm:$0xff] %v15533_v4  ;;  %v15543_v20 = vsub.f32 %v6532_v21, %v15533_v4  ;;  %10446 = vmatprep.subr.mxu0 %v15533_v4 }
 0x58d   : > { %10379 = vmatmul.mubr.f32.gmra.mxu0 %v15280_v61  ;;  %v15540_v61 = vand.u32 4294901760, %v15531_v9 }
 0x58e   : > { %10381 = vmatprep.mubr.f32.mxu0 %v15292_v44  ;;  %17766 = vst [vmem:[#allocation131_spill] sm:$0xff] %v15543_v20  ;;  %v6789_v44 = vand.u32 4294901760, %v6788_v30  ;;  %10447 = vmatpush3.msra.mxu0 %v15533_v4  ;;  %v15552_v16 = vand.u32 4294901760, %v15543_v20  ;;  %v6522_v30 = vld [vmem:[#allocation13 + $0x10] sm:$0xff] }
 0x58f   : > { %17765 = vst [vmem:[#allocation128_spill] sm:$0xff] %v15540_v61  ;;  %v6795_v27 = vsub.f32 %v15531_v9, %v15540_v61  ;;  %10448 = vmatprep.subr.mxu0 %v15545_v47 }
 0x590   : > { %17768 = vst [vmem:[#allocation144_spill] sm:$0xff] %v15552_v16  ;;  %10498 = vmatprep.subr.mxu1 %v6789_v44  ;;  %10449 = vmatpush3.msra.mxu0 %v15545_v47  ;;  %v6802_v15 = vsub.f32 %v15543_v20, %v15552_v16 }
 0x591   : > { %10382 = vmatmul.mubr.f32.gmra.mxu0 %v15309_v45  ;;  %v15557_v45 = vand.u32 4294901760, %v6530_v23  ;;  %10499 = vmatpush3.msra.mxu1 %v6789_v44  ;;  %v6796_v28 = vand.u32 4294901760, %v6795_v27  ;;  %v6851_v44 = vsub.f32 %v15626_v56, %v15637_v41  ;;  %v15653_v27 = vand.u32 4294901760, %v6522_v30 }
 0x592   : > { %v6803_v19 = vand.u32 4294901760, %v6802_v15  ;;  %v6521_v15 = vld [vmem:[#allocation13 + $0x8] sm:$0xff] }
 0x593   : > { %17770 = vst [vmem:[#allocation106_spill] sm:$0xff] %v15557_v45  ;;  %v15567_v50 = vsub.f32 %v6530_v23, %v15557_v45  ;;  %10450 = vmatprep.subr.mxu0 %v15557_v45  ;;  %10500 = vmatprep.subr.mxu1 %v6796_v28  ;;  %v15651_v23 = vsub.f32 %v6523_v8, %v15639_v31  ;;  %17793 = vst [vmem:[#allocation122_spill] sm:$0xff] %v15653_v27  ;;  %v6852_v0 = vand.u32 4294901760, %v6851_v44 }
 0x594   : > { %10451 = vmatpush3.msra.mxu0 %v15557_v45  ;;  %10501 = vmatpush3.msra.mxu1 %v6796_v28  ;;  %v15659_v28 = vand.u32 4294901760, %v15645_v5  ;;  %v15666_v13 = vsub.f32 %v6522_v30, %v15653_v27  ;;  %v15668_v1 = vand.u32 4294901760, %v6521_v15 }
 0x595   : > { %17772 = vst [vmem:[#allocation143_spill] sm:$0xff] %v15567_v50  ;;  %v15576_v63 = vand.u32 4294901760, %v15567_v50  ;;  %10452 = vmatprep.subr.mxu0 %v15570_v18  ;;  %10502 = vmatprep.subr.mxu1 %v6803_v19  ;;  %17792 = vst [vmem:[#allocation136_spill] sm:$0xff] %v15651_v23 }
 0x596   : > { %10453 = vmatpush3.msra.mxu0 %v15570_v18  ;;  %10503 = vmatpush3.msra.mxu1 %v6803_v19  ;;  %17794 = vst [vmem:[#allocation97_spill] sm:$0xff] %v15659_v28  ;;  %v15663_v19 = vand.u32 4294901760, %v15651_v23  ;;  %17796 = vst [vmem:[#allocation132_spill] sm:$0xff] %v15666_v13  ;;  %v15679_v7 = vand.u32 4294901760, %v15666_v13  ;;  %v15682_v49 = vsub.f32 %v6521_v15, %v15668_v1 }
 0x597   : > { %17774 = vst [vmem:[#allocation105_spill] sm:$0xff] %v15576_v63  ;;  %v6816_v39 = vsub.f32 %v15567_v50, %v15576_v63  ;;  %10454 = vmatprep.subr.mxu0 %v15578_v29  ;;  %10504 = vmatprep.subr.mxu1 %v6810_v24  ;;  %17797 = vst [vmem:[#allocation109_spill] sm:$0xff] %v15668_v1 }
 0x598   : > { %10455 = vmatpush3.msra.mxu0 %v15578_v29  ;;  %10505 = vmatpush3.msra.mxu1 %v6810_v24  ;;  %17795 = vst [vmem:[#allocation133_spill] sm:$0xff] %v15663_v19  ;;  %17798 = vst [vmem:[#allocation101_spill] sm:$0xff] %v15679_v7  ;;  %v6872_v8 = vsub.f32 %v15666_v13, %v15679_v7 }
 0x599   : > { %v6817_v48 = vand.u32 4294901760, %v6816_v39  ;;  %10456 = vmatprep.subr.mxu0 %v15589_v22  ;;  %v6858_v39 = vsub.f32 %v15645_v5, %v15659_v28  ;;  %17799 = vst [vmem:[#allocation100_spill] sm:$0xff] %v15682_v49 }
 0x59a   : > { %10457 = vmatpush3.msra.mxu0 %v15589_v22  ;;  %v6873_v44 = vand.u32 4294901760, %v6872_v8 }
 0x59b   : > { %10506 = vmatprep.subr.mxu1 %v6817_v48  ;;  %10458 = vmatprep.subr.mxu0 %v15602_v55  ;;  %v6859_v12 = vand.u32 4294901760, %v6858_v39 }
 0x59c   : > { %10507 = vmatpush3.msra.mxu1 %v6817_v48  ;;  %10459 = vmatpush3.msra.mxu0 %v15602_v55  ;;  %v6865_v48 = vsub.f32 %v15651_v23, %v15663_v19 }
 0x59d   : > { %10508 = vmatprep.subr.mxu1 %v6824_v2  ;;  %10460 = vmatprep.subr.mxu0 %v15616_v60 }
 0x59e   : > { %10509 = vmatpush3.msra.mxu1 %v6824_v2  ;;  %10461 = vmatpush3.msra.mxu0 %v15616_v60  ;;  %v6866_v52 = vand.u32 4294901760, %v6865_v48 }
 0x59f   : > { %10510 = vmatprep.subr.mxu1 %v6831_v59  ;;  %10462 = vmatprep.subr.mxu0 %v15631_v34 }
 0x5a0   : > { %10511 = vmatpush3.msra.mxu1 %v6831_v59  ;;  %10463 = vmatpush3.msra.mxu0 %v15631_v34 }
 0x5a1   : > { %10512 = vmatprep.subr.mxu1 %v6838_v32  ;;  %10464 = vmatprep.subr.mxu0 %v15639_v31 }
 0x5a2   : > { %10513 = vmatpush3.msra.mxu1 %v6838_v32  ;;  %10465 = vmatpush3.msra.mxu0 %v15639_v31  ;;  %v15695_v32 = vand.u32 4294901760, %v15682_v49 }
 0x5a3   : > { %10514 = vmatprep.subr.mxu1 %v6845_v38  ;;  %10466 = vmatprep.subr.mxu0 %v15653_v27 }
 0x5a4   : > { %10515 = vmatpush3.msra.mxu1 %v6845_v38  ;;  %10467 = vmatpush3.msra.mxu0 %v15653_v27  ;;  %17801 = vst [vmem:[#allocation102_spill] sm:$0xff] %v15695_v32  ;;  %v6879_v15 = vsub.f32 %v15682_v49, %v15695_v32 }
 0x5a5   : > { %10516 = vmatprep.subr.mxu1 %v6852_v0  ;;  %10468 = vmatprep.subr.mxu0 %v15668_v1 }
 0x5a6   : > { %10517 = vmatpush3.msra.mxu1 %v6852_v0  ;;  %10469 = vmatpush3.msra.mxu0 %v15668_v1  ;;  %v15709_v0 = vand.u32 4294901760, %v15698_v54  ;;  %v6880_v39 = vand.u32 4294901760, %v6879_v15 }
 0x5a7   : > { %10518 = vmatprep.subr.mxu1 %v6859_v12  ;;  %10470 = vmatprep.subr.mxu0 %v15684_v51 }
 0x5a8   : > { %10519 = vmatpush3.msra.mxu1 %v6859_v12  ;;  %17803 = vst [vmem:[#allocation149_spill] sm:$0xff] %v15709_v0  ;;  %10471 = vmatpush3.msra.mxu0 %v15684_v51  ;;  %v6886_v14 = vsub.f32 %v15698_v54, %v15709_v0 }
 0x5a9   : > { %10520 = vmatprep.subr.mxu1 %v6866_v52  ;;  %10552 = vmatprep.subr.mxu0 %v15509_v6 }
 0x5aa   : > { %10521 = vmatpush3.msra.mxu1 %v6866_v52  ;;  %v6887_v8 = vand.u32 4294901760, %v6886_v14 }
 0x5ab   : > { %10522 = vmatprep.subr.mxu1 %v6873_v44 }
 0x5ac   : > { %10523 = vmatpush3.msra.mxu1 %v6873_v44 }
 0x5ad   : > { %10524 = vmatprep.subr.mxu1 %v6880_v39 }
 0x5ae   : > { %10525 = vmatpush3.msra.mxu1 %v6880_v39 }
 0x5af   : > { %10526 = vmatprep.subr.mxu1 %v6887_v8 }
 0x5b0   : > { %10527 = vmatpush3.msra.mxu1 %v6887_v8 }
 0x5b1   : > { %10608 = vmatprep.subr.mxu1 %v15506_v46 }
 0x5cf   : > { %v15629_v58 = vpop.f32.mrf.mxu1 }
 0x5d1   : > { %v15642_v21 = vpop.f32.mrf.mxu1 }
 0x5d3   : > { %v15656_v11 = vpop.f32.mrf.mxu1 }
 0x5d5   : > { %v15671_v24 = vpop.f32.mrf.mxu1 }
 0x5d7   : > { %v15687_v2 = vpop.f32.mrf.mxu1 }
 0x5d8   : > { %v15690_v59 = vpop.f32.mrf.mxu0 }
 0x5d9   : > { %v15701_v30 = vpop.f32.mrf.mxu1  ;;  %v5220_v17 = vadd.f32 %v15690_v59, %v15747_v26 }
 0x5da   : > { %v15704_v38 = vpop.f32.mrf.mxu0 }
 0x5db   : > { %v5210_v47 = vadd.f32 %v15747_v26, %v15704_v38  ;;  %v5517_v46 = vadd.f32 %v15629_v58, %v5220_v17 }
 0x5dd   : > { %v15715_v48 = vpop.f32.mrf.mxu0  ;;  %v15717_v12 = vpop.f32.mrf.mxu1  ;;  %v5511_v59 = vadd.f32 %v15642_v21, %v5210_v47 }
 0x5de   : > { %v5240_v57 = vadd.f32 %v15715_v48, %v15747_v26 }
 0x5df   : > { %v15719_v32 = vpop.f32.mrf.mxu0  ;;  %v15721_v7 = vpop.f32.mrf.mxu1 }
 0x5e3   : > { %v15723_v52 = vpop.f32.mrf.mxu0  ;;  %v15725_v15 = vpop.f32.mrf.mxu1 }
 0x5e4   : > { %v5260_v38 = vadd.f32 %v15723_v52, %v15747_v26 }
 0x5e5   : > { %v15728_v0 = vpop.f32.mrf.mxu0  ;;  %v15730_v19 = vpop.f32.mrf.mxu1 }
 0x5e6   : > { %v5250_v17 = vadd.f32 %v15747_v26, %v15728_v0  ;;  %v5541_v21 = vadd.f32 %v15687_v2, %v5260_v38 }
 0x5e8   : > { %v5535_v0 = vadd.f32 %v15701_v30, %v5250_v17 }
 0x5e9   : > { %v15732_v44 = vpop.f32.mrf.mxu0  ;;  %v10209_v14 = vpop.f32.mrf.mxu1 }
 0x5ea   : > { %v5280_v47 = vadd.f32 %v15732_v44, %v15747_v26 }
 0x5eb   : > { %v15734_v28 = vpop.f32.mrf.mxu0  ;;  %v15736_v41 = vpop.f32.mrf.mxu1 }
 0x5ec   : > { %v5553_v44 = vadd.f32 %v15717_v12, %v5280_v47 }
 0x5ef   : > { %v15738_v39 = vpop.f32.mrf.mxu0  ;;  %v10212_v8 = vpop.f32.mrf.mxu1 }
 0x5f1   : > { %v15740_v53 = vpop.f32.mrf.mxu0  ;;  %v15742_v37 = vpop.f32.mrf.mxu1 }
 0x5f5   : > { %v10153_v43 = vpop.f32.mrf.mxu0  ;;  %v10215_v63 = vpop.f32.mrf.mxu1 }
 0x5f6   : > { %v5320_v62 = vadd.f32 %v10153_v43, %v15747_v26 }
 0x5f7   : > { %v15750_v16 = vpop.f32.mrf.mxu0  ;;  %v5594_v61 = vpop.f32.mrf.mxu1 }
 0x5f8   : > { %v15752_v42 = vadd.f32 %v10209_v14, %v5320_v62 }
 0x5fb   : > { %v10156_v36 = vpop.f32.mrf.mxu0 }
 0x5fc   : > { %v5340_v54 = vadd.f32 %v10156_v36, %v15747_v26  ;;  %v10306_v49 = vpop.f32.mrf.mxu1 }
 0x5fd   : > { %v15755_v13 = vpop.f32.mrf.mxu0 }
 0x5fe   : > { %v5898_v23 = vpop.f32.mrf.mxu1  ;;  %v15757_v51 = vadd.f32 %v10212_v8, %v5340_v54 }
 0x601   : > { %v10159_v5 = vpop.f32.mrf.mxu0 }
 0x602   : > { %v5360_v1 = vadd.f32 %v10159_v5, %v15747_v26  ;;  %v15760_v56 = vpop.f32.mrf.mxu1 }
 0x603   : > { %v5349_v43 = vpop.f32.mrf.mxu0 }
 0x604   : > { %v5350_v27 = vadd.f32 %v15747_v26, %v5349_v43  ;;  %v15763_v35 = vpop.f32.mrf.mxu1  ;;  %v15765_v62 = vadd.f32 %v10215_v63, %v5360_v1 }
 0x606   : > { %17804 = vst [vmem:[#allocation112_spill] sm:$0xff] %v15765_v62  ;;  %v15767_v14 = vadd.f32 %v5594_v61, %v5350_v27 }
 0x607   : > { %v10250_v36 = vpop.f32.mrf.mxu0  ;;  %v15769_v31 = vpop.f32.mrf.mxu1 }
 0x608   : > { %17805 = vst [vmem:[#allocation115_spill] sm:$0xff] %v15767_v14 }
 0x609   : > { %v5704_v40 = vpop.f32.mrf.mxu0  ;;  %v15771_v54 = vpop.f32.mrf.mxu1 }
 0x60a   : > { %v5705_v62 = vadd.f32 %v5704_v40, %v5511_v59 }
 0x60d   : > { %v10253_v8 = vpop.f32.mrf.mxu0  ;;  %v15773_v34 = vpop.f32.mrf.mxu1 }
 0x60f   : > { %v5718_v5 = vpop.f32.mrf.mxu0  ;;  %v15775_v25 = vpop.f32.mrf.mxu1 }
 0x613   : > { %v10256_v60 = vpop.f32.mrf.mxu0  ;;  %v15777_v43 = vpop.f32.mrf.mxu1 }
 0x615   : > { %v5732_v10 = vpop.f32.mrf.mxu0  ;;  %v15779_v63 = vpop.f32.mrf.mxu1 }
 0x616   : > { %v5733_v2 = vadd.f32 %v5732_v10, %v5535_v0 }
 0x619   : > { %v10259_v61 = vpop.f32.mrf.mxu0  ;;  %v15781_v27 = vpop.f32.mrf.mxu1 }
 0x61a   : > { %v5754_v38 = vadd.f32 %v10259_v61, %v5553_v44 }
 0x61b   : > { %v15783_v1 = vpop.f32.mrf.mxu0  ;;  %v15785_v55 = vpop.f32.mrf.mxu1 }
 0x61c   : > { %17806 = vst [vmem:[#allocation153_spill] sm:$0xff] %v15785_v55 }
 0x61f   : > { %v15787_v50 = vpop.f32.mrf.mxu0  ;;  %v15789_v22 = vpop.f32.mrf.mxu1 }
 0x620   : > { %17807 = vst [vmem:[#allocation111_spill] sm:$0xff] %v15789_v22 }
 0x621   : > { %v15791_v33 = vpop.f32.mrf.mxu0  ;;  %v15793_v29 = vpop.f32.mrf.mxu1 }
 0x622   : > { %17808 = vst [vmem:[#allocation123_spill] sm:$0xff] %v15793_v29  ;;  %v5712_v29 = vadd.f32 %v10250_v36, %v5517_v46 }
 0x625   : > { %v15795_v20 = vpop.f32.mrf.mxu0  ;;  %v15797_v18 = vpop.f32.mrf.mxu1 }
 0x626   : > { %17809 = vst [vmem:[#allocation121_spill] sm:$0xff] %v15797_v18 }
 0x627   : > { %v15799_v9 = vpop.f32.mrf.mxu0  ;;  %v15801_v45 = vpop.f32.mrf.mxu1 }
 0x628   : > { %17810 = vst [vmem:[#allocation135_spill] sm:$0xff] %v15801_v45  ;;  %v5230_v45 = vadd.f32 %v15747_v26, %v15719_v32  ;;  %v5907_v32 = vadd.f32 %v10306_v49, %v5712_v29  ;;  %v5300_v49 = vadd.f32 %v15738_v39, %v15747_v26 }
 0x62a   : > { %v5523_v46 = vadd.f32 %v15671_v24, %v5230_v45 }
 0x62b   : > { %v15805_v6 = vpop.f32.mrf.mxu0 }
 0x62c   : > { %v10418_v4 = vpop.f32.mrf.mxu1  ;;  %v5719_v40 = vadd.f32 %v5718_v5, %v5523_v46 }
 0x62d   : > { %v15809_v3 = vpop.f32.mrf.mxu0 }
 0x62e   : > { %17811 = vst [vmem:[#allocation129_spill] sm:$0xff] %v15809_v3  ;;  %v6314_v18 = vpop.f32.mrf.mxu1  ;;  %v5529_v3 = vadd.f32 %v15656_v11, %v5240_v57  ;;  %v5899_v57 = vadd.f32 %v5898_v23, %v5705_v62  ;;  %v5270_v11 = vadd.f32 %v15747_v26, %v15734_v28  ;;  %v5915_v5 = vadd.f32 %v15763_v35, %v5719_v40 }
 0x62f   : > { %v5565_v35 = vadd.f32 %v15725_v15, %v5300_v49  ;;  %v5955_v15 = vadd.f32 %v15773_v34, %v5754_v38  ;;  %v5782_v49 = vadd.f32 %v15795_v20, %v15752_v42  ;;  %v17813_v38 = vld [vmem:[#allocation153_spill] sm:$0xff] }
 0x630   : > { %v15817_v14 = vpop.f32.mrf.mxu0  ;;  %v5726_v48 = vadd.f32 %v10253_v8, %v5529_v3 }
 0x631   : > { %v10421_v22 = vpop.f32.mrf.mxu1 }
 0x632   : > { %v15822_v55 = vpop.f32.mrf.mxu0  ;;  %v5923_v24 = vadd.f32 %v15760_v56, %v5726_v48  ;;  %v5547_v56 = vadd.f32 %v15721_v7, %v5270_v11 }
 0x633   : > { %17812 = vst [vmem:[#allocation137_spill] sm:$0xff] %v15822_v55  ;;  %v6326_v58 = vpop.f32.mrf.mxu1  ;;  %v5740_v55 = vadd.f32 %v10256_v60, %v5541_v21 }
 0x634   : > { %v5747_v46 = vadd.f32 %v15783_v1, %v5547_v56 }
 0x635   : > { %v10362_v52 = vpop.f32.mrf.mxu0  ;;  %v10424_v36 = vpop.f32.mrf.mxu1  ;;  %v5939_v10 = vadd.f32 %v15769_v31, %v5740_v55  ;;  %v5310_v31 = vadd.f32 %v15747_v26, %v15750_v16 }
 0x636   : > { %v6144_v59 = vadd.f32 %v10362_v52, %v5907_v32  ;;  %v5947_v16 = vadd.f32 %v15775_v25, %v5747_v46  ;;  %v5330_v25 = vadd.f32 %v15747_v26, %v15755_v13 }
 0x637   : > { %v6137_v3 = vpop.f32.mrf.mxu0  ;;  %v6338_v8 = vpop.f32.mrf.mxu1  ;;  %v5571_v34 = vadd.f32 %v15736_v41, %v5310_v31  ;;  %v17817_v31 = vld [vmem:[#allocation115_spill] sm:$0xff] }
 0x638   : > { %v15833_v45 = vadd.f32 %v10418_v4, %v6144_v59  ;;  %v6138_v29 = vadd.f32 %v6137_v3, %v5899_v57  ;;  %v5290_v4 = vadd.f32 %v15747_v26, %v15740_v53  ;;  %v5931_v53 = vadd.f32 %v15771_v54, %v5733_v2 }
 0x639   : > { %v10365_v23 = vpop.f32.mrf.mxu0  ;;  %v10427_v62 = vpop.f32.mrf.mxu1  ;;  %v5583_v13 = vadd.f32 %v15742_v37, %v5330_v25 }
 0x63a   : > { %v8161_v28 = vmul.f32 -1.442695, %v15833_v45  ;;  %v15840_v60 = vadd.f32 %v6314_v18, %v6138_v29  ;;  %v6156_v30 = vadd.f32 %v10365_v23, %v5923_v24  ;;  %v5559_v21 = vadd.f32 %v15730_v19, %v5290_v4 }
 0x63b   : > { %v6149_v17 = vpop.f32.mrf.mxu0  ;;  %v6350_v39 = vpop.f32.mrf.mxu1 }
 0x63c   : > { %10986 = vpow2.f32 %v8161_v28  ;;  %v8160_v12 = vmul.f32 -1.442695, %v15840_v60  ;;  %v15848_v48 = vadd.f32 %v10421_v22, %v6156_v30  ;;  %v6150_v18 = vadd.f32 %v6149_v17, %v5915_v5 }
 0x63d   : > { %v10368_v32 = vpop.f32.mrf.mxu0  ;;  %v10430_v47 = vpop.f32.mrf.mxu1  ;;  %v5768_v22 = vadd.f32 %v15787_v50, %v5565_v35  ;;  %v5796_v28 = vadd.f32 %v15805_v6, %v15757_v51  ;;  %v5987_v5 = vadd.f32 %v15781_v27, %v5782_v49 }
 0x63e   : > { %10988 = vpow2.f32 %v8160_v12  ;;  %v8163_v7 = vmul.f32 -1.442695, %v15848_v48  ;;  %v15854_v61 = vadd.f32 %v6326_v58, %v6150_v18  ;;  %v6168_v55 = vadd.f32 %v10368_v32, %v5939_v10  ;;  %v17814_v10 = vld [vmem:[#allocation129_spill] sm:$0xff]  ;;  %v17815_v18 = vld [vmem:[#allocation112_spill] sm:$0xff]  ;;  %v17816_v32 = vld [vmem:[#allocation111_spill] sm:$0xff] }
 0x63f   : > { %v6161_v1 = vpop.f32.mrf.mxu0  ;;  %v6362_v52 = vpop.f32.mrf.mxu1  ;;  %v5761_v58 = vadd.f32 %v15791_v33, %v5559_v21  ;;  %v5971_v29 = vadd.f32 %v15777_v43, %v5768_v22  ;;  %v5789_v12 = vadd.f32 %v17814_v10, %v5583_v13  ;;  %v5810_v46 = vadd.f32 %v15817_v14, %v17815_v18  ;;  %v17818_v22 = vld [vmem:[#allocation137_spill] sm:$0xff] }
 0x640   : > { %10990 = vpow2.f32 %v8163_v7  ;;  %v8162_v54 = vmul.f32 -1.442695, %v15854_v61  ;;  %v15862_v40 = vadd.f32 %v10424_v36, %v6168_v55  ;;  %v6162_v59 = vadd.f32 %v6161_v1, %v5931_v53 }
 0x641   : > { %v10371_v57 = vpop.f32.mrf.mxu0  ;;  %v10433_v11 = vpop.f32.mrf.mxu1  ;;  %v5963_v41 = vadd.f32 %v15779_v63, %v5761_v58  ;;  %v5803_v21 = vadd.f32 %v17818_v22, %v17817_v31 }
 0x642   : > { %10992 = vpow2.f32 %v8162_v54  ;;  %v8165_v50 = vmul.f32 -1.442695, %v15862_v40  ;;  %v15867_v19 = vadd.f32 %v6338_v8, %v6162_v59  ;;  %v6180_v0 = vadd.f32 %v10371_v57, %v5955_v15 }
 0x643   : > { %v6173_v3 = vpop.f32.mrf.mxu0  ;;  %v5775_v8 = vadd.f32 %v15799_v9, %v5571_v34  ;;  %v6374_v2 = vpop.f32.mrf.mxu1  ;;  %v17820_v34 = vld [vmem:[#allocation121_spill] sm:$0xff] }
 0x644   : > { %10994 = vpow2.f32 %v8165_v50  ;;  %v8164_v36 = vmul.f32 -1.442695, %v15867_v19  ;;  %v15872_v24 = vadd.f32 %v10427_v62, %v6180_v0  ;;  %v6174_v33 = vadd.f32 %v6173_v3, %v5947_v16  ;;  %v17819_v16 = vld [vmem:[#allocation123_spill] sm:$0xff] }
 0x645   : > { %v10374_v44 = vpop.f32.mrf.mxu0  ;;  %v10436_v63 = vpop.f32.mrf.mxu1  ;;  %v5979_v56 = vadd.f32 %v17813_v38, %v5775_v8  ;;  %v5995_v50 = vadd.f32 %v17819_v16, %v5789_v12  ;;  %v6019_v3 = vadd.f32 %v17820_v34, %v5810_v46 }
 0x646   : > { %10996 = vpow2.f32 %v8164_v36  ;;  %v8167_v43 = vmul.f32 -1.442695, %v15872_v24  ;;  %v15881_v23 = vadd.f32 %v6350_v39, %v6174_v33  ;;  %v6192_v62 = vadd.f32 %v10374_v44, %v5971_v29 }
 0x647   : > { %v6185_v30 = vpop.f32.mrf.mxu0  ;;  %v6386_v1 = vpop.f32.mrf.mxu1 }
 0x648   : > { %10998 = vpow2.f32 %v8167_v43  ;;  %v8166_v26 = vmul.f32 -1.442695, %v15881_v23  ;;  %v15886_v42 = vadd.f32 %v10430_v47, %v6192_v62  ;;  %v6186_v9 = vadd.f32 %v6185_v30, %v5963_v41 }
 0x649   : > { %v10987_v20 = vpop.eup %10986  ;;  %v10377_v4 = vpop.f32.mrf.mxu0  ;;  %v6003_v47 = vadd.f32 %v17816_v32, %v5796_v28 }
 0x64a   : > { %v6457_v17 = vadd.f32 1.0, %v10987_v20  ;;  %11000 = vpow2.f32 %v8166_v26  ;;  %v8169_v6 = vmul.f32 -1.442695, %v15886_v42  ;;  %v15892_v51 = vadd.f32 %v6362_v52, %v6186_v9  ;;  %v10439_v25 = vpop.f32.mrf.mxu1 }
 0x64b   : > { %v10989_v39 = vpop.eup %10988  ;;  %v6204_v35 = vadd.f32 %v10377_v4, %v5987_v5  ;;  %v6197_v37 = vpop.f32.mrf.mxu0 }
 0x64c   : > { %11002 = vrcp.f32 %v6457_v17  ;;  %v6456_v27 = vadd.f32 1.0, %v10989_v39  ;;  %v8168_v53 = vmul.f32 -1.442695, %v15892_v51  ;;  %v6198_v7 = vadd.f32 %v6197_v37, %v5979_v56  ;;  %v6398_v5 = vpop.f32.mrf.mxu1 }
 0x64d   : > { %v10991_v55 = vpop.eup %10990  ;;  %11004 = vpow2.f32 %v8169_v6  ;;  %v15901_v52 = vadd.f32 %v10433_v11, %v6204_v35  ;;  %v10380_v15 = vpop.f32.mrf.mxu0 }
 0x64e   : > { %11006 = vrcp.f32 %v6456_v27  ;;  %v6459_v14 = vadd.f32 1.0, %v10991_v55  ;;  %v15903_v54 = vadd.f32 %v6374_v2, %v6198_v7  ;;  %v6216_v59 = vadd.f32 %v10380_v15, %v6003_v47  ;;  %v17821_v2 = vld [vmem:[#allocation135_spill] sm:$0xff] }
 0x64f   : > { %v10993_v58 = vpop.eup %10992  ;;  %11008 = vpow2.f32 %v8168_v53  ;;  %v8171_v57 = vmul.f32 -1.442695, %v15901_v52  ;;  %v6209_v0 = vpop.f32.mrf.mxu0  ;;  %v6011_v44 = vadd.f32 %v17821_v2, %v5803_v21 }
 0x650   : > { %11010 = vrcp.f32 %v6459_v14  ;;  %v6458_v29 = vadd.f32 1.0, %v10993_v58  ;;  %v8170_v11 = vmul.f32 -1.442695, %v15903_v54  ;;  %v15909_v36 = vadd.f32 %v10436_v63, %v6216_v59 }
 0x651   : > { %v10995_v33 = vpop.eup %10994  ;;  %11012 = vpow2.f32 %v8171_v57  ;;  %v6210_v49 = vadd.f32 %v6209_v0, %v5995_v50  ;;  %v10383_v8 = vpop.f32.mrf.mxu0 }
 0x652   : > { %11014 = vrcp.f32 %v6458_v29  ;;  %v6461_v41 = vadd.f32 1.0, %v10995_v33  ;;  %v8173_v43 = vmul.f32 -1.442695, %v15909_v36  ;;  %v6228_v62 = vadd.f32 %v10383_v8, %v6019_v3  ;;  %v17822_v3 = vld [vmem:[#allocation139_spill] sm:$0xff]  ;;  %v17823_v33 = vld [vmem:[#allocation116_spill] sm:$0xff] }
 0x653   : > { %v10997_v28 = vpop.eup %10996  ;;  %11016 = vpow2.f32 %v8170_v11  ;;  %v15913_v30 = vadd.f32 %v6386_v1, %v6210_v49  ;;  %v6221_v26 = vpop.f32.mrf.mxu0 }
 0x654   : > { %11018 = vrcp.f32 %v6461_v41  ;;  %v6460_v9 = vadd.f32 1.0, %v10997_v28  ;;  %v15915_v20 = vadd.f32 %v10439_v25, %v6228_v62  ;;  %v6222_v13 = vadd.f32 %v6221_v26, %v6011_v44 }
 0x655   : > { %v10999_v63 = vpop.eup %10998  ;;  %11020 = vpow2.f32 %v8173_v43  ;;  %v8172_v4 = vmul.f32 -1.442695, %v15913_v30  ;;  %v17824_v43 = vld [vmem:[#allocation113_spill] sm:$0xff] }
 0x656   : > { %11022 = vrcp.f32 %v6460_v9  ;;  %v6463_v38 = vadd.f32 1.0, %v10999_v63  ;;  %v8175_v56 = vmul.f32 -1.442695, %v15915_v20  ;;  %v15919_v17 = vadd.f32 %v6398_v5, %v6222_v13 }
 0x657   : > { %v11001_v6 = vpop.eup %11000  ;;  %11024 = vpow2.f32 %v8172_v4 }
 0x658   : > { %11026 = vrcp.f32 %v6463_v38  ;;  %v6462_v39 = vadd.f32 1.0, %v11001_v6  ;;  %v8174_v10 = vmul.f32 -1.442695, %v15919_v17  ;;  %v17825_v38 = vld [vmem:[#allocation125_spill] sm:$0xff] }
 0x659   : > { %v11003_v12 = vpop.eup %11002  ;;  %11028 = vpow2.f32 %v8175_v56 }
 0x65a   : > { %v11005_v18 = vpop.eup %11004  ;;  %v6505_v46 = vmul.f32 %v11003_v12, %v15833_v45  ;;  %11030 = vrcp.f32 %v6462_v39 }
 0x65b   : > { %v11007_v35 = vpop.eup %11006  ;;  %v6465_v37 = vadd.f32 1.0, %v11005_v18  ;;  %11032 = vpow2.f32 %v8174_v10 }
 0x65c   : > { %v11009_v32 = vpop.eup %11008  ;;  %v15923_v47 = vand.u32 4294901760, %v6505_v46  ;;  %v6504_v27 = vmul.f32 %v11007_v35, %v15840_v60 }
 0x65d   : > { %v11011_v53 = vpop.eup %11010  ;;  %11034 = vrcp.f32 %v6465_v37  ;;  %v6464_v7 = vadd.f32 1.0, %v11009_v32 }
 0x65e   : > { %v11013_v55 = vpop.eup %11012  ;;  %v15927_v31 = vsub.f32 %v6505_v46, %v15923_v47  ;;  %v15929_v22 = vand.u32 4294901760, %v6504_v27  ;;  %v6507_v45 = vmul.f32 %v11011_v53, %v15848_v48 }
 0x65f   : > { %v11015_v21 = vpop.eup %11014  ;;  %11036 = vrcp.f32 %v6464_v7  ;;  %v6467_v1 = vadd.f32 1.0, %v11013_v55  ;;  %v17827_v55 = vld [vmem:[#allocation110_spill] sm:$0xff] }
 0x660   : > { %v11017_v15 = vpop.eup %11016  ;;  %v6629_v14 = vand.u32 4294901760, %v15927_v31  ;;  %v15934_v59 = vsub.f32 %v6504_v27, %v15929_v22  ;;  %v15936_v60 = vand.u32 4294901760, %v6507_v45  ;;  %v6506_v58 = vmul.f32 %v11015_v21, %v15854_v61  ;;  %10528 = vmatprep.mubr.f32.mxu1 %v15929_v22 }
 0x661   : > { %v11019_v57 = vpop.eup %11018  ;;  %11038 = vrcp.f32 %v6467_v1  ;;  %v6466_v16 = vadd.f32 1.0, %v11017_v15  ;;  %10529 = vmatmul.mubr.f32.vlgmr.msra.gmra.mxu1 %v15923_v47 }
 0x662   : > { %v11021_v48 = vpop.eup %11020  ;;  %v15942_v50 = vsub.f32 %v6507_v45, %v15936_v60  ;;  %v15944_v0 = vand.u32 4294901760, %v6506_v58  ;;  %v6509_v34 = vmul.f32 %v11019_v57, %v15862_v40  ;;  %10609 = vmatpush3.msra.mxu1 %v17822_v3  ;;  %v6630_v61 = vsub.f32 %v15927_v31, %v6629_v14  ;;  %v17829_v57 = vld [vmem:[#allocation106_spill] sm:$0xff] }
 0x663   : > { %v11023_v29 = vpop.eup %11022  ;;  %11040 = vrcp.f32 %v6466_v16  ;;  %v6469_v11 = vadd.f32 1.0, %v11021_v48  ;;  %10610 = vmatprep.subr.mxu1 %v17823_v33  ;;  %v6619_v25 = vand.u32 4294901760, %v15934_v59 }
 0x664   : > { %v11025_v49 = vpop.eup %11024  ;;  %v15954_v8 = vsub.f32 %v6506_v58, %v15944_v0  ;;  %v15956_v2 = vand.u32 4294901760, %v6509_v34  ;;  %v6508_v40 = vmul.f32 %v11023_v29, %v15867_v19  ;;  %10531 = vmatprep.mubr.f32.mxu1 %v15944_v0  ;;  %10611 = vmatpush3.msra.mxu1 %v17823_v33  ;;  %v6649_v28 = vand.u32 4294901760, %v15942_v50  ;;  %v17828_v58 = vld [vmem:[#allocation134_spill] sm:$0xff] }
 0x665   : > { %v11027_v44 = vpop.eup %11026  ;;  %v6468_v41 = vadd.f32 1.0, %v11025_v49  ;;  %10532 = vmatmul.mubr.f32.gmra.mxu1 %v15936_v60  ;;  %10612 = vmatprep.subr.mxu1 %v17824_v43  ;;  %v6620_v62 = vsub.f32 %v15934_v59, %v6619_v25  ;;  %11042 = vrcp.f32 %v6469_v11  ;;  %v6631_v5 = vand.u32 4294901760, %v6630_v61 }
 0x666   : > { %v11029_v26 = vpop.eup %11028  ;;  %v15967_v9 = vand.u32 4294901760, %v6508_v40  ;;  %v6511_v19 = vmul.f32 %v11027_v44, %v15872_v24  ;;  %10613 = vmatpush3.msra.mxu1 %v17824_v43  ;;  %v6639_v13 = vand.u32 4294901760, %v15954_v8  ;;  %v15973_v4 = vsub.f32 %v6509_v34, %v15956_v2 }
 0x667   : > { %v11031_v63 = vpop.eup %11030  ;;  %11044 = vrcp.f32 %v6468_v41  ;;  %10614 = vmatprep.subr.mxu1 %v17825_v38  ;;  %v6621_v56 = vand.u32 4294901760, %v6620_v62  ;;  %v6471_v18 = vadd.f32 1.0, %v11029_v26  ;;  %v6650_v35 = vsub.f32 %v15942_v50, %v6649_v28  ;;  %v17830_v41 = vld [vmem:[#allocation138_spill] sm:$0xff]  ;;  %v17831_v62 = vld [vmem:[#allocation141_spill] sm:$0xff] }
 0x668   : > { %v11033_v6 = vpop.eup %11032  ;;  %v15977_v39 = vsub.f32 %v6508_v40, %v15967_v9  ;;  %v15979_v10 = vand.u32 4294901760, %v6511_v19  ;;  %v6510_v24 = vmul.f32 %v11031_v63, %v15881_v23  ;;  %10534 = vmatprep.mubr.f32.mxu1 %v15967_v9  ;;  %10615 = vmatpush3.msra.mxu1 %v17825_v38  ;;  %v6640_v12 = vsub.f32 %v15954_v8, %v6639_v13  ;;  %v17826_v23 = vld [vmem:[#allocation140_spill] sm:$0xff] }
 0x669   : > { %v6470_v46 = vadd.f32 1.0, %v11033_v6  ;;  %10472 = vmatprep.mubr.f32.mxu0 %v6621_v56  ;;  %10535 = vmatmul.mubr.f32.gmra.mxu1 %v15956_v2  ;;  %v6669_v45 = vand.u32 4294901760, %v15973_v4  ;;  %v6651_v48 = vand.u32 4294901760, %v6650_v35  ;;  %v17833_v56 = vld [vmem:[#allocation150_spill] sm:$0xff] }
 0x66a   : > { %v11035_v37 = vpop.eup %11034  ;;  %v15991_v32 = vand.u32 4294901760, %v6510_v24  ;;  %10473 = vmatmul.mubr.f32.vlgmr.msra.gmra.mxu0 %v6631_v5  ;;  %10616 = vmatprep.subr.mxu1 %v17826_v23  ;;  %v6641_v27 = vand.u32 4294901760, %v6640_v12  ;;  %v6659_v53 = vand.u32 4294901760, %v15977_v39  ;;  %v16000_v1 = vsub.f32 %v6511_v19, %v15979_v10 }
 0x66b   : > { %v6513_v7 = vmul.f32 %v11035_v37, %v15886_v42  ;;  %11046 = vrcp.f32 %v6470_v46  ;;  %10553 = vmatpush3.msra.mxu0 %v17827_v55  ;;  %10617 = vmatpush3.msra.mxu1 %v17826_v23  ;;  %v6670_v49 = vsub.f32 %v15973_v4, %v6669_v45 }
 0x66c   : > { %v11037_v21 = vpop.eup %11036  ;;  %v16003_v15 = vsub.f32 %v6510_v24, %v15991_v32  ;;  %10554 = vmatprep.subr.mxu0 %v17828_v58  ;;  %10618 = vmatprep.subr.mxu1 %v17829_v57  ;;  %v6660_v42 = vsub.f32 %v15977_v39, %v6659_v53  ;;  %11048 = vrcp.f32 %v6471_v18  ;;  %v17090_v26 = vand.u32 4294901760, %v16000_v1 }
 0x66d   : > { %v6512_v16 = vmul.f32 %v11037_v21, %v15892_v51  ;;  %10475 = vmatprep.mubr.f32.mxu0 %v6641_v27  ;;  %10537 = vmatprep.mubr.f32.mxu1 %v15991_v32  ;;  %v16015_v61 = vand.u32 4294901760, %v6513_v7  ;;  %v17834_v21 = vld [vmem:[#allocation145_spill] sm:$0xff] }
 0x66e   : > { %v11039_v34 = vpop.eup %11038  ;;  %10555 = vmatpush3.msra.mxu0 %v17828_v58  ;;  %10619 = vmatpush3.msra.mxu1 %v17829_v57  ;;  %v6679_v29 = vand.u32 4294901760, %v16003_v15  ;;  %v6661_v51 = vand.u32 4294901760, %v6660_v42  ;;  %v6690_v35 = vsub.f32 %v16000_v1, %v17090_v26  ;;  %v17835_v58 = vld [vmem:[#allocation154_spill] sm:$0xff] }
 0x66f   : > { %v16017_v11 = vand.u32 4294901760, %v6512_v16  ;;  %10476 = vmatmul.mubr.f32.gmra.mxu0 %v6651_v48  ;;  %10538 = vmatmul.mubr.f32.gmra.mxu1 %v15979_v10  ;;  %v6515_v44 = vmul.f32 %v11039_v34, %v15901_v52  ;;  %v17832_v52 = vld [vmem:[#allocation131_spill] sm:$0xff]  ;;  %v16039_v24 = vsub.f32 %v6513_v7, %v16015_v61 }
 0x670   : > { %v11041_v40 = vpop.eup %11040  ;;  %10556 = vmatprep.subr.mxu0 %v17830_v41  ;;  %10620 = vmatprep.subr.mxu1 %v17831_v62  ;;  %v6680_v5 = vsub.f32 %v16003_v15, %v6679_v29 }
 0x671   : > { %v16028_v19 = vsub.f32 %v6512_v16, %v16017_v11  ;;  %v6514_v63 = vmul.f32 %v11041_v40, %v15903_v54  ;;  %10557 = vmatpush3.msra.mxu0 %v17830_v41  ;;  %10621 = vmatpush3.msra.mxu1 %v17831_v62  ;;  %v6671_v54 = vand.u32 4294901760, %v6670_v49  ;;  %v16050_v37 = vand.u32 4294901760, %v6515_v44  ;;  %v17837_v49 = vld [vmem:[#allocation118_spill] sm:$0xff] }
 0x672   : > { %10558 = vmatprep.subr.mxu0 %v17832_v52  ;;  %10622 = vmatprep.subr.mxu1 %v17833_v56  ;;  %v11043_v6 = vpop.eup %11042  ;;  %v6681_v55 = vand.u32 4294901760, %v6680_v5  ;;  %v17086_v48 = vand.u32 4294901760, %v16039_v24  ;;  %v6691_v41 = vand.u32 4294901760, %v6690_v35 }
 0x673   : > { %v16041_v12 = vand.u32 4294901760, %v6514_v63  ;;  %10478 = vmatprep.mubr.f32.mxu0 %v6661_v51  ;;  %10540 = vmatprep.mubr.f32.mxu1 %v16017_v11  ;;  %v17088_v18 = vand.u32 4294901760, %v16028_v19  ;;  %v6517_v42 = vmul.f32 %v11043_v6, %v15909_v36  ;;  %v17836_v51 = vld [vmem:[#allocation143_spill] sm:$0xff]  ;;  %v16071_v40 = vsub.f32 %v6515_v44, %v16050_v37 }
 0x674   : > { %v11045_v46 = vpop.eup %11044  ;;  %10559 = vmatpush3.msra.mxu0 %v17832_v52  ;;  %10623 = vmatpush3.msra.mxu1 %v17833_v56  ;;  %v6710_v44 = vsub.f32 %v16039_v24, %v17086_v48 }
 0x675   : > { %v16053_v27 = vsub.f32 %v6514_v63, %v16041_v12  ;;  %v6516_v7 = vmul.f32 %v11045_v46, %v15913_v30  ;;  %10479 = vmatmul.mubr.f32.gmra.mxu0 %v6671_v54  ;;  %10541 = vmatmul.mubr.f32.gmra.mxu1 %v16015_v61  ;;  %v6700_v30 = vsub.f32 %v16028_v19, %v17088_v18  ;;  %v16078_v52 = vand.u32 4294901760, %v6517_v42  ;;  %v17838_v54 = vld [vmem:[#allocation99_spill] sm:$0xff] }
 0x676   : > { %10560 = vmatprep.subr.mxu0 %v17834_v21  ;;  %10624 = vmatprep.subr.mxu1 %v17835_v58  ;;  %v17839_v46 = vld [vmem:[#allocation147_spill] sm:$0xff] }
 0x677   : > { %v16060_v16 = vand.u32 4294901760, %v6516_v7  ;;  %10561 = vmatpush3.msra.mxu0 %v17834_v21  ;;  %10625 = vmatpush3.msra.mxu1 %v17835_v58  ;;  %v17084_v63 = vand.u32 4294901760, %v16053_v27  ;;  %v17085_v21 = vand.u32 4294901760, %v16071_v40 }
 0x678   : > { %v11047_v34 = vpop.eup %11046  ;;  %10562 = vmatprep.subr.mxu0 %v17836_v51  ;;  %10626 = vmatprep.subr.mxu1 %v17837_v49 }
 0x679   : > { %v6518_v36 = vmul.f32 %v11047_v34, %v15919_v17  ;;  %10481 = vmatprep.mubr.f32.mxu0 %v6681_v55  ;;  %10543 = vmatprep.mubr.f32.mxu1 %v16041_v12  ;;  %v11049_v5 = vpop.eup %11048  ;;  %v16081_v6 = vsub.f32 %v6516_v7, %v16060_v16  ;;  %v6701_v17 = vand.u32 4294901760, %v6700_v30  ;;  %v6720_v7 = vsub.f32 %v16053_v27, %v17084_v63  ;;  %v17840_v30 = vld [vmem:[#allocation148_spill] sm:$0xff]  ;;  %v17841_v34 = vld [vmem:[#allocation130_spill] sm:$0xff] }
 0x67a   : > { %10563 = vmatpush3.msra.mxu0 %v17836_v51  ;;  %10627 = vmatpush3.msra.mxu1 %v17837_v49  ;;  %v6519_v35 = vmul.f32 %v11049_v5, %v15915_v20  ;;  %v16101_v51 = vsub.f32 %v6517_v42, %v16078_v52  ;;  %v6711_v20 = vand.u32 4294901760, %v6710_v44  ;;  %v17842_v44 = vld [vmem:[#allocation151_spill] sm:$0xff]  ;;  %v17843_v63 = vld [vmem:[#allocation126_spill] sm:$0xff] }
 0x67b   : > { %10482 = vmatmul.mubr.f32.gmra.mxu0 %v6691_v41  ;;  %10544 = vmatmul.mubr.f32.gmra.mxu1 %v16050_v37  ;;  %v16090_v55 = vand.u32 4294901760, %v6518_v36  ;;  %v17087_v41 = vand.u32 4294901760, %v16081_v6  ;;  %v6721_v42 = vand.u32 4294901760, %v6720_v7  ;;  %v17845_v7 = vld [vmem:[#allocation122_spill] sm:$0xff] }
 0x67c   : > { %10564 = vmatprep.subr.mxu0 %v17838_v54  ;;  %10628 = vmatprep.subr.mxu1 %v17839_v46  ;;  %v16107_v5 = vand.u32 4294901760, %v6519_v35 }
 0x67d   : > { %10565 = vmatpush3.msra.mxu0 %v17838_v54  ;;  %10629 = vmatpush3.msra.mxu1 %v17839_v46  ;;  %v16110_v54 = vsub.f32 %v6518_v36, %v16090_v55  ;;  %v6740_v36 = vsub.f32 %v16081_v6, %v17087_v41 }
 0x67e   : > { %10566 = vmatprep.subr.mxu0 %v17840_v30  ;;  %10630 = vmatprep.subr.mxu1 %v17841_v34 }
 0x67f   : > { %10484 = vmatprep.mubr.f32.mxu0 %v6701_v17  ;;  %10546 = vmatprep.mubr.f32.mxu1 %v16060_v16  ;;  %v6730_v17 = vsub.f32 %v16071_v40, %v17085_v21  ;;  %v16127_v21 = vsub.f32 %v6519_v35, %v16107_v5  ;;  %v6741_v41 = vand.u32 4294901760, %v6740_v36  ;;  %v17846_v35 = vld [vmem:[#allocation104_spill] sm:$0xff]  ;;  %v17848_v36 = vld [vmem:[#allocation117_spill] sm:$0xff] }
 0x680   : > { %10567 = vmatpush3.msra.mxu0 %v17840_v30  ;;  %10631 = vmatpush3.msra.mxu1 %v17841_v34  ;;  %v17089_v30 = vand.u32 4294901760, %v16101_v51 }
 0x681   : > { %10485 = vmatmul.mubr.f32.gmra.mxu0 %v6711_v20  ;;  %10547 = vmatmul.mubr.f32.gmra.mxu1 %v16078_v52  ;;  %v17844_v20 = vld [vmem:[#allocation114_spill] sm:$0xff]  ;;  %v6731_v48 = vand.u32 4294901760, %v6730_v17 }
 0x682   : > { %10568 = vmatprep.subr.mxu0 %v17842_v44  ;;  %10632 = vmatprep.subr.mxu1 %v17843_v63  ;;  %v6750_v18 = vsub.f32 %v16101_v51, %v17089_v30 }
 0x683   : > { %10569 = vmatpush3.msra.mxu0 %v17842_v44  ;;  %10633 = vmatpush3.msra.mxu1 %v17843_v63  ;;  %v17091_v44 = vand.u32 4294901760, %v16110_v54 }
 0x684   : > { %10570 = vmatprep.subr.mxu0 %v17844_v20  ;;  %10634 = vmatprep.subr.mxu1 %v17845_v7  ;;  %v6751_v30 = vand.u32 4294901760, %v6750_v18 }
 0x685   : > { %10487 = vmatprep.mubr.f32.mxu0 %v6721_v42  ;;  %10549 = vmatprep.mubr.f32.mxu1 %v16090_v55  ;;  %v17847_v42 = vld [vmem:[#allocation109_spill] sm:$0xff]  ;;  %v6760_v17 = vsub.f32 %v16110_v54, %v17091_v44 }
 0x686   : > { %10571 = vmatpush3.msra.mxu0 %v17844_v20  ;;  %10635 = vmatpush3.msra.mxu1 %v17845_v7  ;;  %v17849_v20 = vld [vmem:[#allocation96_spill] sm:$0xff] }
 0x687   : > { %10488 = vmatmul.mubr.f32.gmra.mxu0 %v6731_v48  ;;  %10550 = vmatmul.mubr.f32.gmra.mxu1 %v16107_v5  ;;  %v6769_v48 = vand.u32 4294901760, %v16127_v21  ;;  %v6761_v26 = vand.u32 4294901760, %v6760_v17 }
 0x688   : > { %10572 = vmatprep.subr.mxu0 %v17846_v35  ;;  %10636 = vmatprep.subr.mxu1 %v17847_v42 }
 0x689   : > { %10573 = vmatpush3.msra.mxu0 %v17846_v35  ;;  %10637 = vmatpush3.msra.mxu1 %v17847_v42  ;;  %v17850_v35 = vld [vmem:[#allocation136_spill] sm:$0xff]  ;;  %v6770_v44 = vsub.f32 %v16127_v21, %v6769_v48 }
 0x68a   : > { %10640 = vmatprep.mubr.f32.mxu1 %v6619_v25  ;;  %10574 = vmatprep.subr.mxu0 %v17848_v36  ;;  %v17851_v25 = vld [vmem:[#allocation132_spill] sm:$0xff] }
 0x68b   : > { %10638 = vmatprep.subr.mxu1 %v17849_v20  ;;  %10490 = vmatprep.mubr.f32.mxu0 %v6741_v41  ;;  %v6771_v18 = vand.u32 4294901760, %v6770_v44 }
 0x68c   : > { %10575 = vmatpush3.msra.mxu0 %v17848_v36  ;;  %10639 = vmatpush3.msra.mxu1 %v17849_v20 }
 0x68d   : > { %10491 = vmatmul.mubr.f32.gmra.mxu0 %v6751_v30  ;;  %10576 = vmatprep.subr.mxu0 %v17850_v35 }
 0x68e   : > { %10641 = vmatmul.mubr.f32.vlgmr.msra.gmra.mxu1 %v6629_v14  ;;  %10720 = vmatprep.subr.mxu1 %v17822_v3  ;;  %v17852_v14 = vld [vmem:[#allocation100_spill] sm:$0xff] }
 0x68f   : > { %10577 = vmatpush3.msra.mxu0 %v17850_v35  ;;  %10643 = vmatprep.mubr.f32.mxu1 %v6639_v13  ;;  %v17861_v13 = vld [vmem:[#allocation146_spill] sm:$0xff] }
 0x690   : > { %10721 = vmatpush3.msra.mxu1 %v17822_v3  ;;  %10578 = vmatprep.subr.mxu0 %v17851_v25  ;;  %v17853_v3 = vld [vmem:[#allocation152_spill] sm:$0xff] }
 0x691   : > { %10722 = vmatprep.subr.mxu1 %v17823_v33  ;;  %10493 = vmatprep.mubr.f32.mxu0 %v6761_v26  ;;  %v17873_v26 = vld [vmem:[#allocation97_spill] sm:$0xff] }
 0x692   : > { %10579 = vmatpush3.msra.mxu0 %v17851_v25  ;;  %10723 = vmatpush3.msra.mxu1 %v17823_v33  ;;  %v17854_v33 = vld [vmem:[#allocation119_spill] sm:$0xff] }
 0x693   : > { %10494 = vmatmul.mubr.f32.gmra.mxu0 %v6771_v18  ;;  %10580 = vmatprep.subr.mxu0 %v17852_v14 }
 0x694   : > { %10644 = vmatmul.mubr.f32.gmra.mxu1 %v6649_v28  ;;  %10724 = vmatprep.subr.mxu1 %v17824_v43  ;;  %v17859_v28 = vld [vmem:[#allocation144_spill] sm:$0xff] }
 0x695   : > { %10581 = vmatpush3.msra.mxu0 %v17852_v14  ;;  %10584 = vmatprep.mubr.f32.mxu0 %v15934_v59  ;;  %v17855_v59 = vld [vmem:[#allocation124_spill] sm:$0xff] }
 0x696   : > { %10646 = vmatprep.mubr.f32.mxu1 %v6659_v53  ;;  %10725 = vmatpush3.msra.mxu1 %v17824_v43  ;;  %v17858_v43 = vand.u32 4294901760, %v16028_v19  ;;  %v17866_v53 = vand.u32 4294901760, %v16081_v6 }
 0x697   : > { %10582 = vmatprep.subr.mxu0 %v17853_v3  ;;  %10726 = vmatprep.subr.mxu1 %v17825_v38 }
 0x698   : > { %10583 = vmatpush3.msra.mxu0 %v17853_v3  ;;  %10727 = vmatpush3.msra.mxu1 %v17825_v38  ;;  %v17862_v38 = vand.u32 4294901760, %v16053_v27 }
 0x699   : > { %10585 = vmatmul.mubr.f32.vlgmr.msra.gmra.mxu0 %v15927_v31  ;;  %10647 = vmatmul.mubr.f32.gmra.mxu1 %v6669_v45  ;;  %v17856_v31 = vand.u32 4294901760, %v16000_v1  ;;  %v17867_v45 = vld [vmem:[#allocation103_spill] sm:$0xff] }
 0x69a   : > { %10664 = vmatprep.subr.mxu0 %v17854_v33  ;;  %10728 = vmatprep.subr.mxu1 %v17826_v23 }
 0x69b   : > { %10587 = vmatprep.mubr.f32.mxu0 %v15954_v8  ;;  %10649 = vmatprep.mubr.f32.mxu1 %v6679_v29  ;;  %v17857_v8 = vld [vmem:[#allocation128_spill] sm:$0xff]  ;;  %v17871_v29 = vld [vmem:[#allocation127_spill] sm:$0xff] }
 0x69c   : > { %10665 = vmatpush3.msra.mxu0 %v17854_v33  ;;  %10729 = vmatpush3.msra.mxu1 %v17826_v23  ;;  %v17865_v23 = vld [vmem:[#allocation108_spill] sm:$0xff] }
 0x69d   : > { %10666 = vmatprep.subr.mxu0 %v17855_v59  ;;  %10730 = vmatprep.subr.mxu1 %v17829_v57 }
 0x69e   : > { %10667 = vmatpush3.msra.mxu0 %v17855_v59  ;;  %10731 = vmatpush3.msra.mxu1 %v17829_v57  ;;  %v17870_v57 = vand.u32 4294901760, %v16110_v54 }
 0x69f   : > { %10588 = vmatmul.mubr.f32.gmra.mxu0 %v15942_v50  ;;  %10650 = vmatmul.mubr.f32.gmra.mxu1 %v17856_v31  ;;  %v17860_v50 = vand.u32 4294901760, %v16039_v24 }
 0x6a0   : > { %10668 = vmatprep.subr.mxu0 %v17857_v8  ;;  %10732 = vmatprep.subr.mxu1 %v17831_v62 }
 0x6a1   : > { %10590 = vmatprep.mubr.f32.mxu0 %v15977_v39  ;;  %10652 = vmatprep.mubr.f32.mxu1 %v17858_v43  ;;  %v17863_v39 = vld [vmem:[#allocation105_spill] sm:$0xff] }
 0x6a2   : > { %10669 = vmatpush3.msra.mxu0 %v17857_v8  ;;  %10733 = vmatpush3.msra.mxu1 %v17831_v62  ;;  %v17872_v62 = vld [vmem:[#allocation120_spill] sm:$0xff] }
 0x6a3   : > { %10670 = vmatprep.subr.mxu0 %v17859_v28  ;;  %10734 = vmatprep.subr.mxu1 %v17833_v56 }
 0x6a4   : > { %10671 = vmatpush3.msra.mxu0 %v17859_v28  ;;  %10735 = vmatpush3.msra.mxu1 %v17833_v56  ;;  %v17875_v56 = vld [vmem:[#allocation101_spill] sm:$0xff] }
 0x6a5   : > { %10591 = vmatmul.mubr.f32.gmra.mxu0 %v15973_v4  ;;  %10653 = vmatmul.mubr.f32.gmra.mxu1 %v17860_v50  ;;  %v17864_v4 = vand.u32 4294901760, %v16071_v40 }
 0x6a6   : > { %10672 = vmatprep.subr.mxu0 %v17861_v13  ;;  %10736 = vmatprep.subr.mxu1 %v17835_v58 }
 0x6a7   : > { %10593 = vmatprep.mubr.f32.mxu0 %v16003_v15  ;;  %10655 = vmatprep.mubr.f32.mxu1 %v17862_v38  ;;  %v17869_v15 = vld [vmem:[#allocation142_spill] sm:$0xff] }
 0x6a8   : > { %10673 = vmatpush3.msra.mxu0 %v17861_v13  ;;  %10737 = vmatpush3.msra.mxu1 %v17835_v58 }
 0x6a9   : > { %10674 = vmatprep.subr.mxu0 %v17863_v39  ;;  %10738 = vmatprep.subr.mxu1 %v17837_v49 }
 0x6aa   : > { %10675 = vmatpush3.msra.mxu0 %v17863_v39  ;;  %10739 = vmatpush3.msra.mxu1 %v17837_v49 }
 0x6ab   : > { %10594 = vmatmul.mubr.f32.gmra.mxu0 %v16000_v1  ;;  %10656 = vmatmul.mubr.f32.gmra.mxu1 %v17864_v4  ;;  %v17868_v1 = vand.u32 4294901760, %v16101_v51 }
 0x6ac   : > { %10676 = vmatprep.subr.mxu0 %v17865_v23  ;;  %10740 = vmatprep.subr.mxu1 %v17839_v46 }
 0x6ad   : > { %10596 = vmatprep.mubr.f32.mxu0 %v16028_v19  ;;  %10658 = vmatprep.mubr.f32.mxu1 %v17866_v53  ;;  %v17874_v19 = vld [vmem:[#allocation133_spill] sm:$0xff] }
 0x6ae   : > { %10677 = vmatpush3.msra.mxu0 %v17865_v23  ;;  %10741 = vmatpush3.msra.mxu1 %v17839_v46 }
 0x6af   : > { %10678 = vmatprep.subr.mxu0 %v17867_v45  ;;  %10742 = vmatprep.subr.mxu1 %v17841_v34 }
 0x6b0   : > { %10679 = vmatpush3.msra.mxu0 %v17867_v45  ;;  %10743 = vmatpush3.msra.mxu1 %v17841_v34 }
 0x6b1   : > { %10597 = vmatmul.mubr.f32.gmra.mxu0 %v16039_v24  ;;  %10659 = vmatmul.mubr.f32.gmra.mxu1 %v17868_v1  ;;  %v17876_v24 = vld [vmem:[#allocation102_spill] sm:$0xff] }
 0x6b2   : > { %10680 = vmatprep.subr.mxu0 %v17869_v15  ;;  %10744 = vmatprep.subr.mxu1 %v17843_v63 }
 0x6b3   : > { %10599 = vmatprep.mubr.f32.mxu0 %v16053_v27  ;;  %10661 = vmatprep.mubr.f32.mxu1 %v17870_v57  ;;  %v17877_v27 = vld [vmem:[#allocation149_spill] sm:$0xff] }
 0x6b4   : > { %10681 = vmatpush3.msra.mxu0 %v17869_v15  ;;  %10745 = vmatpush3.msra.mxu1 %v17843_v63 }
 0x6b5   : > { %10682 = vmatprep.subr.mxu0 %v17871_v29  ;;  %10746 = vmatprep.subr.mxu1 %v17845_v7 }
 0x6b6   : > { %10683 = vmatpush3.msra.mxu0 %v17871_v29  ;;  %10747 = vmatpush3.msra.mxu1 %v17845_v7 }
 0x6b7   : > { %10600 = vmatmul.mubr.f32.gmra.mxu0 %v16071_v40  ;;  %10662 = vmatmul.mubr.f32.gmra.mxu1 %v6769_v48 }
 0x6b8   : > { %10684 = vmatprep.subr.mxu0 %v17872_v62  ;;  %10748 = vmatprep.subr.mxu1 %v17847_v42 }
 0x6b9   : > { %10602 = vmatprep.mubr.f32.mxu0 %v16081_v6  ;;  %10685 = vmatpush3.msra.mxu0 %v17872_v62 }
 0x6ba   : > { %10749 = vmatpush3.msra.mxu1 %v17847_v42  ;;  %10752 = vmatprep.mubr.f32.mxu1 %v15929_v22 }
 0x6bb   : > { %10686 = vmatprep.subr.mxu0 %v17873_v26  ;;  %10750 = vmatprep.subr.mxu1 %v17849_v20 }
 0x6bc   : > { %10687 = vmatpush3.msra.mxu0 %v17873_v26  ;;  %10751 = vmatpush3.msra.mxu1 %v17849_v20 }
 0x6bd   : > { %10603 = vmatmul.mubr.f32.gmra.mxu0 %v16101_v51  ;;  %10688 = vmatprep.subr.mxu0 %v17874_v19 }
 0x6be   : > { %10753 = vmatmul.mubr.f32.vlgmr.msra.gmra.mxu1 %v15923_v47  ;;  %10605 = vmatprep.mubr.f32.mxu0 %v16110_v54 }
 0x6bf   : > { %10689 = vmatpush3.msra.mxu0 %v17874_v19  ;;  %10755 = vmatprep.mubr.f32.mxu1 %v15944_v0 }
 0x6c0   : > { %10690 = vmatprep.subr.mxu0 %v17875_v56 }
 0x6c1   : > { %10691 = vmatpush3.msra.mxu0 %v17875_v56 }
 0x6c2   : > { %10606 = vmatmul.mubr.f32.gmra.mxu0 %v16127_v21  ;;  %10692 = vmatprep.subr.mxu0 %v17876_v24 }
 0x6c3   : > { %10756 = vmatmul.mubr.f32.gmra.mxu1 %v15936_v60  ;;  %10693 = vmatpush3.msra.mxu0 %v17876_v24 }
 0x6c4   : > { %10696 = vmatprep.mubr.f32.mxu0 %v15929_v22  ;;  %10758 = vmatprep.mubr.f32.mxu1 %v15967_v9 }
 0x6c5   : > { %10694 = vmatprep.subr.mxu0 %v17877_v27 }
 0x6c6   : > { %10695 = vmatpush3.msra.mxu0 %v17877_v27 }
 0x6c7   : > { %10697 = vmatmul.mubr.f32.vlgmr.msra.gmra.mxu0 %v15923_v47  ;;  %10759 = vmatmul.mubr.f32.gmra.mxu1 %v15956_v2 }
 0x6c8   : > { %10699 = vmatprep.mubr.f32.mxu0 %v15944_v0  ;;  %10761 = vmatprep.mubr.f32.mxu1 %v15991_v32 }
 0x6cb   : > { %10700 = vmatmul.mubr.f32.gmra.mxu0 %v15936_v60  ;;  %10762 = vmatmul.mubr.f32.gmra.mxu1 %v15979_v10 }
 0x6cc   : > { %10702 = vmatprep.mubr.f32.mxu0 %v15967_v9  ;;  %10764 = vmatprep.mubr.f32.mxu1 %v16017_v11 }
 0x6cf   : > { %10703 = vmatmul.mubr.f32.gmra.mxu0 %v15956_v2  ;;  %10765 = vmatmul.mubr.f32.gmra.mxu1 %v16015_v61 }
 0x6d0   : > { %10705 = vmatprep.mubr.f32.mxu0 %v15991_v32  ;;  %10767 = vmatprep.mubr.f32.mxu1 %v16041_v12 }
 0x6d3   : > { %10706 = vmatmul.mubr.f32.gmra.mxu0 %v15979_v10  ;;  %10768 = vmatmul.mubr.f32.gmra.mxu1 %v16050_v37 }
 0x6d4   : > { %10708 = vmatprep.mubr.f32.mxu0 %v16017_v11  ;;  %10770 = vmatprep.mubr.f32.mxu1 %v16060_v16 }
 0x6d7   : > { %10709 = vmatmul.mubr.f32.gmra.mxu0 %v16015_v61  ;;  %10771 = vmatmul.mubr.f32.gmra.mxu1 %v16078_v52 }
 0x6d8   : > { %10711 = vmatprep.mubr.f32.mxu0 %v16041_v12  ;;  %10773 = vmatprep.mubr.f32.mxu1 %v16090_v55 }
 0x6db   : > { %10712 = vmatmul.mubr.f32.gmra.mxu0 %v16050_v37  ;;  %10774 = vmatmul.mubr.f32.gmra.mxu1 %v16107_v5 }
 0x6dc   : > { %10714 = vmatprep.mubr.f32.mxu0 %v16060_v16 }
 0x6df   : > { %10715 = vmatmul.mubr.f32.gmra.mxu0 %v16078_v52 }
 0x6e0   : > { %10717 = vmatprep.mubr.f32.mxu0 %v16090_v55 }
 0x6e3   : > { %10718 = vmatmul.mubr.f32.gmra.mxu0 %v16107_v5 }
 0x721   : > { %v16304_v47 = vpop.f32.mrf.mxu1 }
 0x723   : > { %v16306_v22 = vpop.f32.mrf.mxu1 }
 0x725   : > { %v16308_v60 = vpop.f32.mrf.mxu1 }
 0x727   : > { %v16310_v0 = vpop.f32.mrf.mxu1 }
 0x729   : > { %v16312_v2 = vpop.f32.mrf.mxu1 }
 0x72a   : > { %v10474_v9 = vpop.f32.mrf.mxu0 }
 0x72b   : > { %v16314_v10 = vpop.f32.mrf.mxu1  ;;  %v6931_v27 = vadd.f32 %v16304_v47, %v10474_v9 }
 0x72c   : > { %v6623_v32 = vpop.f32.mrf.mxu0 }
 0x72f   : > { %v10477_v61 = vpop.f32.mrf.mxu0  ;;  %v16316_v11 = vpop.f32.mrf.mxu1 }
 0x731   : > { %v16318_v12 = vpop.f32.mrf.mxu0  ;;  %v16320_v37 = vpop.f32.mrf.mxu1 }
 0x735   : > { %v16322_v58 = vpop.f32.mrf.mxu0  ;;  %v16324_v16 = vpop.f32.mrf.mxu1 }
 0x737   : > { %v16326_v49 = vpop.f32.mrf.mxu0  ;;  %v16328_v40 = vpop.f32.mrf.mxu1 }
 0x73b   : > { %v16330_v63 = vpop.f32.mrf.mxu0  ;;  %v16332_v52 = vpop.f32.mrf.mxu1 }
 0x73d   : > { %v16334_v6 = vpop.f32.mrf.mxu0  ;;  %v16336_v46 = vpop.f32.mrf.mxu1 }
 0x741   : > { %v16338_v55 = vpop.f32.mrf.mxu0  ;;  %v16340_v21 = vpop.f32.mrf.mxu1 }
 0x743   : > { %v16342_v34 = vpop.f32.mrf.mxu0  ;;  %v16344_v51 = vpop.f32.mrf.mxu1 }
 0x744   : > { %17878 = vst [vmem:[#allocation98_spill] sm:$0xff] %v16344_v51 }
 0x747   : > { %v16346_v41 = vpop.f32.mrf.mxu0  ;;  %v16348_v5 = vpop.f32.mrf.mxu1 }
 0x748   : > { %17879 = vst [vmem:[#allocation107_spill] sm:$0xff] %v16348_v5 }
 0x749   : > { %v16350_v54 = vpop.f32.mrf.mxu0  ;;  %v16352_v30 = vpop.f32.mrf.mxu1 }
 0x74a   : > { %17880 = vst [vmem:[#allocation153_spill] sm:$0xff] %v16352_v30  ;;  %v6925_v30 = vadd.f32 %v16306_v22, %v6623_v32  ;;  %v6955_v22 = vadd.f32 %v16312_v2, %v16322_v58 }
 0x74d   : > { %v16354_v7 = vpop.f32.mrf.mxu0 }
 0x74e   : > { %v10642_v44 = vpop.f32.mrf.mxu1 }
 0x74f   : > { %v16356_v42 = vpop.f32.mrf.mxu0 }
 0x750   : > { %v7312_v17 = vpop.f32.mrf.mxu1 }
 0x753   : > { %v16358_v48 = vpop.f32.mrf.mxu0 }
 0x754   : > { %17881 = vst [vmem:[#allocation129_spill] sm:$0xff] %v16358_v48  ;;  %v10645_v36 = vpop.f32.mrf.mxu1 }
 0x755   : > { %v16360_v20 = vpop.f32.mrf.mxu0 }
 0x756   : > { %17882 = vst [vmem:[#allocation112_spill] sm:$0xff] %v16360_v20  ;;  %v7328_v35 = vpop.f32.mrf.mxu1 }
 0x759   : > { %v10586_v25 = vpop.f32.mrf.mxu0  ;;  %v16362_v18 = vpop.f32.mrf.mxu1 }
 0x75a   : > { %v7126_v20 = vadd.f32 %v10586_v25, %v6931_v27 }
 0x75b   : > { %v7118_v14 = vpop.f32.mrf.mxu0  ;;  %v16364_v3 = vpop.f32.mrf.mxu1 }
 0x75c   : > { %v7119_v5 = vadd.f32 %v7118_v14, %v6925_v30 }
 0x75e   : > { %v7313_v25 = vadd.f32 %v7312_v17, %v7119_v5 }
 0x75f   : > { %v10589_v33 = vpop.f32.mrf.mxu0  ;;  %v16366_v59 = vpop.f32.mrf.mxu1 }
 0x761   : > { %v7132_v31 = vpop.f32.mrf.mxu0  ;;  %v16368_v8 = vpop.f32.mrf.mxu1 }
 0x765   : > { %v10592_v43 = vpop.f32.mrf.mxu0  ;;  %v16370_v28 = vpop.f32.mrf.mxu1 }
 0x766   : > { %v7154_v14 = vadd.f32 %v10592_v43, %v6955_v22 }
 0x767   : > { %v7146_v50 = vpop.f32.mrf.mxu0  ;;  %v16372_v13 = vpop.f32.mrf.mxu1 }
 0x76b   : > { %v10595_v38 = vpop.f32.mrf.mxu0  ;;  %v16374_v39 = vpop.f32.mrf.mxu1 }
 0x76c   : > { %17883 = vst [vmem:[#allocation111_spill] sm:$0xff] %v16374_v39  ;;  %v6937_v39 = vadd.f32 %v16310_v0, %v16318_v12 }
 0x76d   : > { %v7160_v4 = vpop.f32.mrf.mxu0  ;;  %v16376_v23 = vpop.f32.mrf.mxu1 }
 0x76e   : > { %17884 = vst [vmem:[#allocation115_spill] sm:$0xff] %v16376_v23  ;;  %v7133_v9 = vadd.f32 %v7132_v31, %v6937_v39 }
 0x771   : > { %v16378_v53 = vpop.f32.mrf.mxu0  ;;  %v16380_v45 = vpop.f32.mrf.mxu1 }
 0x772   : > { %17885 = vst [vmem:[#allocation137_spill] sm:$0xff] %v16380_v45 }
 0x773   : > { %v16382_v1 = vpop.f32.mrf.mxu0  ;;  %v16384_v15 = vpop.f32.mrf.mxu1 }
 0x774   : > { %17886 = vst [vmem:[#allocation123_spill] sm:$0xff] %v16384_v15 }
 0x777   : > { %v16386_v57 = vpop.f32.mrf.mxu0  ;;  %v16388_v29 = vpop.f32.mrf.mxu1 }
 0x778   : > { %17887 = vst [vmem:[#allocation121_spill] sm:$0xff] %v16388_v29  ;;  %v6943_v29 = vadd.f32 %v16308_v60, %v10477_v61  ;;  %v6949_v60 = vadd.f32 %v16314_v10, %v16326_v49  ;;  %v6961_v10 = vadd.f32 %v16320_v37, %v16334_v6  ;;  %v6973_v6 = vadd.f32 %v16328_v40, %v16342_v34 }
 0x779   : > { %v16390_v62 = vpop.f32.mrf.mxu0  ;;  %v16392_v26 = vpop.f32.mrf.mxu1 }
 0x77a   : > { %17888 = vst [vmem:[#allocation135_spill] sm:$0xff] %v16392_v26  ;;  %v7161_v39 = vadd.f32 %v7160_v4, %v6961_v10  ;;  %v6991_v4 = vadd.f32 %v16332_v52, %v16346_v41  ;;  %v17899_v10 = vld [vmem:[#allocation153_spill] sm:$0xff] }
 0x77c   : > { %v7196_v22 = vadd.f32 %v16386_v57, %v6991_v4  ;;  %v17891_v57 = vld [vmem:[#allocation98_spill] sm:$0xff] }
 0x77d   : > { %v16394_v19 = vpop.f32.mrf.mxu0 }
 0x77e   : > { %17889 = vst [vmem:[#allocation139_spill] sm:$0xff] %v16394_v19  ;;  %v10754_v56 = vpop.f32.mrf.mxu1  ;;  %v7140_v19 = vadd.f32 %v10589_v33, %v6943_v29  ;;  %v7147_v29 = vadd.f32 %v7146_v50, %v6949_v60  ;;  %v6997_v60 = vadd.f32 %v17891_v57, %v16356_v42 }
 0x77f   : > { %v16396_v24 = vpop.f32.mrf.mxu0 }
 0x780   : > { %17890 = vst [vmem:[#allocation116_spill] sm:$0xff] %v16396_v24  ;;  %v7728_v45 = vpop.f32.mrf.mxu1  ;;  %v7321_v24 = vadd.f32 %v10642_v44, %v7126_v20  ;;  %v7337_v12 = vadd.f32 %v10645_v36, %v7140_v19  ;;  %v6967_v44 = vadd.f32 %v16316_v11, %v16330_v63  ;;  %v7353_v11 = vadd.f32 %v16362_v18, %v7154_v14 }
 0x781   : > { %v6979_v63 = vadd.f32 %v16324_v16, %v16338_v55  ;;  %v7345_v37 = vadd.f32 %v16364_v3, %v7147_v29  ;;  %v7175_v3 = vadd.f32 %v16382_v1, %v6973_v6  ;;  %v7003_v1 = vadd.f32 %v16340_v21, %v16354_v7  ;;  %v17893_v7 = vld [vmem:[#allocation111_spill] sm:$0xff] }
 0x782   : > { %v16400_v15 = vpop.f32.mrf.mxu0  ;;  %v7168_v17 = vadd.f32 %v10595_v38, %v6967_v44 }
 0x783   : > { %v10757_v23 = vpop.f32.mrf.mxu1  ;;  %v7182_v19 = vadd.f32 %v16378_v53, %v6979_v63  ;;  %v6985_v53 = vadd.f32 %v16336_v46, %v16350_v54  ;;  %v7377_v54 = vadd.f32 %v16372_v13, %v7175_v3 }
 0x784   : > { %v16403_v48 = vpop.f32.mrf.mxu0  ;;  %v7369_v55 = vadd.f32 %v16366_v59, %v7168_v17 }
 0x785   : > { %v7740_v26 = vpop.f32.mrf.mxu1  ;;  %v7385_v41 = vadd.f32 %v16370_v28, %v7182_v19  ;;  %v17902_v19 = vld [vmem:[#allocation121_spill] sm:$0xff] }
 0x787   : > { %v10698_v51 = vpop.f32.mrf.mxu0  ;;  %v10760_v47 = vpop.f32.mrf.mxu1 }
 0x788   : > { %v7558_v32 = vadd.f32 %v10698_v51, %v7321_v24  ;;  %v7329_v51 = vadd.f32 %v7328_v35, %v7133_v9  ;;  %v7361_v24 = vadd.f32 %v16368_v8, %v7161_v39 }
 0x789   : > { %v7551_v61 = vpop.f32.mrf.mxu0  ;;  %v7752_v30 = vpop.f32.mrf.mxu1 }
 0x78a   : > { %v7735_v27 = vadd.f32 %v10754_v56, %v7558_v32  ;;  %v7552_v0 = vadd.f32 %v7551_v61, %v7313_v25  ;;  %v7189_v25 = vadd.f32 %v16390_v62, %v6985_v53  ;;  %v17895_v62 = vld [vmem:[#allocation107_spill] sm:$0xff] }
 0x78b   : > { %v10701_v20 = vpop.f32.mrf.mxu0  ;;  %v10763_v33 = vpop.f32.mrf.mxu1 }
 0x78c   : > { %7823 = vst [vmem:[%s11604_s5 + $0x8] sm:$0xff] %v7735_v27  ;;  %v7729_v2 = vadd.f32 %v7728_v45, %v7552_v0  ;;  %v7570_v58 = vadd.f32 %v10701_v20, %v7337_v12  ;;  %v7401_v27 = vadd.f32 %v17893_v7, %v7196_v22  ;;  %v17894_v0 = vld [vmem:[#allocation129_spill] sm:$0xff] }
 0x78d   : > { %v7563_v49 = vpop.f32.mrf.mxu0  ;;  %v7764_v5 = vpop.f32.mrf.mxu1  ;;  %v7015_v12 = vadd.f32 %v17895_v62, %v17894_v0 }
 0x78e   : > { %7822 = vst [vmem:[%s11604_s5] sm:$0xff] %v7729_v2  ;;  %v7747_v36 = vadd.f32 %v10757_v23, %v7570_v58  ;;  %v7564_v31 = vadd.f32 %v7563_v49, %v7329_v51  ;;  %v17897_v2 = vld [vmem:[#allocation115_spill] sm:$0xff]  ;;  %v17898_v51 = vld [vmem:[#allocation112_spill] sm:$0xff] }
 0x78f   : > { %v10704_v43 = vpop.f32.mrf.mxu0  ;;  %v10766_v50 = vpop.f32.mrf.mxu1  ;;  %v7393_v58 = vadd.f32 %v17897_v2, %v7189_v25  ;;  %v7009_v49 = vadd.f32 %v17899_v10, %v17898_v51  ;;  %v7224_v17 = vadd.f32 %v16400_v15, %v7015_v12 }
 0x790   : > { %7825 = vst [vmem:[%s11604_s5 + $0x18] sm:$0xff] %v7747_v36  ;;  %v7741_v35 = vadd.f32 %v7740_v26, %v7564_v31  ;;  %v7582_v45 = vadd.f32 %v10704_v43, %v7353_v11  ;;  %v17900_v11 = vld [vmem:[#allocation137_spill] sm:$0xff] }
 0x791   : > { %v7575_v38 = vpop.f32.mrf.mxu0  ;;  %v7776_v23 = vpop.f32.mrf.mxu1  ;;  %v7217_v39 = vadd.f32 %v16403_v48, %v7009_v49  ;;  %v17903_v48 = vld [vmem:[#allocation135_spill] sm:$0xff] }
 0x792   : > { %7824 = vst [vmem:[%s11604_s5 + $0x10] sm:$0xff] %v7741_v35  ;;  %v7759_v18 = vadd.f32 %v10760_v47, %v7582_v45  ;;  %v7576_v16 = vadd.f32 %v7575_v38, %v7345_v37  ;;  %v17901_v37 = vld [vmem:[#allocation123_spill] sm:$0xff] }
 0x793   : > { %v10707_v26 = vpop.f32.mrf.mxu0  ;;  %v10769_v56 = vpop.f32.mrf.mxu1 }
 0x794   : > { %7827 = vst [vmem:[%s11604_s5 + $0x28] sm:$0xff] %v7759_v18  ;;  %v7753_v40 = vadd.f32 %v7752_v30, %v7576_v16  ;;  %v7594_v34 = vadd.f32 %v10707_v26, %v7369_v55  ;;  %v17892_v30 = vld [vmem:[#allocation139_spill] sm:$0xff]  ;;  %v7433_v18 = vadd.f32 %v17902_v19, %v7224_v17 }
 0x795   : > { %v7587_v47 = vpop.f32.mrf.mxu0  ;;  %v7788_v9 = vpop.f32.mrf.mxu1  ;;  %v7210_v14 = vadd.f32 %v17892_v30, %v7003_v1 }
 0x796   : > { %7826 = vst [vmem:[%s11604_s5 + $0x20] sm:$0xff] %v7753_v40  ;;  %v7771_v59 = vadd.f32 %v10763_v33, %v7594_v34  ;;  %v7588_v52 = vadd.f32 %v7587_v47, %v7361_v24  ;;  %v17896_v33 = vld [vmem:[#allocation116_spill] sm:$0xff] }
 0x797   : > { %v10710_v32 = vpop.f32.mrf.mxu0  ;;  %v10772_v44 = vpop.f32.mrf.mxu1  ;;  %v7203_v13 = vadd.f32 %v17896_v33, %v6997_v60  ;;  %v7417_v63 = vadd.f32 %v17900_v11, %v7210_v14 }
 0x798   : > { %7829 = vst [vmem:[%s11604_s5 + $0x38] sm:$0xff] %v7771_v59  ;;  %v7765_v8 = vadd.f32 %v7764_v5, %v7588_v52  ;;  %v7606_v46 = vadd.f32 %v10710_v32, %v7385_v41 }
 0x799   : > { %v7599_v61 = vpop.f32.mrf.mxu0  ;;  %v7800_v43 = vpop.f32.mrf.mxu1  ;;  %v7409_v6 = vadd.f32 %v17901_v37, %v7203_v13 }
 0x79a   : > { %7828 = vst [vmem:[%s11604_s5 + $0x30] sm:$0xff] %v7765_v8  ;;  %v7783_v28 = vadd.f32 %v10766_v50, %v7606_v46  ;;  %v7600_v21 = vadd.f32 %v7599_v61, %v7377_v54 }
 0x79b   : > { %v10713_v20 = vpop.f32.mrf.mxu0  ;;  %v10775_v16 = vpop.f32.mrf.mxu1 }
 0x79c   : > { %7831 = vst [vmem:[%s11604_s5 + $0x48] sm:$0xff] %v7783_v28  ;;  %v7777_v29 = vadd.f32 %v7776_v23, %v7600_v21  ;;  %v7618_v42 = vadd.f32 %v10713_v20, %v7401_v27 }
 0x79d   : > { %v7611_v5 = vpop.f32.mrf.mxu0  ;;  %v7812_v24 = vpop.f32.mrf.mxu1 }
 0x79e   : > { %7830 = vst [vmem:[%s11604_s5 + $0x40] sm:$0xff] %v7777_v29  ;;  %v7795_v36 = vadd.f32 %v10769_v56, %v7618_v42  ;;  %v7612_v31 = vadd.f32 %v7611_v5, %v7393_v58  ;;  %v7425_v56 = vadd.f32 %v17903_v48, %v7217_v39 }
 0x79f   : > { %v10716_v50 = vpop.f32.mrf.mxu0 }
 0x7a0   : > { %7833 = vst [vmem:[%s11604_s5 + $0x58] sm:$0xff] %v7795_v36  ;;  %v7789_v35 = vadd.f32 %v7788_v9, %v7612_v31  ;;  %v7630_v45 = vadd.f32 %v10716_v50, %v7417_v63 }
 0x7a1   : > { %v7623_v38 = vpop.f32.mrf.mxu0 }
 0x7a2   : > { %7832 = vst [vmem:[%s11604_s5 + $0x50] sm:$0xff] %v7789_v35  ;;  %v7807_v15 = vadd.f32 %v10772_v44, %v7630_v45  ;;  %v7624_v23 = vadd.f32 %v7623_v38, %v7409_v6 }
 0x7a3   : > { %v10719_v55 = vpop.f32.mrf.mxu0 }
 0x7a4   : > { %7835 = vst [vmem:[%s11604_s5 + $0x68] sm:$0xff] %v7807_v15  ;;  %v7801_v4 = vadd.f32 %v7800_v43, %v7624_v23  ;;  %v7642_v26 = vadd.f32 %v10719_v55, %v7433_v18 }
 0x7a5   : > { %v7635_v3 = vpop.f32.mrf.mxu0 }
 0x7a6   : > { %7834 = vst [vmem:[%s11604_s5 + $0x60] sm:$0xff] %v7801_v4  ;;  %v7819_v40 = vadd.f32 %v10775_v16, %v7642_v26  ;;  %v7636_v34 = vadd.f32 %v7635_v3, %v7425_v56 }
 0x7a8   : > { %7837 = vst [vmem:[%s11604_s5 + $0x78] sm:$0xff] %v7819_v40  ;;  %v7813_v53 = vadd.f32 %v7812_v24, %v7636_v34 }
 0x7aa   : > { %7836 = vst [vmem:[%s11604_s5 + $0x70] sm:$0xff] %v7813_v53 }
 0x7ab PF: > { %s8183_s8 = sshll.u32 %s11314_s14, 11  ;;  %s17905_s27 = sld [smem:[#allocation160_spill]] }
 0x7ac   : > { %s7852_s11 = sshll.u32 %s11604_s5, 4  ;;  %s16478_s18 = scalar_lea.sflag [#allocation7], %s392_s24  ;;  %s16474_s11 = int_to_ptr.vmem [resolvable:$true] %s7852_s11 }
 0x7ad   : > { %s11192_s21 = scalar_lea.vmem %s16474_s11, 2048  ;;  %s11339_s14 = smov [#allocation14]  }
 0x7ae   : > { %p11193_p0 = scmp.ne.s32.totalorder %s16474_s11, %s11192_s21  ;;  %s11196_s25 = sshll.u32 %s11339_s14, 4  ;;  %s11197_s25 = int_to_ptr.vmem [resolvable:$false] %s11196_s25 }
 0x7af   : > { %s11198_s28 = scalar_lea.vmem %s11197_s25, 4096  ;;  %p11199_p4 = scmp.lt.s32.totalorder %s16474_s11, %s11197_s25 }
 0x7b0   : > { %p11194_p12 = pnand %p11193_p0, %p11461_p7  ;;  %p11200_p5 = scmp.lt.s32.totalorder %s11198_s28, %s11192_s21 }
 0x7b1   : > { %s16471_s30 = scalar_lea.hbm %s17905_s27, %s8183_s8 }
 0x7b2   : > { %p11195_p2 = pneg %p11194_p12  ;;  %p11201_p11 = por %p11200_p5, %p11199_p4 }
 0x7b4   : > { %p11202_p8 = pnand %p11201_p11, %p11195_p2 }
 0x7b6   : > { %11205 = shalt.err (!%p11202_p8)
}
 0x7b7   : > { %s11206_s24 = scalar_lea.hbm %s16471_s30, 2048  ;;  %s11210_s26 = scalar_lea.hbm %s17905_s27, 4096 }
 0x7b8   : > { %p11207_p10 = scmp.ne.s32.totalorder %s16471_s30, %s11206_s24  ;;  %p11211_p6 = scmp.lt.s32.totalorder %s16471_s30, %s17905_s27 }
 0x7b9   : > { %p11212_p1 = scmp.lt.s32.totalorder %s11210_s26, %s11206_s24 }
 0x7ba   : > { %p11208_p13 = pnand %p11207_p10, %p11461_p7 }
 0x7bb   : > { %p11213_p0 = por %p11212_p1, %p11211_p6 }
 0x7bc   : > { %p11209_p3 = pneg %p11208_p13 }
 0x7be   : > { %p11214_p12 = pnand %p11213_p0, %p11209_p3 }
 0x7c0   : > { %11217 = shalt.err (!%p11214_p12)
}
 0x7c1   : > { %s11340_s29 = smov 128   ;;  %s11341_s23 = smov 8  }
 0x7c2   : > { %10792 = dma.vmem_to_hbm [thread:$0]  (%p11461_p7), %s16474_s11, 2048, %s16471_s30, %s16478_s18, %s11340_s29, %s11340_s29, %s11341_s23  }
 0x7c3 PF: > { %s17906_s8 = sld [smem:[#allocation21_spill]]  ;;  %p10822_p2 = scmp.ge.s32.totalorder %s11326_s17, 2 }
 0x7c5   : > { %p10812_p4 = pnand %p10822_p2, %p11466_p9 }
 0x7c7   : > { %p10813_p5 = pneg %p10812_p4 }
 0x7c9   : > { %s7867_s16 = sand.u32 1, %s17906_s8  }
 0x7ca   : > { %s7868_s21 = scalar_lea.sflag [#allocation7], %s7867_s16 }
 0x7cb   : > { %11281 = dma.done.wait (%p10813_p5), %s7868_s21, 2048  }
 0x7cc   : > { %11283 = vsyncadd (%p10813_p5), %s7868_s21, 4294965248  ;;  %s32_s17 = sadd.s32 1, %s11326_s17   ;;  %s17908_s14 = sld [smem:[#allocation22_spill]] }
 0x7cd   : > { %p29_p11 = scmp.ge.s32.totalorder %s32_s17, 6   ;;  %s17909_s19 = sld [smem:[#allocation25_spill]] }
 0x7ce   : > { %s17910_s16 = sld [smem:[#allocation26_spill]]  ;;  %s17911_s30 = smov %s11290_s9 }
 0x7cf   : > { %s17912_s9 = smov %s11294_s10  ;;  %s17913_s10 = smov %s11546_s3 }
 0x7d0   : > { %s17914_s11 = smov %s11302_s12  ;;  %s17915_s12 = smov %s11306_s0 }
 0x7d1   : > { %s17916_s0 = smov %s11537_s20  ;;  %s17917_s13 = smov %s11318_s15 }
 0x7d2   :  { %31 = sbr.rel (!%p29_p11) target bundleno = 23 (0x17), region = 132 }
 0x7d3   : > { %s17918_s15 = smov %s17909_s19 }
 0x7d7   :  { %7873 = vsyncpa [#allocation6], 1 }
 0x7d8   :  { %7875 = vsyncpa [#allocation6 + $0x1], 1 }
 0x7d9   :  { %7876 = vsyncpa [#allocation9], 1 }
 0x7da   :  { %7878 = vsyncpa [#allocation9 + $0x1], 1 }
 0x7db   :  { %7879 = vsyncpa [#allocation12], 1 }
 0x7dc   :  { %7880 = vsyncpa [#allocation7], 1 }
 0x7dd   :  { %7882 = vsyncpa [#allocation7 + $0x1], 1 }

</bundles_post_ra>
